<compile_context>
chip_gen: v7x
topology: tpu7x:2x2x1
jax: 0.10.0
libtpu: 0.0.40
codegen_flags: <defaults>
</compile_context>

<pallas_src>
import jax
import jax.numpy as jnp
from jax import lax
from jax.experimental import pallas as pl
from jax.experimental.pallas import tpu as pltpu


# ---------------------------------------------------------------------------
# bilinear (align_corners=False) interpolation matrices, matching PyTorch
# ---------------------------------------------------------------------------
def _resize_matrix(out_n, in_n):
    d = jnp.arange(out_n, dtype=jnp.float32)
    src = jnp.maximum((d + 0.5) * (in_n / out_n) - 0.5, 0.0)
    i0f = jnp.floor(src)
    lam = src - i0f
    i0 = jnp.clip(i0f.astype(jnp.int32), 0, in_n - 1)
    i1 = jnp.clip(i0 + 1, 0, in_n - 1)
    m0 = jax.nn.one_hot(i0, in_n, dtype=jnp.float32) * (1.0 - lam)[:, None]
    m1 = jax.nn.one_hot(i1, in_n, dtype=jnp.float32) * lam[:, None]
    return m0 + m1                                   # (out_n, in_n)


def _resize2d_matrix(out_hw, in_hw):
    rh = _resize_matrix(out_hw[0], in_hw[0])
    rw = _resize_matrix(out_hw[1], in_hw[1])
    # pixel index = h * W + w (row-major), so the 2-D operator is kron(Rh, Rw)
    return jnp.kron(rh, rw)                          # (Ho*Wo, Hi*Wi)


# ---------------------------------------------------------------------------
# The fused kernel (one batch element per grid step)
# ---------------------------------------------------------------------------
def _bridge_kernel(scal_ref,
                   e1_ref, e2_ref, e3_ref, e4_ref,
                   wp1_ref, wp2_ref, wp3_ref, wp4_ref, bpre_ref,
                   r_up2_ref, r_up3_ref, r_up4_ref,
                   wsp_ref, wfc1_ref, bfc1_ref, wfc2_ref, vec_ref, wsm_ref,
                   r_dn2_ref, r_dn3_ref, r_dn4_ref,
                   o1_ref, o2_ref, o3_ref, o4_ref):
    f32 = jnp.float32
    _, H, W, C = o1_ref.shape
    HW = H * W

    # learned fusion weights (relu6 + normalize) and spatial-attn conv bias (SMEM)
    w0 = jnp.clip(scal_ref[0], 0.0, 6.0)
    w1 = jnp.clip(scal_ref[1], 0.0, 6.0)
    w2 = jnp.clip(scal_ref[2], 0.0, 6.0)
    w3 = jnp.clip(scal_ref[3], 0.0, 6.0)
    inv = 1.0 / (w0 + w1 + w2 + w3 + 1e-8)
    b_sp = scal_ref[4]

    def pre(e_ref, w_ref, b_row):
        # 1x1 conv as a single 2D MXU matmul: (Hi*Wi, Ci) @ (Ci, C)
        _, hi, wi, ci = e_ref.shape
        x = e_ref[0].reshape(hi * wi, ci)
        return jnp.dot(x, w_ref[...], preferred_element_type=f32) + b_row

    z1 = pre(e1_ref, wp1_ref, bpre_ref[0:1])                     # (H*W, C)
    z2 = pre(e2_ref, wp2_ref, bpre_ref[1:2])
    z3 = pre(e3_ref, wp3_ref, bpre_ref[2:3])
    z4 = pre(e4_ref, wp4_ref, bpre_ref[3:4])

    # bilinear upsample to (H, W): interpolation-matrix matmuls (e1 is identity)
    up2 = jnp.dot(r_up2_ref[...], z2, preferred_element_type=f32)
    up3 = jnp.dot(r_up3_ref[...], z3, preferred_element_type=f32)
    up4 = jnp.dot(r_up4_ref[...], z4, preferred_element_type=f32)

    fused = ((w0 * inv) * z1 + (w1 * inv) * up2
             + (w2 * inv) * up3 + (w3 * inv) * up4)              # (H*W, C)

    def conv3x3(flat, w_ref):
        # flat: (H*W, C); w_ref: (9, C, Cout), taps ordered (kh, kw) row-major.
        # zero-padded SAME conv as 9 accumulated tap matmuls (no lane concat,
        # no 9x im2col intermediate).
        x3 = flat.reshape(H, W, C)
        zc = jnp.zeros((H, 1, C), f32)
        zr = jnp.zeros((1, W + 2, C), f32)
        xp = jnp.concatenate([zc, x3, zc], axis=1)
        xp = jnp.concatenate([zr, xp, zr], axis=0)               # (H+2, W+2, C)
        cout = w_ref.shape[2]
        acc = jnp.zeros((HW, cout), f32)
        t = 0
        for kh in range(3):
            for kw in range(3):
                tap = xp[kh:kh + H, kw:kw + W, :].reshape(HW, C)
                acc = acc + jnp.dot(tap, w_ref[t],
                                    preferred_element_type=f32)
                t += 1
        return acc                                               # (H*W, Cout)

    # ---- DetailAttention ----
    ch = jnp.mean(fused, axis=0, keepdims=True)                  # (1, C)
    h1 = jnp.maximum(
        jnp.dot(ch, wfc1_ref[...], preferred_element_type=f32) + bfc1_ref[...],
        0.0)                                                     # (1, Chid)
    ca = jax.nn.sigmoid(
        jnp.dot(h1, wfc2_ref[...], preferred_element_type=f32) + vec_ref[0:1])

    sa = jax.nn.sigmoid(conv3x3(fused, wsp_ref) + b_sp)          # (H*W, 1)

    attn = ca * fused + sa * fused                               # (H*W, C)
    refined = fused * attn
    y1 = refined * vec_ref[1:2] + vec_ref[2:3]                   # BN1 (eval)

    # ---- smooth: 3x3 conv (+ folded bias/BN) + ReLU6 ----
    y2 = conv3x3(y1, wsm_ref)
    out_full = jnp.clip(y2 * vec_ref[3:4] + vec_ref[4:5], 0.0, 6.0)

    # ---- the four output resolutions ----
    o1_ref[0] = out_full.reshape(H, W, C)                        # identity resize
    d2 = jnp.dot(r_dn2_ref[...], out_full, preferred_element_type=f32)
    o2_ref[0] = d2.reshape(o2_ref.shape[1], o2_ref.shape[2], C)
    d3 = jnp.dot(r_dn3_ref[...], out_full, preferred_element_type=f32)
    o3_ref[0] = d3.reshape(o3_ref.shape[1], o3_ref.shape[2], C)
    d4 = jnp.dot(r_dn4_ref[...], out_full, preferred_element_type=f32)
    o4_ref[0] = d4.reshape(o4_ref.shape[1], o4_ref.shape[2], C)


# ---------------------------------------------------------------------------
# Wrapper: layout boundary glue + tiny parameter preprocessing
# ---------------------------------------------------------------------------
def bridge_forward(e1, e2, e3, e4, params):
    es = (e1, e2, e3, e4)
    B = e1.shape[0]
    C = params['sm_w'].shape[0]                      # out_channels
    Chid = params['fc1_w'].shape[0]
    sizes = [(e.shape[2], e.shape[3]) for e in es]
    H, W = sizes[0]

    # NCHW -> NHWC (boundary layout glue only)
    es_nhwc = [jnp.transpose(e, (0, 2, 3, 1)).astype(jnp.float32) for e in es]

    # 1x1 conv weights -> (Ci, C), biases stacked
    wp = [jnp.transpose(params['pre_w'][i][:, :, 0, 0]).astype(jnp.float32)
          for i in range(4)]
    bpre = jnp.stack([params['pre_b'][i] for i in range(4)], 0).astype(jnp.float32)

    # bilinear interpolation matrices (up to e1 size, down to e2..e4 sizes)
    r_up = [_resize2d_matrix((H, W), sizes[i]) for i in (1, 2, 3)]
    r_dn = [_resize2d_matrix(sizes[i], (H, W)) for i in (1, 2, 3)]

    def conv3x3_to_taps(w_oihw):      # (O, Cin, 3, 3) -> (9, Cin, O), tap-major
        o, cin = w_oihw.shape[0], w_oihw.shape[1]
        return jnp.transpose(w_oihw, (2, 3, 1, 0)).reshape(
            9, cin, o).astype(jnp.float32)

    wsp = conv3x3_to_taps(params['sp_w'])            # (9, C, 1)
    wsm = conv3x3_to_taps(params['sm_w'])            # (9, C, C)

    wfc1 = jnp.transpose(params['fc1_w']).astype(jnp.float32)   # (C, Chid)
    bfc1 = params['fc1_b'].reshape(1, Chid).astype(jnp.float32)
    wfc2 = jnp.transpose(params['fc2_w']).astype(jnp.float32)   # (Chid, C)

    # fold BatchNorms (eval mode, eps=1e-5); smooth conv bias folded into BN2
    s1 = params['bn1_gamma'] / jnp.sqrt(params['bn1_var'] + 1e-5)
    b1 = params['bn1_beta'] - params['bn1_mean'] * s1
    s2 = params['bn2_gamma'] / jnp.sqrt(params['bn2_var'] + 1e-5)
    b2 = (params['sm_b'] - params['bn2_mean']) * s2 + params['bn2_beta']
    vec = jnp.stack([params['fc2_b'], s1, b1, s2, b2], 0).astype(jnp.float32)

    scal = jnp.concatenate([params['fuse_w'].astype(jnp.float32),
                            params['sp_b'].astype(jnp.float32)], axis=0)  # (5,)

    def full_spec(a):
        nd = a.ndim
        return pl.BlockSpec(a.shape, lambda b, _nd=nd: (0,) * _nd)

    def batch_spec(a):
        return pl.BlockSpec((1,) + a.shape[1:], lambda b: (b, 0, 0, 0))

    in_specs = ([pl.BlockSpec(memory_space=pltpu.MemorySpace.SMEM)]
                + [batch_spec(a) for a in es_nhwc]
                + [full_spec(a) for a in wp] + [full_spec(bpre)]
                + [full_spec(a) for a in r_up]
                + [full_spec(wsp), full_spec(wfc1), full_spec(bfc1),
                   full_spec(wfc2), full_spec(vec), full_spec(wsm)]
                + [full_spec(a) for a in r_dn])

    out_shapes = [jax.ShapeDtypeStruct((B, h, w, C), jnp.float32)
                  for (h, w) in sizes]
    out_specs = [pl.BlockSpec((1, h, w, C), lambda b: (b, 0, 0, 0))
                 for (h, w) in sizes]

    outs = pl.pallas_call(
        _bridge_kernel,
        grid=(B,),
        in_specs=in_specs,
        out_specs=out_specs,
        out_shape=out_shapes,
        compiler_params=pltpu.CompilerParams(
            dimension_semantics=("parallel",),
            vmem_limit_bytes=32 * 1024 * 1024),
    )(scal, *es_nhwc, *wp, bpre, *r_up, wsp, wfc1, bfc1, wfc2, vec, wsm, *r_dn)

    return [jnp.transpose(o, (0, 3, 1, 2)) for o in outs]        # back to NCHW


# ---------------------------------------------------------------------------
# Pure-JAX reference (mirrors the PyTorch forward) for verification
# ---------------------------------------------------------------------------
def _bilinear_resize_nchw(x, out_h, out_w):
    def idx(out_n, in_n):
        d = jnp.arange(out_n, dtype=jnp.float32)
        src = jnp.maximum((d + 0.5) * (in_n / out_n) - 0.5, 0.0)
        i0f = jnp.floor(src)
        lam = src - i0f
        i0 = jnp.clip(i0f.astype(jnp.int32), 0, in_n - 1)
        i1 = jnp.clip(i0 + 1, 0, in_n - 1)
        return i0, i1, lam

    i0, i1, lh = idx(out_h, x.shape[2])
    j0, j1, lw = idx(out_w, x.shape[3])
    xh = (jnp.take(x, i0, axis=2) * (1.0 - lh)[None, None, :, None]
          + jnp.take(x, i1, axis=2) * lh[None, None, :, None])
    return (jnp.take(xh, j0, axis=3) * (1.0 - lw)[None, None, None, :]
            + jnp.take(xh, j1, axis=3) * lw[None, None, None, :])


def _reference(es, p):
    HI = lax.Precision.HIGHEST
    dn = ('NCHW', 'OIHW', 'NCHW')
    H, W = es[0].shape[2], es[0].shape[3]

    pres = []
    for i, e in enumerate(es):
        w = p['pre_w'][i][:, :, 0, 0]
        z = (jnp.einsum('oc,bchw->bohw', w, e.astype(jnp.float32), precision=HI)
             + p['pre_b'][i][None, :, None, None])
        pres.append(_bilinear_resize_nchw(z, H, W))

    wts = jnp.clip(p['fuse_w'], 0.0, 6.0)
    fw = wts / (jnp.sum(wts) + 1e-8)
    fused = fw[0] * pres[0] + fw[1] * pres[1] + fw[2] * pres[2] + fw[3] * pres[3]

    # DetailAttention
    ch = jnp.mean(fused, axis=(2, 3))
    h1 = jax.nn.relu(jnp.dot(ch, p['fc1_w'].T, precision=HI) + p['fc1_b'])
    ca = jax.nn.sigmoid(jnp.dot(h1, p['fc2_w'].T, precision=HI) + p['fc2_b'])
    sa = lax.conv_general_dilated(fused, p['sp_w'], (1, 1), 'SAME',
                                  dimension_numbers=dn, precision=HI)
    sa = jax.nn.sigmoid(sa + p['sp_b'][None, :, None, None])
    attn = ca[:, :, None, None] * fused + sa * fused
    refined = fused * attn
    s1 = p['bn1_gamma'] / jnp.sqrt(p['bn1_var'] + 1e-5)
    y = (refined * s1[None, :, None, None]
         + (p['bn1_beta'] - p['bn1_mean'] * s1)[None, :, None, None])

    # smooth
    y = (lax.conv_general_dilated(y, p['sm_w'], (1, 1), 'SAME',
                                  dimension_numbers=dn, precision=HI)
         + p['sm_b'][None, :, None, None])
    s2 = p['bn2_gamma'] / jnp.sqrt(p['bn2_var'] + 1e-5)
    y = (y * s2[None, :, None, None]
         + (p['bn2_beta'] - p['bn2_mean'] * s2)[None, :, None, None])
    y = jnp.clip(y, 0.0, 6.0)

    return [_bilinear_resize_nchw(y, e.shape[2], e.shape[3]) for e in es]


if __name__ == "__main__":
    key = jax.random.PRNGKey(0)
    B = 2
    C = 64                                  # out_channels (module default)
    Chid = C // 16                          # DetailAttention reduction=16
    in_ch = (8, 16, 32, 64)
    sizes = ((16, 16), (8, 8), (4, 4), (2, 2))

    keys = jax.random.split(key, 24)
    ki = iter(keys)

    es = [jax.random.normal(next(ki), (B, in_ch[i], sizes[i][0], sizes[i][1]),
                            jnp.float32) for i in range(4)]

    ar = jnp.arange(C, dtype=jnp.float32) / C
    params = {
        'fuse_w': jnp.ones((4,), jnp.float32),
        'pre_w': [(0.5 / jnp.sqrt(in_ch[i]))
                  * jax.random.normal(next(ki), (C, in_ch[i], 1, 1), jnp.float32)
                  for i in range(4)],
        'pre_b': [0.1 * jax.random.normal(next(ki), (C,), jnp.float32)
                  for _ in range(4)],
        'fc1_w': 0.3 * jax.random.normal(next(ki), (Chid, C), jnp.float32),
        'fc1_b': 0.1 * jax.random.normal(next(ki), (Chid,), jnp.float32),
        'fc2_w': 0.5 * jax.random.normal(next(ki), (C, Chid), jnp.float32),
        'fc2_b': 0.1 * jax.random.normal(next(ki), (C,), jnp.float32),
        'sp_w': 0.05 * jax.random.normal(next(ki), (1, C, 3, 3), jnp.float32),
        'sp_b': 0.1 * jnp.ones((1,), jnp.float32),
        'bn1_gamma': 1.0 + 0.05 * ar,
        'bn1_beta': 0.02 * ar - 0.01,
        'bn1_mean': 0.05 * jax.random.normal(next(ki), (C,), jnp.float32),
        'bn1_var': 1.0 + 0.1 * ar,
        'sm_w': 0.05 * jax.random.normal(next(ki), (C, C, 3, 3), jnp.float32),
        'sm_b': 0.1 * jax.random.normal(next(ki), (C,), jnp.float32),
        'bn2_gamma': 1.0 + 0.05 * ar,
        'bn2_beta': 0.02 * ar,
        'bn2_mean': 0.05 * jax.random.normal(next(ki), (C,), jnp.float32),
        'bn2_var': 1.0 + 0.1 * ar,
    }

    outs = bridge_forward(es[0], es[1], es[2], es[3], params)
    outs = jax.block_until_ready(outs)

    refs = _reference(es, params)
    for i in range(4):
        assert outs[i].shape == (B, C, sizes[i][0], sizes[i][1]), outs[i].shape
        err = float(jnp.max(jnp.abs(outs[i] - refs[i])))
        assert err < 5e-2, f"output {i}: max abs err {err}"
    print("KERNEL_OK")
</pallas_src>

<mosaic_0001>
module attributes {stable_mosaic.version = 11 : i64} {
  func.func @_bridge_kernel(%arg0: i32, %arg1: memref<5xf32, #tpu.memory_space<smem>>, %arg2: memref<1x16x16x8xf32, #tpu.memory_space<vmem>>, %arg3: memref<1x8x8x16xf32, #tpu.memory_space<vmem>>, %arg4: memref<1x4x4x32xf32, #tpu.memory_space<vmem>>, %arg5: memref<1x2x2x64xf32, #tpu.memory_space<vmem>>, %arg6: memref<8x64xf32, #tpu.memory_space<vmem>>, %arg7: memref<16x64xf32, #tpu.memory_space<vmem>>, %arg8: memref<32x64xf32, #tpu.memory_space<vmem>>, %arg9: memref<64x64xf32, #tpu.memory_space<vmem>>, %arg10: memref<4x64xf32, #tpu.memory_space<vmem>>, %arg11: memref<256x64xf32, #tpu.memory_space<vmem>>, %arg12: memref<256x16xf32, #tpu.memory_space<vmem>>, %arg13: memref<256x4xf32, #tpu.memory_space<vmem>>, %arg14: memref<9x64x1xf32, #tpu.memory_space<vmem>>, %arg15: memref<64x4xf32, #tpu.memory_space<vmem>>, %arg16: memref<1x4xf32, #tpu.memory_space<vmem>>, %arg17: memref<4x64xf32, #tpu.memory_space<vmem>>, %arg18: memref<5x64xf32, #tpu.memory_space<vmem>>, %arg19: memref<9x64x64xf32, #tpu.memory_space<vmem>>, %arg20: memref<64x256xf32, #tpu.memory_space<vmem>>, %arg21: memref<16x256xf32, #tpu.memory_space<vmem>>, %arg22: memref<4x256xf32, #tpu.memory_space<vmem>>, %arg23: memref<1x16x16x64xf32, #tpu.memory_space<vmem>>, %arg24: memref<1x8x8x64xf32, #tpu.memory_space<vmem>>, %arg25: memref<1x4x4x64xf32, #tpu.memory_space<vmem>>, %arg26: memref<1x2x2x64xf32, #tpu.memory_space<vmem>>) attributes {dimension_semantics = [#tpu.dimension_semantics<parallel>], iteration_bounds = array<i64: 2>, scalar_prefetch = 0 : i64, scratch_operands = 0 : i64, tpu.core_type = #tpu.core_type<tc>, window_params = [{transform_indices = @transform_0, window_bounds = array<i64: 5>}, {transform_indices = @transform_1, window_bounds = array<i64: 1, 16, 16, 8>}, {transform_indices = @transform_2, window_bounds = array<i64: 1, 8, 8, 16>}, {transform_indices = @transform_3, window_bounds = array<i64: 1, 4, 4, 32>}, {transform_indices = @transform_4, window_bounds = array<i64: 1, 2, 2, 64>}, {pipeline_mode = #tpu.pipeline_mode<synchronous>, transform_indices = @transform_5, window_bounds = array<i64: 8, 64>}, {pipeline_mode = #tpu.pipeline_mode<synchronous>, transform_indices = @transform_6, window_bounds = array<i64: 16, 64>}, {pipeline_mode = #tpu.pipeline_mode<synchronous>, transform_indices = @transform_7, window_bounds = array<i64: 32, 64>}, {pipeline_mode = #tpu.pipeline_mode<synchronous>, transform_indices = @transform_8, window_bounds = array<i64: 64, 64>}, {pipeline_mode = #tpu.pipeline_mode<synchronous>, transform_indices = @transform_9, window_bounds = array<i64: 4, 64>}, {pipeline_mode = #tpu.pipeline_mode<synchronous>, transform_indices = @transform_10, window_bounds = array<i64: 256, 64>}, {pipeline_mode = #tpu.pipeline_mode<synchronous>, transform_indices = @transform_11, window_bounds = array<i64: 256, 16>}, {pipeline_mode = #tpu.pipeline_mode<synchronous>, transform_indices = @transform_12, window_bounds = array<i64: 256, 4>}, {pipeline_mode = #tpu.pipeline_mode<synchronous>, transform_indices = @transform_13, window_bounds = array<i64: 9, 64, 1>}, {pipeline_mode = #tpu.pipeline_mode<synchronous>, transform_indices = @transform_14, window_bounds = array<i64: 64, 4>}, {pipeline_mode = #tpu.pipeline_mode<synchronous>, transform_indices = @transform_15, window_bounds = array<i64: 1, 4>}, {pipeline_mode = #tpu.pipeline_mode<synchronous>, transform_indices = @transform_16, window_bounds = array<i64: 4, 64>}, {pipeline_mode = #tpu.pipeline_mode<synchronous>, transform_indices = @transform_17, window_bounds = array<i64: 5, 64>}, {pipeline_mode = #tpu.pipeline_mode<synchronous>, transform_indices = @transform_18, window_bounds = array<i64: 9, 64, 64>}, {pipeline_mode = #tpu.pipeline_mode<synchronous>, transform_indices = @transform_19, window_bounds = array<i64: 64, 256>}, {pipeline_mode = #tpu.pipeline_mode<synchronous>, transform_indices = @transform_20, window_bounds = array<i64: 16, 256>}, {pipeline_mode = #tpu.pipeline_mode<synchronous>, transform_indices = @transform_21, window_bounds = array<i64: 4, 256>}, {transform_indices = @transform_22, window_bounds = array<i64: 1, 16, 16, 64>}, {transform_indices = @transform_23, window_bounds = array<i64: 1, 8, 8, 64>}, {transform_indices = @transform_24, window_bounds = array<i64: 1, 4, 4, 64>}, {transform_indices = @transform_25, window_bounds = array<i64: 1, 2, 2, 64>}]} {
    %c0 = arith.constant 0 : index
    %0 = memref.load %arg1[%c0] : memref<5xf32, #tpu.memory_space<smem>>
    %cst = arith.constant 0.000000e+00 : f32
    %cst_0 = arith.constant 6.000000e+00 : f32
    %1 = arith.maximumf %cst, %0 : f32
    %2 = arith.minimumf %cst_0, %1 : f32
    %c1 = arith.constant 1 : index
    %3 = memref.load %arg1[%c1] : memref<5xf32, #tpu.memory_space<smem>>
    %cst_1 = arith.constant 0.000000e+00 : f32
    %cst_2 = arith.constant 6.000000e+00 : f32
    %4 = arith.maximumf %cst_1, %3 : f32
    %5 = arith.minimumf %cst_2, %4 : f32
    %c2 = arith.constant 2 : index
    %6 = memref.load %arg1[%c2] : memref<5xf32, #tpu.memory_space<smem>>
    %cst_3 = arith.constant 0.000000e+00 : f32
    %cst_4 = arith.constant 6.000000e+00 : f32
    %7 = arith.maximumf %cst_3, %6 : f32
    %8 = arith.minimumf %cst_4, %7 : f32
    %c3 = arith.constant 3 : index
    %9 = memref.load %arg1[%c3] : memref<5xf32, #tpu.memory_space<smem>>
    %cst_5 = arith.constant 0.000000e+00 : f32
    %cst_6 = arith.constant 6.000000e+00 : f32
    %10 = arith.maximumf %cst_5, %9 : f32
    %11 = arith.minimumf %cst_6, %10 : f32
    %12 = arith.addf %2, %5 : f32
    %13 = arith.addf %12, %8 : f32
    %14 = arith.addf %13, %11 : f32
    %cst_7 = arith.constant 9.99999993E-9 : f32
    %15 = arith.addf %14, %cst_7 : f32
    %cst_8 = arith.constant 1.000000e+00 : f32
    %16 = arith.divf %cst_8, %15 : f32
    %c4 = arith.constant 4 : index
    %17 = memref.load %arg1[%c4] : memref<5xf32, #tpu.memory_space<smem>>
    %c0_9 = arith.constant 0 : index
    %c0_10 = arith.constant 0 : index
    %18 = vector.load %arg10[%c0_9, %c0_10] : memref<4x64xf32, #tpu.memory_space<vmem>>, vector<1x64xf32>
    %c0_11 = arith.constant 0 : index
    %c0_12 = arith.constant 0 : index
    %c0_13 = arith.constant 0 : index
    %c0_14 = arith.constant 0 : index
    %19 = vector.load %arg2[%c0_11, %c0_12, %c0_13, %c0_14] : memref<1x16x16x8xf32, #tpu.memory_space<vmem>>, vector<1x16x16x8xf32>
    %20 = vector.shape_cast %19 : vector<1x16x16x8xf32> to vector<16x16x8xf32>
    %21 = vector.shape_cast %20 : vector<16x16x8xf32> to vector<256x8xf32>
    %c0_15 = arith.constant 0 : index
    %c0_16 = arith.constant 0 : index
    %22 = vector.load %arg6[%c0_15, %c0_16] : memref<8x64xf32, #tpu.memory_space<vmem>>, vector<8x64xf32>
    %cst_17 = arith.constant dense<0.000000e+00> : vector<256x64xf32>
    %23 = tpu.matmul %21, %22, %cst_17 {dimension_numbers = #tpu.dot_dimension_numbers<[1], [0], [0], [1], [0, 0, 1, 1], [], []>} : vector<256x8xf32>, vector<8x64xf32>, vector<256x64xf32> -> vector<256x64xf32>
    %24 = vector.broadcast %18 : vector<1x64xf32> to vector<256x64xf32>
    %25 = arith.addf %23, %24 : vector<256x64xf32>
    %c1_18 = arith.constant 1 : index
    %c0_19 = arith.constant 0 : index
    %26 = vector.load %arg10[%c1_18, %c0_19] : memref<4x64xf32, #tpu.memory_space<vmem>>, vector<1x64xf32>
    %c0_20 = arith.constant 0 : index
    %c0_21 = arith.constant 0 : index
    %c0_22 = arith.constant 0 : index
    %c0_23 = arith.constant 0 : index
    %27 = vector.load %arg3[%c0_20, %c0_21, %c0_22, %c0_23] : memref<1x8x8x16xf32, #tpu.memory_space<vmem>>, vector<1x8x8x16xf32>
    %28 = vector.shape_cast %27 : vector<1x8x8x16xf32> to vector<8x8x16xf32>
    %29 = vector.shape_cast %28 : vector<8x8x16xf32> to vector<64x16xf32>
    %c0_24 = arith.constant 0 : index
    %c0_25 = arith.constant 0 : index
    %30 = vector.load %arg7[%c0_24, %c0_25] : memref<16x64xf32, #tpu.memory_space<vmem>>, vector<16x64xf32>
    %cst_26 = arith.constant dense<0.000000e+00> : vector<64x64xf32>
    %31 = tpu.matmul %29, %30, %cst_26 {dimension_numbers = #tpu.dot_dimension_numbers<[1], [0], [0], [1], [0, 0, 1, 1], [], []>} : vector<64x16xf32>, vector<16x64xf32>, vector<64x64xf32> -> vector<64x64xf32>
    %32 = vector.broadcast %26 : vector<1x64xf32> to vector<64x64xf32>
    %33 = arith.addf %31, %32 : vector<64x64xf32>
    %c2_27 = arith.constant 2 : index
    %c0_28 = arith.constant 0 : index
    %34 = vector.load %arg10[%c2_27, %c0_28] : memref<4x64xf32, #tpu.memory_space<vmem>>, vector<1x64xf32>
    %c0_29 = arith.constant 0 : index
    %c0_30 = arith.constant 0 : index
    %c0_31 = arith.constant 0 : index
    %c0_32 = arith.constant 0 : index
    %35 = vector.load %arg4[%c0_29, %c0_30, %c0_31, %c0_32] : memref<1x4x4x32xf32, #tpu.memory_space<vmem>>, vector<1x4x4x32xf32>
    %36 = vector.shape_cast %35 : vector<1x4x4x32xf32> to vector<4x4x32xf32>
    %37 = vector.shape_cast %36 : vector<4x4x32xf32> to vector<16x32xf32>
    %c0_33 = arith.constant 0 : index
    %c0_34 = arith.constant 0 : index
    %38 = vector.load %arg8[%c0_33, %c0_34] : memref<32x64xf32, #tpu.memory_space<vmem>>, vector<32x64xf32>
    %cst_35 = arith.constant dense<0.000000e+00> : vector<16x64xf32>
    %39 = tpu.matmul %37, %38, %cst_35 {dimension_numbers = #tpu.dot_dimension_numbers<[1], [0], [0], [1], [0, 0, 1, 1], [], []>} : vector<16x32xf32>, vector<32x64xf32>, vector<16x64xf32> -> vector<16x64xf32>
    %40 = vector.broadcast %34 : vector<1x64xf32> to vector<16x64xf32>
    %41 = arith.addf %39, %40 : vector<16x64xf32>
    %c3_36 = arith.constant 3 : index
    %c0_37 = arith.constant 0 : index
    %42 = vector.load %arg10[%c3_36, %c0_37] : memref<4x64xf32, #tpu.memory_space<vmem>>, vector<1x64xf32>
    %c0_38 = arith.constant 0 : index
    %c0_39 = arith.constant 0 : index
    %c0_40 = arith.constant 0 : index
    %c0_41 = arith.constant 0 : index
    %43 = vector.load %arg5[%c0_38, %c0_39, %c0_40, %c0_41] : memref<1x2x2x64xf32, #tpu.memory_space<vmem>>, vector<1x2x2x64xf32>
    %44 = vector.shape_cast %43 : vector<1x2x2x64xf32> to vector<2x2x64xf32>
    %45 = vector.shape_cast %44 : vector<2x2x64xf32> to vector<4x64xf32>
    %c0_42 = arith.constant 0 : index
    %c0_43 = arith.constant 0 : index
    %46 = vector.load %arg9[%c0_42, %c0_43] : memref<64x64xf32, #tpu.memory_space<vmem>>, vector<64x64xf32>
    %cst_44 = arith.constant dense<0.000000e+00> : vector<4x64xf32>
    %47 = tpu.matmul %45, %46, %cst_44 {dimension_numbers = #tpu.dot_dimension_numbers<[1], [0], [0], [1], [0, 0, 1, 1], [], []>} : vector<4x64xf32>, vector<64x64xf32>, vector<4x64xf32> -> vector<4x64xf32>
    %48 = vector.broadcast %42 : vector<1x64xf32> to vector<4x64xf32>
    %49 = arith.addf %47, %48 : vector<4x64xf32>
    %c0_45 = arith.constant 0 : index
    %c0_46 = arith.constant 0 : index
    %50 = vector.load %arg11[%c0_45, %c0_46] : memref<256x64xf32, #tpu.memory_space<vmem>>, vector<256x64xf32>
    %cst_47 = arith.constant dense<0.000000e+00> : vector<256x64xf32>
    %51 = tpu.matmul %50, %33, %cst_47 {dimension_numbers = #tpu.dot_dimension_numbers<[1], [0], [0], [1], [0, 0, 1, 1], [], []>} : vector<256x64xf32>, vector<64x64xf32>, vector<256x64xf32> -> vector<256x64xf32>
    %c0_48 = arith.constant 0 : index
    %c0_49 = arith.constant 0 : index
    %52 = vector.load %arg12[%c0_48, %c0_49] : memref<256x16xf32, #tpu.memory_space<vmem>>, vector<256x16xf32>
    %cst_50 = arith.constant dense<0.000000e+00> : vector<256x64xf32>
    %53 = tpu.matmul %52, %41, %cst_50 {dimension_numbers = #tpu.dot_dimension_numbers<[1], [0], [0], [1], [0, 0, 1, 1], [], []>} : vector<256x16xf32>, vector<16x64xf32>, vector<256x64xf32> -> vector<256x64xf32>
    %c0_51 = arith.constant 0 : index
    %c0_52 = arith.constant 0 : index
    %54 = vector.load %arg13[%c0_51, %c0_52] : memref<256x4xf32, #tpu.memory_space<vmem>>, vector<256x4xf32>
    %cst_53 = arith.constant dense<0.000000e+00> : vector<256x64xf32>
    %55 = tpu.matmul %54, %49, %cst_53 {dimension_numbers = #tpu.dot_dimension_numbers<[1], [0], [0], [1], [0, 0, 1, 1], [], []>} : vector<256x4xf32>, vector<4x64xf32>, vector<256x64xf32> -> vector<256x64xf32>
    %56 = arith.mulf %2, %16 : f32
    %57 = vector.broadcast %56 : f32 to vector<256x64xf32>
    %58 = arith.mulf %57, %25 : vector<256x64xf32>
    %59 = arith.mulf %5, %16 : f32
    %60 = vector.broadcast %59 : f32 to vector<256x64xf32>
    %61 = arith.mulf %60, %51 : vector<256x64xf32>
    %62 = arith.addf %58, %61 : vector<256x64xf32>
    %63 = arith.mulf %8, %16 : f32
    %64 = vector.broadcast %63 : f32 to vector<256x64xf32>
    %65 = arith.mulf %64, %53 : vector<256x64xf32>
    %66 = arith.addf %62, %65 : vector<256x64xf32>
    %67 = arith.mulf %11, %16 : f32
    %68 = vector.broadcast %67 : f32 to vector<256x64xf32>
    %69 = arith.mulf %68, %55 : vector<256x64xf32>
    %70 = arith.addf %66, %69 : vector<256x64xf32>
    %cst_54 = arith.constant dense<0.000000e+00> : vector<64xf32>
    %71 = vector.multi_reduction <add>, %70, %cst_54 [0] : vector<256x64xf32> to vector<64xf32>
    %72 = vector.shape_cast %71 : vector<64xf32> to vector<1x64xf32>
    %cst_55 = arith.constant 2.560000e+02 : f32
    %73 = vector.broadcast %cst_55 : f32 to vector<1x64xf32>
    %74 = arith.divf %72, %73 : vector<1x64xf32>
    %c0_56 = arith.constant 0 : index
    %c0_57 = arith.constant 0 : index
    %75 = vector.load %arg15[%c0_56, %c0_57] : memref<64x4xf32, #tpu.memory_space<vmem>>, vector<64x4xf32>
    %cst_58 = arith.constant dense<0.000000e+00> : vector<1x4xf32>
    %76 = tpu.matmul %74, %75, %cst_58 {dimension_numbers = #tpu.dot_dimension_numbers<[1], [0], [0], [1], [0, 0, 1, 1], [], []>} : vector<1x64xf32>, vector<64x4xf32>, vector<1x4xf32> -> vector<1x4xf32>
    %c0_59 = arith.constant 0 : index
    %c0_60 = arith.constant 0 : index
    %77 = vector.load %arg16[%c0_59, %c0_60] : memref<1x4xf32, #tpu.memory_space<vmem>>, vector<1x4xf32>
    %78 = arith.addf %76, %77 : vector<1x4xf32>
    %cst_61 = arith.constant 0.000000e+00 : f32
    %79 = vector.broadcast %cst_61 : f32 to vector<1x4xf32>
    %80 = arith.maximumf %78, %79 : vector<1x4xf32>
    %c0_62 = arith.constant 0 : index
    %c0_63 = arith.constant 0 : index
    %81 = vector.load %arg17[%c0_62, %c0_63] : memref<4x64xf32, #tpu.memory_space<vmem>>, vector<4x64xf32>
    %cst_64 = arith.constant dense<0.000000e+00> : vector<1x64xf32>
    %82 = tpu.matmul %80, %81, %cst_64 {dimension_numbers = #tpu.dot_dimension_numbers<[1], [0], [0], [1], [0, 0, 1, 1], [], []>} : vector<1x4xf32>, vector<4x64xf32>, vector<1x64xf32> -> vector<1x64xf32>
    %c0_65 = arith.constant 0 : index
    %c0_66 = arith.constant 0 : index
    %83 = vector.load %arg18[%c0_65, %c0_66] : memref<5x64xf32, #tpu.memory_space<vmem>>, vector<1x64xf32>
    %84 = arith.addf %82, %83 : vector<1x64xf32>
    %85 = arith.negf %84 : vector<1x64xf32>
    %86 = math.exp %85 : vector<1x64xf32>
    %cst_67 = arith.constant 1.000000e+00 : f32
    %87 = vector.broadcast %cst_67 : f32 to vector<1x64xf32>
    %88 = arith.addf %87, %86 : vector<1x64xf32>
    %89 = arith.divf %87, %88 : vector<1x64xf32>
    %90 = vector.shape_cast %70 : vector<256x64xf32> to vector<16x16x64xf32>
    %cst_68 = arith.constant 0.000000e+00 : f32
    %91 = vector.broadcast %cst_68 : f32 to vector<16x1x64xf32>
    %cst_69 = arith.constant 0.000000e+00 : f32
    %92 = vector.broadcast %cst_69 : f32 to vector<1x18x64xf32>
    %93 = tpu.concatenate %91, %90, %91 in 1 : vector<16x1x64xf32>, vector<16x16x64xf32>, vector<16x1x64xf32> -> vector<16x18x64xf32>
    %94 = tpu.concatenate %92, %93, %92 in 0 : vector<1x18x64xf32>, vector<16x18x64xf32>, vector<1x18x64xf32> -> vector<18x18x64xf32>
    %cst_70 = arith.constant 0.000000e+00 : f32
    %95 = vector.broadcast %cst_70 : f32 to vector<256x1xf32>
    %96 = vector.extract_strided_slice %94 {offsets = [0, 0, 0], sizes = [16, 16, 64], strides = [1, 1, 1]} : vector<18x18x64xf32> to vector<16x16x64xf32>
    %97 = vector.shape_cast %96 : vector<16x16x64xf32> to vector<256x64xf32>
    %c0_71 = arith.constant 0 : index
    %c0_72 = arith.constant 0 : index
    %c0_73 = arith.constant 0 : index
    %98 = vector.load %arg14[%c0_71, %c0_72, %c0_73] : memref<9x64x1xf32, #tpu.memory_space<vmem>>, vector<1x64x1xf32>
    %99 = vector.shape_cast %98 : vector<1x64x1xf32> to vector<64x1xf32>
    %cst_74 = arith.constant dense<0.000000e+00> : vector<256x1xf32>
    %100 = tpu.matmul %97, %99, %cst_74 {dimension_numbers = #tpu.dot_dimension_numbers<[1], [0], [0], [1], [0, 0, 1, 1], [], []>} : vector<256x64xf32>, vector<64x1xf32>, vector<256x1xf32> -> vector<256x1xf32>
    %101 = arith.addf %95, %100 : vector<256x1xf32>
    %102 = vector.extract_strided_slice %94 {offsets = [0, 1, 0], sizes = [16, 16, 64], strides = [1, 1, 1]} : vector<18x18x64xf32> to vector<16x16x64xf32>
    %103 = vector.shape_cast %102 : vector<16x16x64xf32> to vector<256x64xf32>
    %c1_75 = arith.constant 1 : index
    %c0_76 = arith.constant 0 : index
    %c0_77 = arith.constant 0 : index
    %104 = vector.load %arg14[%c1_75, %c0_76, %c0_77] : memref<9x64x1xf32, #tpu.memory_space<vmem>>, vector<1x64x1xf32>
    %105 = vector.shape_cast %104 : vector<1x64x1xf32> to vector<64x1xf32>
    %cst_78 = arith.constant dense<0.000000e+00> : vector<256x1xf32>
    %106 = tpu.matmul %103, %105, %cst_78 {dimension_numbers = #tpu.dot_dimension_numbers<[1], [0], [0], [1], [0, 0, 1, 1], [], []>} : vector<256x64xf32>, vector<64x1xf32>, vector<256x1xf32> -> vector<256x1xf32>
    %107 = arith.addf %101, %106 : vector<256x1xf32>
    %108 = vector.extract_strided_slice %94 {offsets = [0, 2, 0], sizes = [16, 16, 64], strides = [1, 1, 1]} : vector<18x18x64xf32> to vector<16x16x64xf32>
    %109 = vector.shape_cast %108 : vector<16x16x64xf32> to vector<256x64xf32>
    %c2_79 = arith.constant 2 : index
    %c0_80 = arith.constant 0 : index
    %c0_81 = arith.constant 0 : index
    %110 = vector.load %arg14[%c2_79, %c0_80, %c0_81] : memref<9x64x1xf32, #tpu.memory_space<vmem>>, vector<1x64x1xf32>
    %111 = vector.shape_cast %110 : vector<1x64x1xf32> to vector<64x1xf32>
    %cst_82 = arith.constant dense<0.000000e+00> : vector<256x1xf32>
    %112 = tpu.matmul %109, %111, %cst_82 {dimension_numbers = #tpu.dot_dimension_numbers<[1], [0], [0], [1], [0, 0, 1, 1], [], []>} : vector<256x64xf32>, vector<64x1xf32>, vector<256x1xf32> -> vector<256x1xf32>
    %113 = arith.addf %107, %112 : vector<256x1xf32>
    %114 = vector.extract_strided_slice %94 {offsets = [1, 0, 0], sizes = [16, 16, 64], strides = [1, 1, 1]} : vector<18x18x64xf32> to vector<16x16x64xf32>
    %115 = vector.shape_cast %114 : vector<16x16x64xf32> to vector<256x64xf32>
    %c3_83 = arith.constant 3 : index
    %c0_84 = arith.constant 0 : index
    %c0_85 = arith.constant 0 : index
    %116 = vector.load %arg14[%c3_83, %c0_84, %c0_85] : memref<9x64x1xf32, #tpu.memory_space<vmem>>, vector<1x64x1xf32>
    %117 = vector.shape_cast %116 : vector<1x64x1xf32> to vector<64x1xf32>
    %cst_86 = arith.constant dense<0.000000e+00> : vector<256x1xf32>
    %118 = tpu.matmul %115, %117, %cst_86 {dimension_numbers = #tpu.dot_dimension_numbers<[1], [0], [0], [1], [0, 0, 1, 1], [], []>} : vector<256x64xf32>, vector<64x1xf32>, vector<256x1xf32> -> vector<256x1xf32>
    %119 = arith.addf %113, %118 : vector<256x1xf32>
    %120 = vector.extract_strided_slice %94 {offsets = [1, 1, 0], sizes = [16, 16, 64], strides = [1, 1, 1]} : vector<18x18x64xf32> to vector<16x16x64xf32>
    %121 = vector.shape_cast %120 : vector<16x16x64xf32> to vector<256x64xf32>
    %c4_87 = arith.constant 4 : index
    %c0_88 = arith.constant 0 : index
    %c0_89 = arith.constant 0 : index
    %122 = vector.load %arg14[%c4_87, %c0_88, %c0_89] : memref<9x64x1xf32, #tpu.memory_space<vmem>>, vector<1x64x1xf32>
    %123 = vector.shape_cast %122 : vector<1x64x1xf32> to vector<64x1xf32>
    %cst_90 = arith.constant dense<0.000000e+00> : vector<256x1xf32>
    %124 = tpu.matmul %121, %123, %cst_90 {dimension_numbers = #tpu.dot_dimension_numbers<[1], [0], [0], [1], [0, 0, 1, 1], [], []>} : vector<256x64xf32>, vector<64x1xf32>, vector<256x1xf32> -> vector<256x1xf32>
    %125 = arith.addf %119, %124 : vector<256x1xf32>
    %126 = vector.extract_strided_slice %94 {offsets = [1, 2, 0], sizes = [16, 16, 64], strides = [1, 1, 1]} : vector<18x18x64xf32> to vector<16x16x64xf32>
    %127 = vector.shape_cast %126 : vector<16x16x64xf32> to vector<256x64xf32>
    %c5 = arith.constant 5 : index
    %c0_91 = arith.constant 0 : index
    %c0_92 = arith.constant 0 : index
    %128 = vector.load %arg14[%c5, %c0_91, %c0_92] : memref<9x64x1xf32, #tpu.memory_space<vmem>>, vector<1x64x1xf32>
    %129 = vector.shape_cast %128 : vector<1x64x1xf32> to vector<64x1xf32>
    %cst_93 = arith.constant dense<0.000000e+00> : vector<256x1xf32>
    %130 = tpu.matmul %127, %129, %cst_93 {dimension_numbers = #tpu.dot_dimension_numbers<[1], [0], [0], [1], [0, 0, 1, 1], [], []>} : vector<256x64xf32>, vector<64x1xf32>, vector<256x1xf32> -> vector<256x1xf32>
    %131 = arith.addf %125, %130 : vector<256x1xf32>
    %132 = vector.extract_strided_slice %94 {offsets = [2, 0, 0], sizes = [16, 16, 64], strides = [1, 1, 1]} : vector<18x18x64xf32> to vector<16x16x64xf32>
    %133 = vector.shape_cast %132 : vector<16x16x64xf32> to vector<256x64xf32>
    %c6 = arith.constant 6 : index
    %c0_94 = arith.constant 0 : index
    %c0_95 = arith.constant 0 : index
    %134 = vector.load %arg14[%c6, %c0_94, %c0_95] : memref<9x64x1xf32, #tpu.memory_space<vmem>>, vector<1x64x1xf32>
    %135 = vector.shape_cast %134 : vector<1x64x1xf32> to vector<64x1xf32>
    %cst_96 = arith.constant dense<0.000000e+00> : vector<256x1xf32>
    %136 = tpu.matmul %133, %135, %cst_96 {dimension_numbers = #tpu.dot_dimension_numbers<[1], [0], [0], [1], [0, 0, 1, 1], [], []>} : vector<256x64xf32>, vector<64x1xf32>, vector<256x1xf32> -> vector<256x1xf32>
    %137 = arith.addf %131, %136 : vector<256x1xf32>
    %138 = vector.extract_strided_slice %94 {offsets = [2, 1, 0], sizes = [16, 16, 64], strides = [1, 1, 1]} : vector<18x18x64xf32> to vector<16x16x64xf32>
    %139 = vector.shape_cast %138 : vector<16x16x64xf32> to vector<256x64xf32>
    %c7 = arith.constant 7 : index
    %c0_97 = arith.constant 0 : index
    %c0_98 = arith.constant 0 : index
    %140 = vector.load %arg14[%c7, %c0_97, %c0_98] : memref<9x64x1xf32, #tpu.memory_space<vmem>>, vector<1x64x1xf32>
    %141 = vector.shape_cast %140 : vector<1x64x1xf32> to vector<64x1xf32>
    %cst_99 = arith.constant dense<0.000000e+00> : vector<256x1xf32>
    %142 = tpu.matmul %139, %141, %cst_99 {dimension_numbers = #tpu.dot_dimension_numbers<[1], [0], [0], [1], [0, 0, 1, 1], [], []>} : vector<256x64xf32>, vector<64x1xf32>, vector<256x1xf32> -> vector<256x1xf32>
    %143 = arith.addf %137, %142 : vector<256x1xf32>
    %144 = vector.extract_strided_slice %94 {offsets = [2, 2, 0], sizes = [16, 16, 64], strides = [1, 1, 1]} : vector<18x18x64xf32> to vector<16x16x64xf32>
    %145 = vector.shape_cast %144 : vector<16x16x64xf32> to vector<256x64xf32>
    %c8 = arith.constant 8 : index
    %c0_100 = arith.constant 0 : index
    %c0_101 = arith.constant 0 : index
    %146 = vector.load %arg14[%c8, %c0_100, %c0_101] : memref<9x64x1xf32, #tpu.memory_space<vmem>>, vector<1x64x1xf32>
    %147 = vector.shape_cast %146 : vector<1x64x1xf32> to vector<64x1xf32>
    %cst_102 = arith.constant dense<0.000000e+00> : vector<256x1xf32>
    %148 = tpu.matmul %145, %147, %cst_102 {dimension_numbers = #tpu.dot_dimension_numbers<[1], [0], [0], [1], [0, 0, 1, 1], [], []>} : vector<256x64xf32>, vector<64x1xf32>, vector<256x1xf32> -> vector<256x1xf32>
    %149 = arith.addf %143, %148 : vector<256x1xf32>
    %150 = vector.broadcast %17 : f32 to vector<256x1xf32>
    %151 = arith.addf %149, %150 : vector<256x1xf32>
    %152 = arith.negf %151 : vector<256x1xf32>
    %153 = math.exp %152 : vector<256x1xf32>
    %cst_103 = arith.constant 1.000000e+00 : f32
    %154 = vector.broadcast %cst_103 : f32 to vector<256x1xf32>
    %155 = arith.addf %154, %153 : vector<256x1xf32>
    %156 = arith.divf %154, %155 : vector<256x1xf32>
    %157 = vector.broadcast %89 : vector<1x64xf32> to vector<256x64xf32>
    %158 = arith.mulf %157, %70 : vector<256x64xf32>
    %159 = vector.broadcast %156 : vector<256x1xf32> to vector<256x64xf32>
    %160 = arith.mulf %159, %70 : vector<256x64xf32>
    %161 = arith.addf %158, %160 : vector<256x64xf32>
    %162 = arith.mulf %70, %161 : vector<256x64xf32>
    %c1_104 = arith.constant 1 : index
    %c0_105 = arith.constant 0 : index
    %163 = vector.load %arg18[%c1_104, %c0_105] : memref<5x64xf32, #tpu.memory_space<vmem>>, vector<1x64xf32>
    %164 = vector.broadcast %163 : vector<1x64xf32> to vector<256x64xf32>
    %165 = arith.mulf %162, %164 : vector<256x64xf32>
    %c2_106 = arith.constant 2 : index
    %c0_107 = arith.constant 0 : index
    %166 = vector.load %arg18[%c2_106, %c0_107] : memref<5x64xf32, #tpu.memory_space<vmem>>, vector<1x64xf32>
    %167 = vector.broadcast %166 : vector<1x64xf32> to vector<256x64xf32>
    %168 = arith.addf %165, %167 : vector<256x64xf32>
    %169 = vector.shape_cast %168 : vector<256x64xf32> to vector<16x16x64xf32>
    %cst_108 = arith.constant 0.000000e+00 : f32
    %170 = vector.broadcast %cst_108 : f32 to vector<16x1x64xf32>
    %cst_109 = arith.constant 0.000000e+00 : f32
    %171 = vector.broadcast %cst_109 : f32 to vector<1x18x64xf32>
    %172 = tpu.concatenate %170, %169, %170 in 1 : vector<16x1x64xf32>, vector<16x16x64xf32>, vector<16x1x64xf32> -> vector<16x18x64xf32>
    %173 = tpu.concatenate %171, %172, %171 in 0 : vector<1x18x64xf32>, vector<16x18x64xf32>, vector<1x18x64xf32> -> vector<18x18x64xf32>
    %cst_110 = arith.constant 0.000000e+00 : f32
    %174 = vector.broadcast %cst_110 : f32 to vector<256x64xf32>
    %175 = vector.extract_strided_slice %173 {offsets = [0, 0, 0], sizes = [16, 16, 64], strides = [1, 1, 1]} : vector<18x18x64xf32> to vector<16x16x64xf32>
    %176 = vector.shape_cast %175 : vector<16x16x64xf32> to vector<256x64xf32>
    %c0_111 = arith.constant 0 : index
    %c0_112 = arith.constant 0 : index
    %c0_113 = arith.constant 0 : index
    %177 = vector.load %arg19[%c0_111, %c0_112, %c0_113] : memref<9x64x64xf32, #tpu.memory_space<vmem>>, vector<1x64x64xf32>
    %178 = vector.shape_cast %177 : vector<1x64x64xf32> to vector<64x64xf32>
    %cst_114 = arith.constant dense<0.000000e+00> : vector<256x64xf32>
    %179 = tpu.matmul %176, %178, %cst_114 {dimension_numbers = #tpu.dot_dimension_numbers<[1], [0], [0], [1], [0, 0, 1, 1], [], []>} : vector<256x64xf32>, vector<64x64xf32>, vector<256x64xf32> -> vector<256x64xf32>
    %180 = arith.addf %174, %179 : vector<256x64xf32>
    %181 = vector.extract_strided_slice %173 {offsets = [0, 1, 0], sizes = [16, 16, 64], strides = [1, 1, 1]} : vector<18x18x64xf32> to vector<16x16x64xf32>
    %182 = vector.shape_cast %181 : vector<16x16x64xf32> to vector<256x64xf32>
    %c1_115 = arith.constant 1 : index
    %c0_116 = arith.constant 0 : index
    %c0_117 = arith.constant 0 : index
    %183 = vector.load %arg19[%c1_115, %c0_116, %c0_117] : memref<9x64x64xf32, #tpu.memory_space<vmem>>, vector<1x64x64xf32>
    %184 = vector.shape_cast %183 : vector<1x64x64xf32> to vector<64x64xf32>
    %cst_118 = arith.constant dense<0.000000e+00> : vector<256x64xf32>
    %185 = tpu.matmul %182, %184, %cst_118 {dimension_numbers = #tpu.dot_dimension_numbers<[1], [0], [0], [1], [0, 0, 1, 1], [], []>} : vector<256x64xf32>, vector<64x64xf32>, vector<256x64xf32> -> vector<256x64xf32>
    %186 = arith.addf %180, %185 : vector<256x64xf32>
    %187 = vector.extract_strided_slice %173 {offsets = [0, 2, 0], sizes = [16, 16, 64], strides = [1, 1, 1]} : vector<18x18x64xf32> to vector<16x16x64xf32>
    %188 = vector.shape_cast %187 : vector<16x16x64xf32> to vector<256x64xf32>
    %c2_119 = arith.constant 2 : index
    %c0_120 = arith.constant 0 : index
    %c0_121 = arith.constant 0 : index
    %189 = vector.load %arg19[%c2_119, %c0_120, %c0_121] : memref<9x64x64xf32, #tpu.memory_space<vmem>>, vector<1x64x64xf32>
    %190 = vector.shape_cast %189 : vector<1x64x64xf32> to vector<64x64xf32>
    %cst_122 = arith.constant dense<0.000000e+00> : vector<256x64xf32>
    %191 = tpu.matmul %188, %190, %cst_122 {dimension_numbers = #tpu.dot_dimension_numbers<[1], [0], [0], [1], [0, 0, 1, 1], [], []>} : vector<256x64xf32>, vector<64x64xf32>, vector<256x64xf32> -> vector<256x64xf32>
    %192 = arith.addf %186, %191 : vector<256x64xf32>
    %193 = vector.extract_strided_slice %173 {offsets = [1, 0, 0], sizes = [16, 16, 64], strides = [1, 1, 1]} : vector<18x18x64xf32> to vector<16x16x64xf32>
    %194 = vector.shape_cast %193 : vector<16x16x64xf32> to vector<256x64xf32>
    %c3_123 = arith.constant 3 : index
    %c0_124 = arith.constant 0 : index
    %c0_125 = arith.constant 0 : index
    %195 = vector.load %arg19[%c3_123, %c0_124, %c0_125] : memref<9x64x64xf32, #tpu.memory_space<vmem>>, vector<1x64x64xf32>
    %196 = vector.shape_cast %195 : vector<1x64x64xf32> to vector<64x64xf32>
    %cst_126 = arith.constant dense<0.000000e+00> : vector<256x64xf32>
    %197 = tpu.matmul %194, %196, %cst_126 {dimension_numbers = #tpu.dot_dimension_numbers<[1], [0], [0], [1], [0, 0, 1, 1], [], []>} : vector<256x64xf32>, vector<64x64xf32>, vector<256x64xf32> -> vector<256x64xf32>
    %198 = arith.addf %192, %197 : vector<256x64xf32>
    %199 = vector.extract_strided_slice %173 {offsets = [1, 1, 0], sizes = [16, 16, 64], strides = [1, 1, 1]} : vector<18x18x64xf32> to vector<16x16x64xf32>
    %200 = vector.shape_cast %199 : vector<16x16x64xf32> to vector<256x64xf32>
    %c4_127 = arith.constant 4 : index
    %c0_128 = arith.constant 0 : index
    %c0_129 = arith.constant 0 : index
    %201 = vector.load %arg19[%c4_127, %c0_128, %c0_129] : memref<9x64x64xf32, #tpu.memory_space<vmem>>, vector<1x64x64xf32>
    %202 = vector.shape_cast %201 : vector<1x64x64xf32> to vector<64x64xf32>
    %cst_130 = arith.constant dense<0.000000e+00> : vector<256x64xf32>
    %203 = tpu.matmul %200, %202, %cst_130 {dimension_numbers = #tpu.dot_dimension_numbers<[1], [0], [0], [1], [0, 0, 1, 1], [], []>} : vector<256x64xf32>, vector<64x64xf32>, vector<256x64xf32> -> vector<256x64xf32>
    %204 = arith.addf %198, %203 : vector<256x64xf32>
    %205 = vector.extract_strided_slice %173 {offsets = [1, 2, 0], sizes = [16, 16, 64], strides = [1, 1, 1]} : vector<18x18x64xf32> to vector<16x16x64xf32>
    %206 = vector.shape_cast %205 : vector<16x16x64xf32> to vector<256x64xf32>
    %c5_131 = arith.constant 5 : index
    %c0_132 = arith.constant 0 : index
    %c0_133 = arith.constant 0 : index
    %207 = vector.load %arg19[%c5_131, %c0_132, %c0_133] : memref<9x64x64xf32, #tpu.memory_space<vmem>>, vector<1x64x64xf32>
    %208 = vector.shape_cast %207 : vector<1x64x64xf32> to vector<64x64xf32>
    %cst_134 = arith.constant dense<0.000000e+00> : vector<256x64xf32>
    %209 = tpu.matmul %206, %208, %cst_134 {dimension_numbers = #tpu.dot_dimension_numbers<[1], [0], [0], [1], [0, 0, 1, 1], [], []>} : vector<256x64xf32>, vector<64x64xf32>, vector<256x64xf32> -> vector<256x64xf32>
    %210 = arith.addf %204, %209 : vector<256x64xf32>
    %211 = vector.extract_strided_slice %173 {offsets = [2, 0, 0], sizes = [16, 16, 64], strides = [1, 1, 1]} : vector<18x18x64xf32> to vector<16x16x64xf32>
    %212 = vector.shape_cast %211 : vector<16x16x64xf32> to vector<256x64xf32>
    %c6_135 = arith.constant 6 : index
    %c0_136 = arith.constant 0 : index
    %c0_137 = arith.constant 0 : index
    %213 = vector.load %arg19[%c6_135, %c0_136, %c0_137] : memref<9x64x64xf32, #tpu.memory_space<vmem>>, vector<1x64x64xf32>
    %214 = vector.shape_cast %213 : vector<1x64x64xf32> to vector<64x64xf32>
    %cst_138 = arith.constant dense<0.000000e+00> : vector<256x64xf32>
    %215 = tpu.matmul %212, %214, %cst_138 {dimension_numbers = #tpu.dot_dimension_numbers<[1], [0], [0], [1], [0, 0, 1, 1], [], []>} : vector<256x64xf32>, vector<64x64xf32>, vector<256x64xf32> -> vector<256x64xf32>
    %216 = arith.addf %210, %215 : vector<256x64xf32>
    %217 = vector.extract_strided_slice %173 {offsets = [2, 1, 0], sizes = [16, 16, 64], strides = [1, 1, 1]} : vector<18x18x64xf32> to vector<16x16x64xf32>
    %218 = vector.shape_cast %217 : vector<16x16x64xf32> to vector<256x64xf32>
    %c7_139 = arith.constant 7 : index
    %c0_140 = arith.constant 0 : index
    %c0_141 = arith.constant 0 : index
    %219 = vector.load %arg19[%c7_139, %c0_140, %c0_141] : memref<9x64x64xf32, #tpu.memory_space<vmem>>, vector<1x64x64xf32>
    %220 = vector.shape_cast %219 : vector<1x64x64xf32> to vector<64x64xf32>
    %cst_142 = arith.constant dense<0.000000e+00> : vector<256x64xf32>
    %221 = tpu.matmul %218, %220, %cst_142 {dimension_numbers = #tpu.dot_dimension_numbers<[1], [0], [0], [1], [0, 0, 1, 1], [], []>} : vector<256x64xf32>, vector<64x64xf32>, vector<256x64xf32> -> vector<256x64xf32>
    %222 = arith.addf %216, %221 : vector<256x64xf32>
    %223 = vector.extract_strided_slice %173 {offsets = [2, 2, 0], sizes = [16, 16, 64], strides = [1, 1, 1]} : vector<18x18x64xf32> to vector<16x16x64xf32>
    %224 = vector.shape_cast %223 : vector<16x16x64xf32> to vector<256x64xf32>
    %c8_143 = arith.constant 8 : index
    %c0_144 = arith.constant 0 : index
    %c0_145 = arith.constant 0 : index
    %225 = vector.load %arg19[%c8_143, %c0_144, %c0_145] : memref<9x64x64xf32, #tpu.memory_space<vmem>>, vector<1x64x64xf32>
    %226 = vector.shape_cast %225 : vector<1x64x64xf32> to vector<64x64xf32>
    %cst_146 = arith.constant dense<0.000000e+00> : vector<256x64xf32>
    %227 = tpu.matmul %224, %226, %cst_146 {dimension_numbers = #tpu.dot_dimension_numbers<[1], [0], [0], [1], [0, 0, 1, 1], [], []>} : vector<256x64xf32>, vector<64x64xf32>, vector<256x64xf32> -> vector<256x64xf32>
    %228 = arith.addf %222, %227 : vector<256x64xf32>
    %c3_147 = arith.constant 3 : index
    %c0_148 = arith.constant 0 : index
    %229 = vector.load %arg18[%c3_147, %c0_148] : memref<5x64xf32, #tpu.memory_space<vmem>>, vector<1x64xf32>
    %230 = vector.broadcast %229 : vector<1x64xf32> to vector<256x64xf32>
    %231 = arith.mulf %228, %230 : vector<256x64xf32>
    %c4_149 = arith.constant 4 : index
    %c0_150 = arith.constant 0 : index
    %232 = vector.load %arg18[%c4_149, %c0_150] : memref<5x64xf32, #tpu.memory_space<vmem>>, vector<1x64xf32>
    %233 = vector.broadcast %232 : vector<1x64xf32> to vector<256x64xf32>
    %234 = arith.addf %231, %233 : vector<256x64xf32>
    %cst_151 = arith.constant 0.000000e+00 : f32
    %cst_152 = arith.constant 6.000000e+00 : f32
    %235 = vector.broadcast %cst_151 : f32 to vector<256x64xf32>
    %236 = arith.maximumf %235, %234 : vector<256x64xf32>
    %237 = vector.broadcast %cst_152 : f32 to vector<256x64xf32>
    %238 = arith.minimumf %237, %236 : vector<256x64xf32>
    %239 = vector.shape_cast %238 : vector<256x64xf32> to vector<16x16x64xf32>
    %c0_153 = arith.constant 0 : index
    %c0_154 = arith.constant 0 : index
    %c0_155 = arith.constant 0 : index
    %c0_156 = arith.constant 0 : index
    %240 = vector.load %arg23[%c0_153, %c0_154, %c0_155, %c0_156] : memref<1x16x16x64xf32, #tpu.memory_space<vmem>>, vector<1x16x16x64xf32>
    %241 = vector.shape_cast %240 : vector<1x16x16x64xf32> to vector<16x16x64xf32>
    %242 = vector.shape_cast %239 : vector<16x16x64xf32> to vector<1x16x16x64xf32>
    tpu.vector_store %arg23[%c0_153, %c0_154, %c0_155, %c0_156], %242 {strides = array<i32>} : memref<1x16x16x64xf32, #tpu.memory_space<vmem>>, vector<1x16x16x64xf32>,
    %c0_157 = arith.constant 0 : index
    %c0_158 = arith.constant 0 : index
    %243 = vector.load %arg20[%c0_157, %c0_158] : memref<64x256xf32, #tpu.memory_space<vmem>>, vector<64x256xf32>
    %cst_159 = arith.constant dense<0.000000e+00> : vector<64x64xf32>
    %244 = tpu.matmul %243, %238, %cst_159 {dimension_numbers = #tpu.dot_dimension_numbers<[1], [0], [0], [1], [0, 0, 1, 1], [], []>} : vector<64x256xf32>, vector<256x64xf32>, vector<64x64xf32> -> vector<64x64xf32>
    %245 = vector.shape_cast %244 : vector<64x64xf32> to vector<8x8x64xf32>
    %c0_160 = arith.constant 0 : index
    %c0_161 = arith.constant 0 : index
    %c0_162 = arith.constant 0 : index
    %c0_163 = arith.constant 0 : index
    %246 = vector.load %arg24[%c0_160, %c0_161, %c0_162, %c0_163] : memref<1x8x8x64xf32, #tpu.memory_space<vmem>>, vector<1x8x8x64xf32>
    %247 = vector.shape_cast %246 : vector<1x8x8x64xf32> to vector<8x8x64xf32>
    %248 = vector.shape_cast %245 : vector<8x8x64xf32> to vector<1x8x8x64xf32>
    tpu.vector_store %arg24[%c0_160, %c0_161, %c0_162, %c0_163], %248 {strides = array<i32>} : memref<1x8x8x64xf32, #tpu.memory_space<vmem>>, vector<1x8x8x64xf32>,
    %c0_164 = arith.constant 0 : index
    %c0_165 = arith.constant 0 : index
    %249 = vector.load %arg21[%c0_164, %c0_165] : memref<16x256xf32, #tpu.memory_space<vmem>>, vector<16x256xf32>
    %cst_166 = arith.constant dense<0.000000e+00> : vector<16x64xf32>
    %250 = tpu.matmul %249, %238, %cst_166 {dimension_numbers = #tpu.dot_dimension_numbers<[1], [0], [0], [1], [0, 0, 1, 1], [], []>} : vector<16x256xf32>, vector<256x64xf32>, vector<16x64xf32> -> vector<16x64xf32>
    %251 = vector.shape_cast %250 : vector<16x64xf32> to vector<4x4x64xf32>
    %c0_167 = arith.constant 0 : index
    %c0_168 = arith.constant 0 : index
    %c0_169 = arith.constant 0 : index
    %c0_170 = arith.constant 0 : index
    %252 = vector.load %arg25[%c0_167, %c0_168, %c0_169, %c0_170] : memref<1x4x4x64xf32, #tpu.memory_space<vmem>>, vector<1x4x4x64xf32>
    %253 = vector.shape_cast %252 : vector<1x4x4x64xf32> to vector<4x4x64xf32>
    %254 = vector.shape_cast %251 : vector<4x4x64xf32> to vector<1x4x4x64xf32>
    tpu.vector_store %arg25[%c0_167, %c0_168, %c0_169, %c0_170], %254 {strides = array<i32>} : memref<1x4x4x64xf32, #tpu.memory_space<vmem>>, vector<1x4x4x64xf32>,
    %c0_171 = arith.constant 0 : index
    %c0_172 = arith.constant 0 : index
    %255 = vector.load %arg22[%c0_171, %c0_172] : memref<4x256xf32, #tpu.memory_space<vmem>>, vector<4x256xf32>
    %cst_173 = arith.constant dense<0.000000e+00> : vector<4x64xf32>
    %256 = tpu.matmul %255, %238, %cst_173 {dimension_numbers = #tpu.dot_dimension_numbers<[1], [0], [0], [1], [0, 0, 1, 1], [], []>} : vector<4x256xf32>, vector<256x64xf32>, vector<4x64xf32> -> vector<4x64xf32>
    %257 = vector.shape_cast %256 : vector<4x64xf32> to vector<2x2x64xf32>
    %c0_174 = arith.constant 0 : index
    %c0_175 = arith.constant 0 : index
    %c0_176 = arith.constant 0 : index
    %c0_177 = arith.constant 0 : index
    %258 = vector.load %arg26[%c0_174, %c0_175, %c0_176, %c0_177] : memref<1x2x2x64xf32, #tpu.memory_space<vmem>>, vector<1x2x2x64xf32>
    %259 = vector.shape_cast %258 : vector<1x2x2x64xf32> to vector<2x2x64xf32>
    %260 = vector.shape_cast %257 : vector<2x2x64xf32> to vector<1x2x2x64xf32>
    tpu.vector_store %arg26[%c0_174, %c0_175, %c0_176, %c0_177], %260 {strides = array<i32>} : memref<1x2x2x64xf32, #tpu.memory_space<vmem>>, vector<1x2x2x64xf32>,
    return
  }
  func.func @transform_0(%arg0: i32) -> i32 {
    %c0_i32 = arith.constant 0 : i32
    %c0_i32_0 = arith.constant 0 : i32
    return %c0_i32 : i32
  }
  func.func @transform_1(%arg0: i32) -> (i32, i32, i32, i32) {
    %c0_i32 = arith.constant 0 : i32
    %c0_i32_0 = arith.constant 0 : i32
    %c0_i32_1 = arith.constant 0 : i32
    %c0_i32_2 = arith.constant 0 : i32
    return %arg0, %c0_i32, %c0_i32_0, %c0_i32_1 : i32, i32, i32, i32
  }
  func.func @transform_2(%arg0: i32) -> (i32, i32, i32, i32) {
    %c0_i32 = arith.constant 0 : i32
    %c0_i32_0 = arith.constant 0 : i32
    %c0_i32_1 = arith.constant 0 : i32
    %c0_i32_2 = arith.constant 0 : i32
    return %arg0, %c0_i32, %c0_i32_0, %c0_i32_1 : i32, i32, i32, i32
  }
  func.func @transform_3(%arg0: i32) -> (i32, i32, i32, i32) {
    %c0_i32 = arith.constant 0 : i32
    %c0_i32_0 = arith.constant 0 : i32
    %c0_i32_1 = arith.constant 0 : i32
    %c0_i32_2 = arith.constant 0 : i32
    return %arg0, %c0_i32, %c0_i32_0, %c0_i32_1 : i32, i32, i32, i32
  }
  func.func @transform_4(%arg0: i32) -> (i32, i32, i32, i32) {
    %c0_i32 = arith.constant 0 : i32
    %c0_i32_0 = arith.constant 0 : i32
    %c0_i32_1 = arith.constant 0 : i32
    %c0_i32_2 = arith.constant 0 : i32
    return %arg0, %c0_i32, %c0_i32_0, %c0_i32_1 : i32, i32, i32, i32
  }
  func.func @transform_5(%arg0: i32) -> (i32, i32) {
    %c0_i32 = arith.constant 0 : i32
    %c0_i32_0 = arith.constant 0 : i32
    %c0_i32_1 = arith.constant 0 : i32
    return %c0_i32, %c0_i32_0 : i32, i32
  }
  func.func @transform_6(%arg0: i32) -> (i32, i32) {
    %c0_i32 = arith.constant 0 : i32
    %c0_i32_0 = arith.constant 0 : i32
    %c0_i32_1 = arith.constant 0 : i32
    return %c0_i32, %c0_i32_0 : i32, i32
  }
  func.func @transform_7(%arg0: i32) -> (i32, i32) {
    %c0_i32 = arith.constant 0 : i32
    %c0_i32_0 = arith.constant 0 : i32
    %c0_i32_1 = arith.constant 0 : i32
    return %c0_i32, %c0_i32_0 : i32, i32
  }
  func.func @transform_8(%arg0: i32) -> (i32, i32) {
    %c0_i32 = arith.constant 0 : i32
    %c0_i32_0 = arith.constant 0 : i32
    %c0_i32_1 = arith.constant 0 : i32
    return %c0_i32, %c0_i32_0 : i32, i32
  }
  func.func @transform_9(%arg0: i32) -> (i32, i32) {
    %c0_i32 = arith.constant 0 : i32
    %c0_i32_0 = arith.constant 0 : i32
    %c0_i32_1 = arith.constant 0 : i32
    return %c0_i32, %c0_i32_0 : i32, i32
  }
  func.func @transform_10(%arg0: i32) -> (i32, i32) {
    %c0_i32 = arith.constant 0 : i32
    %c0_i32_0 = arith.constant 0 : i32
    %c0_i32_1 = arith.constant 0 : i32
    return %c0_i32, %c0_i32_0 : i32, i32
  }
  func.func @transform_11(%arg0: i32) -> (i32, i32) {
    %c0_i32 = arith.constant 0 : i32
    %c0_i32_0 = arith.constant 0 : i32
    %c0_i32_1 = arith.constant 0 : i32
    return %c0_i32, %c0_i32_0 : i32, i32
  }
  func.func @transform_12(%arg0: i32) -> (i32, i32) {
    %c0_i32 = arith.constant 0 : i32
    %c0_i32_0 = arith.constant 0 : i32
    %c0_i32_1 = arith.constant 0 : i32
    return %c0_i32, %c0_i32_0 : i32, i32
  }
  func.func @transform_13(%arg0: i32) -> (i32, i32, i32) {
    %c0_i32 = arith.constant 0 : i32
    %c0_i32_0 = arith.constant 0 : i32
    %c0_i32_1 = arith.constant 0 : i32
    %c0_i32_2 = arith.constant 0 : i32
    return %c0_i32, %c0_i32_0, %c0_i32_1 : i32, i32, i32
  }
  func.func @transform_14(%arg0: i32) -> (i32, i32) {
    %c0_i32 = arith.constant 0 : i32
    %c0_i32_0 = arith.constant 0 : i32
    %c0_i32_1 = arith.constant 0 : i32
    return %c0_i32, %c0_i32_0 : i32, i32
  }
  func.func @transform_15(%arg0: i32) -> (i32, i32) {
    %c0_i32 = arith.constant 0 : i32
    %c0_i32_0 = arith.constant 0 : i32
    %c0_i32_1 = arith.constant 0 : i32
    return %c0_i32, %c0_i32_0 : i32, i32
  }
  func.func @transform_16(%arg0: i32) -> (i32, i32) {
    %c0_i32 = arith.constant 0 : i32
    %c0_i32_0 = arith.constant 0 : i32
    %c0_i32_1 = arith.constant 0 : i32
    return %c0_i32, %c0_i32_0 : i32, i32
  }
  func.func @transform_17(%arg0: i32) -> (i32, i32) {
    %c0_i32 = arith.constant 0 : i32
    %c0_i32_0 = arith.constant 0 : i32
    %c0_i32_1 = arith.constant 0 : i32
    return %c0_i32, %c0_i32_0 : i32, i32
  }
  func.func @transform_18(%arg0: i32) -> (i32, i32, i32) {
    %c0_i32 = arith.constant 0 : i32
    %c0_i32_0 = arith.constant 0 : i32
    %c0_i32_1 = arith.constant 0 : i32
    %c0_i32_2 = arith.constant 0 : i32
    return %c0_i32, %c0_i32_0, %c0_i32_1 : i32, i32, i32
  }
  func.func @transform_19(%arg0: i32) -> (i32, i32) {
    %c0_i32 = arith.constant 0 : i32
    %c0_i32_0 = arith.constant 0 : i32
    %c0_i32_1 = arith.constant 0 : i32
    return %c0_i32, %c0_i32_0 : i32, i32
  }
  func.func @transform_20(%arg0: i32) -> (i32, i32) {
    %c0_i32 = arith.constant 0 : i32
    %c0_i32_0 = arith.constant 0 : i32
    %c0_i32_1 = arith.constant 0 : i32
    return %c0_i32, %c0_i32_0 : i32, i32
  }
  func.func @transform_21(%arg0: i32) -> (i32, i32) {
    %c0_i32 = arith.constant 0 : i32
    %c0_i32_0 = arith.constant 0 : i32
    %c0_i32_1 = arith.constant 0 : i32
    return %c0_i32, %c0_i32_0 : i32, i32
  }
  func.func @transform_22(%arg0: i32) -> (i32, i32, i32, i32) {
    %c0_i32 = arith.constant 0 : i32
    %c0_i32_0 = arith.constant 0 : i32
    %c0_i32_1 = arith.constant 0 : i32
    %c0_i32_2 = arith.constant 0 : i32
    return %arg0, %c0_i32, %c0_i32_0, %c0_i32_1 : i32, i32, i32, i32
  }
  func.func @transform_23(%arg0: i32) -> (i32, i32, i32, i32) {
    %c0_i32 = arith.constant 0 : i32
    %c0_i32_0 = arith.constant 0 : i32
    %c0_i32_1 = arith.constant 0 : i32
    %c0_i32_2 = arith.constant 0 : i32
    return %arg0, %c0_i32, %c0_i32_0, %c0_i32_1 : i32, i32, i32, i32
  }
  func.func @transform_24(%arg0: i32) -> (i32, i32, i32, i32) {
    %c0_i32 = arith.constant 0 : i32
    %c0_i32_0 = arith.constant 0 : i32
    %c0_i32_1 = arith.constant 0 : i32
    %c0_i32_2 = arith.constant 0 : i32
    return %arg0, %c0_i32, %c0_i32_0, %c0_i32_1 : i32, i32, i32, i32
  }
  func.func @transform_25(%arg0: i32) -> (i32, i32, i32, i32) {
    %c0_i32 = arith.constant 0 : i32
    %c0_i32_0 = arith.constant 0 : i32
    %c0_i32_1 = arith.constant 0 : i32
    %c0_i32_2 = arith.constant 0 : i32
    return %arg0, %c0_i32, %c0_i32_0, %c0_i32_1 : i32, i32, i32, i32
  }
}

</mosaic_0001>

<bundles_post_ra>
// kernel: tpu_custom_call.1
= control target key start
LH: loop header
LB: loop body
LE: loop exit
PB: predicated region body
PF: predicated region fallthrough
CT: control target
= control target key end

     0   :  { %s19589_s0 = inlined_call_operand.vmem [shape: f32[5], index: 0, kind: input, shape index: {}]   ;;  %s19590_s1 = inlined_call_operand.vmem [shape: f32[2,16,16,8], index: 1, kind: input, shape index: {}]   ;;  %s19591_s2 = inlined_call_operand.vmem [shape: f32[2,8,8,16], index: 2, kind: input, shape index: {}]   ;;  %s19592_s3 = inlined_call_operand.vmem [shape: f32[2,4,4,32], index: 3, kind: input, shape index: {}]   ;;  %s19593_s4 = inlined_call_operand.vmem [shape: f32[2,2,2,64], index: 4, kind: input, shape index: {}]   ;;  %s19594_s5 = inlined_call_operand.vmem [shape: f32[8,64], index: 5, kind: input, shape index: {}]   ;;  %s19595_s6 = inlined_call_operand.vmem [shape: f32[16,64], index: 6, kind: input, shape index: {}]   ;;  %s19596_s7 = inlined_call_operand.vmem [shape: f32[32,64], index: 7, kind: input, shape index: {}]   ;;  %s19597_s8 = inlined_call_operand.vmem [shape: f32[64,64], index: 8, kind: input, shape index: {}]   ;;  %s19598_s9 = inlined_call_operand.vmem [shape: f32[4,64], index: 9, kind: input, shape index: {}]   ;;  %s19599_s10 = inlined_call_operand.vmem [shape: f32[256,64], index: 10, kind: input, shape index: {}]   ;;  %s19600_s11 = inlined_call_operand.vmem [shape: f32[256,16], index: 11, kind: input, shape index: {}]   ;;  %s19601_s12 = inlined_call_operand.vmem [shape: f32[256,4], index: 12, kind: input, shape index: {}]   ;;  %s19602_s13 = inlined_call_operand.vmem [shape: f32[9,64,1], index: 13, kind: input, shape index: {}]   ;;  %s19603_s14 = inlined_call_operand.vmem [shape: f32[64,4], index: 14, kind: input, shape index: {}]   ;;  %s19604_s15 = inlined_call_operand.vmem [shape: f32[1,4], index: 15, kind: input, shape index: {}]   ;;  %s19605_s16 = inlined_call_operand.vmem [shape: f32[4,64], index: 16, kind: input, shape index: {}]   ;;  %s19606_s17 = inlined_call_operand.vmem [shape: f32[5,64], index: 17, kind: input, shape index: {}]   ;;  %s19607_s18 = inlined_call_operand.vmem [shape: f32[9,64,64], index: 18, kind: input, shape index: {}]   ;;  %s19608_s19 = inlined_call_operand.vmem [shape: f32[64,256], index: 19, kind: input, shape index: {}]   ;;  %s19609_s20 = inlined_call_operand.vmem [shape: f32[16,256], index: 20, kind: input, shape index: {}]   ;;  %s19610_s21 = inlined_call_operand.vmem [shape: f32[4,256], index: 21, kind: input, shape index: {}]   ;;  %s19611_s22 = inlined_call_operand.hbm [shape: f32[2,16,16,64], index: 22, kind: output, shape index: {0}]   ;;  %s19612_s23 = inlined_call_operand.hbm [shape: f32[2,8,8,64], index: 23, kind: output, shape index: {1}]   ;;  %s19613_s24 = inlined_call_operand.hbm [shape: f32[2,4,4,64], index: 24, kind: output, shape index: {2}]   ;;  %s19614_s25 = inlined_call_operand.hbm [shape: f32[2,2,2,64], index: 25, kind: output, shape index: {3}]  }
   0x1   :  { %19882 = sst [smem:[#allocation102_spill]] %s19589_s0 }
   0x2   :  { %19883 = sst [smem:[#allocation103_spill]] %s19590_s1 }
   0x3   :  { %19884 = sst [smem:[#allocation104_spill]] %s19591_s2 }
   0x4   :  { %19885 = sst [smem:[#allocation105_spill]] %s19592_s3 }
   0x5   :  { %19886 = sst [smem:[#allocation106_spill]] %s19593_s4 }
   0x6   :  { %19887 = sst [smem:[#allocation107_spill]] %s19594_s5 }
   0x7   :  { %19888 = sst [smem:[#allocation108_spill]] %s19595_s6 }
   0x8   :  { %19889 = sst [smem:[#allocation109_spill]] %s19596_s7 }
   0x9   :  { %19890 = sst [smem:[#allocation110_spill]] %s19597_s8 }
   0xa   :  { %19891 = sst [smem:[#allocation111_spill]] %s19598_s9 }
   0xb   :  { %19892 = sst [smem:[#allocation112_spill]] %s19599_s10 }
   0xc   :  { %19893 = sst [smem:[#allocation113_spill]] %s19600_s11 }
   0xd   :  { %19894 = sst [smem:[#allocation114_spill]] %s19601_s12 }
   0xe   :  { %19895 = sst [smem:[#allocation115_spill]] %s19602_s13 }
   0xf   :  { %19896 = sst [smem:[#allocation116_spill]] %s19611_s22 }
  0x10   :  { %19897 = sst [smem:[#allocation117_spill]] %s19612_s23 }
  0x11   :  { %19898 = sst [smem:[#allocation118_spill]] %s19613_s24 }
  0x12   :  { %19899 = sst [smem:[#allocation119_spill]] %s19614_s25 }
  0x13   :  { %31 = vsyncpa [#allocation4], 0 }
  0x14   :  { %32 = vsyncpa [#allocation3], 0 }
  0x15   :  { %34 = vsyncpa [#allocation3 + $0x1], 0 }
  0x16   :  { %35 = vsyncpa [#allocation7], 0 }
  0x17   :  { %37 = vsyncpa [#allocation7 + $0x1], 0 }
  0x18   :  { %38 = vsyncpa [#allocation10], 0 }
  0x19   :  { %40 = vsyncpa [#allocation10 + $0x1], 0  ;;  %s15080_s29 = smov 0   ;;  %s15082_s2 = smov 0  }
  0x1a   :  { %s15084_s6 = smov 0   ;;  %s15086_s30 = smov 0  }
  0x1b LB: > { %19900 = sst [smem:[#allocation15_spill]] %s14918_s29  ;;  %s15101_s7 = sadd.s32 4294967295, %s14930_s30   ;;  %s14930_s30 = sphi %s15086_s30, %s20261_s30   ;;  %s14926_s6 = sphi %s15084_s6, %s20263_s6   ;;  %s14922_s2 = sphi %s15082_s2, %s20265_s2   ;;  %s14918_s29 = sphi %s15080_s29, %s20264_s29  }
  0x1c   : > { %19901 = sst [smem:[#allocation16_spill]] %s14926_s6  ;;  %s19619_s3 = sadd.s32 4294967294, %s14930_s30  }
  0x1d   : > { %19902 = sst [smem:[#allocation17_spill]] %s14930_s30  ;;  %s15105_s26 = sadd.s32 1, %s14930_s30  }
  0x1e   : > { %19903 = sst [smem:[#allocation18_spill]] %s15105_s26  ;;  %s535_s1 = sadd.s32 1, %s14926_s6 }
  0x1f   : > { %s532_s8 = ssub.s32 %s14930_s30, %s15105_s26  ;;  %p545_p0 = scmp.ne.s32.totalorder %s14926_s6, %s14922_s2 }
  0x20   : > { %p533_p1 = scmp.eq.s32.totalorder %s532_s8, 0  ;;  %p546_p2 = scmp.eq.s32.totalorder %s15101_s7, 1 }
  0x21   : > { %p551_p3 = scmp.ne.s32.totalorder %s14922_s2, %s14918_s29  ;;  %p552_p4 = scmp.eq.s32.totalorder %s19619_s3, 1 }
  0x22   : > { %s15118_s27 = scalar_select %p533_p1, %s14926_s6, %s535_s1  }
  0x23   : > { %p15120_p5 = por %p546_p2, %p545_p0  ;;  %p15124_p6 = por %p552_p4, %p551_p3 }
  0x24   : > { %19904 = sst [smem:[#allocation19_spill]] %s15118_s27  ;;  %p10198_p7 = scmp.ge.s32.totalorder %s14930_s30, 1 }
  0x25   : > { %s19905_s4 = scalar_select %p15120_p5, 1, 0 }
  0x26   : > { %s19907_s28 = scalar_select %p15124_p6, 1, 0 }
  0x27   : > { %19906 = sst [smem:[#allocation20_spill]] %s19905_s4  ;;  %p637_p8 = scmp.lt.s32.totalorder %s14930_s30, 3 }
  0x28   : > { %19908 = sst [smem:[#allocation21_spill]] %s19907_s28  ;;  %p14567_p9 = scmp.eq.s32.totalorder %s15101_s7, 0 }
  0x29   : > { %p15131_p10 = pnand %p10198_p7, %p637_p8  ;;  %s19910_s8 = sld [smem:[#allocation102_spill]] }
  0x2b   : > { %p14550_p11 = pneg %p15131_p10 }
  0x2d   : > { %p14551_p12 = pnand %p14567_p9, %p14550_p11 }
  0x2f   : > { %s650_s1 = sshll.u32 %s19910_s8, 4  ;;  %p14759_p0 = pneg %p14551_p12  ;;  %s651_s1 = int_to_ptr.vmem [resolvable:$true] %s650_s1 }
  0x30   : > { %s14757_s3 = scalar_lea.vmem %s651_s1, 16  ;;  %p14765_p3 = scmp.lt.s32.totalorder %s651_s1, %s651_s1 }
  0x31   : > { %p14758_p13 = scmp.ne.s32.totalorder %s651_s1, %s14757_s3  ;;  %p14766_p4 = scmp.lt.s32.totalorder %s14757_s3, %s14757_s3 }
  0x33   : > { %p14760_p1 = pnand %p14759_p0, %p14758_p13  ;;  %p14767_p7 = por %p14766_p4, %p14765_p3 }
  0x35   : > { %p14761_p2 = pneg %p14760_p1 }
  0x37   : > { %p14768_p8 = pnand %p14767_p7, %p14761_p2 }
  0x39   : > { %14771 = shalt.err (!%p14768_p8)
}
  0x3a   : > { %s14932_s27 = smov [#allocation2]   ;;  %746 = sbr.rel (%p15131_p10) target bundleno = 2929 (0xb71), region = 108 }
  0x3b   : > { %14553 = dma.vmem_to_smem (!%p14551_p12), %s651_s1, 16, %s14932_s27, [#allocation4]  }
  0x41   : > { %14901 = dma.done.wait (%p14567_p9), [#allocation4], 16  }
  0x42   : > { %14903 = vsyncadd (%p14567_p9), [#allocation4], 4294967280 }
  0x43   : > { %752 = sfence }
  0x44   : > { %s19911_s8 = sld [smem:[#allocation108_spill]]  ;;  %p845_p11 = scmp.lt.s32.totalorder %s15101_s7, 1  ;;  %vm1260_vm0 = vcmask 130048   ;;  %vm923_vm1 = vcmask 64512   ;;  %v14933_v20 = vmov 0.0|0.0   ;;  %vm1409_vm2 = vcmask 261120  }
  0x45   : > { %s19912_s1 = sld [smem:[#allocation109_spill]]  ;;  %s19913_s9 = sld [smem:[#allocation107_spill]]  ;;  %v14934_v34 = vmov 1983009808   ;;  %v1510_v36 = vlaneseq  ;;  %vm14935_vm3 = vmmov 0   ;;  %v19636_v39 = vmov 0.0  }
  0x46   : > { %s15162_s29 = scalar_select %p845_p11, %s15101_s7, 1  ;;  %v1508_v35 = vunpack.c.l.s4 %v14934_v34  ;;  %vm1514_vm4 = vcmask 523264   ;;  %vm2422_vm5 = vcmask 1043456   ;;  %vm2325_vm6 = vcmask 31744  }
  0x47   : > { %s19914_s24 = sld [smem:[#allocation104_spill]]  ;;  %s19915_s25 = sld [smem:[#allocation105_spill]]  ;;  %v15256_v44 = vshrl.u32 %v1510_v36, 7  ;;  %vm3153_vm7 = vcmask 1040384   ;;  %vm3305_vm8 = vcmask 1046528   ;;  %vm3966_vm9 = vcmask 1045504  }
  0x48   : > { %s11114_s27 = sshll.u32 %s15162_s29, 6  ;;  %s11115_s5 = sshll.u32 %s15162_s29, 4  ;;  %v1509_v43 = vunpack.c.0.s8 %v1508_v35 }
  0x49   : > { %s11116_s3 = sshll.u32 %s15162_s29, 2  ;;  %s19918_s6 = sld [smem:[#allocation106_spill]] }
  0x4a   : > { %v1254_v0 = vld [vmem:[%s19911_s8] sm:$0xff]  ;;  %v1255_v1 = vld [vmem:[%s19911_s8 + $0x8] sm:$0xff]  ;;  %s11113_s8 = sshll.u32 %s15162_s29, 8  ;;  %v15270_v53 = vsub.s32 %v1509_v43, %v15256_v44  ;;  %s19920_s10 = sld [smem:[#allocation112_spill]] }
  0x4b   : > { %v1395_v2 = vld [vmem:[%s19912_s1] sm:$0xff]  ;;  %v13584_v3 = vpack.c.bf16 %v1255_v1, %v1254_v0  ;;  %v1396_v4 = vld [vmem:[%s19912_s1 + $0x8] sm:$0xff]  ;;  %v1397_v6 = vld [vmem:[%s19912_s1 + $0x10] sm:$0xff]  ;;  %s19921_s11 = sld [smem:[#allocation113_spill]]  ;;  %s15340_s28 = sld [smem:[#allocation2 + $0x3]] }
  0x4c   : > { %v13588_v5 = vpack.c.bf16 %v1396_v4, %v1395_v2  ;;  %v1398_v7 = vld [vmem:[%s19912_s1 + $0x18] sm:$0xff]  ;;  %v918_v8 = vld [vmem:[%s19913_s9] sm:$0xff]  ;;  %s19917_s9 = sld [smem:[#allocation110_spill]]  ;;  %19919 = vst [vmem:[#allocation22_spill] sm:$0xff] %v15270_v53  ;;  %s10215_s29 = sld [smem:[#allocation2 + $0x1]] }
  0x4d   : > { %13585 = vmatprep.subr.bf16.mxu1 %v13584_v3  ;;  %s15178_s23 = scalar_lea.vmem %s19914_s24, %s11114_s27  ;;  %12146 = vmatprep.subr.mxu0 %v918_v8  ;;  %v13592_v12 = vpack.c.bf16 %v1398_v7, %v1397_v6  ;;  %s15188_s24 = scalar_lea.vmem %s19915_s25, %s11115_s5 }
  0x4e   : > { %13587 = vmatpush3.bf16.msra.mxu1 %v13584_v3  ;;  %v1246_v9 = vld [vmem:[%s15178_s23] sm:$0xff]  ;;  %v1247_v10 = vld [vmem:[%s15178_s23 + $0x8] sm:$0xff]  ;;  %v1248_v11 = vld [vmem:[%s15178_s23 + $0x10] sm:$0xff]  ;;  %12147 = vmatpush3.msra.mxu0 %v918_v8  ;;  %s19916_s27 = sld [smem:[#allocation103_spill]]  ;;  %s865_s25 = sld [smem:[#allocation2]] }
  0x4f   : > { %13589 = vmatprep.subr.bf16.mxu1 %v13588_v5  ;;  %12200 = vmatprep.mubr.msk.f32.mxu1 %vm1260_vm0, %v1246_v9  ;;  %v1249_v13 = vld [vmem:[%s15178_s23 + $0x18] sm:$0xff]  ;;  %v1250_v14 = vld [vmem:[%s15178_s23 + $0x20] sm:$0xff]  ;;  %v1251_v18 = vld [vmem:[%s15178_s23 + $0x28] sm:$0xff]  ;;  %s14937_s1 = smov 0.0   ;;  %s14938_s5 = smov 6.0  }
  0x50   : > { %v1252_v19 = vld [vmem:[%s15178_s23 + $0x30] sm:$0xff]  ;;  %v1253_v23 = vld [vmem:[%s15178_s23 + $0x38] sm:$0xff]  ;;  %v14618_v24 = vld [vmem:[%s15188_s24] sm:$0xff]   ;;  %s864_s23 = scalar_lea.vmem %s19918_s6, %s11116_s3  ;;  %s19922_s6 = sld [smem:[#allocation111_spill]] }
  0x51   : > { %12201 = vmatmul.mubr.msk.f32.vlgmr.msra.gmra.mrb[0].mxu1 %vm1260_vm0, %v1247_v10  ;;  %v14619_v28 = vld [vmem:[%s15188_s24 + $0x8] sm:$0xff]   ;;  %v1490_v47 = vld [vmem:[%s864_s23] sm:$0x3]  ;;  %v1491_v48 = vld [vmem:[%s864_s23 + $0x2] sm:$0x3]  ;;  %s19924_s12 = sld [smem:[#allocation114_spill]] }
  0x52   : > { %12203 = vmatprep.mubr.msk.f32.mxu1 %vm1260_vm0, %v1248_v11  ;;  %13591 = vmatpush3.bf16.msra.mxu1 %v13588_v5  ;;  %v1492_v25 = vld [vmem:[%s19917_s9] sm:$0xff]  ;;  %v1493_v26 = vld [vmem:[%s19917_s9 + $0x8] sm:$0xff]  ;;  %v1494_v31 = vld [vmem:[%s19917_s9 + $0x10] sm:$0xff]  ;;  %v1506_v52 = vcombine.low %v1490_v47, %v1491_v48  ;;  %s19957_s13 = sld [smem:[#allocation115_spill]]  ;;  %s19128_s22 = sand.u32 1, %s14922_s2  }
  0x53   : > { %13593 = vmatprep.subr.bf16.mxu1 %v13592_v12  ;;  %v13597_v30 = vpack.c.bf16 %v1493_v26, %v1492_v25  ;;  %v1495_v32 = vld [vmem:[%s19917_s9 + $0x18] sm:$0xff]  ;;  %v1496_v40 = vld [vmem:[%s19917_s9 + $0x20] sm:$0xff]  ;;  %v1497_v41 = vld [vmem:[%s19917_s9 + $0x28] sm:$0xff]  ;;  %s11117_s4 = sshll.u32 %s15101_s7, 12 }
  0x54   : > { %s15193_s26 = scalar_lea.vmem %s19916_s27, %s11113_s8  ;;  %v13600_v38 = vpack.c.bf16 %v1495_v32, %v1494_v31  ;;  %v13603_v46 = vpack.c.bf16 %v1497_v41, %v1496_v40  ;;  %v1498_v49 = vld [vmem:[%s19917_s9 + $0x30] sm:$0xff]  ;;  %v1499_v50 = vld [vmem:[%s19917_s9 + $0x38] sm:$0xff]  ;;  %v1513_v57 = vrot.slane %v1506_v52, %v15270_v53  ;;  %v1587_v11 = vld [vmem:[%s19920_s10] sm:$0xff]  ;;  %s10216_s8 = sld [smem:[#allocation2 + $0x2]] }
  0x55   : > { %v886_v15 = vld [vmem:[%s15193_s26] sm:$0xff]  ;;  %v887_v16 = vld [vmem:[%s15193_s26 + $0x8] sm:$0xff]  ;;  %12204 = vmatmul.mubr.msk.f32.gmra.mrb[2].mxu1 %vm1260_vm0, %v1249_v13  ;;  %v888_v17 = vld [vmem:[%s15193_s26 + $0x10] sm:$0xff]  ;;  %v13606_v55 = vpack.c.bf16 %v1499_v50, %v1498_v49  ;;  %s866_s9 = smax.f32 %s14937_s1, %s865_s25  ;;  %s875_s27 = smax.f32 %s14937_s1, %s15340_s28 }
  0x56   : > { %12148 = vmatprep.mubr.msk.f32.mxu0 %vm923_vm1, %v886_v15  ;;  %12206 = vmatprep.mubr.msk.f32.mxu1 %vm1260_vm0, %v1250_v14  ;;  %v889_v21 = vld [vmem:[%s15193_s26 + $0x18] sm:$0xff]  ;;  %v890_v22 = vld [vmem:[%s15193_s26 + $0x20] sm:$0xff]  ;;  %v891_v27 = vld [vmem:[%s15193_s26 + $0x28] sm:$0xff]  ;;  %s19923_s23 = smov %s19922_s6  ;;  %s15400_s30 = smin.f32 %s14938_s5, %s875_s27 }
  0x57   : > { %13595 = vmatpush3.bf16.msra.mxu1 %v13592_v12  ;;  %12149 = vmatmul.mubr.msk.f32.vlgmr.msra.gmra.mrb[0].mxu0 %vm923_vm1, %v887_v16  ;;  %v892_v29 = vld [vmem:[%s15193_s26 + $0x30] sm:$0xff]  ;;  %v893_v33 = vld [vmem:[%s15193_s26 + $0x38] sm:$0xff]  ;;  %v894_v37 = vld [vmem:[%s15193_s26 + $0x40] sm:$0xff] }
  0x58   : > { %13596 = vmatprep.subr.bf16.mxu1 %v14933_v20  ;;  %12151 = vmatprep.mubr.msk.f32.mxu0 %vm923_vm1, %v888_v17  ;;  %v895_v42 = vld [vmem:[%s15193_s26 + $0x48] sm:$0xff]  ;;  %v896_v45 = vld [vmem:[%s15193_s26 + $0x50] sm:$0xff]  ;;  %v897_v51 = vld [vmem:[%s15193_s26 + $0x58] sm:$0xff] }
  0x59   : > { %12207 = vmatmul.mubr.msk.f32.gmra.mrb[4].mxu1 %vm1260_vm0, %v1251_v18  ;;  %v898_v54 = vld [vmem:[%s15193_s26 + $0x60] sm:$0xff]  ;;  %v899_v56 = vld [vmem:[%s15193_s26 + $0x68] sm:$0xff]  ;;  %v900_v58 = vld [vmem:[%s15193_s26 + $0x70] sm:$0xff] }
  0x5a   : > { %12209 = vmatprep.mubr.msk.f32.mxu1 %vm1260_vm0, %v1252_v19  ;;  %v901_v59 = vld [vmem:[%s15193_s26 + $0x78] sm:$0xff]  ;;  %v902_v60 = vld [vmem:[%s15193_s26 + $0x80] sm:$0xff]  ;;  %v903_v61 = vld [vmem:[%s15193_s26 + $0x88] sm:$0xff]  ;;  %s872_s25 = smax.f32 %s14937_s1, %s10216_s8 }
  0x5b   : > { %12152 = vmatmul.mubr.msk.f32.gmra.mrb[2].mxu0 %vm923_vm1, %v889_v21  ;;  %v904_v62 = vld [vmem:[%s15193_s26 + $0x90] sm:$0xff]  ;;  %v905_v63 = vld [vmem:[%s15193_s26 + $0x98] sm:$0xff]  ;;  %v906_v0 = vld [vmem:[%s15193_s26 + $0xa0] sm:$0xff]  ;;  %s15385_s24 = smin.f32 %s14938_s5, %s872_s25 }
  0x5c   : > { %12154 = vmatprep.mubr.msk.f32.mxu0 %vm923_vm1, %v890_v22  ;;  %v907_v1 = vld [vmem:[%s15193_s26 + $0xa8] sm:$0xff]  ;;  %v908_v2 = vld [vmem:[%s15193_s26 + $0xb0] sm:$0xff]  ;;  %v909_v3 = vld [vmem:[%s15193_s26 + $0xb8] sm:$0xff] }
  0x5d   : > { %12210 = vmatmul.mubr.msk.f32.gmra.mrb[6].mxu1 %vm1260_vm0, %v1253_v23  ;;  %v910_v4 = vld [vmem:[%s15193_s26 + $0xc0] sm:$0xff]  ;;  %v911_v5 = vld [vmem:[%s15193_s26 + $0xc8] sm:$0xff]  ;;  %v912_v6 = vld [vmem:[%s15193_s26 + $0xd0] sm:$0xff] }
  0x5e   : > { %12220 = vmatprep.mubr.msk.f32.mxu1 %vm1409_vm2, %v14618_v24  ;;  %v913_v7 = vld [vmem:[%s15193_s26 + $0xd8] sm:$0xff]  ;;  %v914_v8 = vld [vmem:[%s15193_s26 + $0xe0] sm:$0xff]  ;;  %v915_v9 = vld [vmem:[%s15193_s26 + $0xe8] sm:$0xff] }
  0x5f   : > { %12155 = vmatmul.mubr.msk.f32.gmra.mrb[4].mxu0 %vm923_vm1, %v891_v27  ;;  %v916_v10 = vld [vmem:[%s15193_s26 + $0xf0] sm:$0xff]  ;;  %v917_v12 = vld [vmem:[%s15193_s26 + $0xf8] sm:$0xff]  ;;  %v1940_v13 = vld [vmem:[%s19921_s11] sm:$0xff]  ;;  %s869_s26 = smax.f32 %s14937_s1, %s10215_s29  ;;  %s10203_s29 = sshll.u32 %s19128_s22, 8 }
  0x60   : > { %12157 = vmatprep.mubr.msk.f32.mxu0 %vm923_vm1, %v892_v29  ;;  %v10252_v14 = vld [vmem:[%s19922_s6 + $0x1] ss:$0 sm:$0xff]  ;;  %v10261_v35 = vld [vmem:[%s19923_s23 + $0x2] ss:$0 sm:$0xff]  ;;  %v1588_v43 = vld [vmem:[%s19920_s10 + $0x8] sm:$0xff]  ;;  %s15367_s6 = smin.f32 %s14938_s5, %s866_s9  ;;  %s15373_s0 = smin.f32 %s14938_s5, %s869_s26 }
  0x61   : > { %12221 = vmatmul.mubr.msk.f32.vlgmr.msra.gmra.mrb[8].mxu1 %vm1409_vm2, %v14619_v28  ;;  %v1589_v47 = vld [vmem:[%s19920_s10 + $0x10] sm:$0xff]  ;;  %v1941_v52 = vld [vmem:[%s19921_s11 + $0x8] sm:$0xff]  ;;  %s877_s9 = sadd.f32 %s15373_s0, %s15367_s6  ;;  %v10437_v53 = vld [vmem:[%s19957_s13 + $0x80] sm:$0xff]  ;;  %s19144_s3 = scalar_lea.vmem [#allocation5], %s10203_s29 }
  0x62   : > { %13598 = vmatpush3.bf16.msra.mxu1 %v13597_v30  ;;  %12239 = vmatprep.mubr.msk.f32.mxu1 %vm14935_vm3, %v19636_v39  ;;  %s9946_s26 = sshll.u32 %s19144_s3, 4  ;;  %s19400_s26 = int_to_ptr.vmem [resolvable:$true] %s9946_s26 }
  0x63   : > { %13599 = vmatprep.subr.bf16.mxu1 %v14933_v20  ;;  %12158 = vmatmul.mubr.msk.f32.gmra.mrb[6].mxu0 %vm923_vm1, %v893_v33  ;;  %s878_s25 = sadd.f32 %s877_s9, %s15385_s24  ;;  %s14772_s28 = scalar_lea.vmem %s19400_s26, 4096 }
  0x64   : > { %12160 = vmatprep.mubr.msk.f32.mxu0 %vm923_vm1, %v894_v37  ;;  %p14773_p9 = scmp.ne.s32.totalorder %s19400_s26, %s14772_s28 }
  0x65   : > { %s879_s9 = sadd.f32 %s878_s25, %s15400_s30 }
  0x66   : > { %13601 = vmatpush3.bf16.msra.mxu1 %v13600_v38  ;;  %p14774_p10 = pnand %p14773_p9, %p15120_p5 }
  0x67   : > { %13602 = vmatprep.subr.bf16.mxu1 %v14933_v20  ;;  %12161 = vmatmul.mubr.msk.f32.gmra.mrb[8].mxu0 %vm923_vm1, %v895_v42  ;;  %s880_s1 = sadd.f32 1e-08, %s879_s9  ;;  %s9918_s9 = scalar_lea.sflag [#allocation3], %s19128_s22 }
  0x68   : > { %12163 = vmatprep.mubr.msk.f32.mxu0 %vm923_vm1, %v896_v45  ;;  %p14775_p12 = pneg %p14774_p10 }
  0x6a   : > { %13604 = vmatpush3.bf16.msra.mxu1 %v13603_v46 }
  0x6b   : > { %13605 = vmatprep.subr.bf16.mxu1 %v14933_v20  ;;  %12164 = vmatmul.mubr.msk.f32.gmra.mrb[10].mxu0 %vm923_vm1, %v897_v51  ;;  %v1590_v51 = vld [vmem:[%s19920_s10 + $0x18] sm:$0xff] }
  0x6c   : > { %12166 = vmatprep.mubr.msk.f32.mxu0 %vm923_vm1, %v898_v54 }
  0x6e   : > { %13607 = vmatpush3.bf16.msra.mxu1 %v13606_v55  ;;  %v1591_v55 = vld [vmem:[%s19920_s10 + $0x20] sm:$0xff] }
  0x6f   : > { %12167 = vmatmul.mubr.msk.f32.gmra.mrb[12].mxu0 %vm923_vm1, %v899_v56  ;;  %v1942_v56 = vld [vmem:[%s19921_s11 + $0x10] sm:$0xff] }
  0x70   : > { %12169 = vmatprep.mubr.msk.f32.mxu0 %vm923_vm1, %v900_v58 }
  0x71   : > { %12240 = vmatmul.mubr.msk.f32.vlgmr.msra.gmra.mrb[10].mxu1 %vm1514_vm4, %v1513_v57 }
  0x72   : > { %12258 = vmatprep.mubr.msk.f32.mxu1 %vm1514_vm4, %v1587_v11 }
  0x73   : > { %12170 = vmatmul.mubr.msk.f32.gmra.mrb[14].mxu0 %vm923_vm1, %v901_v59 }
  0x74   : > { %12172 = vmatprep.mubr.msk.f32.mxu0 %vm923_vm1, %v902_v60  ;;  %v1592_v60 = vld [vmem:[%s19920_s10 + $0x28] sm:$0xff] }
  0x77   : > { %12173 = vmatmul.mubr.msk.f32.gmra.mrb[16].mxu0 %vm923_vm1, %v903_v61  ;;  %v1943_v61 = vld [vmem:[%s19921_s11 + $0x18] sm:$0xff] }
  0x78   : > { %12175 = vmatprep.mubr.msk.f32.mxu0 %vm923_vm1, %v904_v62 }
  0x7b   : > { %12176 = vmatmul.mubr.msk.f32.gmra.mrb[18].mxu0 %vm923_vm1, %v905_v63  ;;  %v1593_v63 = vld [vmem:[%s19920_s10 + $0x30] sm:$0xff] }
  0x7c   : > { %12178 = vmatprep.mubr.msk.f32.mxu0 %vm923_vm1, %v906_v0  ;;  %v1944_v0 = vld [vmem:[%s19921_s11 + $0x20] sm:$0xff] }
  0x7f   : > { %12179 = vmatmul.mubr.msk.f32.gmra.mrb[20].mxu0 %vm923_vm1, %v907_v1 }
  0x80   : > { %12181 = vmatprep.mubr.msk.f32.mxu0 %vm923_vm1, %v908_v2 }
  0x83   : > { %12182 = vmatmul.mubr.msk.f32.gmra.mrb[22].mxu0 %vm923_vm1, %v909_v3  ;;  %v10264_v3 = vld [vmem:[%s19923_s23 + $0x3] ss:$0 sm:$0xff] }
  0x84   : > { %12184 = vmatprep.mubr.msk.f32.mxu0 %vm923_vm1, %v910_v4 }
  0x87   : > { %12185 = vmatmul.mubr.msk.f32.gmra.mrb[24].mxu0 %vm923_vm1, %v911_v5  ;;  %v1594_v5 = vld [vmem:[%s19920_s10 + $0x38] sm:$0xff] }
  0x88   : > { %12187 = vmatprep.mubr.msk.f32.mxu0 %vm923_vm1, %v912_v6  ;;  %v1945_v6 = vld [vmem:[%s19921_s11 + $0x28] sm:$0xff] }
  0x8b   : > { %12188 = vmatmul.mubr.msk.f32.gmra.mrb[26].mxu0 %vm923_vm1, %v913_v7 }
  0x8c   : > { %12190 = vmatprep.mubr.msk.f32.mxu0 %vm923_vm1, %v914_v8  ;;  %v1595_v8 = vld [vmem:[%s19920_s10 + $0x40] sm:$0xff] }
  0x8f   : > { %12191 = vmatmul.mubr.msk.f32.gmra.mrb[28].mxu0 %vm923_vm1, %v915_v9  ;;  %v1946_v9 = vld [vmem:[%s19921_s11 + $0x30] sm:$0xff] }
  0x90   : > { %12193 = vmatprep.mubr.msk.f32.mxu0 %vm923_vm1, %v916_v10 }
  0x93   : > { %12194 = vmatmul.mubr.msk.f32.gmra.mrb[30].mxu0 %vm923_vm1, %v917_v12 }
  0x94   : > { %12310 = vmatprep.mubr.msk.f32.mxu0 %vm1260_vm0, %v1940_v13 }
 0x124   : > { %v12202_v15 = vpop.f32.mrb[0].mxu1 }
 0x125   : > { %v1357_v16 = vadd.f32 %v12202_v15, %v10252_v14  ;;  %v1351_v17 = vpop.f32.mrb[1].mxu1  ;;  %v1947_v15 = vld [vmem:[%s19921_s11 + $0x38] sm:$0xff] }
 0x126   : > { %v1352_v18 = vadd.f32 %v10252_v14, %v1351_v17  ;;  %v1597_v17 = vld [vmem:[%s19920_s10 + $0x50] sm:$0xff] }
 0x128   : > { %v13608_v19 = vpack.c.bf16 %v1357_v16, %v1352_v18  ;;  %v12205_v21 = vpop.f32.mrb[2].mxu1  ;;  %v1948_v18 = vld [vmem:[%s19921_s11 + $0x40] sm:$0xff] }
 0x129   : > { %v1367_v22 = vadd.f32 %v12205_v21, %v10252_v14  ;;  %v1361_v23 = vpop.f32.mrb[3].mxu1 }
 0x12a   : > { %v1362_v24 = vadd.f32 %v10252_v14, %v1361_v23  ;;  %13609 = vmatprep.subr.bf16.mxu1 %v13608_v19  ;;  %v15330_v42 = vpop.f32.mrb[0].mxu0  ;;  %v1949_v23 = vld [vmem:[%s19921_s11 + $0x48] sm:$0xff] }
 0x12b   : > { %13611 = vmatpush3.bf16.msra.mxu1 %v13608_v19  ;;  %v15335_v45 = vpop.f32.mrb[1].mxu0  ;;  %v881_v19 = vstv %s880_s1 }
 0x12c   : > { %v13612_v25 = vpack.c.bf16 %v1367_v22, %v1362_v24  ;;  %v12208_v26 = vpop.f32.mrb[4].mxu1  ;;  %14621 = vrcp.f32 %v881_v19  ;;  %v1598_v22 = vld [vmem:[%s19920_s10 + $0x58] sm:$0xff]  ;;  %v1617_v19 = vld [vmem:[%s19920_s10 + $0xf0] sm:$0xff] }
 0x12d   : > { %v1377_v27 = vadd.f32 %v12208_v26, %v10252_v14  ;;  %v1371_v28 = vpop.f32.mrb[5].mxu1  ;;  %v1950_v26 = vld [vmem:[%s19921_s11 + $0x50] sm:$0xff] }
 0x12e   : > { %v1372_v29 = vadd.f32 %v10252_v14, %v1371_v28  ;;  %13613 = vmatprep.subr.bf16.mxu1 %v13612_v25  ;;  %v15342_v48 = vpop.f32.mrb[2].mxu0  ;;  %v1600_v28 = vld [vmem:[%s19920_s10 + $0x68] sm:$0xff] }
 0x12f   : > { %13615 = vmatpush3.bf16.msra.mxu1 %v13612_v25  ;;  %v15344_v49 = vpop.f32.mrb[3].mxu0  ;;  %v1599_v25 = vld [vmem:[%s19920_s10 + $0x60] sm:$0xff] }
 0x130   : > { %v13616_v30 = vpack.c.bf16 %v1377_v27, %v1372_v29  ;;  %v12211_v31 = vpop.f32.mrb[6].mxu1  ;;  %v1951_v29 = vld [vmem:[%s19921_s11 + $0x58] sm:$0xff] }
 0x131   : > { %v1387_v32 = vadd.f32 %v12211_v31, %v10252_v14  ;;  %v1381_v33 = vpop.f32.mrb[7].mxu1  ;;  %v1601_v31 = vld [vmem:[%s19920_s10 + $0x70] sm:$0xff] }
 0x132   : > { %v1382_v34 = vadd.f32 %v10252_v14, %v1381_v33  ;;  %13617 = vmatprep.subr.bf16.mxu1 %v13616_v30  ;;  %v15347_v50 = vpop.f32.mrb[4].mxu0  ;;  %v1596_v14 = vld [vmem:[%s19920_s10 + $0x48] sm:$0xff] }
 0x133   : > { %13619 = vmatpush3.bf16.msra.mxu1 %v13616_v30  ;;  %v15356_v54 = vpop.f32.mrb[5].mxu0 }
 0x134   : > { %v13620_v36 = vpack.c.bf16 %v1387_v32, %v1382_v34  ;;  %v12222_v37 = vpop.f32.mrb[8].mxu1  ;;  %v1952_v32 = vld [vmem:[%s19921_s11 + $0x60] sm:$0xff]  ;;  %v1602_v34 = vld [vmem:[%s19920_s10 + $0x78] sm:$0xff] }
 0x135   : > { %v1486_v38 = vadd.f32 %v12222_v37, %v10261_v35  ;;  %v1480_v40 = vpop.f32.mrb[9].mxu1  ;;  %v1954_v37 = vld [vmem:[%s19921_s11 + $0x70] sm:$0xff] }
 0x136   : > { %v1481_v41 = vadd.f32 %v10261_v35, %v1480_v40  ;;  %13621 = vmatprep.subr.bf16.mxu1 %v13620_v36  ;;  %v15364_v57 = vpop.f32.mrb[6].mxu0  ;;  %v14622_v33 = vpop.eup %14621  ;;  %v1953_v35 = vld [vmem:[%s19921_s11 + $0x68] sm:$0xff]  ;;  %v1955_v40 = vld [vmem:[%s19921_s11 + $0x78] sm:$0xff] }
 0x137   : > { %13623 = vmatpush3.bf16.msra.mxu1 %v13620_v36  ;;  %v15369_v58 = vpop.f32.mrb[7].mxu0  ;;  %v1603_v36 = vld [vmem:[%s19920_s10 + $0x80] sm:$0xff]  ;;  %14536 = vpush %v14622_v33 }
 0x138   : > { %v13624_v46 = vpack.c.bf16 %v1486_v38, %v1481_v41  ;;  %v1604_v38 = vld [vmem:[%s19920_s10 + $0x88] sm:$0xff]  ;;  %v1605_v41 = vld [vmem:[%s19920_s10 + $0x90] sm:$0xff] }
 0x13a   : > { %12259 = vmatmul.mubr.msk.f32.vlgmr.msra.gmra.mrb[12].mxu1 %vm1514_vm4, %v1588_v43  ;;  %13625 = vmatprep.subr.bf16.mxu0 %v13624_v46  ;;  %v15375_v59 = vpop.f32.mrb[8].mxu0  ;;  %v1956_v43 = vld [vmem:[%s19921_s11 + $0x80] sm:$0xff] }
 0x13b   : > { %13627 = vmatpush3.bf16.msra.mxu0 %v13624_v46  ;;  %12261 = vmatprep.mubr.msk.f32.mxu1 %vm1514_vm4, %v1589_v47  ;;  %v15388_v62 = vpop.f32.mrb[9].mxu0  ;;  %v1606_v46 = vld [vmem:[%s19920_s10 + $0x98] sm:$0xff]  ;;  %v1957_v47 = vld [vmem:[%s19921_s11 + $0x88] sm:$0xff] }
 0x13c   : > { %13628 = vmatprep.subr.bf16.mxu0 %v14933_v20 }
 0x13e   : > { %12262 = vmatmul.mubr.msk.f32.gmra.mrb[14].mxu1 %vm1514_vm4, %v1590_v51  ;;  %12311 = vmatmul.mubr.msk.f32.vlgmr.msra.gmra.mrb[32].mxu0 %vm1260_vm0, %v1941_v52  ;;  %v15398_v1 = vpop.f32.mrb[10].mxu0  ;;  %v1607_v51 = vld [vmem:[%s19920_s10 + $0xa0] sm:$0xff]  ;;  %v1958_v52 = vld [vmem:[%s19921_s11 + $0x90] sm:$0xff] }
 0x13f   : > { %12264 = vmatprep.mubr.msk.f32.mxu1 %vm1514_vm4, %v1591_v55  ;;  %12313 = vmatprep.mubr.msk.f32.mxu0 %vm1260_vm0, %v1942_v56  ;;  %v15402_v2 = vpop.f32.mrb[11].mxu0  ;;  %v1608_v55 = vld [vmem:[%s19920_s10 + $0xa8] sm:$0xff]  ;;  %v1959_v56 = vld [vmem:[%s19921_s11 + $0x98] sm:$0xff] }
 0x142   : > { %12265 = vmatmul.mubr.msk.f32.gmra.mrb[16].mxu1 %vm1514_vm4, %v1592_v60  ;;  %12314 = vmatmul.mubr.msk.f32.gmra.mrb[34].mxu0 %vm1260_vm0, %v1943_v61  ;;  %v15410_v4 = vpop.f32.mrb[12].mxu0  ;;  %v1609_v60 = vld [vmem:[%s19920_s10 + $0xb0] sm:$0xff]  ;;  %v1960_v61 = vld [vmem:[%s19921_s11 + $0xa0] sm:$0xff] }
 0x143   : > { %12267 = vmatprep.mubr.msk.f32.mxu1 %vm1514_vm4, %v1593_v63  ;;  %12316 = vmatprep.mubr.msk.f32.mxu0 %vm1260_vm0, %v1944_v0  ;;  %v15420_v7 = vpop.f32.mrb[13].mxu0  ;;  %v1610_v63 = vld [vmem:[%s19920_s10 + $0xb8] sm:$0xff]  ;;  %v1961_v0 = vld [vmem:[%s19921_s11 + $0xa8] sm:$0xff] }
 0x144   : > { %v1583_v10 = vpop.f32.mrb[10].mxu1 }
 0x145   : > { %v1584_v11 = vadd.f32 %v10264_v3, %v1583_v10  ;;  %v12241_v12 = vpop.f32.mrb[11].mxu1  ;;  %v1611_v3 = vld [vmem:[%s19920_s10 + $0xc0] sm:$0xff] }
 0x146   : > { %12268 = vmatmul.mubr.msk.f32.gmra.mrb[18].mxu1 %vm1514_vm4, %v1594_v5  ;;  %12317 = vmatmul.mubr.msk.f32.gmra.mrb[36].mxu0 %vm1260_vm0, %v1945_v6  ;;  %v15431_v13 = vpop.f32.mrb[14].mxu0  ;;  %v1962_v5 = vld [vmem:[%s19921_s11 + $0xb0] sm:$0xff]  ;;  %v1612_v6 = vld [vmem:[%s19920_s10 + $0xc8] sm:$0xff]  ;;  %v1964_v10 = vld [vmem:[%s19921_s11 + $0xc0] sm:$0xff] }
 0x147   : > { %12270 = vmatprep.mubr.msk.f32.mxu1 %vm1514_vm4, %v1595_v8  ;;  %12319 = vmatprep.mubr.msk.f32.mxu0 %vm1260_vm0, %v1946_v9  ;;  %v15441_v16 = vpop.f32.mrb[15].mxu0  ;;  %v1963_v8 = vld [vmem:[%s19921_s11 + $0xb8] sm:$0xff]  ;;  %v1613_v9 = vld [vmem:[%s19920_s10 + $0xd0] sm:$0xff]  ;;  %v1965_v12 = vld [vmem:[%s19921_s11 + $0xc8] sm:$0xff] }
 0x148   : > { %12358 = vmatprep.subr.msk.mxu1 %vm2422_vm5, %v1584_v11 }
 0x149   : > { %12359 = vmatpush3.msk.msra.mxu1 %vm2422_vm5, %v1584_v11  ;;  %v1614_v11 = vld [vmem:[%s19920_s10 + $0xd8] sm:$0xff] }
 0x14a   : > { %12271 = vmatmul.mubr.msk.f32.gmra.mrb[20].mxu1 %vm1514_vm4, %v1596_v14  ;;  %12320 = vmatmul.mubr.msk.f32.gmra.mrb[38].mxu0 %vm1260_vm0, %v1947_v15  ;;  %v15453_v21 = vpop.f32.mrb[16].mxu0  ;;  %v1615_v14 = vld [vmem:[%s19920_s10 + $0xe0] sm:$0xff]  ;;  %v1966_v15 = vld [vmem:[%s19921_s11 + $0xd0] sm:$0xff] }
 0x14b   : > { %12273 = vmatprep.mubr.msk.f32.mxu1 %vm1514_vm4, %v1597_v17  ;;  %12322 = vmatprep.mubr.msk.f32.mxu0 %vm1260_vm0, %v1948_v18  ;;  %v15463_v24 = vpop.f32.mrb[17].mxu0  ;;  %v1616_v17 = vld [vmem:[%s19920_s10 + $0xe8] sm:$0xff]  ;;  %v1967_v18 = vld [vmem:[%s19921_s11 + $0xd8] sm:$0xff] }
 0x14e   : > { %12274 = vmatmul.mubr.msk.f32.gmra.mrb[22].mxu1 %vm1514_vm4, %v1598_v22  ;;  %12323 = vmatmul.mubr.msk.f32.gmra.mrb[40].mxu0 %vm1260_vm0, %v1949_v23  ;;  %v15473_v27 = vpop.f32.mrb[18].mxu0  ;;  %v1968_v22 = vld [vmem:[%s19921_s11 + $0xe0] sm:$0xff]  ;;  %v1618_v23 = vld [vmem:[%s19920_s10 + $0xf8] sm:$0xff] }
 0x14f   : > { %12276 = vmatprep.mubr.msk.f32.mxu1 %vm1514_vm4, %v1599_v25  ;;  %12325 = vmatprep.mubr.msk.f32.mxu0 %vm1260_vm0, %v1950_v26  ;;  %v15483_v30 = vpop.f32.mrb[19].mxu0  ;;  %v1969_v25 = vld [vmem:[%s19921_s11 + $0xe8] sm:$0xff]  ;;  %v1970_v26 = vld [vmem:[%s19921_s11 + $0xf0] sm:$0xff] }
 0x152   : > { %12277 = vmatmul.mubr.msk.f32.gmra.mrb[24].mxu1 %vm1514_vm4, %v1600_v28  ;;  %12326 = vmatmul.mubr.msk.f32.gmra.mrb[42].mxu0 %vm1260_vm0, %v1951_v29  ;;  %v2293_v28 = vld [vmem:[%s19924_s12] sm:$0xff]  ;;  %v1971_v29 = vld [vmem:[%s19921_s11 + $0xf8] sm:$0xff]  ;;  %v15648_v33 = vpop.f32.mrb[20].mxu0 }
 0x153   : > { %12279 = vmatprep.mubr.msk.f32.mxu1 %vm1514_vm4, %v1601_v31  ;;  %12328 = vmatprep.mubr.msk.f32.mxu0 %vm1260_vm0, %v1952_v32  ;;  %v2294_v31 = vld [vmem:[%s19924_s12 + $0x8] sm:$0xff]  ;;  %v2295_v32 = vld [vmem:[%s19924_s12 + $0x10] sm:$0xff] }
 0x156   : > { %12280 = vmatmul.mubr.msk.f32.gmra.mrb[26].mxu1 %vm1514_vm4, %v1602_v34  ;;  %12329 = vmatmul.mubr.msk.f32.gmra.mrb[44].mxu0 %vm1260_vm0, %v1953_v35  ;;  %v15652_v34 = vpop.f32.mrb[21].mxu0  ;;  %v2296_v35 = vld [vmem:[%s19924_s12 + $0x18] sm:$0xff] }
 0x157   : > { %12282 = vmatprep.mubr.msk.f32.mxu1 %vm1514_vm4, %v1603_v36  ;;  %12331 = vmatprep.mubr.msk.f32.mxu0 %vm1260_vm0, %v1954_v37  ;;  %v2297_v36 = vld [vmem:[%s19924_s12 + $0x20] sm:$0xff]  ;;  %v15663_v37 = vpop.f32.mrb[22].mxu0 }
 0x15a   : > { %12283 = vmatmul.mubr.msk.f32.gmra.mrb[28].mxu1 %vm1514_vm4, %v1604_v38  ;;  %12332 = vmatmul.mubr.msk.f32.gmra.mrb[46].mxu0 %vm1260_vm0, %v1955_v40  ;;  %v15666_v38 = vpop.f32.mrb[23].mxu0  ;;  %v2298_v40 = vld [vmem:[%s19924_s12 + $0x28] sm:$0xff] }
 0x15b   : > { %12285 = vmatprep.mubr.msk.f32.mxu1 %vm1514_vm4, %v1605_v41  ;;  %12334 = vmatprep.mubr.msk.f32.mxu0 %vm1260_vm0, %v1956_v43  ;;  %v2299_v41 = vld [vmem:[%s19924_s12 + $0x30] sm:$0xff]  ;;  %v15675_v43 = vpop.f32.mrb[24].mxu0 }
 0x15e   : > { %12286 = vmatmul.mubr.msk.f32.gmra.mrb[30].mxu1 %vm1514_vm4, %v1606_v46  ;;  %12335 = vmatmul.mubr.msk.f32.gmra.mrb[48].mxu0 %vm1260_vm0, %v1957_v47  ;;  %v15678_v46 = vpop.f32.mrb[25].mxu0  ;;  %v2300_v47 = vld [vmem:[%s19924_s12 + $0x38] sm:$0xff] }
 0x15f   : > { %12288 = vmatprep.mubr.msk.f32.mxu1 %vm1514_vm4, %v1607_v51  ;;  %12337 = vmatprep.mubr.msk.f32.mxu0 %vm1260_vm0, %v1958_v52  ;;  %v2301_v51 = vld [vmem:[%s19924_s12 + $0x40] sm:$0xff]  ;;  %v15687_v52 = vpop.f32.mrb[26].mxu0 }
 0x162   : > { %12289 = vmatmul.mubr.msk.f32.gmra.mrb[32].mxu1 %vm1514_vm4, %v1608_v55  ;;  %12338 = vmatmul.mubr.msk.f32.gmra.mrb[50].mxu0 %vm1260_vm0, %v1959_v56  ;;  %v15690_v55 = vpop.f32.mrb[27].mxu0  ;;  %v2302_v56 = vld [vmem:[%s19924_s12 + $0x48] sm:$0xff] }
 0x163   : > { %12291 = vmatprep.mubr.msk.f32.mxu1 %vm1514_vm4, %v1609_v60  ;;  %12340 = vmatprep.mubr.msk.f32.mxu0 %vm1260_vm0, %v1960_v61  ;;  %v2303_v60 = vld [vmem:[%s19924_s12 + $0x50] sm:$0xff]  ;;  %v15699_v61 = vpop.f32.mrb[28].mxu0 }
 0x166   : > { %12292 = vmatmul.mubr.msk.f32.gmra.mrb[34].mxu1 %vm1514_vm4, %v1610_v63  ;;  %12341 = vmatmul.mubr.msk.f32.gmra.mrb[52].mxu0 %vm1260_vm0, %v1961_v0  ;;  %v2304_v63 = vld [vmem:[%s19924_s12 + $0x58] sm:$0xff]  ;;  %v2305_v0 = vld [vmem:[%s19924_s12 + $0x60] sm:$0xff] }
 0x167   : > { %12294 = vmatprep.mubr.msk.f32.mxu1 %vm1514_vm4, %v1611_v3  ;;  %12343 = vmatprep.mubr.msk.f32.mxu0 %vm1260_vm0, %v1962_v5  ;;  %v15710_v3 = vpop.f32.mrb[29].mxu0  ;;  %v2306_v5 = vld [vmem:[%s19924_s12 + $0x68] sm:$0xff] }
 0x168   : > { %s15793_s5 = spop %14536 }
 0x169   : > { %s2651_s27 = smul.f32 %s15793_s5, %s15367_s6 }
 0x16a   : > { %12295 = vmatmul.mubr.msk.f32.gmra.mrb[36].mxu1 %vm1514_vm4, %v1612_v6  ;;  %12344 = vmatmul.mubr.msk.f32.gmra.mrb[54].mxu0 %vm1260_vm0, %v1963_v8  ;;  %v15716_v6 = vpop.f32.mrb[30].mxu0  ;;  %v2307_v8 = vld [vmem:[%s19924_s12 + $0x70] sm:$0xff]  ;;  %s2685_s8 = smul.f32 %s15793_s5, %s15373_s0 }
 0x16b   : > { %12297 = vmatprep.mubr.msk.f32.mxu1 %vm1514_vm4, %v1613_v9  ;;  %12346 = vmatprep.mubr.msk.f32.mxu0 %vm1260_vm0, %v1964_v10  ;;  %v15721_v9 = vpop.f32.mrb[31].mxu0  ;;  %v2308_v10 = vld [vmem:[%s19924_s12 + $0x78] sm:$0xff]  ;;  %s2751_s6 = smul.f32 %s15793_s5, %s15385_s24 }
 0x16c   : > { %s2817_s1 = smul.f32 %s15793_s5, %s15400_s30 }
 0x16e   : > { %12298 = vmatmul.mubr.msk.f32.gmra.mrb[38].mxu1 %vm1514_vm4, %v1614_v11  ;;  %12347 = vmatmul.mubr.msk.f32.gmra.mrb[56].mxu0 %vm1260_vm0, %v1965_v12  ;;  %v2309_v11 = vld [vmem:[%s19924_s12 + $0x80] sm:$0xff]  ;;  %v2310_v12 = vld [vmem:[%s19924_s12 + $0x88] sm:$0xff] }
 0x16f   : > { %12300 = vmatprep.mubr.msk.f32.mxu1 %vm1514_vm4, %v1615_v14  ;;  %12349 = vmatprep.mubr.msk.f32.mxu0 %vm1260_vm0, %v1966_v15  ;;  %v2311_v14 = vld [vmem:[%s19924_s12 + $0x90] sm:$0xff]  ;;  %v2312_v15 = vld [vmem:[%s19924_s12 + $0x98] sm:$0xff] }
 0x172   : > { %12301 = vmatmul.mubr.msk.f32.gmra.mrb[40].mxu1 %vm1514_vm4, %v1616_v17  ;;  %12350 = vmatmul.mubr.msk.f32.gmra.mrb[58].mxu0 %vm1260_vm0, %v1967_v18  ;;  %v2313_v17 = vld [vmem:[%s19924_s12 + $0xa0] sm:$0xff]  ;;  %v2314_v18 = vld [vmem:[%s19924_s12 + $0xa8] sm:$0xff] }
 0x173   : > { %12303 = vmatprep.mubr.msk.f32.mxu1 %vm1514_vm4, %v1617_v19  ;;  %12352 = vmatprep.mubr.msk.f32.mxu0 %vm1260_vm0, %v1968_v22  ;;  %v2315_v19 = vld [vmem:[%s19924_s12 + $0xb0] sm:$0xff]  ;;  %v2316_v22 = vld [vmem:[%s19924_s12 + $0xb8] sm:$0xff] }
 0x176   : > { %12304 = vmatmul.mubr.msk.f32.gmra.mrb[42].mxu1 %vm1514_vm4, %v1618_v23  ;;  %12353 = vmatmul.mubr.msk.f32.gmra.mrb[60].mxu0 %vm1260_vm0, %v1969_v25  ;;  %v2317_v23 = vld [vmem:[%s19924_s12 + $0xc0] sm:$0xff]  ;;  %v2318_v25 = vld [vmem:[%s19924_s12 + $0xc8] sm:$0xff] }
 0x177   : > { %12355 = vmatprep.mubr.msk.f32.mxu0 %vm1260_vm0, %v1970_v26  ;;  %12360 = vmatprep.mubr.msk.f32.mxu1 %vm2325_vm6, %v2293_v28  ;;  %v2319_v26 = vld [vmem:[%s19924_s12 + $0xd0] sm:$0xff]  ;;  %v2320_v28 = vld [vmem:[%s19924_s12 + $0xd8] sm:$0xff] }
 0x17a   : > { %12356 = vmatmul.mubr.msk.f32.gmra.mrb[62].mxu0 %vm1260_vm0, %v1971_v29  ;;  %12361 = vmatmul.mubr.msk.f32.vlgmr.msra.gmra.mrb[44].mxu1 %vm2325_vm6, %v2294_v31  ;;  %v2321_v29 = vld [vmem:[%s19924_s12 + $0xe0] sm:$0xff]  ;;  %v2322_v31 = vld [vmem:[%s19924_s12 + $0xe8] sm:$0xff] }
 0x17b   : > { %12363 = vmatprep.mubr.msk.f32.mxu1 %vm2325_vm6, %v2295_v32  ;;  %12424 = vmatprep.mubr.msk.f32.mxu0 %vm14935_vm3, %v19636_v39  ;;  %v2323_v32 = vld [vmem:[%s19924_s12 + $0xf0] sm:$0xff] }
 0x17e   : > { %12364 = vmatmul.mubr.msk.f32.gmra.mrb[46].mxu1 %vm2325_vm6, %v2296_v35  ;;  %v2324_v35 = vld [vmem:[%s19924_s12 + $0xf8] sm:$0xff] }
 0x17f   : > { %12366 = vmatprep.mubr.msk.f32.mxu1 %vm2325_vm6, %v2297_v36  ;;  %v15798_v36 = vld [vmem:[%s19923_s23] ss:$0 sm:$0xff] }
 0x182   : > { %12367 = vmatmul.mubr.msk.f32.gmra.mrb[48].mxu1 %vm2325_vm6, %v2298_v40  ;;  %v1092_v40 = vadd.f32 %v15330_v42, %v15798_v36  ;;  %v1102_v42 = vadd.f32 %v15342_v48, %v15798_v36  ;;  %v1112_v48 = vadd.f32 %v15347_v50, %v15798_v36  ;;  %v1122_v50 = vadd.f32 %v15364_v57, %v15798_v36  ;;  %v2957_v57 = vld [vmem:[%s19603_s14 + $0x18] sm:$0xff] }
 0x183   : > { %12369 = vmatprep.mubr.msk.f32.mxu1 %vm2325_vm6, %v2299_v41  ;;  %v2954_v41 = vld [vmem:[%s19603_s14] sm:$0xff] }
 0x186   : > { %12370 = vmatmul.mubr.msk.f32.gmra.mrb[50].mxu1 %vm2325_vm6, %v2300_v47  ;;  %v2955_v47 = vld [vmem:[%s19603_s14 + $0x8] sm:$0xff] }
 0x187   : > { %12372 = vmatprep.mubr.msk.f32.mxu1 %vm2325_vm6, %v2301_v51  ;;  %v1087_v51 = vadd.f32 %v15798_v36, %v15335_v45 }
 0x18a   : > { %12373 = vmatmul.mubr.msk.f32.gmra.mrb[52].mxu1 %vm2325_vm6, %v2302_v56  ;;  %v15814_v56 = vstv %s2651_s27  ;;  %s10218_s27 = sld [smem:[#allocation2 + $0x4]] }
 0x18b   : > { %12375 = vmatprep.mubr.msk.f32.mxu1 %vm2325_vm6, %v2303_v60  ;;  %v13629_v60 = vpack.c.bf16 %v2955_v47, %v2954_v41  ;;  %v2956_v47 = vld [vmem:[%s19603_s14 + $0x10] sm:$0xff] }
 0x18d   : > { %13630 = vmatpush3.bf16.msra.mxu0 %v13629_v60 }
 0x18e   : > { %12376 = vmatmul.mubr.msk.f32.gmra.mrb[54].mxu1 %vm2325_vm6, %v2304_v63  ;;  %v15816_v63 = vstv %s2685_s8  ;;  %13631 = vmatprep.subr.bf16.mxu0 %v14933_v20 }
 0x18f   : > { %12378 = vmatprep.mubr.msk.f32.mxu1 %vm2325_vm6, %v2305_v0  ;;  %v2654_v0 = vmul.f32 %v15814_v56, %v1092_v40 }
 0x192   : > { %12379 = vmatmul.mubr.msk.f32.gmra.mrb[56].mxu1 %vm2325_vm6, %v2306_v5  ;;  %v1097_v5 = vadd.f32 %v15798_v36, %v15344_v49 }
 0x193   : > { %12381 = vmatprep.mubr.msk.f32.mxu1 %vm2325_vm6, %v2307_v8  ;;  %v2653_v8 = vmul.f32 %v15814_v56, %v1087_v51 }
 0x194   : > { %v2655_v49 = vmul.f32 %v15814_v56, %v1097_v5  ;;  %v13632_v5 = vpack.c.bf16 %v2957_v57, %v2956_v47 }
 0x196   : > { %12382 = vmatmul.mubr.msk.f32.gmra.mrb[58].mxu1 %vm2325_vm6, %v2308_v10  ;;  %13633 = vmatpush3.bf16.msra.mxu0 %v13632_v5 }
 0x197   : > { %12384 = vmatprep.mubr.msk.f32.mxu1 %vm2325_vm6, %v2309_v11  ;;  %13634 = vmatprep.subr.bf16.mxu0 %v14933_v20 }
 0x19a   : > { %12385 = vmatmul.mubr.msk.f32.gmra.mrb[60].mxu1 %vm2325_vm6, %v2310_v12  ;;  %v15828_v12 = vstv %s2751_s6 }
 0x19b   : > { %12387 = vmatprep.mubr.msk.f32.mxu1 %vm2325_vm6, %v2311_v14 }
 0x19e   : > { %12388 = vmatmul.mubr.msk.f32.gmra.mrb[62].mxu1 %vm2325_vm6, %v2312_v15  ;;  %v2656_v15 = vmul.f32 %v15814_v56, %v1102_v42 }
 0x19f   : > { %12390 = vmatprep.mubr.msk.f32.mxu1 %vm2325_vm6, %v2313_v17 }
 0x1a2   : > { %12391 = vmatmul.mubr.msk.f32.gmra.mrb[64].mxu1 %vm2325_vm6, %v2314_v18  ;;  %v1107_v18 = vadd.f32 %v15798_v36, %v15356_v54  ;;  %v1117_v54 = vadd.f32 %v15798_v36, %v15369_v58 }
 0x1a3   : > { %12393 = vmatprep.mubr.msk.f32.mxu1 %vm2325_vm6, %v2315_v19 }
 0x1a4   : > { %v2657_v51 = vmul.f32 %v15814_v56, %v1107_v18 }
 0x1a6   : > { %12394 = vmatmul.mubr.msk.f32.gmra.mrb[66].mxu1 %vm2325_vm6, %v2316_v22 }
 0x1a7   : > { %12396 = vmatprep.mubr.msk.f32.mxu1 %vm2325_vm6, %v2317_v23 }
 0x1aa   : > { %12397 = vmatmul.mubr.msk.f32.gmra.mrb[68].mxu1 %vm2325_vm6, %v2318_v25 }
 0x1ab   : > { %12399 = vmatprep.mubr.msk.f32.mxu1 %vm2325_vm6, %v2319_v26 }
 0x1ae   : > { %12400 = vmatmul.mubr.msk.f32.gmra.mrb[70].mxu1 %vm2325_vm6, %v2320_v28 }
 0x1af   : > { %12402 = vmatprep.mubr.msk.f32.mxu1 %vm2325_vm6, %v2321_v29 }
 0x1b2   : > { %12403 = vmatmul.mubr.msk.f32.gmra.mrb[72].mxu1 %vm2325_vm6, %v2322_v31 }
 0x1b3   : > { %12405 = vmatprep.mubr.msk.f32.mxu1 %vm2325_vm6, %v2323_v32 }
 0x1b6   : > { %12406 = vmatmul.mubr.msk.f32.gmra.mrb[74].mxu1 %vm2325_vm6, %v2324_v35  ;;  %v2658_v35 = vmul.f32 %v15814_v56, %v1112_v48  ;;  %v2959_v48 = vld [vmem:[%s19603_s14 + $0x28] sm:$0xff] }
 0x20d   : > { %v12260_v45 = vpop.f32.mrb[12].mxu1 }
 0x20e   : > { %v2688_v10 = vmul.f32 %v12260_v45, %v15816_v63  ;;  %v1781_v11 = vpop.f32.mrb[13].mxu1 }
 0x20f   : > { %v2687_v14 = vmul.f32 %v15816_v63, %v1781_v11 }
 0x210   : > { %v2720_v17 = vadd.f32 %v2688_v10, %v2654_v0 }
 0x211   : > { %v2719_v19 = vadd.f32 %v2687_v14, %v2653_v8  ;;  %v12263_v22 = vpop.f32.mrb[14].mxu1  ;;  %v12312_v23 = vpop.f32.mrb[32].mxu0  ;;  %v2958_v14 = vld [vmem:[%s19603_s14 + $0x20] sm:$0xff] }
 0x212   : > { %v2690_v25 = vmul.f32 %v12263_v22, %v15816_v63  ;;  %v2754_v26 = vmul.f32 %v12312_v23, %v15828_v12  ;;  %v1791_v28 = vpop.f32.mrb[15].mxu1  ;;  %v2134_v29 = vpop.f32.mrb[33].mxu0  ;;  %v13635_v18 = vpack.c.bf16 %v2959_v48, %v2958_v14 }
 0x213   : > { %v2689_v31 = vmul.f32 %v15816_v63, %v1791_v28  ;;  %v2753_v32 = vmul.f32 %v15828_v12, %v2134_v29  ;;  %v1127_v28 = vadd.f32 %v15798_v36, %v15388_v62  ;;  %v1142_v62 = vadd.f32 %v15398_v1, %v15798_v36 }
 0x214   : > { %v2722_v40 = vadd.f32 %v2690_v25, %v2656_v15  ;;  %v15846_v41 = vadd.f32 %v2754_v26, %v2720_v17  ;;  %v2960_v25 = vld [vmem:[%s19603_s14 + $0x30] sm:$0xff]  ;;  %v2961_v26 = vld [vmem:[%s19603_s14 + $0x38] sm:$0xff]  ;;  %13636 = vmatpush3.bf16.msra.mxu0 %v13635_v18 }
 0x215   : > { %v2721_v60 = vadd.f32 %v2689_v31, %v2655_v49  ;;  %v15855_v42 = vadd.f32 %v2753_v32, %v2719_v19  ;;  %v12266_v0 = vpop.f32.mrb[16].mxu1  ;;  %v12315_v58 = vpop.f32.mrb[34].mxu0  ;;  %v1132_v49 = vadd.f32 %v15375_v59, %v15798_v36  ;;  %v2660_v19 = vmul.f32 %v15814_v56, %v1122_v50  ;;  %13637 = vmatprep.subr.bf16.mxu0 %v14933_v20 }
 0x216   : > { %v2692_v8 = vmul.f32 %v12266_v0, %v15816_v63  ;;  %v2756_v45 = vmul.f32 %v12315_v58, %v15828_v12  ;;  %v1801_v10 = vpop.f32.mrb[17].mxu1  ;;  %v2144_v11 = vpop.f32.mrb[35].mxu0  ;;  %v2659_v59 = vmul.f32 %v15814_v56, %v1117_v54  ;;  %v13638_v5 = vpack.c.bf16 %v2961_v26, %v2960_v25 }
 0x217   : > { %v2691_v15 = vmul.f32 %v15816_v63, %v1801_v10  ;;  %v2755_v17 = vmul.f32 %v15828_v12, %v2144_v11  ;;  %v2662_v54 = vmul.f32 %v15814_v56, %v1132_v49  ;;  %v1147_v26 = vadd.f32 %v15798_v36, %v15420_v7 }
 0x218   : > { %v2724_v22 = vadd.f32 %v2692_v8, %v2658_v35  ;;  %v15870_v23 = vadd.f32 %v2756_v45, %v2722_v40  ;;  %v1137_v8 = vadd.f32 %v15798_v36, %v15402_v2  ;;  %v2661_v45 = vmul.f32 %v15814_v56, %v1127_v28  ;;  %13639 = vmatpush3.bf16.msra.mxu0 %v13638_v5 }
 0x219   : > { %v2723_v29 = vadd.f32 %v2691_v15, %v2657_v51  ;;  %v15882_v50 = vadd.f32 %v2755_v17, %v2721_v60  ;;  %v12269_v31 = vpop.f32.mrb[18].mxu1  ;;  %v12318_v32 = vpop.f32.mrb[36].mxu0  ;;  %v1152_v2 = vadd.f32 %v15410_v4, %v15798_v36  ;;  %12427 = vmatprep.subr.mxu0 %v19636_v39  ;;  %v1162_v7 = vadd.f32 %v15431_v13, %v15798_v36 }
 0x21a   : > { %v2694_v35 = vmul.f32 %v12269_v31, %v15816_v63  ;;  %v2758_v40 = vmul.f32 %v12318_v32, %v15828_v12  ;;  %v1811_v47 = vpop.f32.mrb[19].mxu1  ;;  %v2154_v57 = vpop.f32.mrb[37].mxu0  ;;  %v2663_v28 = vmul.f32 %v15814_v56, %v1137_v8 }
 0x21b   : > { %v2693_v0 = vmul.f32 %v15816_v63, %v1811_v47  ;;  %v2757_v58 = vmul.f32 %v15828_v12, %v2154_v57 }
 0x21c   : > { %v2726_v51 = vadd.f32 %v2694_v35, %v2660_v19  ;;  %v15891_v60 = vadd.f32 %v2758_v40, %v2724_v22  ;;  %v2664_v19 = vmul.f32 %v15814_v56, %v1142_v62 }
 0x21d   : > { %v2725_v10 = vadd.f32 %v2693_v0, %v2659_v59  ;;  %v15897_v11 = vadd.f32 %v2757_v58, %v2723_v29  ;;  %v12272_v14 = vpop.f32.mrb[20].mxu1  ;;  %v12321_v48 = vpop.f32.mrb[38].mxu0  ;;  %v2666_v58 = vmul.f32 %v15814_v56, %v1152_v2 }
 0x21e   : > { %v2696_v15 = vmul.f32 %v12272_v14, %v15816_v63  ;;  %v2760_v1 = vmul.f32 %v12321_v48, %v15828_v12  ;;  %v1821_v17 = vpop.f32.mrb[21].mxu1  ;;  %v2164_v18 = vpop.f32.mrb[39].mxu0 }
 0x21f   : > { %v2695_v49 = vmul.f32 %v15816_v63, %v1821_v17  ;;  %v2759_v20 = vmul.f32 %v15828_v12, %v2164_v18 }
 0x220   : > { %v2728_v22 = vadd.f32 %v2696_v15, %v2662_v54  ;;  %v15906_v25 = vadd.f32 %v2760_v1, %v2726_v51  ;;  %v1157_v54 = vadd.f32 %v15798_v36, %v15441_v16  ;;  %v2665_v51 = vmul.f32 %v15814_v56, %v1147_v26 }
 0x221   : > { %v2727_v59 = vadd.f32 %v2695_v49, %v2661_v45  ;;  %v15912_v29 = vadd.f32 %v2759_v20, %v2725_v10  ;;  %v12275_v31 = vpop.f32.mrb[22].mxu1  ;;  %v12324_v32 = vpop.f32.mrb[40].mxu0  ;;  %v1172_v16 = vadd.f32 %v15453_v21, %v15798_v36  ;;  %v2668_v49 = vmul.f32 %v15814_v56, %v1162_v7 }
 0x222   : > { %v2698_v35 = vmul.f32 %v12275_v31, %v15816_v63  ;;  %v2762_v4 = vmul.f32 %v12324_v32, %v15828_v12  ;;  %v1831_v40 = vpop.f32.mrb[23].mxu1  ;;  %v2174_v47 = vpop.f32.mrb[41].mxu0 }
 0x223   : > { %v2697_v57 = vmul.f32 %v15816_v63, %v1831_v40  ;;  %v2761_v0 = vmul.f32 %v15828_v12, %v2174_v47 }
 0x224   : > { %v2730_v5 = vadd.f32 %v2698_v35, %v2664_v19  ;;  %v15921_v62 = vadd.f32 %v2762_v4, %v2728_v22  ;;  %v1167_v19 = vadd.f32 %v15798_v36, %v15463_v24  ;;  %v2667_v22 = vmul.f32 %v15814_v56, %v1157_v54 }
 0x225   : > { %v2729_v8 = vadd.f32 %v2697_v57, %v2663_v28  ;;  %v15926_v45 = vadd.f32 %v2761_v0, %v2727_v59  ;;  %v12278_v10 = vpop.f32.mrb[24].mxu1  ;;  %v12327_v14 = vpop.f32.mrb[42].mxu0  ;;  %v1182_v24 = vadd.f32 %v15473_v27, %v15798_v36  ;;  %v2670_v57 = vmul.f32 %v15814_v56, %v1172_v16 }
 0x226   : > { %v2700_v48 = vmul.f32 %v12278_v10, %v15816_v63  ;;  %v2764_v15 = vmul.f32 %v12327_v14, %v15828_v12  ;;  %v1841_v13 = vpop.f32.mrb[25].mxu1  ;;  %v2184_v1 = vpop.f32.mrb[43].mxu0 }
 0x227   : > { %v2699_v17 = vmul.f32 %v15816_v63, %v1841_v13  ;;  %v2763_v18 = vmul.f32 %v15828_v12, %v2184_v1 }
 0x228   : > { %v2732_v20 = vadd.f32 %v2700_v48, %v2666_v58  ;;  %v15935_v2 = vadd.f32 %v2764_v15, %v2730_v5  ;;  %v1177_v58 = vadd.f32 %v15798_v36, %v15483_v30  ;;  %v2669_v5 = vmul.f32 %v15814_v56, %v1167_v19 }
 0x229   : > { %v2731_v26 = vadd.f32 %v2699_v17, %v2665_v51  ;;  %v15940_v28 = vadd.f32 %v2763_v18, %v2729_v8  ;;  %v12281_v59 = vpop.f32.mrb[26].mxu1  ;;  %v12330_v31 = vpop.f32.mrb[44].mxu0  ;;  %v1192_v30 = vadd.f32 %v15648_v33, %v15798_v36  ;;  %v2672_v17 = vmul.f32 %v15814_v56, %v1182_v24 }
 0x22a   : > { %v2702_v32 = vmul.f32 %v12281_v59, %v15816_v63  ;;  %v2766_v35 = vmul.f32 %v12330_v31, %v15828_v12  ;;  %v1851_v21 = vpop.f32.mrb[27].mxu1  ;;  %v2194_v4 = vpop.f32.mrb[45].mxu0 }
 0x22b   : > { %v2701_v40 = vmul.f32 %v15816_v63, %v1851_v21  ;;  %v2765_v47 = vmul.f32 %v15828_v12, %v2194_v4 }
 0x22c   : > { %v2734_v0 = vadd.f32 %v2702_v32, %v2668_v49  ;;  %v15949_v7 = vadd.f32 %v2766_v35, %v2732_v20  ;;  %v1187_v49 = vadd.f32 %v15798_v36, %v15652_v34  ;;  %v2671_v20 = vmul.f32 %v15814_v56, %v1177_v58 }
 0x22d   : > { %v2733_v54 = vadd.f32 %v2701_v40, %v2667_v22  ;;  %v15954_v51 = vadd.f32 %v2765_v47, %v2731_v26  ;;  %v12284_v8 = vpop.f32.mrb[28].mxu1  ;;  %v12333_v10 = vpop.f32.mrb[46].mxu0  ;;  %v1202_v34 = vadd.f32 %v15663_v37, %v15798_v36  ;;  %v2674_v40 = vmul.f32 %v15814_v56, %v1192_v30 }
 0x22e   : > { %v2704_v14 = vmul.f32 %v12284_v8, %v15816_v63  ;;  %v2768_v48 = vmul.f32 %v12333_v10, %v15828_v12  ;;  %v1861_v27 = vpop.f32.mrb[29].mxu1  ;;  %v2204_v15 = vpop.f32.mrb[47].mxu0 }
 0x22f   : > { %v2703_v13 = vmul.f32 %v15816_v63, %v1861_v27  ;;  %v2767_v1 = vmul.f32 %v15828_v12, %v2204_v15 }
 0x230   : > { %v2736_v18 = vadd.f32 %v2704_v14, %v2670_v57  ;;  %v15963_v16 = vadd.f32 %v2768_v48, %v2734_v0  ;;  %v1197_v57 = vadd.f32 %v15798_v36, %v15666_v38  ;;  %v2673_v0 = vmul.f32 %v15814_v56, %v1187_v49 }
 0x231   : > { %v2735_v19 = vadd.f32 %v2703_v13, %v2669_v5  ;;  %v15968_v22 = vadd.f32 %v2767_v1, %v2733_v54  ;;  %v12287_v26 = vpop.f32.mrb[30].mxu1  ;;  %v12336_v59 = vpop.f32.mrb[48].mxu0  ;;  %v1212_v38 = vadd.f32 %v15675_v43, %v15798_v36  ;;  %v2676_v13 = vmul.f32 %v15814_v56, %v1202_v34 }
 0x232   : > { %v2706_v31 = vmul.f32 %v12287_v26, %v15816_v63  ;;  %v2770_v32 = vmul.f32 %v12336_v59, %v15828_v12  ;;  %v1871_v33 = vpop.f32.mrb[31].mxu1  ;;  %v2214_v35 = vpop.f32.mrb[49].mxu0 }
 0x233   : > { %v2705_v21 = vmul.f32 %v15816_v63, %v1871_v33  ;;  %v2769_v4 = vmul.f32 %v15828_v12, %v2214_v35 }
 0x234   : > { %v2738_v47 = vadd.f32 %v2706_v31, %v2672_v17  ;;  %v15977_v24 = vadd.f32 %v2770_v32, %v2736_v18  ;;  %v2675_v17 = vmul.f32 %v15814_v56, %v1197_v57  ;;  %v1207_v18 = vadd.f32 %v15798_v36, %v15678_v46 }
 0x235   : > { %v2737_v58 = vadd.f32 %v2705_v21, %v2671_v20  ;;  %v15982_v5 = vadd.f32 %v2769_v4, %v2735_v19  ;;  %v12290_v54 = vpop.f32.mrb[32].mxu1  ;;  %v12339_v8 = vpop.f32.mrb[50].mxu0  ;;  %v2678_v21 = vmul.f32 %v15814_v56, %v1212_v38  ;;  %v1222_v46 = vadd.f32 %v15687_v52, %v15798_v36 }
 0x236   : > { %v2708_v10 = vmul.f32 %v12290_v54, %v15816_v63  ;;  %v2772_v14 = vmul.f32 %v12339_v8, %v15828_v12  ;;  %v1881_v37 = vpop.f32.mrb[33].mxu1  ;;  %v2224_v48 = vpop.f32.mrb[51].mxu0 }
 0x237   : > { %v2707_v27 = vmul.f32 %v15816_v63, %v1881_v37  ;;  %v2771_v15 = vmul.f32 %v15828_v12, %v2224_v48 }
 0x238   : > { %v2740_v1 = vadd.f32 %v2708_v10, %v2674_v40  ;;  %v15991_v30 = vadd.f32 %v2772_v14, %v2738_v47  ;;  %v2677_v40 = vmul.f32 %v15814_v56, %v1207_v18  ;;  %v1217_v47 = vadd.f32 %v15798_v36, %v15690_v55 }
 0x239   : > { %v2739_v49 = vadd.f32 %v2707_v27, %v2673_v0  ;;  %v15996_v20 = vadd.f32 %v2771_v15, %v2737_v58  ;;  %v12293_v19 = vpop.f32.mrb[34].mxu1  ;;  %v12342_v26 = vpop.f32.mrb[52].mxu0  ;;  %v2680_v27 = vmul.f32 %v15814_v56, %v1222_v46  ;;  %v1232_v55 = vadd.f32 %v15699_v61, %v15798_v36 }
 0x23a   : > { %v2710_v59 = vmul.f32 %v12293_v19, %v15816_v63  ;;  %v2774_v31 = vmul.f32 %v12342_v26, %v15828_v12  ;;  %v1891_v43 = vpop.f32.mrb[35].mxu1  ;;  %v2234_v32 = vpop.f32.mrb[53].mxu0 }
 0x23b   : > { %v2709_v33 = vmul.f32 %v15816_v63, %v1891_v43  ;;  %v2773_v35 = vmul.f32 %v15828_v12, %v2234_v32 }
 0x23c   : > { %v2742_v4 = vadd.f32 %v2710_v59, %v2676_v13  ;;  %v16005_v34 = vadd.f32 %v2774_v31, %v2740_v1  ;;  %v2679_v13 = vmul.f32 %v15814_v56, %v1217_v47  ;;  %v1227_v1 = vadd.f32 %v15798_v36, %v15710_v3 }
 0x23d   : > { %v2741_v57 = vadd.f32 %v2709_v33, %v2675_v17  ;;  %v16010_v0 = vadd.f32 %v2773_v35, %v2739_v49  ;;  %v12296_v58 = vpop.f32.mrb[36].mxu1  ;;  %v12345_v54 = vpop.f32.mrb[54].mxu0  ;;  %v2682_v33 = vmul.f32 %v15814_v56, %v1232_v55  ;;  %v1242_v3 = vadd.f32 %v15716_v6, %v15798_v36 }
 0x23e   : > { %v2712_v8 = vmul.f32 %v12296_v58, %v15816_v63  ;;  %v2776_v10 = vmul.f32 %v12345_v54, %v15828_v12  ;;  %v1901_v14 = vpop.f32.mrb[37].mxu1  ;;  %v2244_v37 = vpop.f32.mrb[55].mxu0  ;;  %v2681_v46 = vmul.f32 %v15814_v56, %v1227_v1 }
 0x23f   : > { %v2711_v52 = vmul.f32 %v15816_v63, %v1901_v14  ;;  %v2775_v48 = vmul.f32 %v15828_v12, %v2244_v37 }
 0x240   : > { %v2744_v15 = vadd.f32 %v2712_v8, %v2678_v21  ;;  %v16019_v38 = vadd.f32 %v2776_v10, %v2742_v4  ;;  %v1237_v4 = vadd.f32 %v15798_v36, %v15721_v9 }
 0x241   : > { %v2743_v17 = vadd.f32 %v2711_v52, %v2677_v40  ;;  %v16024_v18 = vadd.f32 %v2775_v48, %v2741_v57  ;;  %v12299_v49 = vpop.f32.mrb[38].mxu1  ;;  %v12348_v19 = vpop.f32.mrb[56].mxu0  ;;  %v2684_v52 = vmul.f32 %v15814_v56, %v1242_v3 }
 0x242   : > { %v2714_v26 = vmul.f32 %v12299_v49, %v15816_v63  ;;  %v2778_v59 = vmul.f32 %v12348_v19, %v15828_v12  ;;  %v1911_v31 = vpop.f32.mrb[39].mxu1  ;;  %v2254_v43 = vpop.f32.mrb[57].mxu0  ;;  %v2683_v36 = vmul.f32 %v15814_v56, %v1237_v4 }
 0x243   : > { %v2713_v61 = vmul.f32 %v15816_v63, %v1911_v31  ;;  %v2777_v32 = vmul.f32 %v15828_v12, %v2254_v43 }
 0x244   : > { %v2746_v35 = vadd.f32 %v2714_v26, %v2680_v27  ;;  %v16033_v21 = vadd.f32 %v2778_v59, %v2744_v15  ;;  %v16054_v26 = vstv %s2817_s1  ;;  %s14940_s1 = smov [#allocation5]  }
 0x245   : > { %v2745_v40 = vadd.f32 %v2713_v61, %v2679_v13  ;;  %v16038_v47 = vadd.f32 %v2777_v32, %v2743_v17  ;;  %v12302_v57 = vpop.f32.mrb[40].mxu1  ;;  %v12351_v58 = vpop.f32.mrb[58].mxu0  ;;  %s14776_s30 = sshll.u32 %s14940_s1, 4  ;;  %s14777_s30 = int_to_ptr.vmem [resolvable:$false] %s14776_s30 }
 0x246   : > { %v2716_v54 = vmul.f32 %v12302_v57, %v15816_v63  ;;  %v2780_v8 = vmul.f32 %v12351_v58, %v15828_v12  ;;  %v1921_v10 = vpop.f32.mrb[41].mxu1  ;;  %v2264_v14 = vpop.f32.mrb[59].mxu0  ;;  %s14778_s5 = scalar_lea.vmem %s14777_s30, 8192  ;;  %p14779_p13 = scmp.lt.s32.totalorder %s19400_s26, %s14777_s30 }
 0x247   : > { %v2715_v6 = vmul.f32 %v15816_v63, %v1921_v10  ;;  %v2779_v37 = vmul.f32 %v15828_v12, %v2264_v14  ;;  %p14780_p0 = scmp.lt.s32.totalorder %s14778_s5, %s14772_s28 }
 0x248   : > { %v2748_v48 = vadd.f32 %v2716_v54, %v2682_v33  ;;  %v16047_v9 = vadd.f32 %v2780_v8, %v2746_v35 }
 0x249   : > { %v2747_v27 = vadd.f32 %v2715_v6, %v2681_v46  ;;  %v16050_v55 = vadd.f32 %v2779_v37, %v2745_v40  ;;  %v12305_v15 = vpop.f32.mrb[42].mxu1  ;;  %v12354_v13 = vpop.f32.mrb[60].mxu0  ;;  %p14781_p1 = por %p14780_p0, %p14779_p13 }
 0x24a   : > { %v2718_v1 = vmul.f32 %v12305_v15, %v15816_v63  ;;  %v2782_v17 = vmul.f32 %v12354_v13, %v15828_v12  ;;  %v1931_v49 = vpop.f32.mrb[43].mxu1  ;;  %v2274_v19 = vpop.f32.mrb[61].mxu0 }
 0x24b   : > { %v2717_v59 = vmul.f32 %v15816_v63, %v1931_v49  ;;  %v2781_v31 = vmul.f32 %v15828_v12, %v2274_v19  ;;  %p14782_p2 = pnand %p14781_p1, %p14775_p12 }
 0x24c   : > { %v2750_v43 = vadd.f32 %v2718_v1, %v2684_v52  ;;  %v16058_v61 = vadd.f32 %v2782_v17, %v2748_v48 }
 0x24d   : > { %v2749_v56 = vadd.f32 %v2717_v59, %v2683_v36  ;;  %v16060_v32 = vadd.f32 %v2781_v31, %v2747_v27  ;;  %v12357_v33 = vpop.f32.mrb[62].mxu0  ;;  %v12362_v3 = vpop.f32.mrb[44].mxu1 }
 0x24e   : > { %v2784_v35 = vmul.f32 %v12357_v33, %v15828_v12  ;;  %v2820_v46 = vmul.f32 %v12362_v3, %v16054_v26  ;;  %v2284_v4 = vpop.f32.mrb[63].mxu0  ;;  %v2492_v40 = vpop.f32.mrb[45].mxu1 }
 0x24f   : > { %v2783_v57 = vmul.f32 %v15828_v12, %v2284_v4  ;;  %v2819_v63 = vmul.f32 %v16054_v26, %v2492_v40 }
 0x250   : > { %v16066_v58 = vadd.f32 %v2784_v35, %v2750_v43  ;;  %v16069_v54 = vadd.f32 %v2820_v46, %v15846_v41 }
 0x251   : > { %v16071_v8 = vadd.f32 %v2783_v57, %v2749_v56  ;;  %v16074_v10 = vadd.f32 %v2819_v63, %v15855_v42  ;;  %v12365_v14 = vpop.f32.mrb[46].mxu1 }
 0x252   : > { %19925 = vst [vmem:[#allocation23_spill] sm:$0xff] %v16069_v54  ;;  %v2822_v6 = vmul.f32 %v12365_v14, %v16054_v26  ;;  %v2502_v37 = vpop.f32.mrb[47].mxu1  ;;  %v2884_v52 = vsel %vm1514_vm4, %v16069_v54, 0.0 }
 0x253   : > { %19926 = vst [vmem:[#allocation24_spill] sm:$0xff] %v16074_v10  ;;  %v2883_v12 = vsel %vm1514_vm4, %v16074_v10, 0.0  ;;  %v2821_v48 = vmul.f32 %v16054_v26, %v2502_v37 }
 0x254   : > { %v16083_v41 = vadd.f32 %v2822_v6, %v15870_v23  ;;  %v2885_v27 = vadd.f32 %v2884_v52, %v2883_v12 }
 0x255   : > { %v16086_v36 = vadd.f32 %v2821_v48, %v15882_v50  ;;  %v12368_v42 = vpop.f32.mrb[48].mxu1 }
 0x256   : > { %19927 = vst [vmem:[#allocation25_spill] sm:$0xff] %v16083_v41  ;;  %v2824_v15 = vmul.f32 %v12368_v42, %v16054_v26  ;;  %v2512_v13 = vpop.f32.mrb[49].mxu1  ;;  %v2888_v23 = vsel %vm1514_vm4, %v16083_v41, 0.0 }
 0x257   : > { %19928 = vst [vmem:[#allocation26_spill] sm:$0xff] %v16086_v36  ;;  %v2886_v1 = vsel %vm1514_vm4, %v16086_v36, 0.0  ;;  %v2823_v17 = vmul.f32 %v16054_v26, %v2512_v13 }
 0x258   : > { %v2887_v49 = vadd.f32 %v2886_v1, %v2885_v27  ;;  %v16093_v19 = vadd.f32 %v2824_v15, %v15891_v60 }
 0x259   : > { %v16098_v50 = vadd.f32 %v2823_v17, %v15897_v11  ;;  %v12371_v59 = vpop.f32.mrb[50].mxu1 }
 0x25a   : > { %19929 = vst [vmem:[#allocation27_spill] sm:$0xff] %v16093_v19  ;;  %v2889_v31 = vadd.f32 %v2888_v23, %v2887_v49  ;;  %v2826_v43 = vmul.f32 %v12371_v59, %v16054_v26  ;;  %v2522_v56 = vpop.f32.mrb[51].mxu1  ;;  %v2892_v46 = vsel %vm1514_vm4, %v16093_v19, 0.0 }
 0x25b   : > { %19930 = vst [vmem:[#allocation28_spill] sm:$0xff] %v16098_v50  ;;  %v2890_v33 = vsel %vm1514_vm4, %v16098_v50, 0.0  ;;  %v2825_v3 = vmul.f32 %v16054_v26, %v2522_v56 }
 0x25c   : > { %v2891_v35 = vadd.f32 %v2890_v33, %v2889_v31  ;;  %v16105_v60 = vadd.f32 %v2826_v43, %v15906_v25 }
 0x25d   : > { %v16110_v11 = vadd.f32 %v2825_v3, %v15912_v29  ;;  %v12374_v4 = vpop.f32.mrb[52].mxu1 }
 0x25e   : > { %19931 = vst [vmem:[#allocation29_spill] sm:$0xff] %v16105_v60  ;;  %v2893_v40 = vadd.f32 %v2892_v46, %v2891_v35  ;;  %v2828_v57 = vmul.f32 %v12374_v4, %v16054_v26  ;;  %v2532_v63 = vpop.f32.mrb[53].mxu1  ;;  %v2896_v52 = vsel %vm1514_vm4, %v16105_v60, 0.0 }
 0x25f   : > { %19932 = vst [vmem:[#allocation30_spill] sm:$0xff] %v16110_v11  ;;  %v2894_v14 = vsel %vm1514_vm4, %v16110_v11, 0.0  ;;  %v2827_v6 = vmul.f32 %v16054_v26, %v2532_v63 }
 0x260   : > { %v2895_v37 = vadd.f32 %v2894_v14, %v2893_v40  ;;  %v16117_v25 = vadd.f32 %v2828_v57, %v15921_v62 }
 0x261   : > { %v16122_v29 = vadd.f32 %v2827_v6, %v15926_v45  ;;  %v12377_v12 = vpop.f32.mrb[54].mxu1 }
 0x262   : > { %19933 = vst [vmem:[#allocation31_spill] sm:$0xff] %v16117_v25  ;;  %v2897_v48 = vadd.f32 %v2896_v52, %v2895_v37  ;;  %v2830_v42 = vmul.f32 %v12377_v12, %v16054_v26  ;;  %v2542_v27 = vpop.f32.mrb[55].mxu1  ;;  %v2900_v17 = vsel %vm1514_vm4, %v16117_v25, 0.0 }
 0x263   : > { %19934 = vst [vmem:[#allocation32_spill] sm:$0xff] %v16122_v29  ;;  %v2898_v15 = vsel %vm1514_vm4, %v16122_v29, 0.0  ;;  %v2829_v13 = vmul.f32 %v16054_v26, %v2542_v27 }
 0x264   : > { %v2899_v1 = vadd.f32 %v2898_v15, %v2897_v48  ;;  %v16129_v62 = vadd.f32 %v2830_v42, %v15935_v2 }
 0x265   : > { %v16134_v45 = vadd.f32 %v2829_v13, %v15940_v28  ;;  %v12380_v49 = vpop.f32.mrb[56].mxu1 }
 0x266   : > { %19935 = vst [vmem:[#allocation33_spill] sm:$0xff] %v16129_v62  ;;  %v2901_v23 = vadd.f32 %v2900_v17, %v2899_v1  ;;  %v2832_v59 = vmul.f32 %v12380_v49, %v16054_v26  ;;  %v2552_v31 = vpop.f32.mrb[57].mxu1  ;;  %v2904_v3 = vsel %vm1514_vm4, %v16129_v62, 0.0 }
 0x267   : > { %19936 = vst [vmem:[#allocation34_spill] sm:$0xff] %v16134_v45  ;;  %v2902_v43 = vsel %vm1514_vm4, %v16134_v45, 0.0  ;;  %v2831_v56 = vmul.f32 %v16054_v26, %v2552_v31 }
 0x268   : > { %v2903_v33 = vadd.f32 %v2902_v43, %v2901_v23  ;;  %v16141_v2 = vadd.f32 %v2832_v59, %v15949_v7 }
 0x269   : > { %v16146_v28 = vadd.f32 %v2831_v56, %v15954_v51  ;;  %v12383_v35 = vpop.f32.mrb[58].mxu1 }
 0x26a   : > { %19937 = vst [vmem:[#allocation35_spill] sm:$0xff] %v16141_v2  ;;  %v2905_v46 = vadd.f32 %v2904_v3, %v2903_v33  ;;  %v2834_v4 = vmul.f32 %v12383_v35, %v16054_v26  ;;  %v2562_v40 = vpop.f32.mrb[59].mxu1  ;;  %v2908_v6 = vsel %vm1514_vm4, %v16141_v2, 0.0 }
 0x26b   : > { %19938 = vst [vmem:[#allocation36_spill] sm:$0xff] %v16146_v28  ;;  %v2906_v57 = vsel %vm1514_vm4, %v16146_v28, 0.0  ;;  %v2833_v63 = vmul.f32 %v16054_v26, %v2562_v40 }
 0x26c   : > { %v2907_v14 = vadd.f32 %v2906_v57, %v2905_v46  ;;  %v16153_v7 = vadd.f32 %v2834_v4, %v15963_v16 }
 0x26d   : > { %v16158_v51 = vadd.f32 %v2833_v63, %v15968_v22  ;;  %v12386_v37 = vpop.f32.mrb[60].mxu1 }
 0x26e   : > { %19939 = vst [vmem:[#allocation37_spill] sm:$0xff] %v16153_v7  ;;  %v2909_v52 = vadd.f32 %v2908_v6, %v2907_v14  ;;  %v2836_v12 = vmul.f32 %v12386_v37, %v16054_v26  ;;  %v2572_v48 = vpop.f32.mrb[61].mxu1  ;;  %v2912_v13 = vsel %vm1514_vm4, %v16153_v7, 0.0 }
 0x26f   : > { %19940 = vst [vmem:[#allocation38_spill] sm:$0xff] %v16158_v51  ;;  %v2910_v42 = vsel %vm1514_vm4, %v16158_v51, 0.0  ;;  %v2835_v27 = vmul.f32 %v16054_v26, %v2572_v48 }
 0x270   : > { %v2911_v15 = vadd.f32 %v2910_v42, %v2909_v52  ;;  %v16165_v16 = vadd.f32 %v2836_v12, %v15977_v24 }
 0x271   : > { %v16170_v22 = vadd.f32 %v2835_v27, %v15982_v5  ;;  %v12389_v1 = vpop.f32.mrb[62].mxu1 }
 0x272   : > { %19941 = vst [vmem:[#allocation39_spill] sm:$0xff] %v16165_v16  ;;  %v2913_v17 = vadd.f32 %v2912_v13, %v2911_v15  ;;  %v2838_v49 = vmul.f32 %v12389_v1, %v16054_v26  ;;  %v2582_v23 = vpop.f32.mrb[63].mxu1  ;;  %v2916_v56 = vsel %vm1514_vm4, %v16165_v16, 0.0 }
 0x273   : > { %19942 = vst [vmem:[#allocation40_spill] sm:$0xff] %v16170_v22  ;;  %v2914_v59 = vsel %vm1514_vm4, %v16170_v22, 0.0  ;;  %v2837_v31 = vmul.f32 %v16054_v26, %v2582_v23 }
 0x274   : > { %v2915_v43 = vadd.f32 %v2914_v59, %v2913_v17  ;;  %v16177_v24 = vadd.f32 %v2838_v49, %v15991_v30 }
 0x275   : > { %v16182_v5 = vadd.f32 %v2837_v31, %v15996_v20  ;;  %v12392_v33 = vpop.f32.mrb[64].mxu1 }
 0x276   : > { %19943 = vst [vmem:[#allocation41_spill] sm:$0xff] %v16177_v24  ;;  %v2917_v3 = vadd.f32 %v2916_v56, %v2915_v43  ;;  %v2840_v35 = vmul.f32 %v12392_v33, %v16054_v26  ;;  %v2592_v46 = vpop.f32.mrb[65].mxu1  ;;  %v2920_v63 = vsel %vm1514_vm4, %v16177_v24, 0.0 }
 0x277   : > { %19944 = vst [vmem:[#allocation42_spill] sm:$0xff] %v16182_v5  ;;  %v2918_v4 = vsel %vm1514_vm4, %v16182_v5, 0.0  ;;  %v2839_v40 = vmul.f32 %v16054_v26, %v2592_v46 }
 0x278   : > { %v2919_v57 = vadd.f32 %v2918_v4, %v2917_v3  ;;  %v16189_v30 = vadd.f32 %v2840_v35, %v16005_v34 }
 0x279   : > { %v16194_v20 = vadd.f32 %v2839_v40, %v16010_v0  ;;  %v12395_v14 = vpop.f32.mrb[66].mxu1 }
 0x27a   : > { %19945 = vst [vmem:[#allocation43_spill] sm:$0xff] %v16189_v30  ;;  %v2921_v6 = vadd.f32 %v2920_v63, %v2919_v57  ;;  %v2842_v37 = vmul.f32 %v12395_v14, %v16054_v26  ;;  %v2602_v52 = vpop.f32.mrb[67].mxu1  ;;  %v2924_v27 = vsel %vm1514_vm4, %v16189_v30, 0.0 }
 0x27b   : > { %19946 = vst [vmem:[#allocation44_spill] sm:$0xff] %v16194_v20  ;;  %v2922_v12 = vsel %vm1514_vm4, %v16194_v20, 0.0  ;;  %v2841_v48 = vmul.f32 %v16054_v26, %v2602_v52 }
 0x27c   : > { %v2923_v42 = vadd.f32 %v2922_v12, %v2921_v6  ;;  %v16201_v34 = vadd.f32 %v2842_v37, %v16019_v38 }
 0x27d   : > { %v16206_v0 = vadd.f32 %v2841_v48, %v16024_v18  ;;  %v12398_v15 = vpop.f32.mrb[68].mxu1 }
 0x27e   : > { %19947 = vst [vmem:[#allocation45_spill] sm:$0xff] %v16201_v34  ;;  %v2925_v13 = vadd.f32 %v2924_v27, %v2923_v42  ;;  %v2844_v1 = vmul.f32 %v12398_v15, %v16054_v26  ;;  %v2612_v17 = vpop.f32.mrb[69].mxu1  ;;  %v2928_v31 = vsel %vm1514_vm4, %v16201_v34, 0.0 }
 0x27f   : > { %19948 = vst [vmem:[#allocation46_spill] sm:$0xff] %v16206_v0  ;;  %v2926_v49 = vsel %vm1514_vm4, %v16206_v0, 0.0  ;;  %v2843_v23 = vmul.f32 %v16054_v26, %v2612_v17 }
 0x280   : > { %v2927_v59 = vadd.f32 %v2926_v49, %v2925_v13  ;;  %v16213_v38 = vadd.f32 %v2844_v1, %v16033_v21 }
 0x281   : > { %v16218_v18 = vadd.f32 %v2843_v23, %v16038_v47  ;;  %v12401_v43 = vpop.f32.mrb[70].mxu1 }
 0x282   : > { %19949 = vst [vmem:[#allocation47_spill] sm:$0xff] %v16213_v38  ;;  %v2929_v56 = vadd.f32 %v2928_v31, %v2927_v59  ;;  %v2846_v33 = vmul.f32 %v12401_v43, %v16054_v26  ;;  %v2622_v3 = vpop.f32.mrb[71].mxu1  ;;  %v2932_v40 = vsel %vm1514_vm4, %v16213_v38, 0.0 }
 0x283   : > { %19950 = vst [vmem:[#allocation48_spill] sm:$0xff] %v16218_v18  ;;  %v2930_v35 = vsel %vm1514_vm4, %v16218_v18, 0.0  ;;  %v2845_v46 = vmul.f32 %v16054_v26, %v2622_v3 }
 0x284   : > { %v2931_v4 = vadd.f32 %v2930_v35, %v2929_v56  ;;  %v16225_v21 = vadd.f32 %v2846_v33, %v16047_v9 }
 0x285   : > { %v16230_v47 = vadd.f32 %v2845_v46, %v16050_v55  ;;  %v12404_v57 = vpop.f32.mrb[72].mxu1 }
 0x286   : > { %19951 = vst [vmem:[#allocation49_spill] sm:$0xff] %v16225_v21  ;;  %v2933_v63 = vadd.f32 %v2932_v40, %v2931_v4  ;;  %v2848_v14 = vmul.f32 %v12404_v57, %v16054_v26  ;;  %v2632_v6 = vpop.f32.mrb[73].mxu1  ;;  %v2936_v48 = vsel %vm1514_vm4, %v16225_v21, 0.0  ;;  %v10368_v57 = vld [vmem:[%s19957_s13 + $0x48] sm:$0xff] }
 0x287   : > { %19952 = vst [vmem:[#allocation50_spill] sm:$0xff] %v16230_v47  ;;  %v2934_v37 = vsel %vm1514_vm4, %v16230_v47, 0.0  ;;  %v2847_v52 = vmul.f32 %v16054_v26, %v2632_v6  ;;  %v16274_v6 = vrot.slane %v19636_v39, 1 }
 0x288   : > { %v2935_v12 = vadd.f32 %v2934_v37, %v2933_v63  ;;  %v16237_v9 = vadd.f32 %v2848_v14, %v16058_v61  ;;  %v3037_v63 = vld [vmem:[%s19605_s16] sm:$0xf] }
 0x289   : > { %v16242_v55 = vadd.f32 %v2847_v52, %v16060_v32  ;;  %v12407_v42 = vpop.f32.mrb[74].mxu1  ;;  %19958 = vst [vmem:[#allocation55_spill] sm:$0xff] %v16274_v6  ;;  %13024 = vmatprep.mubr.msk.f32.mxu1 %vm1514_vm4, %v16274_v6  ;;  %v2962_v37 = vld [vmem:[%s19604_s15] sm:$0x1] }
 0x28a   : > { %19953 = vst [vmem:[#allocation51_spill] sm:$0xff] %v16237_v9  ;;  %v2937_v27 = vadd.f32 %v2936_v48, %v2935_v12  ;;  %v2850_v15 = vmul.f32 %v12407_v42, %v16054_v26  ;;  %v2642_v13 = vpop.f32.mrb[75].mxu1  ;;  %v2940_v23 = vsel %vm1514_vm4, %v16237_v9, 0.0  ;;  %v10369_v12 = vld [vmem:[%s19957_s13 + $0x50] sm:$0xff]  ;;  %v10370_v48 = vld [vmem:[%s19957_s13 + $0x58] sm:$0xff] }
 0x28b   : > { %19954 = vst [vmem:[#allocation52_spill] sm:$0xff] %v16242_v55  ;;  %v2938_v1 = vsel %vm1514_vm4, %v16242_v55, 0.0  ;;  %v2849_v17 = vmul.f32 %v16054_v26, %v2642_v13  ;;  %v13644_v13 = vpack.c.bf16 %v10370_v48, %v10369_v12 }
 0x28c   : > { %v2939_v49 = vadd.f32 %v2938_v1, %v2937_v27  ;;  %v16249_v61 = vadd.f32 %v2850_v15, %v16066_v58  ;;  %v10371_v1 = vld [vmem:[%s19957_s13 + $0x60] sm:$0xff] }
 0x28d   : > { %v16254_v32 = vadd.f32 %v2849_v17, %v16071_v8  ;;  %v10367_v8 = vld [vmem:[%s19957_s13 + $0x40] sm:$0xff]  ;;  %v10372_v17 = vld [vmem:[%s19957_s13 + $0x68] sm:$0xff] }
 0x28e   : > { %19955 = vst [vmem:[#allocation53_spill] sm:$0xff] %v16249_v61  ;;  %v2941_v59 = vadd.f32 %v2940_v23, %v2939_v49  ;;  %v2944_v56 = vsel %vm1514_vm4, %v16249_v61, 0.0  ;;  %v13640_v14 = vpack.c.bf16 %v10368_v57, %v10367_v8  ;;  %v13648_v49 = vpack.c.bf16 %v10372_v17, %v10371_v1  ;;  %v10373_v23 = vld [vmem:[%s19957_s13 + $0x70] sm:$0xff]  ;;  %v3269_v8 = vld [vmem:[%s19957_s13 + $0x18] sm:$0xff] }
 0x28f   : > { %19956 = vst [vmem:[#allocation54_spill] sm:$0xff] %v16254_v32  ;;  %v2942_v31 = vsel %vm1514_vm4, %v16254_v32, 0.0 }
 0x290   : > { %v2943_v43 = vadd.f32 %v2942_v31, %v2941_v59  ;;  %v10374_v59 = vld [vmem:[%s19957_s13 + $0x78] sm:$0xff]  ;;  %v3155_v31 = vrot.slane %v16069_v54, 7 }
 0x292   : > { %v2945_v33 = vadd.f32 %v2944_v56, %v2943_v43  ;;  %v3154_v43 = vrot.slane %v16074_v10, 7  ;;  %v13652_v56 = vpack.c.bf16 %v10374_v59, %v10373_v23  ;;  %v3164_v59 = vrot.slane %v16105_v60, 7 }
 0x294   : > { %v2946_v26 = vrot.slane %v2945_v33, 4 }
 0x296   : > { %v2947_v3 = vadd.f32 %v2946_v26, %v2945_v33  ;;  %v3266_v33 = vld [vmem:[%s19957_s13] sm:$0xff]  ;;  %v3267_v26 = vld [vmem:[%s19957_s13 + $0x8] sm:$0xff] }
 0x298   : > { %v2948_v35 = vrot.slane %v2947_v3, 2 }
 0x29a   : > { %v2949_v58 = vadd.f32 %v2948_v35, %v2947_v3  ;;  %v3158_v3 = vrot.slane %v16083_v41, 7  ;;  %v3157_v35 = vrot.slane %v16086_v36, 7 }
 0x29c   : > { %v2950_v46 = vrot.slane %v2949_v58, 1  ;;  %v16332_v12 = vsel %vm3153_vm7, %v3157_v35, %v3158_v3  ;;  %v16335_v48 = vsel %vm3153_vm7, 0.0, %v3157_v35  ;;  %v16352_v23 = vsel %vm3153_vm7, %v3158_v3, 0.0  ;;  %v3272_v35 = vld [vmem:[%s19957_s13 + $0x30] sm:$0xff] }
 0x29d   : > { %19959 = vst [vmem:[#allocation56_spill] sm:$0xff] %v16335_v48  ;;  %v3313_v17 = vrot.slane %v16335_v48, 1  ;;  %v3316_v3 = vrot.slane %v16352_v23, 1 }
 0x29e   : > { %v2951_v4 = vadd.f32 %v2950_v46, %v2949_v58  ;;  %v16313_v58 = vsel %vm3153_vm7, %v3154_v43, %v3155_v31  ;;  %v16316_v46 = vsel %vm3153_vm7, 0.0, %v3154_v43 }
 0x29f   : > { %v3308_v57 = vrot.slane %v16316_v46, 1 }
 0x2a0   : > { %v2953_v40 = vmul.f32 0.00390625, %v2951_v4  ;;  %v13656_v4 = vpack.c.bf16 %v3267_v26, %v3266_v33 }
 0x2a2   : > { %12425 = vmatmul.mubr.msk.f32.vlgmr.msra.gmra.mrb[64].mxu0 %vm1514_vm4, %v2953_v40  ;;  %v3268_v40 = vld [vmem:[%s19957_s13 + $0x10] sm:$0xff] }
 0x2a3   : > { %12429 = vmatprep.mubr.msk.f32.mxu0 %vm14935_vm3, %v19636_v39  ;;  %12428 = vmatpush3.msk.msra.mxu0 %vm2422_vm5, %v3037_v63  ;;  %v3309_v63 = vrot.slane %v16313_v58, 1 }
 0x2a4   : > { %13641 = vmatprep.subr.bf16.mxu0 %v13640_v14 }
 0x2a5   : > { %v16347_v1 = vsel %vm3305_vm8, %v3308_v57, %v3309_v63 }
 0x375   : > { %v3032_v52 = vpop.f32.mrb[64].mxu0 }
 0x376   : > { %v3033_v42 = vadd.f32 %v3032_v52, %v2962_v37  ;;  %v12426_v27 = vpop.f32.mrb[65].mxu0  ;;  %v3161_v37 = vrot.slane %v16093_v19, 7  ;;  %v3160_v52 = vrot.slane %v16098_v50, 7 }
 0x378   : > { %v3036_v15 = vmax.f32 %v3033_v42, 0.0  ;;  %v13660_v42 = vpack.c.bf16 %v3269_v8, %v3268_v40  ;;  %v16359_v43 = vsel %vm3153_vm7, %v3160_v52, %v3161_v37  ;;  %v3273_v40 = vld [vmem:[%s19957_s13 + $0x38] sm:$0xff] }
 0x379   : > { %v3319_v57 = vrot.slane %v16359_v43, 1 }
 0x37a   : > { %12430 = vmatmul.mubr.msk.f32.vlgmr.msra.gmra.mrb[66].mxu0 %vm2325_vm6, %v3036_v15  ;;  %v3270_v15 = vld [vmem:[%s19957_s13 + $0x20] sm:$0xff] }
 0x37b   : > { %13643 = vmatpush3.bf16.msra.mxu0 %v13640_v14  ;;  %12448 = vmatprep.mubr.msk.f32.mxu0 %vm1514_vm4, %v16274_v6  ;;  %v16327_v14 = vsel %vm3153_vm7, %v3155_v31, 0.0  ;;  %v3163_v31 = vrot.slane %v16110_v11, 7 }
 0x37c   : > { %13645 = vmatprep.subr.bf16.mxu0 %v13644_v13  ;;  %v3311_v27 = vrot.slane %v16327_v14, 1 }
 0x37e   : > { %v16365_v26 = vsel %vm3305_vm8, %v3309_v63, %v3311_v27  ;;  %v16382_v63 = vsel %vm3153_vm7, %v3161_v37, 0.0  ;;  %v3166_v27 = vrot.slane %v16122_v29, 7 }
 0x37f   : > { %13647 = vmatpush3.bf16.msra.mxu0 %v13644_v13  ;;  %v3271_v13 = vld [vmem:[%s19957_s13 + $0x28] sm:$0xff]  ;;  %v3321_v37 = vrot.slane %v16382_v63, 1 }
 0x380   : > { %13649 = vmatprep.subr.bf16.mxu0 %v13648_v49  ;;  %v13664_v33 = vpack.c.bf16 %v3271_v13, %v3270_v15  ;;  %v16389_v15 = vsel %vm3153_vm7, %v3163_v31, %v3164_v59  ;;  %v16392_v13 = vsel %vm3153_vm7, 0.0, %v3163_v31 }
 0x381   : > { %v3323_v31 = vrot.slane %v16392_v13, 1 }
 0x383   : > { %13651 = vmatpush3.bf16.msra.mxu0 %v13648_v49  ;;  %v3314_v49 = vrot.slane %v16332_v12, 1 }
 0x384   : > { %13653 = vmatprep.subr.bf16.mxu0 %v13652_v56 }
 0x385   : > { %v16395_v39 = vsel %vm3305_vm8, %v3314_v49, %v3316_v3  ;;  %v16412_v3 = vsel %vm3153_vm7, %v3164_v59, 0.0  ;;  %v16427_v59 = vsel %vm3305_vm8, %v3319_v57, %v3321_v37 }
 0x386   : > { %19960 = vst [vmem:[#allocation57_spill] sm:$0xff] %v16395_v39  ;;  %19962 = vst [vmem:[#allocation59_spill] sm:$0xff] %v16427_v59 }
 0x387   : > { %13655 = vmatpush3.bf16.msra.mxu0 %v13652_v56  ;;  %v16362_v56 = vsel %vm3153_vm7, 0.0, %v3160_v52  ;;  %v3167_v52 = vrot.slane %v16117_v25, 7  ;;  %v10438_v25 = vld [vmem:[%s19957_s13 + $0x88] sm:$0xff] }
 0x388   : > { %13657 = vmatprep.subr.bf16.mxu0 %v13656_v4  ;;  %v3318_v8 = vrot.slane %v16362_v56, 1  ;;  %v16424_v60 = vpack.c.bf16 %v10438_v25, %v10437_v53  ;;  %v3173_v53 = vrot.slane %v16141_v2, 7  ;;  %v3172_v25 = vrot.slane %v16146_v28, 7 }
 0x389   : > { %v16419_v29 = vsel %vm3153_vm7, %v3166_v27, %v3167_v52 }
 0x38a   : > { %12449 = vmatmul.mubr.msk.f32.vlgmr.msra.gmra.mrb[68].mxu0 %vm1514_vm4, %v16274_v6  ;;  %v16487_v54 = vsel %vm3153_vm7, %v3173_v53, 0.0 }
 0x38b   : > { %12451 = vmatprep.mubr.msk.f32.mxu0 %vm1514_vm4, %v16347_v1  ;;  %13659 = vmatpush3.bf16.msra.mxu0 %v13656_v4  ;;  %v16377_v4 = vsel %vm3305_vm8, %v3313_v17, %v3314_v49  ;;  %v13668_v17 = vpack.c.bf16 %v3273_v40, %v3272_v35  ;;  %v3324_v49 = vrot.slane %v16389_v15, 1  ;;  %v3170_v35 = vrot.slane %v16129_v62, 7 }
 0x38c   : > { %13661 = vmatprep.subr.bf16.mxu0 %v13660_v42  ;;  %v3169_v40 = vrot.slane %v16134_v45, 7  ;;  %v3326_v62 = vrot.slane %v16412_v3, 1  ;;  %v3341_v10 = vrot.slane %v16487_v54, 1 }
 0x38d   : > { %v16433_v45 = vsel %vm3305_vm8, %v3323_v31, %v3324_v49 }
 0x38e   : > { %12452 = vmatmul.mubr.msk.f32.gmra.mrb[70].mxu0 %vm1514_vm4, %v16365_v26  ;;  %19963 = vst [vmem:[#allocation60_spill] sm:$0xff] %v16433_v45  ;;  %v16448_v37 = vsel %vm3153_vm7, 0.0, %v3169_v40  ;;  %v16452_v31 = vsel %vm3305_vm8, %v3324_v49, %v3326_v62  ;;  %v3175_v62 = vrot.slane %v16158_v51, 7  ;;  %v16470_v49 = vsel %vm3153_vm7, %v3172_v25, %v3173_v53 }
 0x38f   : > { %12454 = vmatprep.mubr.msk.f32.mxu0 %vm1514_vm4, %v16377_v4  ;;  %13663 = vmatpush3.bf16.msra.mxu0 %v13660_v42  ;;  %v16407_v42 = vsel %vm3305_vm8, %v3318_v8, %v3319_v57  ;;  %v16422_v8 = vsel %vm3153_vm7, 0.0, %v3166_v27  ;;  %v3329_v27 = vrot.slane %v16419_v29, 1  ;;  %v16445_v57 = vsel %vm3153_vm7, %v3169_v40, %v3170_v35  ;;  %19964 = vst [vmem:[#allocation61_spill] sm:$0xff] %v16452_v31 }
 0x390   : > { %13665 = vmatprep.subr.bf16.mxu0 %v13664_v33  ;;  %19961 = vst [vmem:[#allocation58_spill] sm:$0xff] %v16407_v42  ;;  %v3328_v11 = vrot.slane %v16422_v8, 1  ;;  %v3333_v28 = vrot.slane %v16448_v37, 1  ;;  %v3334_v19 = vrot.slane %v16445_v57, 1  ;;  %v16463_v40 = vsel %vm3153_vm7, %v3170_v35, 0.0 }
 0x391   : > { %v3336_v36 = vrot.slane %v16463_v40, 1  ;;  %v3339_v51 = vrot.slane %v16470_v49, 1 }
 0x392   : > { %12455 = vmatmul.mubr.msk.f32.gmra.mrb[72].mxu0 %vm1514_vm4, %v16395_v39  ;;  %v16458_v2 = vsel %vm3305_vm8, %v3328_v11, %v3329_v27  ;;  %v16473_v11 = vsel %vm3153_vm7, 0.0, %v3172_v25  ;;  %v16482_v35 = vsel %vm3305_vm8, %v3333_v28, %v3334_v19  ;;  %v3179_v25 = vrot.slane %v16165_v16, 7 }
 0x393   : > { %12457 = vmatprep.mubr.msk.f32.mxu0 %vm1514_vm4, %v16407_v42  ;;  %13667 = vmatpush3.bf16.msra.mxu0 %v13664_v33  ;;  %v16438_v33 = vsel %vm3153_vm7, %v3167_v52, 0.0  ;;  %19965 = vst [vmem:[#allocation62_spill] sm:$0xff] %v16458_v2  ;;  %19967 = vst [vmem:[#allocation64_spill] sm:$0xff] %v16482_v35  ;;  %v16497_v28 = vsel %vm3153_vm7, 0.0, %v3175_v62  ;;  %v16500_v41 = vsel %vm3305_vm8, %v3334_v19, %v3336_v36  ;;  %v3181_v36 = vrot.slane %v16182_v5, 7 }
 0x394   : > { %13669 = vmatprep.subr.bf16.mxu0 %v13668_v17  ;;  %v3331_v52 = vrot.slane %v16438_v33, 1  ;;  %19968 = vst [vmem:[#allocation65_spill] sm:$0xff] %v16500_v41  ;;  %v3343_v16 = vrot.slane %v16497_v28, 1  ;;  %v3977_v39 = vrot.slane %v16352_v23, 2 }
 0x396   : > { %12458 = vmatmul.mubr.msk.f32.gmra.mrb[74].mxu0 %vm1514_vm4, %v16427_v59  ;;  %v16476_v50 = vsel %vm3305_vm8, %v3329_v27, %v3331_v52  ;;  %v3178_v27 = vrot.slane %v16170_v22, 7 }
 0x397   : > { %12460 = vmatprep.mubr.msk.f32.mxu0 %vm1514_vm4, %v16433_v45  ;;  %13671 = vmatpush3.bf16.msra.mxu0 %v13668_v17  ;;  %v3176_v17 = vrot.slane %v16153_v7, 7  ;;  %19966 = vst [vmem:[#allocation63_spill] sm:$0xff] %v16476_v50  ;;  %v3338_v7 = vrot.slane %v16473_v11, 1 }
 0x398   : > { %13673 = vmatprep.subr.bf16.mxu0 %v16424_v60  ;;  %v16518_v19 = vsel %vm3153_vm7, %v3178_v27, %v3179_v25 }
 0x399   : > { %v16494_v52 = vsel %vm3153_vm7, %v3175_v62, %v3176_v17  ;;  %v16506_v53 = vsel %vm3305_vm8, %v3338_v7, %v3339_v51  ;;  %v16511_v6 = vsel %vm3153_vm7, %v3176_v17, 0.0  ;;  %v3182_v62 = vrot.slane %v16177_v24, 7 }
 0x39a   : > { %12461 = vmatmul.mubr.msk.f32.gmra.mrb[76].mxu0 %vm1514_vm4, %v16452_v31  ;;  %19969 = vst [vmem:[#allocation66_spill] sm:$0xff] %v16506_v53  ;;  %v3344_v22 = vrot.slane %v16494_v52, 1  ;;  %v16521_v7 = vsel %vm3153_vm7, 0.0, %v3178_v27  ;;  %v3349_v5 = vrot.slane %v16518_v19, 1  ;;  %v3185_v27 = vrot.slane %v16189_v30, 7 }
 0x39b   : > { %12463 = vmatprep.mubr.msk.f32.mxu0 %vm1514_vm4, %v16458_v2  ;;  %v3348_v24 = vrot.slane %v16521_v7, 1 }
 0x39c   : > { %v16530_v17 = vsel %vm3305_vm8, %v3343_v16, %v3344_v22  ;;  %v16545_v16 = vsel %vm3153_vm7, 0.0, %v3181_v36 }
 0x39d   : > { %19971 = vst [vmem:[#allocation68_spill] sm:$0xff] %v16530_v17  ;;  %v3353_v30 = vrot.slane %v16545_v16, 1 }
 0x39e   : > { %12464 = vmatmul.mubr.msk.f32.gmra.mrb[78].mxu0 %vm1514_vm4, %v16476_v50 }
 0x39f   : > { %12466 = vmatprep.mubr.msk.f32.mxu0 %vm1514_vm4, %v16482_v35  ;;  %v3346_v35 = vrot.slane %v16511_v6, 1 }
 0x3a2   : > { %12467 = vmatmul.mubr.msk.f32.gmra.mrb[80].mxu0 %vm1514_vm4, %v16500_v41  ;;  %v16524_v41 = vsel %vm3305_vm8, %v3339_v51, %v3341_v10  ;;  %v3184_v10 = vrot.slane %v16194_v20, 7  ;;  %v16542_v51 = vsel %vm3153_vm7, %v3181_v36, %v3182_v62  ;;  %v3188_v36 = vrot.slane %v16201_v34, 7 }
 0x3a3   : > { %12469 = vmatprep.mubr.msk.f32.mxu0 %vm1514_vm4, %v16506_v53  ;;  %19970 = vst [vmem:[#allocation67_spill] sm:$0xff] %v16524_v41  ;;  %v16535_v53 = vsel %vm3153_vm7, %v3179_v25, 0.0  ;;  %v16554_v25 = vsel %vm3305_vm8, %v3348_v24, %v3349_v5  ;;  %v3354_v20 = vrot.slane %v16542_v51, 1 }
 0x3a4   : > { %v3351_v50 = vrot.slane %v16535_v53, 1  ;;  %19973 = vst [vmem:[#allocation70_spill] sm:$0xff] %v16554_v25  ;;  %v16569_v24 = vsel %vm3153_vm7, 0.0, %v3184_v10 }
 0x3a5   : > { %v3358_v34 = vrot.slane %v16569_v24, 1 }
 0x3a6   : > { %12470 = vmatmul.mubr.msk.f32.gmra.mrb[82].mxu0 %vm1514_vm4, %v16524_v41  ;;  %v16548_v41 = vsel %vm3305_vm8, %v3344_v22, %v3346_v35  ;;  %v3187_v22 = vrot.slane %v16206_v0, 7  ;;  %v16566_v35 = vsel %vm3153_vm7, %v3184_v10, %v3185_v27  ;;  %v3191_v10 = vrot.slane %v16213_v38, 7 }
 0x3a7   : > { %12472 = vmatprep.mubr.msk.f32.mxu0 %vm1514_vm4, %v16530_v17  ;;  %19972 = vst [vmem:[#allocation69_spill] sm:$0xff] %v16548_v41  ;;  %v16559_v17 = vsel %vm3153_vm7, %v3182_v62, 0.0  ;;  %v16578_v62 = vsel %vm3305_vm8, %v3353_v30, %v3354_v20  ;;  %v3359_v0 = vrot.slane %v16566_v35, 1 }
 0x3a8   : > { %v3356_v2 = vrot.slane %v16559_v17, 1  ;;  %19975 = vst [vmem:[#allocation72_spill] sm:$0xff] %v16578_v62  ;;  %v16593_v30 = vsel %vm3153_vm7, 0.0, %v3187_v22 }
 0x3a9   : > { %v3363_v38 = vrot.slane %v16593_v30, 1 }
 0x3aa   : > { %12473 = vmatmul.mubr.msk.f32.gmra.mrb[84].mxu0 %vm1514_vm4, %v16548_v41  ;;  %v16572_v41 = vsel %vm3305_vm8, %v3349_v5, %v3351_v50  ;;  %v3190_v50 = vrot.slane %v16218_v18, 7  ;;  %v16590_v5 = vsel %vm3153_vm7, %v3187_v22, %v3188_v36  ;;  %v3194_v22 = vrot.slane %v16225_v21, 7 }
 0x3ab   : > { %12475 = vmatprep.mubr.msk.f32.mxu0 %vm1514_vm4, %v16554_v25  ;;  %19974 = vst [vmem:[#allocation71_spill] sm:$0xff] %v16572_v41  ;;  %v16583_v25 = vsel %vm3153_vm7, %v3185_v27, 0.0  ;;  %v16602_v27 = vsel %vm3305_vm8, %v3358_v34, %v3359_v0  ;;  %v3364_v18 = vrot.slane %v16590_v5, 1 }
 0x3ac   : > { %v3361_v31 = vrot.slane %v16583_v25, 1  ;;  %19977 = vst [vmem:[#allocation74_spill] sm:$0xff] %v16602_v27  ;;  %v16617_v34 = vsel %vm3153_vm7, 0.0, %v3190_v50 }
 0x3ad   : > { %v3368_v21 = vrot.slane %v16617_v34, 1 }
 0x3ae   : > { %12476 = vmatmul.mubr.msk.f32.gmra.mrb[86].mxu0 %vm1514_vm4, %v16572_v41  ;;  %v16596_v41 = vsel %vm3305_vm8, %v3354_v20, %v3356_v2  ;;  %v3193_v2 = vrot.slane %v16230_v47, 7  ;;  %v16614_v20 = vsel %vm3153_vm7, %v3190_v50, %v3191_v10  ;;  %v3197_v50 = vrot.slane %v16237_v9, 7 }
 0x3af   : > { %12478 = vmatprep.mubr.msk.f32.mxu0 %vm1514_vm4, %v16578_v62  ;;  %19976 = vst [vmem:[#allocation73_spill] sm:$0xff] %v16596_v41  ;;  %v16607_v62 = vsel %vm3153_vm7, %v3188_v36, 0.0  ;;  %v16626_v36 = vsel %vm3305_vm8, %v3363_v38, %v3364_v18  ;;  %v3369_v47 = vrot.slane %v16614_v20, 1 }
 0x3b0   : > { %v3366_v45 = vrot.slane %v16607_v62, 1  ;;  %19979 = vst [vmem:[#allocation76_spill] sm:$0xff] %v16626_v36  ;;  %v16641_v38 = vsel %vm3153_vm7, 0.0, %v3193_v2  ;;  %v16677_v42 = vsel %vm3153_vm7, %v3197_v50, 0.0 }
 0x3b1   : > { %v3373_v9 = vrot.slane %v16641_v38, 1 }
 0x3b2   : > { %12479 = vmatmul.mubr.msk.f32.gmra.mrb[88].mxu0 %vm1514_vm4, %v16596_v41  ;;  %v16620_v41 = vsel %vm3305_vm8, %v3359_v0, %v3361_v31  ;;  %v3196_v0 = vrot.slane %v16242_v55, 7  ;;  %v16638_v31 = vsel %vm3153_vm7, %v3193_v2, %v3194_v22 }
 0x3b3   : > { %12481 = vmatprep.mubr.msk.f32.mxu0 %vm1514_vm4, %v16602_v27  ;;  %19978 = vst [vmem:[#allocation75_spill] sm:$0xff] %v16620_v41  ;;  %v16631_v27 = vsel %vm3153_vm7, %v3191_v10, 0.0  ;;  %v16650_v10 = vsel %vm3305_vm8, %v3368_v21, %v3369_v47  ;;  %v3374_v55 = vrot.slane %v16638_v31, 1 }
 0x3b4   : > { %v3371_v59 = vrot.slane %v16631_v27, 1  ;;  %19981 = vst [vmem:[#allocation78_spill] sm:$0xff] %v16650_v10 }
 0x3b6   : > { %12482 = vmatmul.mubr.msk.f32.gmra.mrb[90].mxu0 %vm1514_vm4, %v16620_v41  ;;  %v16644_v41 = vsel %vm3305_vm8, %v3364_v18, %v3366_v45  ;;  %v16660_v45 = vsel %vm3153_vm7, %v3196_v0, %v3197_v50  ;;  %v16663_v18 = vsel %vm3153_vm7, 0.0, %v3196_v0  ;;  %v16666_v2 = vsel %vm3305_vm8, %v3369_v47, %v3371_v59  ;;  %v10439_v0 = vld [vmem:[%s19957_s13 + $0x90] sm:$0xff] }
 0x3b7   : > { %12484 = vmatprep.mubr.msk.f32.mxu0 %vm1514_vm4, %v16626_v36  ;;  %19980 = vst [vmem:[#allocation77_spill] sm:$0xff] %v16644_v41  ;;  %v16655_v36 = vsel %vm3153_vm7, %v3194_v22, 0.0  ;;  %19982 = vst [vmem:[#allocation79_spill] sm:$0xff] %v16666_v2  ;;  %v16672_v22 = vsel %vm3305_vm8, %v3373_v9, %v3374_v55  ;;  %v3381_v59 = vrot.slane %v16677_v42, 1 }
 0x3b8   : > { %v3376_v21 = vrot.slane %v16655_v36, 1  ;;  %19983 = vst [vmem:[#allocation80_spill] sm:$0xff] %v16672_v22 }
 0x3ba   : > { %12485 = vmatmul.mubr.msk.f32.gmra.mrb[92].mxu0 %vm1514_vm4, %v16644_v41  ;;  %v3378_v41 = vrot.slane %v16663_v18, 1  ;;  %v16682_v47 = vsel %vm3305_vm8, %v3374_v55, %v3376_v21  ;;  %v10440_v55 = vld [vmem:[%s19957_s13 + $0x98] sm:$0xff]  ;;  %v19987_v21 = vmov 0.0  }
 0x3bb   : > { %12487 = vmatprep.mubr.msk.f32.mxu0 %vm1514_vm4, %v16650_v10  ;;  %v3379_v10 = vrot.slane %v16660_v45, 1  ;;  %19984 = vst [vmem:[#allocation81_spill] sm:$0xff] %v16682_v47 }
 0x3bd   : > { %v16688_v9 = vsel %vm3305_vm8, %v3378_v41, %v3379_v10  ;;  %v16693_v50 = vsel %vm3305_vm8, %v3379_v10, %v3381_v59  ;;  %v13676_v41 = vpack.c.bf16 %v10440_v55, %v10439_v0  ;;  %v10442_v10 = vld [vmem:[%s19957_s13 + $0xa8] sm:$0xff]  ;;  %v10443_v0 = vld [vmem:[%s19957_s13 + $0xb0] sm:$0xff]  ;;  %v10444_v55 = vld [vmem:[%s19957_s13 + $0xb8] sm:$0xff] }
 0x3be   : > { %12488 = vmatmul.mubr.msk.f32.gmra.mrb[94].mxu0 %vm1514_vm4, %v16666_v2  ;;  %19985 = vst [vmem:[#allocation82_spill] sm:$0xff] %v16688_v9  ;;  %19986 = vst [vmem:[#allocation83_spill] sm:$0xff] %v16693_v50  ;;  %v3974_v2 = vrot.slane %v16335_v48, 2 }
 0x3bf   : > { %12490 = vmatprep.mubr.msk.f32.mxu0 %vm1514_vm4, %v16672_v22 }
 0x3c2   : > { %12491 = vmatmul.mubr.msk.f32.gmra.mrb[96].mxu0 %vm1514_vm4, %v16682_v47  ;;  %v10482_v47 = vld [vmem:[%s19957_s13 + $0xe8] sm:$0xff] }
 0x3c3   : > { %12493 = vmatprep.mubr.msk.f32.mxu0 %vm1514_vm4, %v16688_v9  ;;  %v10441_v9 = vld [vmem:[%s19957_s13 + $0xa0] sm:$0xff] }
 0x3c4   : > { %v13680_v59 = vpack.c.bf16 %v10442_v10, %v10441_v9  ;;  %v10478_v9 = vld [vmem:[%s19957_s13 + $0xc8] sm:$0xff] }
 0x3c6   : > { %12494 = vmatmul.mubr.msk.f32.gmra.mrb[98].mxu0 %vm1514_vm4, %v16693_v50  ;;  %v13684_v50 = vpack.c.bf16 %v10444_v55, %v10443_v0  ;;  %v3969_v0 = vrot.slane %v16316_v46, 2  ;;  %v3970_v55 = vrot.slane %v16313_v58, 2 }
 0x3c7   : > { %12512 = vmatprep.mubr.f32.mxu0 %v19987_v21 }
 0x3c8   : > { %v16807_v22 = vsel %vm3966_vm9, %v3969_v0, %v3970_v55  ;;  %v10483_v0 = vld [vmem:[%s19957_s13 + $0xf0] sm:$0xff] }
 0x3ca   : > { %12513 = vmatmul.mubr.f32.vlgmr.msra.gmra.mrb[68].mxu0 %v19987_v21 }
 0x3cb   : > { %12515 = vmatprep.mubr.msk.f32.mxu0 %vm1514_vm4, %v16316_v46  ;;  %13675 = vmatpush3.bf16.msra.mxu0 %v16424_v60  ;;  %v10477_v60 = vld [vmem:[%s19957_s13 + $0xc0] sm:$0xff] }
 0x3cc   : > { %13677 = vmatprep.subr.bf16.mxu0 %v13676_v41  ;;  %v13688_v10 = vpack.c.bf16 %v10478_v9, %v10477_v60  ;;  %v3972_v9 = vrot.slane %v16327_v14, 2 }
 0x3ce   : > { %12516 = vmatmul.mubr.msk.f32.gmra.mrb[70].mxu0 %vm1514_vm4, %v16313_v58 }
 0x3cf   : > { %12518 = vmatprep.mubr.msk.f32.mxu0 %vm1514_vm4, %v16335_v48  ;;  %13679 = vmatpush3.bf16.msra.mxu0 %v13676_v41  ;;  %v10479_v41 = vld [vmem:[%s19957_s13 + $0xd0] sm:$0xff] }
 0x3d0   : > { %13681 = vmatprep.subr.bf16.mxu0 %v13680_v59 }
 0x3d2   : > { %12519 = vmatmul.mubr.msk.f32.gmra.mrb[72].mxu0 %vm1514_vm4, %v16332_v12 }
 0x3d3   : > { %12521 = vmatprep.mubr.msk.f32.mxu0 %vm1514_vm4, %v16362_v56  ;;  %13683 = vmatpush3.bf16.msra.mxu0 %v13680_v59  ;;  %v10480_v59 = vld [vmem:[%s19957_s13 + $0xd8] sm:$0xff] }
 0x3d4   : > { %13685 = vmatprep.subr.bf16.mxu0 %v13684_v50  ;;  %v13692_v60 = vpack.c.bf16 %v10480_v59, %v10479_v41  ;;  %v3975_v41 = vrot.slane %v16332_v12, 2  ;;  %v16814_v59 = vsel %vm3966_vm9, %v3970_v55, %v3972_v9  ;;  %v3982_v9 = vrot.slane %v16382_v63, 2 }
 0x3d5   : > { %19989 = vst [vmem:[#allocation85_spill] sm:$0xff] %v16814_v59 }
 0x3d6   : > { %12522 = vmatmul.mubr.msk.f32.gmra.mrb[74].mxu0 %vm1514_vm4, %v16359_v43  ;;  %v16833_v55 = vsel %vm3966_vm9, %v3975_v41, %v3977_v39  ;;  %v3985_v39 = vrot.slane %v16389_v15, 2 }
 0x3d7   : > { %12524 = vmatprep.mubr.msk.f32.mxu0 %vm1514_vm4, %v16392_v13  ;;  %13687 = vmatpush3.bf16.msra.mxu0 %v13684_v50  ;;  %v16783_v50 = vrot.slane %v19987_v21, 2  ;;  %v10481_v21 = vld [vmem:[%s19957_s13 + $0xe0] sm:$0xff]  ;;  %19991 = vst [vmem:[#allocation87_spill] sm:$0xff] %v16833_v55 }
 0x3d8   : > { %13689 = vmatprep.subr.bf16.mxu0 %v13688_v10  ;;  %v13696_v14 = vpack.c.bf16 %v10482_v47, %v10481_v21  ;;  %v3979_v47 = vrot.slane %v16362_v56, 2  ;;  %v3980_v21 = vrot.slane %v16359_v43, 2 }
 0x3d9   : > { %19988 = vst [vmem:[#allocation84_spill] sm:$0xff] %v16783_v50 }
 0x3da   : > { %12525 = vmatmul.mubr.msk.f32.gmra.mrb[76].mxu0 %vm1514_vm4, %v16389_v15 }
 0x3db   : > { %12527 = vmatprep.mubr.msk.f32.mxu0 %vm1514_vm4, %v16422_v8 }
 0x3de   : > { %12528 = vmatmul.mubr.msk.f32.gmra.mrb[78].mxu0 %vm1514_vm4, %v16419_v29 }
 0x3df   : > { %12530 = vmatprep.mubr.msk.f32.mxu0 %vm1514_vm4, %v16448_v37 }
 0x3e2   : > { %12531 = vmatmul.mubr.msk.f32.gmra.mrb[80].mxu0 %vm1514_vm4, %v16445_v57 }
 0x3e3   : > { %12533 = vmatprep.mubr.msk.f32.mxu0 %vm1514_vm4, %v16473_v11 }
 0x3e6   : > { %12534 = vmatmul.mubr.msk.f32.gmra.mrb[82].mxu0 %vm1514_vm4, %v16470_v49 }
 0x3e7   : > { %12536 = vmatprep.mubr.msk.f32.mxu0 %vm1514_vm4, %v16497_v28 }
 0x3ea   : > { %12537 = vmatmul.mubr.msk.f32.gmra.mrb[84].mxu0 %vm1514_vm4, %v16494_v52 }
 0x3eb   : > { %12539 = vmatprep.mubr.msk.f32.mxu0 %vm1514_vm4, %v16521_v7 }
 0x3ee   : > { %12540 = vmatmul.mubr.msk.f32.gmra.mrb[86].mxu0 %vm1514_vm4, %v16518_v19 }
 0x3ef   : > { %12542 = vmatprep.mubr.msk.f32.mxu0 %vm1514_vm4, %v16545_v16 }
 0x3f2   : > { %12543 = vmatmul.mubr.msk.f32.gmra.mrb[88].mxu0 %vm1514_vm4, %v16542_v51 }
 0x3f3   : > { %12545 = vmatprep.mubr.msk.f32.mxu0 %vm1514_vm4, %v16569_v24 }
 0x3f6   : > { %12546 = vmatmul.mubr.msk.f32.gmra.mrb[90].mxu0 %vm1514_vm4, %v16566_v35 }
 0x3f7   : > { %12548 = vmatprep.mubr.msk.f32.mxu0 %vm1514_vm4, %v16593_v30 }
 0x3fa   : > { %12549 = vmatmul.mubr.msk.f32.gmra.mrb[92].mxu0 %vm1514_vm4, %v16590_v5 }
 0x3fb   : > { %12551 = vmatprep.mubr.msk.f32.mxu0 %vm1514_vm4, %v16617_v34 }
 0x3fe   : > { %12552 = vmatmul.mubr.msk.f32.gmra.mrb[94].mxu0 %vm1514_vm4, %v16614_v20 }
 0x3ff   : > { %12554 = vmatprep.mubr.msk.f32.mxu0 %vm1514_vm4, %v16641_v38 }
 0x402   : > { %12555 = vmatmul.mubr.msk.f32.gmra.mrb[96].mxu0 %vm1514_vm4, %v16638_v31 }
 0x403   : > { %12557 = vmatprep.mubr.msk.f32.mxu0 %vm1514_vm4, %v16663_v18 }
 0x406   : > { %12558 = vmatmul.mubr.msk.f32.gmra.mrb[98].mxu0 %vm1514_vm4, %v16660_v45 }
 0x407   : > { %12576 = vmatprep.mubr.msk.f32.mxu0 %vm1514_vm4, %v16783_v50 }
 0x40a   : > { %12577 = vmatmul.mubr.msk.f32.vlgmr.msra.gmra.mrb[68].mxu0 %vm1514_vm4, %v16783_v50  ;;  %v10484_v50 = vld [vmem:[%s19957_s13 + $0xf8] sm:$0xff] }
 0x40b   : > { %12579 = vmatprep.mubr.msk.f32.mxu0 %vm1514_vm4, %v16807_v22  ;;  %13691 = vmatpush3.bf16.msra.mxu0 %v13688_v10  ;;  %v16826_v10 = vsel %vm3966_vm9, %v3974_v2, %v3975_v41  ;;  %v13700_v23 = vpack.c.bf16 %v10484_v50, %v10483_v0  ;;  %v10517_v2 = vld [vmem:[%s19957_s13 + $0x100] sm:$0xff]  ;;  %v3984_v50 = vrot.slane %v16392_v13, 2  ;;  %v16854_v41 = vsel %vm3966_vm9, %v3980_v21, %v3982_v9 }
 0x40c   : > { %13693 = vmatprep.subr.bf16.mxu0 %v13692_v60  ;;  %19990 = vst [vmem:[#allocation86_spill] sm:$0xff] %v16826_v10  ;;  %v3987_v0 = vrot.slane %v16412_v3, 2  ;;  %v3992_v3 = vrot.slane %v16438_v33, 2  ;;  %v3995_v9 = vrot.slane %v16445_v57, 2 }
 0x40e   : > { %12580 = vmatmul.mubr.msk.f32.gmra.mrb[70].mxu0 %vm1514_vm4, %v16814_v59  ;;  %v10518_v59 = vld [vmem:[%s19957_s13 + $0x108] sm:$0xff] }
 0x40f   : > { %12582 = vmatprep.mubr.msk.f32.mxu0 %vm1514_vm4, %v16826_v10  ;;  %13695 = vmatpush3.bf16.msra.mxu0 %v13692_v60  ;;  %v16845_v60 = vsel %vm3966_vm9, %v3979_v47, %v3980_v21  ;;  %v16851_v63 = vpack.c.bf16 %v10518_v59, %v10517_v2  ;;  %v16860_v47 = vsel %vm3966_vm9, %v3984_v50, %v3985_v39  ;;  %v3990_v10 = vrot.slane %v16419_v29, 2 }
 0x410   : > { %13697 = vmatprep.subr.bf16.mxu0 %v13696_v14  ;;  %v3994_v21 = vrot.slane %v16448_v37, 2  ;;  %v3997_v2 = vrot.slane %v16463_v40, 2  ;;  %v4000_v50 = vrot.slane %v16470_v49, 2 }
 0x412   : > { %12583 = vmatmul.mubr.msk.f32.gmra.mrb[72].mxu0 %vm1514_vm4, %v16833_v55  ;;  %v3989_v55 = vrot.slane %v16422_v8, 2  ;;  %v16887_v33 = vsel %vm3966_vm9, %v3994_v21, %v3995_v9 }
 0x413   : > { %12585 = vmatprep.mubr.msk.f32.mxu0 %vm1514_vm4, %v16845_v60  ;;  %13699 = vmatpush3.bf16.msra.mxu0 %v13696_v14  ;;  %v16868_v14 = vsel %vm3966_vm9, %v3985_v39, %v3987_v0  ;;  %v16894_v39 = vsel %vm3966_vm9, %v3995_v9, %v3997_v2  ;;  %v4004_v0 = vrot.slane %v16497_v28, 2  ;;  %v4007_v9 = vrot.slane %v16511_v6, 2 }
 0x414   : > { %13701 = vmatprep.subr.bf16.mxu0 %v13700_v23  ;;  %v16874_v59 = vsel %vm3966_vm9, %v3989_v55, %v3990_v10  ;;  %v3999_v55 = vrot.slane %v16473_v11, 2  ;;  %v4009_v2 = vrot.slane %v16521_v7, 2 }
 0x416   : > { %12586 = vmatmul.mubr.msk.f32.gmra.mrb[74].mxu0 %vm1514_vm4, %v16854_v41  ;;  %v16900_v40 = vsel %vm3966_vm9, %v3999_v55, %v4000_v50  ;;  %v4010_v55 = vrot.slane %v16518_v19, 2 }
 0x417   : > { %12588 = vmatprep.mubr.msk.f32.mxu0 %vm1514_vm4, %v16860_v47  ;;  %13703 = vmatpush3.bf16.msra.mxu0 %v13700_v23  ;;  %v16881_v23 = vsel %vm3966_vm9, %v3990_v10, %v3992_v3  ;;  %v4002_v10 = vrot.slane %v16487_v54, 2  ;;  %19992 = vst [vmem:[#allocation88_spill] sm:$0xff] %v16900_v40  ;;  %v4005_v3 = vrot.slane %v16494_v52, 2 }
 0x418   : > { %13705 = vmatprep.subr.bf16.mxu0 %v16851_v63  ;;  %v16926_v6 = vsel %vm3966_vm9, %v4009_v2, %v4010_v55  ;;  %v4020_v2 = vrot.slane %v16566_v35, 2 }
 0x419   : > { %v16907_v21 = vsel %vm3966_vm9, %v4000_v50, %v4002_v10  ;;  %v16913_v54 = vsel %vm3966_vm9, %v4004_v0, %v4005_v3  ;;  %v4012_v50 = vrot.slane %v16535_v53, 2  ;;  %19994 = vst [vmem:[#allocation90_spill] sm:$0xff] %v16926_v6  ;;  %v4014_v10 = vrot.slane %v16545_v16, 2 }
 0x41a   : > { %12589 = vmatmul.mubr.msk.f32.gmra.mrb[76].mxu0 %vm1514_vm4, %v16868_v14  ;;  %19993 = vst [vmem:[#allocation89_spill] sm:$0xff] %v16913_v54  ;;  %v4015_v0 = vrot.slane %v16542_v51, 2 }
 0x41b   : > { %12591 = vmatprep.mubr.msk.f32.mxu0 %vm1514_vm4, %v16874_v59 }
 0x41c   : > { %v16939_v53 = vsel %vm3966_vm9, %v4014_v10, %v4015_v0  ;;  %v4025_v10 = vrot.slane %v16590_v5, 2 }
 0x41d   : > { %19995 = vst [vmem:[#allocation91_spill] sm:$0xff] %v16939_v53 }
 0x41e   : > { %12592 = vmatmul.mubr.msk.f32.gmra.mrb[78].mxu0 %vm1514_vm4, %v16881_v23 }
 0x41f   : > { %12594 = vmatprep.mubr.msk.f32.mxu0 %vm1514_vm4, %v16887_v33 }
 0x422   : > { %12595 = vmatmul.mubr.msk.f32.gmra.mrb[80].mxu0 %vm1514_vm4, %v16894_v39 }
 0x423   : > { %12597 = vmatprep.mubr.msk.f32.mxu0 %vm1514_vm4, %v16900_v40  ;;  %v16920_v40 = vsel %vm3966_vm9, %v4005_v3, %v4007_v9  ;;  %v4017_v3 = vrot.slane %v16559_v17, 2  ;;  %v4019_v9 = vrot.slane %v16569_v24, 2 }
 0x425   : > { %v16952_v17 = vsel %vm3966_vm9, %v4019_v9, %v4020_v2  ;;  %v4030_v9 = vrot.slane %v16614_v20, 2 }
 0x426   : > { %12598 = vmatmul.mubr.msk.f32.gmra.mrb[82].mxu0 %vm1514_vm4, %v16907_v21  ;;  %19997 = vst [vmem:[#allocation93_spill] sm:$0xff] %v16952_v17 }
 0x427   : > { %12600 = vmatprep.mubr.msk.f32.mxu0 %vm1514_vm4, %v16913_v54  ;;  %v16933_v54 = vsel %vm3966_vm9, %v4010_v55, %v4012_v50  ;;  %v4022_v55 = vrot.slane %v16583_v25, 2  ;;  %v4024_v50 = vrot.slane %v16593_v30, 2 }
 0x429   : > { %v16965_v25 = vsel %vm3966_vm9, %v4024_v50, %v4025_v10  ;;  %v4035_v50 = vrot.slane %v16638_v31, 2 }
 0x42a   : > { %12601 = vmatmul.mubr.msk.f32.gmra.mrb[84].mxu0 %vm1514_vm4, %v16920_v40  ;;  %19998 = vst [vmem:[#allocation94_spill] sm:$0xff] %v16965_v25 }
 0x42b   : > { %12603 = vmatprep.mubr.msk.f32.mxu0 %vm1514_vm4, %v16926_v6  ;;  %v16946_v6 = vsel %vm3966_vm9, %v4015_v0, %v4017_v3  ;;  %v4027_v0 = vrot.slane %v16607_v62, 2  ;;  %v4029_v3 = vrot.slane %v16617_v34, 2 }
 0x42c   : > { %19996 = vst [vmem:[#allocation92_spill] sm:$0xff] %v16946_v6 }
 0x42d   : > { %v16978_v62 = vsel %vm3966_vm9, %v4029_v3, %v4030_v9  ;;  %v4040_v3 = vrot.slane %v16660_v45, 2 }
 0x42e   : > { %12604 = vmatmul.mubr.msk.f32.gmra.mrb[86].mxu0 %vm1514_vm4, %v16933_v54  ;;  %20000 = vst [vmem:[#allocation96_spill] sm:$0xff] %v16978_v62 }
 0x42f   : > { %12606 = vmatprep.mubr.msk.f32.mxu0 %vm1514_vm4, %v16939_v53  ;;  %v16959_v53 = vsel %vm3966_vm9, %v4020_v2, %v4022_v55  ;;  %v4032_v2 = vrot.slane %v16631_v27, 2  ;;  %v4034_v55 = vrot.slane %v16641_v38, 2 }
 0x431   : > { %v16991_v27 = vsel %vm3966_vm9, %v4034_v55, %v4035_v50  ;;  %v10519_v55 = vld [vmem:[%s19957_s13 + $0x110] sm:$0xff] }
 0x432   : > { %12607 = vmatmul.mubr.msk.f32.gmra.mrb[88].mxu0 %vm1514_vm4, %v16946_v6  ;;  %20002 = vst [vmem:[#allocation98_spill] sm:$0xff] %v16991_v27 }
 0x433   : > { %12609 = vmatprep.mubr.msk.f32.mxu0 %vm1514_vm4, %v16952_v17  ;;  %v16972_v17 = vsel %vm3966_vm9, %v4025_v10, %v4027_v0  ;;  %v4037_v10 = vrot.slane %v16655_v36, 2  ;;  %v4039_v0 = vrot.slane %v16663_v18, 2 }
 0x434   : > { %19999 = vst [vmem:[#allocation95_spill] sm:$0xff] %v16972_v17 }
 0x435   : > { %v17004_v36 = vsel %vm3966_vm9, %v4039_v0, %v4040_v3  ;;  %v10522_v0 = vld [vmem:[%s19957_s13 + $0x128] sm:$0xff] }
 0x436   : > { %12610 = vmatmul.mubr.msk.f32.gmra.mrb[90].mxu0 %vm1514_vm4, %v16959_v53 }
 0x437   : > { %12612 = vmatprep.mubr.msk.f32.mxu0 %vm1514_vm4, %v16965_v25  ;;  %v16985_v25 = vsel %vm3966_vm9, %v4030_v9, %v4032_v2  ;;  %v4042_v9 = vrot.slane %v16677_v42, 2  ;;  %v10520_v42 = vld [vmem:[%s19957_s13 + $0x118] sm:$0xff] }
 0x438   : > { %20001 = vst [vmem:[#allocation97_spill] sm:$0xff] %v16985_v25 }
 0x439   : > { %v17009_v2 = vsel %vm3966_vm9, %v4040_v3, %v4042_v9  ;;  %v3038_v3 = vld [vmem:[%s19606_s17] sm:$0x1] }
 0x43a   : > { %12613 = vmatmul.mubr.msk.f32.gmra.mrb[92].mxu0 %vm1514_vm4, %v16972_v17  ;;  %20004 = vst [vmem:[#allocation100_spill] sm:$0xff] %v17009_v2 }
 0x43b   : > { %12615 = vmatprep.mubr.msk.f32.mxu0 %vm1514_vm4, %v16978_v62  ;;  %v16998_v62 = vsel %vm3966_vm9, %v4035_v50, %v4037_v10  ;;  %v13708_v50 = vpack.c.bf16 %v10520_v42, %v10519_v55  ;;  %v10521_v10 = vld [vmem:[%s19957_s13 + $0x120] sm:$0xff]  ;;  %v10523_v55 = vld [vmem:[%s19957_s13 + $0x130] sm:$0xff] }
 0x43c   : > { %20003 = vst [vmem:[#allocation99_spill] sm:$0xff] %v16998_v62 }
 0x43e   : > { %12616 = vmatmul.mubr.msk.f32.gmra.mrb[94].mxu0 %vm1514_vm4, %v16985_v25 }
 0x43f   : > { %12618 = vmatprep.mubr.msk.f32.mxu0 %vm1514_vm4, %v16991_v27 }
 0x442   : > { %12619 = vmatmul.mubr.msk.f32.gmra.mrb[96].mxu0 %vm1514_vm4, %v16998_v62 }
 0x443   : > { %12621 = vmatprep.mubr.msk.f32.mxu0 %vm1514_vm4, %v17004_v36 }
 0x446   : > { %12622 = vmatmul.mubr.msk.f32.gmra.mrb[98].mxu0 %vm1514_vm4, %v17009_v2  ;;  %v10558_v2 = vld [vmem:[%s19957_s13 + $0x148] sm:$0xff] }
 0x447   : > { %12640 = vmatprep.mubr.msk.f32.mxu0 %vm1514_vm4, %v16316_v46  ;;  %v13712_v46 = vpack.c.bf16 %v10522_v0, %v10521_v10  ;;  %v10557_v0 = vld [vmem:[%s19957_s13 + $0x140] sm:$0xff] }
 0x44a   : > { %12641 = vmatmul.mubr.msk.f32.vlgmr.msra.gmra.mrb[68].mxu0 %vm1514_vm4, %v16313_v58  ;;  %v10524_v58 = vld [vmem:[%s19957_s13 + $0x138] sm:$0xff] }
 0x44b   : > { %12643 = vmatprep.mubr.msk.f32.mxu0 %vm1514_vm4, %v16335_v48  ;;  %13707 = vmatpush3.bf16.msra.mxu0 %v16851_v63  ;;  %v13716_v10 = vpack.c.bf16 %v10524_v58, %v10523_v55  ;;  %v3200_v55 = vrot.slane %v16249_v61, 7 }
 0x44c   : > { %13709 = vmatprep.subr.bf16.mxu0 %v13708_v50 }
 0x44d   : > { %v3111_v9 = vpop.f32.mrb[66].mxu0 }
 0x44e   : > { %v3112_v42 = vadd.f32 %v3111_v9, %v3038_v3  ;;  %12644 = vmatmul.mubr.msk.f32.gmra.mrb[70].mxu0 %vm1514_vm4, %v16332_v12  ;;  %v12431_v48 = vpop.f32.mrb[67].mxu0 }
 0x44f   : > { %12646 = vmatprep.mubr.msk.f32.mxu0 %vm1514_vm4, %v16362_v56  ;;  %13711 = vmatpush3.bf16.msra.mxu0 %v13708_v50  ;;  %v13720_v48 = vpack.c.bf16 %v10558_v2, %v10557_v0  ;;  %v6219_v2 = vsub.s32 0, %v15256_v44  ;;  %v3199_v44 = vrot.slane %v16254_v32, 7  ;;  %v20013_v32 = vld [vmem:[#allocation64_spill] sm:$0xff] }
 0x450   : > { %v10366_v63 = vmul.f32 -1.442695, %v3112_v42  ;;  %13713 = vmatprep.subr.bf16.mxu0 %v13712_v46 }
 0x451   : > { %v17107_v58 = vsel %vm3153_vm7, 0.0, %v3199_v44  ;;  %v17112_v42 = vsel %vm3153_vm7, %v3199_v44, %v3200_v55  ;;  %v20006_v44 = vld [vmem:[#allocation57_spill] sm:$0xff] }
 0x452   : > { %14623 = vpow2.f32 %v10366_v63  ;;  %12647 = vmatmul.mubr.msk.f32.gmra.mrb[72].mxu0 %vm1514_vm4, %v16359_v43  ;;  %v10559_v63 = vld [vmem:[%s19957_s13 + $0x150] sm:$0xff] }
 0x453   : > { %12649 = vmatprep.mubr.msk.f32.mxu0 %vm1514_vm4, %v16392_v13  ;;  %13715 = vmatpush3.bf16.msra.mxu0 %v13712_v46 }
 0x454   : > { %13717 = vmatprep.subr.bf16.mxu0 %v13716_v10 }
 0x456   : > { %12650 = vmatmul.mubr.msk.f32.gmra.mrb[74].mxu0 %vm1514_vm4, %v16389_v15 }
 0x457   : > { %12652 = vmatprep.mubr.msk.f32.mxu0 %vm1514_vm4, %v16422_v8  ;;  %13719 = vmatpush3.bf16.msra.mxu0 %v13716_v10  ;;  %v10560_v10 = vld [vmem:[%s19957_s13 + $0x158] sm:$0xff] }
 0x458   : > { %13721 = vmatprep.subr.bf16.mxu0 %v13720_v48  ;;  %v13724_v0 = vpack.c.bf16 %v10560_v10, %v10559_v63  ;;  %v20007_v63 = vld [vmem:[#allocation58_spill] sm:$0xff] }
 0x459   : > { %v10598_v10 = vld [vmem:[%s19957_s13 + $0x188] sm:$0xff] }
 0x45a   : > { %12653 = vmatmul.mubr.msk.f32.gmra.mrb[76].mxu0 %vm1514_vm4, %v16419_v29 }
 0x45b   : > { %12655 = vmatprep.mubr.msk.f32.mxu0 %vm1514_vm4, %v16448_v37 }
 0x45c   : > { %v14624_v50 = vpop.eup %14623 }
 0x45d   : > { %v3118_v3 = vadd.f32 1.0, %v14624_v50  ;;  %v10561_v50 = vld [vmem:[%s19957_s13 + $0x160] sm:$0xff] }
 0x45e   : > { %12656 = vmatmul.mubr.msk.f32.gmra.mrb[78].mxu0 %vm1514_vm4, %v16445_v57 }
 0x45f   : > { %14625 = vrcp.f32 %v3118_v3  ;;  %12658 = vmatprep.mubr.msk.f32.mxu0 %vm1514_vm4, %v16473_v11  ;;  %v10562_v3 = vld [vmem:[%s19957_s13 + $0x168] sm:$0xff] }
 0x462   : > { %12659 = vmatmul.mubr.msk.f32.gmra.mrb[80].mxu0 %vm1514_vm4, %v16470_v49 }
 0x463   : > { %12661 = vmatprep.mubr.msk.f32.mxu0 %vm1514_vm4, %v16497_v28 }
 0x466   : > { %12662 = vmatmul.mubr.msk.f32.gmra.mrb[82].mxu0 %vm1514_vm4, %v16494_v52 }
 0x467   : > { %12664 = vmatprep.mubr.msk.f32.mxu0 %vm1514_vm4, %v16521_v7 }
 0x469   : > { %v14626_v46 = vpop.eup %14625 }
 0x46a   : > { %v17076_v9 = vrot.slane %v14626_v46, %v6219_v2  ;;  %12665 = vmatmul.mubr.msk.f32.gmra.mrb[84].mxu0 %vm1514_vm4, %v16518_v19  ;;  %v13728_v2 = vpack.c.bf16 %v10562_v3, %v10561_v50  ;;  %v10564_v46 = vld [vmem:[%s19957_s13 + $0x178] sm:$0xff]  ;;  %v20008_v50 = vld [vmem:[#allocation59_spill] sm:$0xff] }
 0x46b   : > { %12667 = vmatprep.mubr.msk.f32.mxu0 %vm1514_vm4, %v16545_v16  ;;  %v20009_v3 = vld [vmem:[#allocation60_spill] sm:$0xff] }
 0x46c   : > { %20005 = vst [vmem:[#allocation101_spill] sm:$0xff] %v17076_v9  ;;  %v20014_v9 = vld [vmem:[#allocation65_spill] sm:$0xff] }
 0x46e   : > { %12668 = vmatmul.mubr.msk.f32.gmra.mrb[86].mxu0 %vm1514_vm4, %v16542_v51 }
 0x46f   : > { %12670 = vmatprep.mubr.msk.f32.mxu0 %vm1514_vm4, %v16569_v24 }
 0x472   : > { %12671 = vmatmul.mubr.msk.f32.gmra.mrb[88].mxu0 %vm1514_vm4, %v16566_v35 }
 0x473   : > { %12673 = vmatprep.mubr.msk.f32.mxu0 %vm1514_vm4, %v16593_v30 }
 0x476   : > { %12674 = vmatmul.mubr.msk.f32.gmra.mrb[90].mxu0 %vm1514_vm4, %v16590_v5 }
 0x477   : > { %12676 = vmatprep.mubr.msk.f32.mxu0 %vm1514_vm4, %v16617_v34 }
 0x47a   : > { %12677 = vmatmul.mubr.msk.f32.gmra.mrb[92].mxu0 %vm1514_vm4, %v16614_v20 }
 0x47b   : > { %12679 = vmatprep.mubr.msk.f32.mxu0 %vm1514_vm4, %v16641_v38 }
 0x47e   : > { %12680 = vmatmul.mubr.msk.f32.gmra.mrb[94].mxu0 %vm1514_vm4, %v16638_v31 }
 0x47f   : > { %12682 = vmatprep.mubr.msk.f32.mxu0 %vm1514_vm4, %v16663_v18 }
 0x482   : > { %12683 = vmatmul.mubr.msk.f32.gmra.mrb[96].mxu0 %vm1514_vm4, %v16660_v45 }
 0x483   : > { %12685 = vmatprep.mubr.msk.f32.mxu0 %vm1514_vm4, %v17107_v58 }
 0x486   : > { %12686 = vmatmul.mubr.msk.f32.gmra.mrb[98].mxu0 %vm1514_vm4, %v17112_v42 }
 0x487   : > { %12704 = vmatprep.mubr.msk.f32.mxu0 %vm1514_vm4, %v16347_v1  ;;  %v10563_v1 = vld [vmem:[%s19957_s13 + $0x170] sm:$0xff] }
 0x48a   : > { %12705 = vmatmul.mubr.msk.f32.vlgmr.msra.gmra.mrb[68].mxu0 %vm1514_vm4, %v16365_v26  ;;  %v13732_v26 = vpack.c.bf16 %v10564_v46, %v10563_v1  ;;  %v20011_v1 = vld [vmem:[#allocation62_spill] sm:$0xff]  ;;  %v20012_v46 = vld [vmem:[#allocation63_spill] sm:$0xff] }
 0x48b   : > { %12707 = vmatprep.mubr.msk.f32.mxu0 %vm1514_vm4, %v16377_v4  ;;  %13723 = vmatpush3.bf16.msra.mxu0 %v13720_v48  ;;  %v10597_v48 = vld [vmem:[%s19957_s13 + $0x180] sm:$0xff] }
 0x48c   : > { %13725 = vmatprep.subr.bf16.mxu0 %v13724_v0  ;;  %v13736_v61 = vpack.c.bf16 %v10598_v10, %v10597_v48  ;;  %v20016_v48 = vld [vmem:[#allocation67_spill] sm:$0xff]  ;;  %v20017_v10 = vld [vmem:[#allocation68_spill] sm:$0xff] }
 0x48e   : > { %12708 = vmatmul.mubr.msk.f32.gmra.mrb[70].mxu0 %vm1514_vm4, %v20006_v44 }
 0x48f   : > { %12710 = vmatprep.mubr.msk.f32.mxu0 %vm1514_vm4, %v20007_v63  ;;  %13727 = vmatpush3.bf16.msra.mxu0 %v13724_v0  ;;  %v20010_v0 = vld [vmem:[#allocation61_spill] sm:$0xff] }
 0x490   : > { %13729 = vmatprep.subr.bf16.mxu0 %v13728_v2 }
 0x492   : > { %12711 = vmatmul.mubr.msk.f32.gmra.mrb[72].mxu0 %vm1514_vm4, %v20008_v50 }
 0x493   : > { %12713 = vmatprep.mubr.msk.f32.mxu0 %vm1514_vm4, %v20009_v3  ;;  %13731 = vmatpush3.bf16.msra.mxu0 %v13728_v2  ;;  %v20015_v2 = vld [vmem:[#allocation66_spill] sm:$0xff] }
 0x494   : > { %13733 = vmatprep.subr.bf16.mxu0 %v13732_v26 }
 0x496   : > { %12714 = vmatmul.mubr.msk.f32.gmra.mrb[74].mxu0 %vm1514_vm4, %v20010_v0  ;;  %v20032_v0 = vld [vmem:[#allocation83_spill] sm:$0xff] }
 0x497   : > { %12716 = vmatprep.mubr.msk.f32.mxu0 %vm1514_vm4, %v20011_v1  ;;  %13735 = vmatpush3.bf16.msra.mxu0 %v13732_v26  ;;  %v20018_v26 = vld [vmem:[#allocation69_spill] sm:$0xff]  ;;  %v20019_v1 = vld [vmem:[#allocation70_spill] sm:$0xff] }
 0x498   : > { %13737 = vmatprep.subr.bf16.mxu0 %v13736_v61 }
 0x49a   : > { %12717 = vmatmul.mubr.msk.f32.gmra.mrb[76].mxu0 %vm1514_vm4, %v20012_v46  ;;  %v20020_v46 = vld [vmem:[#allocation71_spill] sm:$0xff] }
 0x49b   : > { %12719 = vmatprep.mubr.msk.f32.mxu0 %vm1514_vm4, %v20013_v32  ;;  %v20021_v32 = vld [vmem:[#allocation72_spill] sm:$0xff] }
 0x49e   : > { %12720 = vmatmul.mubr.msk.f32.gmra.mrb[78].mxu0 %vm1514_vm4, %v20014_v9  ;;  %v20022_v9 = vld [vmem:[#allocation73_spill] sm:$0xff] }
 0x49f   : > { %12722 = vmatprep.mubr.msk.f32.mxu0 %vm1514_vm4, %v20015_v2  ;;  %v20023_v2 = vld [vmem:[#allocation74_spill] sm:$0xff] }
 0x4a2   : > { %12723 = vmatmul.mubr.msk.f32.gmra.mrb[80].mxu0 %vm1514_vm4, %v20016_v48  ;;  %v20024_v48 = vld [vmem:[#allocation75_spill] sm:$0xff] }
 0x4a3   : > { %12725 = vmatprep.mubr.msk.f32.mxu0 %vm1514_vm4, %v20017_v10  ;;  %v20025_v10 = vld [vmem:[#allocation76_spill] sm:$0xff] }
 0x4a6   : > { %12726 = vmatmul.mubr.msk.f32.gmra.mrb[82].mxu0 %vm1514_vm4, %v20018_v26  ;;  %v20026_v26 = vld [vmem:[#allocation77_spill] sm:$0xff] }
 0x4a7   : > { %12728 = vmatprep.mubr.msk.f32.mxu0 %vm1514_vm4, %v20019_v1  ;;  %v20027_v1 = vld [vmem:[#allocation78_spill] sm:$0xff] }
 0x4aa   : > { %12729 = vmatmul.mubr.msk.f32.gmra.mrb[84].mxu0 %vm1514_vm4, %v20020_v46  ;;  %v20028_v46 = vld [vmem:[#allocation79_spill] sm:$0xff] }
 0x4ab   : > { %12731 = vmatprep.mubr.msk.f32.mxu0 %vm1514_vm4, %v20021_v32  ;;  %v20029_v32 = vld [vmem:[#allocation80_spill] sm:$0xff] }
 0x4ae   : > { %12732 = vmatmul.mubr.msk.f32.gmra.mrb[86].mxu0 %vm1514_vm4, %v20022_v9  ;;  %v4645_v9 = vrot.slane %v17112_v42, 1 }
 0x4af   : > { %12734 = vmatprep.mubr.msk.f32.mxu0 %vm1514_vm4, %v20023_v2  ;;  %v4644_v2 = vrot.slane %v17107_v58, 1 }
 0x4b2   : > { %12735 = vmatmul.mubr.msk.f32.gmra.mrb[88].mxu0 %vm1514_vm4, %v20024_v48  ;;  %v20030_v48 = vld [vmem:[#allocation81_spill] sm:$0xff] }
 0x4b3   : > { %12737 = vmatprep.mubr.msk.f32.mxu0 %vm1514_vm4, %v20025_v10  ;;  %v17199_v10 = vsel %vm3153_vm7, %v3200_v55, 0.0  ;;  %v10599_v55 = vld [vmem:[%s19957_s13 + $0x190] sm:$0xff] }
 0x4b6   : > { %12738 = vmatmul.mubr.msk.f32.gmra.mrb[90].mxu0 %vm1514_vm4, %v20026_v26  ;;  %v20031_v26 = vld [vmem:[#allocation82_spill] sm:$0xff] }
 0x4b7   : > { %12740 = vmatprep.mubr.msk.f32.mxu0 %vm1514_vm4, %v20027_v1  ;;  %v4647_v1 = vrot.slane %v17199_v10, 1 }
 0x4ba   : > { %12741 = vmatmul.mubr.msk.f32.gmra.mrb[92].mxu0 %vm1514_vm4, %v20028_v46  ;;  %v17212_v46 = vsel %vm3305_vm8, %v4645_v9, %v4647_v1  ;;  %v10602_v1 = vld [vmem:[%s19957_s13 + $0x1a8] sm:$0xff] }
 0x4bb   : > { %12743 = vmatprep.mubr.msk.f32.mxu0 %vm1514_vm4, %v20029_v32  ;;  %v17207_v32 = vsel %vm3305_vm8, %v4644_v2, %v4645_v9  ;;  %20034 = vst [vmem:[#allocation58_spill] sm:$0xff] %v17212_v46  ;;  %v10601_v9 = vld [vmem:[%s19957_s13 + $0x1a0] sm:$0xff] }
 0x4bc   : > { %20033 = vst [vmem:[#allocation57_spill] sm:$0xff] %v17207_v32 }
 0x4be   : > { %12744 = vmatmul.mubr.msk.f32.gmra.mrb[94].mxu0 %vm1514_vm4, %v20030_v48 }
 0x4bf   : > { %12746 = vmatprep.mubr.msk.f32.mxu0 %vm1514_vm4, %v20031_v26  ;;  %v10600_v26 = vld [vmem:[%s19957_s13 + $0x198] sm:$0xff] }
 0x4c0   : > { %v13740_v2 = vpack.c.bf16 %v10600_v26, %v10599_v55  ;;  %v10604_v26 = vld [vmem:[%s19957_s13 + $0x1b8] sm:$0xff]  ;;  %v20037_v55 = vld [vmem:[#allocation87_spill] sm:$0xff] }
 0x4c2   : > { %12747 = vmatmul.mubr.msk.f32.gmra.mrb[96].mxu0 %vm1514_vm4, %v20032_v0  ;;  %v20036_v0 = vld [vmem:[#allocation86_spill] sm:$0xff] }
 0x4c3   : > { %12749 = vmatprep.mubr.msk.f32.mxu0 %vm1514_vm4, %v17207_v32  ;;  %v20035_v32 = vld [vmem:[#allocation85_spill] sm:$0xff] }
 0x4c6   : > { %12750 = vmatmul.mubr.msk.f32.gmra.mrb[98].mxu0 %vm1514_vm4, %v17212_v46  ;;  %v13744_v46 = vpack.c.bf16 %v10602_v1, %v10601_v9  ;;  %v10636_v9 = vld [vmem:[%s19957_s13 + $0x1c8] sm:$0xff] }
 0x4c7   : > { %12768 = vmatprep.mubr.msk.f32.mxu0 %vm1514_vm4, %v16807_v22  ;;  %v10603_v22 = vld [vmem:[%s19957_s13 + $0x1b0] sm:$0xff] }
 0x4ca   : > { %12769 = vmatmul.mubr.msk.f32.vlgmr.msra.gmra.mrb[68].mxu0 %vm1514_vm4, %v20035_v32  ;;  %v13748_v32 = vpack.c.bf16 %v10604_v26, %v10603_v22  ;;  %v20040_v22 = vld [vmem:[#allocation90_spill] sm:$0xff]  ;;  %v20041_v26 = vld [vmem:[#allocation91_spill] sm:$0xff] }
 0x4cb   : > { %12771 = vmatprep.mubr.msk.f32.mxu0 %vm1514_vm4, %v20036_v0  ;;  %13739 = vmatpush3.bf16.msra.mxu0 %v13736_v61  ;;  %v10635_v61 = vld [vmem:[%s19957_s13 + $0x1c0] sm:$0xff] }
 0x4cc   : > { %13741 = vmatprep.subr.bf16.mxu0 %v13740_v2  ;;  %v13752_v1 = vpack.c.bf16 %v10636_v9, %v10635_v61  ;;  %v20043_v61 = vld [vmem:[#allocation94_spill] sm:$0xff]  ;;  %v20044_v9 = vld [vmem:[#allocation96_spill] sm:$0xff] }
 0x4ce   : > { %12772 = vmatmul.mubr.msk.f32.gmra.mrb[70].mxu0 %vm1514_vm4, %v20037_v55 }
 0x4cf   : > { %12774 = vmatprep.mubr.msk.f32.mxu0 %vm1514_vm4, %v16845_v60  ;;  %13743 = vmatpush3.bf16.msra.mxu0 %v13740_v2  ;;  %v20039_v2 = vld [vmem:[#allocation89_spill] sm:$0xff] }
 0x4d0   : > { %13745 = vmatprep.subr.bf16.mxu0 %v13744_v46 }
 0x4d2   : > { %12775 = vmatmul.mubr.msk.f32.gmra.mrb[72].mxu0 %vm1514_vm4, %v16854_v41 }
 0x4d3   : > { %12777 = vmatprep.mubr.msk.f32.mxu0 %vm1514_vm4, %v16860_v47  ;;  %13747 = vmatpush3.bf16.msra.mxu0 %v13744_v46  ;;  %v20038_v46 = vld [vmem:[#allocation88_spill] sm:$0xff] }
 0x4d4   : > { %13749 = vmatprep.subr.bf16.mxu0 %v13748_v32 }
 0x4d6   : > { %12778 = vmatmul.mubr.msk.f32.gmra.mrb[74].mxu0 %vm1514_vm4, %v16868_v14 }
 0x4d7   : > { %12780 = vmatprep.mubr.msk.f32.mxu0 %vm1514_vm4, %v16874_v59  ;;  %13751 = vmatpush3.bf16.msra.mxu0 %v13748_v32  ;;  %v20042_v32 = vld [vmem:[#allocation93_spill] sm:$0xff] }
 0x4d8   : > { %13753 = vmatprep.subr.bf16.mxu0 %v13752_v1 }
 0x4da   : > { %12781 = vmatmul.mubr.msk.f32.gmra.mrb[76].mxu0 %vm1514_vm4, %v16881_v23 }
 0x4db   : > { %12783 = vmatprep.mubr.msk.f32.mxu0 %vm1514_vm4, %v16887_v33 }
 0x4de   : > { %12784 = vmatmul.mubr.msk.f32.gmra.mrb[78].mxu0 %vm1514_vm4, %v16894_v39 }
 0x4df   : > { %12786 = vmatprep.mubr.msk.f32.mxu0 %vm1514_vm4, %v20038_v46 }
 0x4e2   : > { %12787 = vmatmul.mubr.msk.f32.gmra.mrb[80].mxu0 %vm1514_vm4, %v16907_v21 }
 0x4e3   : > { %12789 = vmatprep.mubr.msk.f32.mxu0 %vm1514_vm4, %v20039_v2 }
 0x4e6   : > { %12790 = vmatmul.mubr.msk.f32.gmra.mrb[82].mxu0 %vm1514_vm4, %v16920_v40 }
 0x4e7   : > { %12792 = vmatprep.mubr.msk.f32.mxu0 %vm1514_vm4, %v20040_v22 }
 0x4ea   : > { %12793 = vmatmul.mubr.msk.f32.gmra.mrb[84].mxu0 %vm1514_vm4, %v16933_v54 }
 0x4eb   : > { %12795 = vmatprep.mubr.msk.f32.mxu0 %vm1514_vm4, %v20041_v26 }
 0x4ee   : > { %12796 = vmatmul.mubr.msk.f32.gmra.mrb[86].mxu0 %vm1514_vm4, %v16946_v6  ;;  %v4920_v6 = vrot.slane %v17112_v42, 2 }
 0x4ef   : > { %12798 = vmatprep.mubr.msk.f32.mxu0 %vm1514_vm4, %v20042_v32  ;;  %v4919_v32 = vrot.slane %v17107_v58, 2 }
 0x4f2   : > { %12799 = vmatmul.mubr.msk.f32.gmra.mrb[88].mxu0 %vm1514_vm4, %v16959_v53 }
 0x4f3   : > { %12801 = vmatprep.mubr.msk.f32.mxu0 %vm1514_vm4, %v20043_v61  ;;  %v20045_v61 = vld [vmem:[#allocation100_spill] sm:$0xff] }
 0x4f6   : > { %12802 = vmatmul.mubr.msk.f32.gmra.mrb[90].mxu0 %vm1514_vm4, %v16972_v17  ;;  %v4922_v17 = vrot.slane %v17199_v10, 2  ;;  %v10638_v10 = vld [vmem:[%s19957_s13 + $0x1d8] sm:$0xff] }
 0x4f7   : > { %12804 = vmatprep.mubr.msk.f32.mxu0 %vm1514_vm4, %v20044_v9 }
 0x4fa   : > { %12805 = vmatmul.mubr.msk.f32.gmra.mrb[92].mxu0 %vm1514_vm4, %v16985_v25  ;;  %v17304_v25 = vsel %vm3966_vm9, %v4919_v32, %v4920_v6 }
 0x4fb   : > { %12807 = vmatprep.mubr.msk.f32.mxu0 %vm1514_vm4, %v16991_v27  ;;  %v17309_v27 = vsel %vm3966_vm9, %v4920_v6, %v4922_v17  ;;  %v10639_v6 = vld [vmem:[%s19957_s13 + $0x1e0] sm:$0xff]  ;;  %v10640_v17 = vld [vmem:[%s19957_s13 + $0x1e8] sm:$0xff] }
 0x4fc   : > { %20046 = vst [vmem:[#allocation59_spill] sm:$0xff] %v17309_v27 }
 0x4fe   : > { %12808 = vmatmul.mubr.msk.f32.gmra.mrb[94].mxu0 %vm1514_vm4, %v16998_v62  ;;  %v10637_v62 = vld [vmem:[%s19957_s13 + $0x1d0] sm:$0xff] }
 0x4ff   : > { %12810 = vmatprep.mubr.msk.f32.mxu0 %vm1514_vm4, %v17004_v36  ;;  %v13756_v32 = vpack.c.bf16 %v10638_v10, %v10637_v62  ;;  %v10641_v62 = vld [vmem:[%s19957_s13 + $0x1f0] sm:$0xff]  ;;  %v20071_v10 = vld [vmem:[#allocation57_spill] sm:$0xff] }
 0x502   : > { %12811 = vmatmul.mubr.msk.f32.gmra.mrb[96].mxu0 %vm1514_vm4, %v20045_v61  ;;  %v20047_v61 = vld [vmem:[#allocation56_spill] sm:$0xff] }
 0x503   : > { %12813 = vmatprep.mubr.msk.f32.mxu0 %vm1514_vm4, %v17304_v25 }
 0x506   : > { %12814 = vmatmul.mubr.msk.f32.gmra.mrb[98].mxu0 %vm1514_vm4, %v17309_v27  ;;  %v13760_v27 = vpack.c.bf16 %v10640_v17, %v10639_v6  ;;  %v20073_v6 = vld [vmem:[#allocation55_spill] sm:$0xff] }
 0x507   : > { %12832 = vmatprep.mubr.msk.f32.mxu0 %vm1514_vm4, %v20047_v61  ;;  %v10642_v61 = vld [vmem:[%s19957_s13 + $0x1f8] sm:$0xff] }
 0x50a   : > { %12833 = vmatmul.mubr.msk.f32.vlgmr.msra.gmra.mrb[68].mxu0 %vm1514_vm4, %v16332_v12  ;;  %v13764_v12 = vpack.c.bf16 %v10642_v61, %v10641_v62 }
 0x50b   : > { %12835 = vmatprep.mubr.msk.f32.mxu0 %vm1514_vm4, %v16362_v56  ;;  %13755 = vmatpush3.bf16.msra.mxu0 %v13752_v1  ;;  %v10675_v56 = vld [vmem:[%s19957_s13 + $0x200] sm:$0xff]  ;;  %v10676_v1 = vld [vmem:[%s19957_s13 + $0x208] sm:$0xff] }
 0x50c   : > { %13757 = vmatprep.subr.bf16.mxu0 %v13756_v32 }
 0x50e   : > { %12836 = vmatmul.mubr.msk.f32.gmra.mrb[70].mxu0 %vm1514_vm4, %v16359_v43  ;;  %v13768_v43 = vpack.c.bf16 %v10676_v1, %v10675_v56 }
 0x50f   : > { %12838 = vmatprep.mubr.msk.f32.mxu0 %vm1514_vm4, %v16392_v13  ;;  %13759 = vmatpush3.bf16.msra.mxu0 %v13756_v32  ;;  %v10678_v13 = vld [vmem:[%s19957_s13 + $0x218] sm:$0xff]  ;;  %v20072_v32 = vld [vmem:[#allocation58_spill] sm:$0xff] }
 0x510   : > { %13761 = vmatprep.subr.bf16.mxu0 %v13760_v27 }
 0x512   : > { %12839 = vmatmul.mubr.msk.f32.gmra.mrb[72].mxu0 %vm1514_vm4, %v16389_v15  ;;  %v10677_v15 = vld [vmem:[%s19957_s13 + $0x210] sm:$0xff] }
 0x513   : > { %12841 = vmatprep.mubr.msk.f32.mxu0 %vm1514_vm4, %v16422_v8  ;;  %13763 = vmatpush3.bf16.msra.mxu0 %v13760_v27  ;;  %v13772_v8 = vpack.c.bf16 %v10678_v13, %v10677_v15  ;;  %v20064_v27 = vld [vmem:[#allocation76_spill] sm:$0xff] }
 0x514   : > { %13765 = vmatprep.subr.bf16.mxu0 %v13764_v12 }
 0x516   : > { %12842 = vmatmul.mubr.msk.f32.gmra.mrb[74].mxu0 %vm1514_vm4, %v16419_v29  ;;  %v20048_v29 = vmov 0.0  }
 0x517   : > { %12844 = vmatprep.mubr.msk.f32.mxu0 %vm1514_vm4, %v16448_v37  ;;  %13767 = vmatpush3.bf16.msra.mxu0 %v13764_v12  ;;  %v10680_v37 = vld [vmem:[%s19957_s13 + $0x228] sm:$0xff] }
 0x518   : > { %13769 = vmatprep.subr.bf16.mxu0 %v13768_v43 }
 0x51a   : > { %12845 = vmatmul.mubr.msk.f32.gmra.mrb[76].mxu0 %vm1514_vm4, %v16445_v57  ;;  %v10679_v57 = vld [vmem:[%s19957_s13 + $0x220] sm:$0xff] }
 0x51b   : > { %12847 = vmatprep.mubr.msk.f32.mxu0 %vm1514_vm4, %v16473_v11  ;;  %v10682_v11 = vld [vmem:[%s19957_s13 + $0x238] sm:$0xff] }
 0x51e   : > { %12848 = vmatmul.mubr.msk.f32.gmra.mrb[78].mxu0 %vm1514_vm4, %v16470_v49  ;;  %v13776_v49 = vpack.c.bf16 %v10680_v37, %v10679_v57 }
 0x51f   : > { %12850 = vmatprep.mubr.msk.f32.mxu0 %vm1514_vm4, %v16497_v28  ;;  %v20049_v28 = vld [vmem:[#allocation61_spill] sm:$0xff] }
 0x522   : > { %12851 = vmatmul.mubr.msk.f32.gmra.mrb[80].mxu0 %vm1514_vm4, %v16494_v52 }
 0x523   : > { %12853 = vmatprep.mubr.msk.f32.mxu0 %vm1514_vm4, %v16521_v7  ;;  %v20051_v7 = vld [vmem:[#allocation63_spill] sm:$0xff] }
 0x526   : > { %12854 = vmatmul.mubr.msk.f32.gmra.mrb[82].mxu0 %vm1514_vm4, %v16518_v19  ;;  %v20050_v19 = vld [vmem:[#allocation62_spill] sm:$0xff] }
 0x527   : > { %12856 = vmatprep.mubr.msk.f32.mxu0 %vm1514_vm4, %v16545_v16  ;;  %v20053_v16 = vld [vmem:[#allocation65_spill] sm:$0xff] }
 0x52a   : > { %12857 = vmatmul.mubr.msk.f32.gmra.mrb[84].mxu0 %vm1514_vm4, %v16542_v51  ;;  %v20052_v51 = vld [vmem:[#allocation64_spill] sm:$0xff] }
 0x52b   : > { %12859 = vmatprep.mubr.msk.f32.mxu0 %vm1514_vm4, %v16569_v24  ;;  %v20055_v24 = vld [vmem:[#allocation67_spill] sm:$0xff] }
 0x52e   : > { %12860 = vmatmul.mubr.msk.f32.gmra.mrb[86].mxu0 %vm1514_vm4, %v16566_v35  ;;  %v20054_v35 = vld [vmem:[#allocation66_spill] sm:$0xff] }
 0x52f   : > { %12862 = vmatprep.mubr.msk.f32.mxu0 %vm1514_vm4, %v16593_v30  ;;  %v20057_v30 = vld [vmem:[#allocation69_spill] sm:$0xff] }
 0x532   : > { %12863 = vmatmul.mubr.msk.f32.gmra.mrb[88].mxu0 %vm1514_vm4, %v16590_v5  ;;  %v20056_v5 = vld [vmem:[#allocation68_spill] sm:$0xff] }
 0x533   : > { %12865 = vmatprep.mubr.msk.f32.mxu0 %vm1514_vm4, %v16617_v34  ;;  %v20059_v34 = vld [vmem:[#allocation71_spill] sm:$0xff] }
 0x536   : > { %12866 = vmatmul.mubr.msk.f32.gmra.mrb[90].mxu0 %vm1514_vm4, %v16614_v20  ;;  %v20058_v20 = vld [vmem:[#allocation70_spill] sm:$0xff] }
 0x537   : > { %12868 = vmatprep.mubr.msk.f32.mxu0 %vm1514_vm4, %v16641_v38  ;;  %v20061_v38 = vld [vmem:[#allocation73_spill] sm:$0xff] }
 0x53a   : > { %12869 = vmatmul.mubr.msk.f32.gmra.mrb[92].mxu0 %vm1514_vm4, %v16638_v31  ;;  %v20060_v31 = vld [vmem:[#allocation72_spill] sm:$0xff] }
 0x53b   : > { %12871 = vmatprep.mubr.msk.f32.mxu0 %vm1514_vm4, %v16663_v18  ;;  %v20063_v18 = vld [vmem:[#allocation75_spill] sm:$0xff] }
 0x53e   : > { %12872 = vmatmul.mubr.msk.f32.gmra.mrb[94].mxu0 %vm1514_vm4, %v16660_v45  ;;  %v20062_v45 = vld [vmem:[#allocation74_spill] sm:$0xff] }
 0x53f   : > { %12874 = vmatprep.mubr.msk.f32.mxu0 %vm1514_vm4, %v17107_v58  ;;  %v20065_v58 = vld [vmem:[#allocation77_spill] sm:$0xff] }
 0x542   : > { %12875 = vmatmul.mubr.msk.f32.gmra.mrb[96].mxu0 %vm1514_vm4, %v17112_v42  ;;  %v20066_v42 = vld [vmem:[#allocation78_spill] sm:$0xff] }
 0x543   : > { %12877 = vmatprep.mubr.f32.mxu0 %v20048_v29 }
 0x546   : > { %12878 = vmatmul.mubr.f32.gmra.mrb[98].mxu0 %v20048_v29 }
 0x547   : > { %12896 = vmatprep.mubr.msk.f32.mxu0 %vm1514_vm4, %v16377_v4  ;;  %v10681_v4 = vld [vmem:[%s19957_s13 + $0x230] sm:$0xff] }
 0x548   : > { %v13780_v52 = vpack.c.bf16 %v10682_v11, %v10681_v4 }
 0x54a   : > { %12897 = vmatmul.mubr.msk.f32.vlgmr.msra.gmra.mrb[68].mxu0 %vm1514_vm4, %v20006_v44  ;;  %v20067_v44 = vld [vmem:[#allocation79_spill] sm:$0xff] }
 0x54b   : > { %12899 = vmatprep.mubr.msk.f32.mxu0 %vm1514_vm4, %v20007_v63  ;;  %13771 = vmatpush3.bf16.msra.mxu0 %v13768_v43  ;;  %v20068_v63 = vld [vmem:[#allocation80_spill] sm:$0xff] }
 0x54c   : > { %13773 = vmatprep.subr.bf16.mxu0 %v13772_v8 }
 0x54e   : > { %12900 = vmatmul.mubr.msk.f32.gmra.mrb[70].mxu0 %vm1514_vm4, %v20008_v50  ;;  %v20069_v50 = vld [vmem:[#allocation82_spill] sm:$0xff] }
 0x54f   : > { %12902 = vmatprep.mubr.msk.f32.mxu0 %vm1514_vm4, %v20009_v3  ;;  %13775 = vmatpush3.bf16.msra.mxu0 %v13772_v8  ;;  %v20070_v3 = vld [vmem:[#allocation83_spill] sm:$0xff] }
 0x550   : > { %13777 = vmatprep.subr.bf16.mxu0 %v13776_v49 }
 0x552   : > { %12903 = vmatmul.mubr.msk.f32.gmra.mrb[72].mxu0 %vm1514_vm4, %v20049_v28 }
 0x553   : > { %12905 = vmatprep.mubr.msk.f32.mxu0 %vm1514_vm4, %v20050_v19  ;;  %13779 = vmatpush3.bf16.msra.mxu0 %v13776_v49 }
 0x554   : > { %13781 = vmatprep.subr.bf16.mxu0 %v13780_v52 }
 0x556   : > { %12906 = vmatmul.mubr.msk.f32.gmra.mrb[74].mxu0 %vm1514_vm4, %v20051_v7 }
 0x557   : > { %12908 = vmatprep.mubr.msk.f32.mxu0 %vm1514_vm4, %v20052_v51  ;;  %13783 = vmatpush3.bf16.msra.mxu0 %v13780_v52 }
 0x55a   : > { %12909 = vmatmul.mubr.msk.f32.gmra.mrb[76].mxu0 %vm1514_vm4, %v20053_v16 }
 0x55b   : > { %12911 = vmatprep.mubr.msk.f32.mxu0 %vm1514_vm4, %v20054_v35 }
 0x55e   : > { %12912 = vmatmul.mubr.msk.f32.gmra.mrb[78].mxu0 %vm1514_vm4, %v20055_v24 }
 0x55f   : > { %12914 = vmatprep.mubr.msk.f32.mxu0 %vm1514_vm4, %v20056_v5 }
 0x562   : > { %12915 = vmatmul.mubr.msk.f32.gmra.mrb[80].mxu0 %vm1514_vm4, %v20057_v30 }
 0x563   : > { %12917 = vmatprep.mubr.msk.f32.mxu0 %vm1514_vm4, %v20058_v20 }
 0x566   : > { %12918 = vmatmul.mubr.msk.f32.gmra.mrb[82].mxu0 %vm1514_vm4, %v20059_v34 }
 0x567   : > { %12920 = vmatprep.mubr.msk.f32.mxu0 %vm1514_vm4, %v20060_v31 }
 0x56a   : > { %12921 = vmatmul.mubr.msk.f32.gmra.mrb[84].mxu0 %vm1514_vm4, %v20061_v38 }
 0x56b   : > { %12923 = vmatprep.mubr.msk.f32.mxu0 %vm1514_vm4, %v20062_v45 }
 0x56e   : > { %12924 = vmatmul.mubr.msk.f32.gmra.mrb[86].mxu0 %vm1514_vm4, %v20063_v18 }
 0x56f   : > { %12926 = vmatprep.mubr.msk.f32.mxu0 %vm1514_vm4, %v20064_v27 }
 0x572   : > { %12927 = vmatmul.mubr.msk.f32.gmra.mrb[88].mxu0 %vm1514_vm4, %v20065_v58 }
 0x573   : > { %12929 = vmatprep.mubr.msk.f32.mxu0 %vm1514_vm4, %v20066_v42 }
 0x576   : > { %12930 = vmatmul.mubr.msk.f32.gmra.mrb[90].mxu0 %vm1514_vm4, %v20067_v44 }
 0x577   : > { %12932 = vmatprep.mubr.msk.f32.mxu0 %vm1514_vm4, %v20068_v63 }
 0x57a   : > { %12933 = vmatmul.mubr.msk.f32.gmra.mrb[92].mxu0 %vm1514_vm4, %v20030_v48 }
 0x57b   : > { %12935 = vmatprep.mubr.msk.f32.mxu0 %vm1514_vm4, %v20069_v50 }
 0x57e   : > { %12936 = vmatmul.mubr.msk.f32.gmra.mrb[94].mxu0 %vm1514_vm4, %v20070_v3 }
 0x57f   : > { %12938 = vmatprep.mubr.msk.f32.mxu0 %vm1514_vm4, %v20071_v10 }
 0x582   : > { %12939 = vmatmul.mubr.msk.f32.gmra.mrb[96].mxu0 %vm1514_vm4, %v20072_v32 }
 0x583   : > { %12941 = vmatprep.mubr.msk.f32.mxu0 %vm1514_vm4, %v20073_v6 }
 0x586   : > { %12942 = vmatmul.mubr.msk.f32.gmra.mrb[98].mxu0 %vm1514_vm4, %v20073_v6 }
 0x587   : > { %12960 = vmatprep.mubr.msk.f32.mxu0 %vm1514_vm4, %v20036_v0  ;;  %v17551_v0 = vstv %s10218_s27  ;;  %s20249_s27 = sld [smem:[#allocation116_spill]] }
 0x58a   : > { %12961 = vmatmul.mubr.msk.f32.vlgmr.msra.gmra.mrb[68].mxu0 %vm1514_vm4, %v20037_v55 }
 0x58b   : > { %12963 = vmatprep.mubr.msk.f32.mxu0 %vm1514_vm4, %v16845_v60  ;;  %v20074_v60 = vld [vmem:[#allocation92_spill] sm:$0xff] }
 0x58d   : > { %s19397_s8 = scalar_lea.hbm %s20249_s27, %s11117_s4 }
 0x58e   : > { %12964 = vmatmul.mubr.msk.f32.gmra.mrb[70].mxu0 %vm1514_vm4, %v16854_v41  ;;  %v20075_v41 = vld [vmem:[#allocation93_spill] sm:$0xff] }
 0x58f   : > { %12966 = vmatprep.mubr.msk.f32.mxu0 %vm1514_vm4, %v16860_v47  ;;  %v20076_v47 = vld [vmem:[#allocation94_spill] sm:$0xff] }
 0x592   : > { %12967 = vmatmul.mubr.msk.f32.gmra.mrb[72].mxu0 %vm1514_vm4, %v16868_v14  ;;  %v20077_v14 = vld [vmem:[#allocation95_spill] sm:$0xff] }
 0x593   : > { %12969 = vmatprep.mubr.msk.f32.mxu0 %vm1514_vm4, %v16874_v59  ;;  %v20078_v59 = vld [vmem:[#allocation97_spill] sm:$0xff] }
 0x596   : > { %12970 = vmatmul.mubr.msk.f32.gmra.mrb[74].mxu0 %vm1514_vm4, %v16881_v23  ;;  %v20079_v23 = vld [vmem:[#allocation98_spill] sm:$0xff] }
 0x597   : > { %12972 = vmatprep.mubr.msk.f32.mxu0 %vm1514_vm4, %v16887_v33  ;;  %v20080_v33 = vld [vmem:[#allocation99_spill] sm:$0xff] }
 0x59a   : > { %12973 = vmatmul.mubr.msk.f32.gmra.mrb[76].mxu0 %vm1514_vm4, %v16894_v39  ;;  %v20081_v39 = vld [vmem:[#allocation100_spill] sm:$0xff] }
 0x59b   : > { %12975 = vmatprep.mubr.msk.f32.mxu0 %vm1514_vm4, %v20038_v46 }
 0x59e   : > { %12976 = vmatmul.mubr.msk.f32.gmra.mrb[78].mxu0 %vm1514_vm4, %v16907_v21  ;;  %v20083_v21 = vld [vmem:[#allocation84_spill] sm:$0xff] }
 0x59f   : > { %12978 = vmatprep.mubr.msk.f32.mxu0 %vm1514_vm4, %v20039_v2 }
 0x5a2   : > { %12979 = vmatmul.mubr.msk.f32.gmra.mrb[80].mxu0 %vm1514_vm4, %v16920_v40  ;;  %v20082_v40 = vld [vmem:[#allocation59_spill] sm:$0xff] }
 0x5a3   : > { %12981 = vmatprep.mubr.msk.f32.mxu0 %vm1514_vm4, %v20040_v22 }
 0x5a6   : > { %12982 = vmatmul.mubr.msk.f32.gmra.mrb[82].mxu0 %vm1514_vm4, %v16933_v54  ;;  %v14939_v54 = vmov 0  }
 0x5a7   : > { %12984 = vmatprep.mubr.msk.f32.mxu0 %vm1514_vm4, %v20041_v26  ;;  %14616 = vset.pattern.permute.xlu0 %v14939_v54 }
 0x5a8   : > { %14617 = vset.pattern.permute.xlu1 %v14939_v54 }
 0x5aa   : > { %12985 = vmatmul.mubr.msk.f32.gmra.mrb[84].mxu0 %vm1514_vm4, %v20074_v60 }
 0x5ab   : > { %12987 = vmatprep.mubr.msk.f32.mxu0 %vm1514_vm4, %v20075_v41 }
 0x5ae   : > { %12988 = vmatmul.mubr.msk.f32.gmra.mrb[86].mxu0 %vm1514_vm4, %v16959_v53  ;;  %v10749_v53 = vld [vmem:[%s19607_s18 + $0x40] sm:$0xff] }
 0x5af   : > { %12990 = vmatprep.mubr.msk.f32.mxu0 %vm1514_vm4, %v20076_v47 }
 0x5b2   : > { %12991 = vmatmul.mubr.msk.f32.gmra.mrb[88].mxu0 %vm1514_vm4, %v20077_v14 }
 0x5b3   : > { %12993 = vmatprep.mubr.msk.f32.mxu0 %vm1514_vm4, %v20044_v9 }
 0x5b6   : > { %12994 = vmatmul.mubr.msk.f32.gmra.mrb[90].mxu0 %vm1514_vm4, %v20078_v59 }
 0x5b7   : > { %12996 = vmatprep.mubr.msk.f32.mxu0 %vm1514_vm4, %v20079_v23 }
 0x5ba   : > { %12997 = vmatmul.mubr.msk.f32.gmra.mrb[92].mxu0 %vm1514_vm4, %v20080_v33 }
 0x5bb   : > { %12999 = vmatprep.mubr.msk.f32.mxu0 %vm1514_vm4, %v17004_v36 }
 0x5be   : > { %13000 = vmatmul.mubr.msk.f32.gmra.mrb[94].mxu0 %vm1514_vm4, %v20081_v39 }
 0x5bf   : > { %13002 = vmatprep.mubr.msk.f32.mxu0 %vm1514_vm4, %v17304_v25  ;;  %v10750_v25 = vld [vmem:[%s19607_s18 + $0x48] sm:$0xff] }
 0x5c0   : > { %v13784_v36 = vpack.c.bf16 %v10750_v25, %v10749_v53 }
 0x5c2   : > { %13003 = vmatmul.mubr.msk.f32.gmra.mrb[96].mxu0 %vm1514_vm4, %v20082_v40  ;;  %13785 = vmatprep.subr.bf16.mxu1 %v13784_v36 }
 0x5c3   : > { %13005 = vmatprep.mubr.msk.f32.mxu0 %vm1514_vm4, %v20083_v21  ;;  %13787 = vmatpush3.bf16.msra.mxu1 %v13784_v36 }
 0x5c6   : > { %13006 = vmatmul.mubr.msk.f32.gmra.mrb[98].mxu0 %vm1514_vm4, %v20083_v21  ;;  %v20116_v21 = vld [vmem:[#allocation52_spill] sm:$0xff] }
 0x65d   : > { %v12962_v48 = vpop.f32.mrb[68].mxu0 }
 0x65e   : > { %v5994_v55 = vadd.f32 %v12962_v48, %v17551_v0  ;;  %v5801_v46 = vpop.f32.mrb[69].mxu0 }
 0x65f   : > { %v5993_v2 = vadd.f32 %v17551_v0, %v5801_v46 }
 0x660   : > { %v10716_v22 = vmul.f32 -1.442695, %v5994_v55 }
 0x661   : > { %v10715_v26 = vmul.f32 -1.442695, %v5993_v2  ;;  %v12965_v9 = vpop.f32.mrb[70].mxu0 }
 0x662   : > { %14627 = vpow2.f32 %v10716_v22  ;;  %v5996_v17 = vadd.f32 %v12965_v9, %v17551_v0  ;;  %v5811_v62 = vpop.f32.mrb[71].mxu0 }
 0x663   : > { %14629 = vpow2.f32 %v10715_v26  ;;  %v5995_v61 = vadd.f32 %v17551_v0, %v5811_v62 }
 0x664   : > { %v10718_v12 = vmul.f32 -1.442695, %v5996_v17 }
 0x665   : > { %v10717_v56 = vmul.f32 -1.442695, %v5995_v61  ;;  %v12968_v1 = vpop.f32.mrb[72].mxu0 }
 0x666   : > { %14631 = vpow2.f32 %v10718_v12  ;;  %v5998_v43 = vadd.f32 %v12968_v1, %v17551_v0  ;;  %v5821_v15 = vpop.f32.mrb[73].mxu0 }
 0x667   : > { %14633 = vpow2.f32 %v10717_v56  ;;  %v5997_v13 = vadd.f32 %v17551_v0, %v5821_v15 }
 0x668   : > { %v10720_v8 = vmul.f32 -1.442695, %v5998_v43 }
 0x669   : > { %v10719_v57 = vmul.f32 -1.442695, %v5997_v13  ;;  %v12971_v37 = vpop.f32.mrb[74].mxu0 }
 0x66a   : > { %14635 = vpow2.f32 %v10720_v8  ;;  %v6000_v49 = vadd.f32 %v12971_v37, %v17551_v0  ;;  %v5831_v4 = vpop.f32.mrb[75].mxu0 }
 0x66b   : > { %14637 = vpow2.f32 %v10719_v57  ;;  %v5999_v11 = vadd.f32 %v17551_v0, %v5831_v4 }
 0x66c   : > { %v14628_v52 = vpop.eup %14627  ;;  %v10722_v28 = vmul.f32 -1.442695, %v6000_v49 }
 0x66d   : > { %v14630_v19 = vpop.eup %14629  ;;  %v10721_v7 = vmul.f32 -1.442695, %v5999_v11  ;;  %v12974_v51 = vpop.f32.mrb[76].mxu0  ;;  %v6122_v20 = vadd.f32 1.0, %v14628_v52 }
 0x66e   : > { %v6121_v16 = vadd.f32 1.0, %v14630_v19  ;;  %14639 = vpow2.f32 %v10722_v28  ;;  %v6002_v35 = vadd.f32 %v12974_v51, %v17551_v0  ;;  %v5841_v24 = vpop.f32.mrb[77].mxu0 }
 0x66f   : > { %v6001_v5 = vadd.f32 %v17551_v0, %v5841_v24 }
 0x670   : > { %v14632_v30 = vpop.eup %14631  ;;  %14641 = vrcp.f32 %v6121_v16  ;;  %v10724_v34 = vmul.f32 -1.442695, %v6002_v35 }
 0x671   : > { %v14634_v31 = vpop.eup %14633  ;;  %v6124_v38 = vadd.f32 1.0, %v14632_v30  ;;  %14643 = vpow2.f32 %v10721_v7  ;;  %v10723_v45 = vmul.f32 -1.442695, %v6001_v5  ;;  %v12977_v18 = vpop.f32.mrb[78].mxu0 }
 0x672   : > { %14645 = vpow2.f32 %v10724_v34  ;;  %v6004_v27 = vadd.f32 %v12977_v18, %v17551_v0  ;;  %v5851_v58 = vpop.f32.mrb[79].mxu0  ;;  %v6123_v42 = vadd.f32 1.0, %v14634_v31 }
 0x673   : > { %14647 = vrcp.f32 %v6124_v38  ;;  %v6003_v44 = vadd.f32 %v17551_v0, %v5851_v58  ;;  %v10751_v58 = vld [vmem:[%s19607_s18 + $0x50] sm:$0xff] }
 0x674   : > { %v14636_v63 = vpop.eup %14635  ;;  %14649 = vrcp.f32 %v6122_v20  ;;  %v10726_v50 = vmul.f32 -1.442695, %v6004_v27 }
 0x675   : > { %v14638_v3 = vpop.eup %14637  ;;  %14651 = vpow2.f32 %v10723_v45  ;;  %v10725_v10 = vmul.f32 -1.442695, %v6003_v44  ;;  %v12980_v32 = vpop.f32.mrb[80].mxu0  ;;  %v6126_v14 = vadd.f32 1.0, %v14636_v63 }
 0x676   : > { %v6125_v60 = vadd.f32 1.0, %v14638_v3  ;;  %14653 = vpow2.f32 %v10726_v50  ;;  %v6006_v41 = vadd.f32 %v12980_v32, %v17551_v0  ;;  %v5861_v47 = vpop.f32.mrb[81].mxu0 }
 0x677   : > { %14655 = vrcp.f32 %v6123_v42  ;;  %v6005_v59 = vadd.f32 %v17551_v0, %v5861_v47  ;;  %v10752_v42 = vld [vmem:[%s19607_s18 + $0x58] sm:$0xff] }
 0x678   : > { %v14640_v23 = vpop.eup %14639  ;;  %14657 = vrcp.f32 %v6125_v60  ;;  %v10728_v33 = vmul.f32 -1.442695, %v6006_v41  ;;  %v13788_v50 = vpack.c.bf16 %v10752_v42, %v10751_v58 }
 0x679   : > { %v6128_v39 = vadd.f32 1.0, %v14640_v23  ;;  %14659 = vpow2.f32 %v10725_v10  ;;  %v10727_v40 = vmul.f32 -1.442695, %v6005_v59  ;;  %v12983_v54 = vpop.f32.mrb[82].mxu0 }
 0x67a   : > { %v14642_v53 = vpop.eup %14641  ;;  %14661 = vpow2.f32 %v10728_v33  ;;  %v6008_v25 = vadd.f32 %v12983_v54, %v17551_v0  ;;  %v5871_v36 = vpop.f32.mrb[83].mxu0  ;;  %13789 = vmatprep.subr.bf16.mxu1 %v13788_v50 }
 0x67b   : > { %v14644_v48 = vpop.eup %14643  ;;  %14663 = vrcp.f32 %v6126_v14  ;;  %v6007_v55 = vadd.f32 %v17551_v0, %v5871_v36  ;;  %6255 = vperm.xlu0 %14616, %v14642_v53   ;;  %13791 = vmatpush3.bf16.msra.mxu1 %v13788_v50 }
 0x67c   : > { %v14646_v46 = vpop.eup %14645  ;;  %v6127_v2 = vadd.f32 1.0, %v14644_v48  ;;  %14665 = vpow2.f32 %v10727_v40  ;;  %v10730_v22 = vmul.f32 -1.442695, %v6008_v25 }
 0x67d   : > { %v14648_v26 = vpop.eup %14647  ;;  %14667 = vrcp.f32 %v6128_v39  ;;  %v6130_v9 = vadd.f32 1.0, %v14646_v46  ;;  %v10729_v17 = vmul.f32 -1.442695, %v6007_v55  ;;  %v12986_v62 = vpop.f32.mrb[84].mxu0 }
 0x67e   : > { %v14650_v61 = vpop.eup %14649  ;;  %14669 = vrcp.f32 %v6127_v2  ;;  %v6010_v12 = vadd.f32 %v12986_v62, %v17551_v0  ;;  %6270 = vperm.xlu1 %14617, %v14648_v26   ;;  %v5881_v56 = vpop.f32.mrb[85].mxu0  ;;  %v10753_v26 = vld [vmem:[%s19607_s18 + $0x60] sm:$0xff] }
 0x67f   : > { %v14652_v1 = vpop.eup %14651  ;;  %14671 = vrcp.f32 %v6130_v9  ;;  %v6009_v43 = vadd.f32 %v17551_v0, %v5881_v56  ;;  %6260 = vperm.xlu0 %14616, %v14650_v61   ;;  %v10754_v9 = vld [vmem:[%s19607_s18 + $0x68] sm:$0xff] }
 0x680   : > { %v14654_v15 = vpop.eup %14653  ;;  %v6129_v13 = vadd.f32 1.0, %v14652_v1  ;;  %14673 = vpow2.f32 %v10730_v22  ;;  %v10732_v8 = vmul.f32 -1.442695, %v6010_v12  ;;  %v13792_v12 = vpack.c.bf16 %v10754_v9, %v10753_v26 }
 0x681   : > { %v14656_v57 = vpop.eup %14655  ;;  %v6132_v37 = vadd.f32 1.0, %v14654_v15  ;;  %14675 = vpow2.f32 %v10729_v17  ;;  %v10731_v49 = vmul.f32 -1.442695, %v6009_v43  ;;  %v12989_v4 = vpop.f32.mrb[86].mxu0 }
 0x682   : > { %v14658_v11 = vpop.eup %14657  ;;  %14677 = vrcp.f32 %v6129_v13  ;;  %v6012_v52 = vadd.f32 %v12989_v4, %v17551_v0  ;;  %6265 = vperm.xlu1 %14617, %v14656_v57   ;;  %v5891_v28 = vpop.f32.mrb[87].mxu0  ;;  %13793 = vmatprep.subr.bf16.mxu1 %v13792_v12 }
 0x683   : > { %v14660_v19 = vpop.eup %14659  ;;  %14679 = vrcp.f32 %v6132_v37  ;;  %v6011_v7 = vadd.f32 %v17551_v0, %v5891_v28  ;;  %6275 = vperm.xlu0 %14616, %v14658_v11   ;;  %13795 = vmatpush3.bf16.msra.mxu1 %v13792_v12 }
 0x684   : > { %v14662_v51 = vpop.eup %14661  ;;  %v6131_v16 = vadd.f32 1.0, %v14660_v19  ;;  %14681 = vpow2.f32 %v10732_v8  ;;  %v10734_v35 = vmul.f32 -1.442695, %v6012_v52 }
 0x685   : > { %v14664_v24 = vpop.eup %14663  ;;  %v6134_v5 = vadd.f32 1.0, %v14662_v51  ;;  %14683 = vpow2.f32 %v10731_v49  ;;  %v12992_v30 = vpop.f32.mrb[88].mxu0  ;;  %v10733_v34 = vmul.f32 -1.442695, %v6011_v7  ;;  %v10755_v51 = vld [vmem:[%s19607_s18 + $0x70] sm:$0xff] }
 0x686   : > { %v14666_v20 = vpop.eup %14665  ;;  %14685 = vrcp.f32 %v6131_v16  ;;  %v6014_v31 = vadd.f32 %v12992_v30, %v17551_v0  ;;  %6280 = vperm.xlu1 %14617, %v14664_v24   ;;  %v5901_v38 = vpop.f32.mrb[89].mxu0  ;;  %v10756_v16 = vld [vmem:[%s19607_s18 + $0x78] sm:$0xff] }
 0x687   : > { %v14668_v45 = vpop.eup %14667  ;;  %14687 = vrcp.f32 %v6134_v5  ;;  %v6133_v18 = vadd.f32 1.0, %v14666_v20  ;;  %v6013_v27 = vadd.f32 %v17551_v0, %v5901_v38  ;;  %v13796_v20 = vpack.c.bf16 %v10756_v16, %v10755_v51  ;;  %v6731_v51 = vld [vmem:[%s19607_s18 + $0x20] sm:$0xff]  ;;  %v6732_v16 = vld [vmem:[%s19607_s18 + $0x28] sm:$0xff] }
 0x688   : > { %v14670_v44 = vpop.eup %14669  ;;  %14689 = vpow2.f32 %v10734_v35  ;;  %v10736_v63 = vmul.f32 -1.442695, %v6014_v31 }
 0x689   : > { %v14672_v3 = vpop.eup %14671  ;;  %14691 = vrcp.f32 %v6133_v18  ;;  %v10735_v10 = vmul.f32 -1.442695, %v6013_v27  ;;  %6285 = vperm.xlu0 %14616, %v14670_v44   ;;  %v12995_v32 = vpop.f32.mrb[90].mxu0  ;;  %13797 = vmatprep.subr.bf16.mxu1 %v13796_v20 }
 0x68a   : > { %v14674_v60 = vpop.eup %14673  ;;  %14693 = vpow2.f32 %v10733_v34  ;;  %v6016_v41 = vadd.f32 %v12995_v32, %v17551_v0  ;;  %6290 = vperm.xlu1 %14617, %v14668_v45   ;;  %v5911_v47 = vpop.f32.mrb[91].mxu0  ;;  %13799 = vmatpush3.bf16.msra.mxu1 %v13796_v20 }
 0x68b   : > { %v14676_v14 = vpop.eup %14675  ;;  %v6136_v59 = vadd.f32 1.0, %v14674_v60  ;;  %14695 = vpow2.f32 %v10736_v63  ;;  %v6015_v23 = vadd.f32 %v17551_v0, %v5911_v47 }
 0x68c   : > { %v14678_v33 = vpop.eup %14677  ;;  %v6135_v39 = vadd.f32 1.0, %v14676_v14  ;;  %14697 = vpow2.f32 %v10735_v10  ;;  %v10738_v40 = vmul.f32 -1.442695, %v6016_v41 }
 0x68d   : > { %v14680_v54 = vpop.eup %14679  ;;  %14699 = vrcp.f32 %v6136_v59  ;;  %v10737_v53 = vmul.f32 -1.442695, %v6015_v23  ;;  %6295 = vperm.xlu0 %14616, %v14678_v33   ;;  %v12998_v25 = vpop.f32.mrb[92].mxu0  ;;  %13025 = vmatmul.mubr.msk.f32.vlgmr.msra.gmra.mrb[76].mxu1 %vm1514_vm4, %v20073_v6 }
 0x68e   : > { %v14682_v36 = vpop.eup %14681  ;;  %14701 = vrcp.f32 %v6135_v39  ;;  %v6018_v48 = vadd.f32 %v12998_v25, %v17551_v0  ;;  %6300 = vperm.xlu1 %14617, %v14672_v3   ;;  %v5921_v55 = vpop.f32.mrb[93].mxu0 }
 0x68f   : > { %v14684_v46 = vpop.eup %14683  ;;  %v6138_v2 = vadd.f32 1.0, %v14682_v36  ;;  %14703 = vpow2.f32 %v10738_v40  ;;  %v6017_v22 = vadd.f32 %v17551_v0, %v5921_v55 }
 0x690   : > { %v14686_v17 = vpop.eup %14685  ;;  %v6137_v62 = vadd.f32 1.0, %v14684_v46  ;;  %14705 = vpow2.f32 %v10737_v53  ;;  %v10740_v61 = vmul.f32 -1.442695, %v6018_v48 }
 0x691   : > { %v14688_v56 = vpop.eup %14687  ;;  %14707 = vrcp.f32 %v6138_v2  ;;  %v10739_v1 = vmul.f32 -1.442695, %v6017_v22  ;;  %6305 = vperm.xlu0 %14616, %v14686_v17   ;;  %v13001_v43 = vpop.f32.mrb[94].mxu0 }
 0x692   : > { %v14690_v15 = vpop.eup %14689  ;;  %14709 = vrcp.f32 %v6137_v62  ;;  %v6020_v13 = vadd.f32 %v13001_v43, %v17551_v0  ;;  %6310 = vperm.xlu1 %14617, %v14680_v54   ;;  %v5931_v8 = vpop.f32.mrb[95].mxu0 }
 0x693   : > { %v14692_v57 = vpop.eup %14691  ;;  %v6140_v37 = vadd.f32 1.0, %v14690_v15  ;;  %14711 = vpow2.f32 %v10740_v61  ;;  %v6019_v49 = vadd.f32 %v17551_v0, %v5931_v8 }
 0x694   : > { %v14694_v4 = vpop.eup %14693  ;;  %14713 = vpow2.f32 %v10739_v1  ;;  %v10742_v11 = vmul.f32 -1.442695, %v6020_v13 }
 0x695   : > { %v14696_v52 = vpop.eup %14695  ;;  %14715 = vrcp.f32 %v6140_v37  ;;  %v6139_v28 = vadd.f32 1.0, %v14694_v4  ;;  %v10741_v19 = vmul.f32 -1.442695, %v6019_v49  ;;  %6315 = vperm.xlu0 %14616, %v14692_v57   ;;  %v13004_v7 = vpop.f32.mrb[96].mxu0  ;;  %v6727_v4 = vld [vmem:[%s19607_s18] sm:$0xff] }
 0x696   : > { %v14698_v35 = vpop.eup %14697  ;;  %v6142_v24 = vadd.f32 1.0, %v14696_v52  ;;  %14717 = vpow2.f32 %v10742_v11  ;;  %v6022_v5 = vadd.f32 %v13004_v7, %v17551_v0  ;;  %6320 = vperm.xlu1 %14617, %v14688_v56   ;;  %v5941_v30 = vpop.f32.mrb[97].mxu0  ;;  %v6728_v11 = vld [vmem:[%s19607_s18 + $0x8] sm:$0xff] }
 0x697   : > { %v14700_v34 = vpop.eup %14699  ;;  %14719 = vrcp.f32 %v6139_v28  ;;  %v6141_v31 = vadd.f32 1.0, %v14698_v35  ;;  %v6021_v38 = vadd.f32 %v17551_v0, %v5941_v30  ;;  %v13800_v52 = vpack.c.bf16 %v6728_v11, %v6727_v4  ;;  %v6729_v28 = vld [vmem:[%s19607_s18 + $0x10] sm:$0xff]  ;;  %v20102_v11 = vld [vmem:[#allocation40_spill] sm:$0xff] }
 0x698   : > { %v14702_v45 = vpop.eup %14701  ;;  %14721 = vrcp.f32 %v6142_v24  ;;  %v10744_v18 = vmul.f32 -1.442695, %v6022_v5  ;;  %v13808_v35 = vpack.c.bf16 %v6732_v16, %v6731_v51  ;;  %v6733_v24 = vld [vmem:[%s19607_s18 + $0x30] sm:$0xff]  ;;  %v6734_v5 = vld [vmem:[%s19607_s18 + $0x38] sm:$0xff] }
 0x699   : > { %v14704_v27 = vpop.eup %14703  ;;  %14723 = vrcp.f32 %v6141_v31  ;;  %6325 = vperm.xlu0 %14616, %v14702_v45   ;;  %v13007_v58 = vpop.f32.mrb[98].mxu0  ;;  %v10743_v63 = vmul.f32 -1.442695, %v6021_v38  ;;  %13801 = vmatprep.subr.bf16.mxu1 %v13800_v52  ;;  %v13812_v30 = vpack.c.bf16 %v6734_v5, %v6733_v24  ;;  %v20085_v31 = vld [vmem:[#allocation101_spill] sm:$0xff]  ;;  %v20103_v51 = vld [vmem:[#allocation39_spill] sm:$0xff] }
 0x69a   : > { %v14706_v42 = vpop.eup %14705  ;;  %v6144_v44 = vadd.f32 1.0, %v14704_v27  ;;  %14725 = vpow2.f32 %v10741_v19  ;;  %v6024_v50 = vadd.f32 %v13007_v58, %v17551_v0  ;;  %6330 = vperm.xlu1 %14617, %v14700_v34   ;;  %v5951_v3 = vpop.f32.mrb[99].mxu0  ;;  %13803 = vmatpush3.bf16.msra.mxu1 %v13800_v52  ;;  %v6730_v19 = vld [vmem:[%s19607_s18 + $0x18] sm:$0xff]  ;;  %v10820_v27 = vld [vmem:[%s19607_s18 + $0x88] sm:$0xff]  ;;  %v20086_v58 = vld [vmem:[#allocation25_spill] sm:$0xff]  ;;  %v17707_v52 = vmul.f32 %v20085_v31, %v20102_v11 }
 0x69b   : > { %v14708_v10 = vpop.eup %14707  ;;  %v6143_v32 = vadd.f32 1.0, %v14706_v42  ;;  %14727 = vpow2.f32 %v10744_v18  ;;  %v6023_v60 = vadd.f32 %v17551_v0, %v5951_v3  ;;  %v13804_v7 = vpack.c.bf16 %v6730_v19, %v6729_v28  ;;  %v20084_v34 = vld [vmem:[#allocation24_spill] sm:$0xff]  ;;  %v10819_v18 = vld [vmem:[%s19607_s18 + $0x80] sm:$0xff] }
 0x69c   : > { %v14710_v41 = vpop.eup %14709  ;;  %14729 = vrcp.f32 %v6144_v44  ;;  %v10746_v47 = vmul.f32 -1.442695, %v6024_v50  ;;  %v6221_v38 = vmul.f32 %v20085_v31, %v20084_v34  ;;  %v6224_v42 = vmul.f32 %v20085_v31, %v20086_v58  ;;  %v20087_v44 = vld [vmem:[#allocation23_spill] sm:$0xff]  ;;  %v20088_v50 = vld [vmem:[#allocation26_spill] sm:$0xff] }
 0x69d   : > { %v14712_v14 = vpop.eup %14711  ;;  %14731 = vrcp.f32 %v6143_v32  ;;  %6335 = vperm.xlu0 %14616, %v14710_v41   ;;  %v10745_v23 = vmul.f32 -1.442695, %v6023_v60  ;;  %13805 = vmatprep.subr.bf16.mxu1 %v13804_v7  ;;  %v6223_v3 = vmul.f32 %v20085_v31, %v20088_v50  ;;  %v20090_v41 = vld [vmem:[#allocation28_spill] sm:$0xff]  ;;  %v17713_v16 = vmul.f32 %v20085_v31, %v20103_v51 }
 0x69e   : > { %v14714_v59 = vpop.eup %14713  ;;  %14733 = vpow2.f32 %v10743_v63  ;;  %6340 = vperm.xlu1 %14617, %v14708_v10   ;;  %v6146_v39 = vadd.f32 1.0, %v14712_v14  ;;  %13807 = vmatpush3.bf16.msra.mxu1 %v13804_v7  ;;  %v6222_v63 = vmul.f32 %v20085_v31, %v20087_v44  ;;  %v17644_v10 = vpack.c.bf16 %v10820_v27, %v10819_v18  ;;  %v20091_v14 = vld [vmem:[#allocation27_spill] sm:$0xff]  ;;  %v20106_v18 = vld [vmem:[#allocation44_spill] sm:$0xff] }
 0x69f   : > { %v14716_v33 = vpop.eup %14715  ;;  %v6145_v40 = vadd.f32 1.0, %v14714_v59  ;;  %14735 = vpow2.f32 %v10746_v47  ;;  %13809 = vmatprep.subr.bf16.mxu1 %v13808_v35  ;;  %v6225_v47 = vmul.f32 %v20085_v31, %v20090_v41  ;;  %v6226_v59 = vmul.f32 %v20085_v31, %v20091_v14 }
 0x6a0   : > { %v14718_v54 = vpop.eup %14717  ;;  %20089 = vst [vmem:[#allocation60_spill] sm:$0xff] %v17644_v10  ;;  %v17728_v27 = vmul.f32 %v20085_v31, %v20106_v18 }
 0x6a1   : > { %v14720_v53 = vpop.eup %14719  ;;  %14737 = vrcp.f32 %v6145_v40  ;;  %v6148_v25 = vadd.f32 1.0, %v14718_v54 }
 0x6a2   : > { %v14722_v0 = vpop.eup %14721  ;;  %14739 = vpow2.f32 %v10745_v23  ;;  %6345 = vperm.xlu0 %14616, %v14720_v53   ;;  %6350 = vperm.xlu1 %14617, %v14716_v33   ;;  %v20092_v23 = vld [vmem:[#allocation30_spill] sm:$0xff]  ;;  %v20093_v53 = vld [vmem:[#allocation29_spill] sm:$0xff] }
 0x6a3   : > { %v14724_v36 = vpop.eup %14723  ;;  %14741 = vrcp.f32 %v6146_v39  ;;  %13811 = vmatpush3.bf16.msra.mxu1 %v13808_v35  ;;  %v17652_v33 = vmul.f32 %v20085_v31, %v20092_v23  ;;  %v17657_v39 = vld [vmem:[%s19606_s17 + $0x1] ss:$0 sm:$0xff]  ;;  %v20104_v35 = vld [vmem:[#allocation42_spill] sm:$0xff] }
 0x6a4   : > { %v14726_v48 = vpop.eup %14725  ;;  %14743 = vrcp.f32 %v6148_v25  ;;  %13813 = vmatprep.subr.bf16.mxu1 %v13812_v30  ;;  %v20094_v25 = vld [vmem:[#allocation32_spill] sm:$0xff]  ;;  %v17717_v24 = vmul.f32 %v20085_v31, %v20104_v35 }
 0x6a5   : > { %v14728_v55 = vpop.eup %14727  ;;  %v6147_v46 = vadd.f32 1.0, %v14726_v48  ;;  %v20095_v48 = vld [vmem:[#allocation31_spill] sm:$0xff] }
 0x6a6   : > { %v14730_v2 = vpop.eup %14729  ;;  %v6150_v22 = vadd.f32 1.0, %v14728_v55  ;;  %6355 = vperm.xlu0 %14616, %v14724_v36   ;;  %6360 = vperm.xlu1 %14617, %v14722_v0   ;;  %v17662_v0 = vmul.f32 %v20085_v31, %v20093_v53  ;;  %v17666_v36 = vmul.f32 %v20085_v31, %v20094_v25  ;;  %v17670_v55 = vmul.f32 %v20085_v31, %v20095_v48 }
 0x6a7   : > { %v14732_v26 = vpop.eup %14731  ;;  %14745 = vrcp.f32 %v6147_v46  ;;  %13815 = vmatpush3.bf16.msra.mxu1 %v13812_v30 }
 0x6a8   : > { %v14734_v9 = vpop.eup %14733  ;;  %14747 = vrcp.f32 %v6150_v22  ;;  %13817 = vmatprep.subr.bf16.mxu1 %v17644_v10  ;;  %v20096_v22 = vld [vmem:[#allocation34_spill] sm:$0xff] }
 0x6a9   : > { %v14736_v17 = vpop.eup %14735  ;;  %v6149_v62 = vadd.f32 1.0, %v14734_v9  ;;  %v20097_v9 = vld [vmem:[#allocation33_spill] sm:$0xff] }
 0x6aa   : > { %v6152_v61 = vadd.f32 1.0, %v14736_v17  ;;  %6365 = vperm.xlu0 %14616, %v14732_v26   ;;  %6370 = vperm.xlu1 %14617, %v14730_v2   ;;  %v17677_v26 = vmul.f32 %v20085_v31, %v20096_v22  ;;  %v17681_v17 = vmul.f32 %v20085_v31, %v20097_v9 }
 0x6ab   : > { %v14738_v12 = vpop.eup %14737  ;;  %14749 = vrcp.f32 %v6149_v62  ;;  %v17686_v62 = vld [vmem:[%s19606_s17 + $0x2] ss:$0 sm:$0xff] }
 0x6ac   : > { %v14740_v56 = vpop.eup %14739  ;;  %14751 = vrcp.f32 %v6152_v61 }
 0x6ad   : > { %v14742_v1 = vpop.eup %14741  ;;  %v6151_v43 = vadd.f32 1.0, %v14740_v56 }
 0x6ae   : > { %6375 = vperm.xlu0 %14616, %v14738_v12   ;;  %6380 = vperm.xlu1 %14617, %v14742_v1   ;;  %v14744_v15 = vpop.eup %14743  ;;  %v20098_v12 = vld [vmem:[#allocation36_spill] sm:$0xff]  ;;  %v20099_v1 = vld [vmem:[#allocation35_spill] sm:$0xff] }
 0x6af   : > { %14753 = vrcp.f32 %v6151_v43  ;;  %v17690_v56 = vmul.f32 %v20085_v31, %v20098_v12  ;;  %v17694_v43 = vmul.f32 %v20085_v31, %v20099_v1 }
 0x6b1   : > { %v14746_v13 = vpop.eup %14745 }
 0x6b2   : > { %6385 = vperm.xlu0 %14616, %v14746_v13   ;;  %6390 = vperm.xlu1 %14617, %v14744_v15   ;;  %v14748_v8 = vpop.eup %14747  ;;  %v20100_v15 = vld [vmem:[#allocation38_spill] sm:$0xff] }
 0x6b3   : > { %v17698_v13 = vmul.f32 %v20085_v31, %v20100_v15 }
 0x6b5   : > { %v14750_v57 = vpop.eup %14749 }
 0x6b6   : > { %6395 = vperm.xlu0 %14616, %v14750_v57   ;;  %6400 = vperm.xlu1 %14617, %v14748_v8   ;;  %v14752_v37 = vpop.eup %14751 }
 0x6b9   : > { %v14754_v49 = vpop.eup %14753 }
 0x6ba   : > { %6405 = vperm.xlu0 %14616, %v14754_v49   ;;  %6410 = vperm.xlu1 %14617, %v14752_v37   ;;  %v20101_v49 = vld [vmem:[#allocation37_spill] sm:$0xff] }
 0x6bb   : > { %v17703_v4 = vmul.f32 %v20085_v31, %v20101_v49 }
 0x6fa   : > { %v6256_v20 = vpop.permute.xlu0 %6255 }
 0x6fb   : > { %v6413_v45 = vmul.f32 %v6256_v20, %v20084_v34 }
 0x6fd   : > { %v6445_v32 = vadd.f32 %v6413_v45, %v6221_v38  ;;  %v6271_v60 = vpop.permute.xlu1 %6270 }
 0x6fe   : > { %v6416_v40 = vmul.f32 %v6271_v60, %v20086_v58  ;;  %v6261_v54 = vpop.permute.xlu0 %6260 }
 0x6ff   : > { %v6477_v46 = vmul.f32 %v6445_v32, %v20084_v34  ;;  %v6414_v2 = vmul.f32 %v6261_v54, %v20087_v44  ;;  %v20105_v34 = vld [vmem:[#allocation41_spill] sm:$0xff] }
 0x700   : > { %v6448_v61 = vadd.f32 %v6416_v40, %v6224_v42  ;;  %v17724_v38 = vmul.f32 %v20085_v31, %v20105_v34 }
 0x701   : > { %v6514_v8 = vmul.f32 %v17657_v39, %v6477_v46  ;;  %v6446_v57 = vadd.f32 %v6414_v2, %v6222_v63  ;;  %v6266_v37 = vpop.permute.xlu1 %6265  ;;  %v20108_v63 = vld [vmem:[#allocation46_spill] sm:$0xff]  ;;  %v20109_v46 = vld [vmem:[#allocation45_spill] sm:$0xff] }
 0x702   : > { %v6480_v28 = vmul.f32 %v6448_v61, %v20086_v58  ;;  %v6415_v19 = vmul.f32 %v6266_v37, %v20088_v50  ;;  %v6276_v7 = vpop.permute.xlu0 %6275  ;;  %v20107_v58 = vld [vmem:[#allocation43_spill] sm:$0xff]  ;;  %v17736_v32 = vmul.f32 %v20085_v31, %v20108_v63 }
 0x703   : > { %v6551_v5 = vadd.f32 %v17686_v62, %v6514_v8  ;;  %v6478_v30 = vmul.f32 %v6446_v57, %v20087_v44  ;;  %v6417_v20 = vmul.f32 %v6276_v7, %v20090_v41  ;;  %v17732_v42 = vmul.f32 %v20085_v31, %v20107_v58  ;;  %v20110_v57 = vld [vmem:[#allocation48_spill] sm:$0xff]  ;;  %v20111_v7 = vld [vmem:[#allocation47_spill] sm:$0xff] }
 0x704   : > { %v6447_v45 = vadd.f32 %v6415_v19, %v6223_v3  ;;  %v6517_v44 = vmul.f32 %v17657_v39, %v6480_v28  ;;  %v17742_v3 = vmul.f32 %v20085_v31, %v20109_v46  ;;  %v17748_v37 = vmul.f32 %v20085_v31, %v20110_v57 }
 0x705   : > { %v6515_v60 = vmul.f32 %v17657_v39, %v6478_v30  ;;  %v6449_v40 = vadd.f32 %v6417_v20, %v6225_v47  ;;  %v6281_v54 = vpop.permute.xlu1 %6280  ;;  %v6615_v2 = vrot.slane %v6551_v5, 7  ;;  %v17754_v47 = vmul.f32 %v20085_v31, %v20111_v7  ;;  %v20112_v30 = vld [vmem:[#allocation50_spill] sm:$0xff] }
 0x706   : > { %v6479_v61 = vmul.f32 %v6447_v45, %v20088_v50  ;;  %v6418_v8 = vmul.f32 %v6281_v54, %v20091_v14  ;;  %v17758_v20 = vmul.f32 %v20085_v31, %v20112_v30  ;;  %v20114_v54 = vld [vmem:[#allocation49_spill] sm:$0xff] }
 0x707   : > { %v6552_v19 = vadd.f32 %v17686_v62, %v6515_v60  ;;  %v6481_v28 = vmul.f32 %v6449_v40, %v20090_v41  ;;  %v17763_v6 = vmul.f32 %v20085_v31, %v20114_v54  ;;  %v17767_v60 = vmul.f32 %v20085_v31, %v20116_v21 }
 0x708   : > { %20113 = vst [vmem:[#allocation81_spill] sm:$0xff] %v17758_v20  ;;  %v6516_v50 = vmul.f32 %v17657_v39, %v6479_v61  ;;  %v6450_v5 = vadd.f32 %v6418_v8, %v6226_v59  ;;  %v6286_v45 = vpop.permute.xlu0 %6285  ;;  %v6554_v41 = vadd.f32 %v17686_v62, %v6517_v44  ;;  %v17773_v61 = vsel %vm3153_vm7, 0.0, %v6615_v2 }
 0x709   : > { %20115 = vst [vmem:[#allocation85_spill] sm:$0xff] %v17763_v6  ;;  %20117 = vst [vmem:[#allocation86_spill] sm:$0xff] %v17767_v60  ;;  %v6616_v40 = vrot.slane %v6552_v19, 7  ;;  %v6518_v10 = vmul.f32 %v17657_v39, %v6481_v28  ;;  %v6419_v29 = vmul.f32 %v6286_v45, %v20092_v23  ;;  %v6291_v20 = vpop.permute.xlu1 %6290 }
 0x70a   : > { %v6553_v59 = vadd.f32 %v17686_v62, %v6516_v50  ;;  %v6482_v8 = vmul.f32 %v6450_v5, %v20091_v14  ;;  %v6420_v6 = vmul.f32 %v6291_v20, %v20093_v53  ;;  %v6619_v5 = vrot.slane %v6554_v41, 7 }
 0x70b   : > { %v6555_v21 = vadd.f32 %v17686_v62, %v6518_v10  ;;  %v6451_v60 = vadd.f32 %v6419_v29, %v17652_v33  ;;  %v17781_v44 = vsel %vm3153_vm7, %v6615_v2, %v6616_v40  ;;  %v17784_v19 = vsel %vm3153_vm7, %v6616_v40, 0.0 }
 0x70c   : > { %v6618_v28 = vrot.slane %v6553_v59, 7  ;;  %v6519_v45 = vmul.f32 %v17657_v39, %v6482_v8  ;;  %v6452_v54 = vadd.f32 %v6420_v6, %v17662_v0  ;;  %v6296_v50 = vpop.permute.xlu0 %6295  ;;  %v6766_v14 = vrot.slane %v17781_v44, 1 }
 0x70d   : > { %v6483_v20 = vmul.f32 %v6451_v60, %v20092_v23  ;;  %v6421_v10 = vmul.f32 %v6296_v50, %v20094_v25  ;;  %v6301_v29 = vpop.permute.xlu1 %6300  ;;  %v6768_v33 = vrot.slane %v17784_v19, 1  ;;  %v6621_v2 = vrot.slane %v6555_v21, 7 }
 0x70e   : > { %v17793_v40 = vadd.f32 %v17686_v62, %v6519_v45  ;;  %v6484_v59 = vmul.f32 %v6452_v54, %v20093_v53  ;;  %v6765_v8 = vrot.slane %v17773_v61, 1  ;;  %v17798_v6 = vsel %vm3153_vm7, 0.0, %v6618_v28 }
 0x70f   : > { %v6520_v0 = vmul.f32 %v17657_v39, %v6483_v20  ;;  %v6453_v23 = vadd.f32 %v6421_v10, %v17666_v36  ;;  %v6422_v60 = vmul.f32 %v6301_v29, %v20095_v48  ;;  %v17804_v41 = vsel %vm3153_vm7, %v6618_v28, %v6619_v5 }
 0x710   : > { %v6521_v21 = vmul.f32 %v17657_v39, %v6484_v59  ;;  %v6306_v45 = vpop.permute.xlu0 %6305  ;;  %v17808_v50 = vsel %vm3305_vm8, %v6765_v8, %v6766_v14  ;;  %v17811_v53 = vsel %vm3305_vm8, %v6766_v14, %v6768_v33  ;;  %v6622_v29 = vrot.slane %v17793_v40, 7 }
 0x711   : > { %20118 = vst [vmem:[#allocation87_spill] sm:$0xff] %v17811_v53  ;;  %v6557_v54 = vadd.f32 %v17686_v62, %v6520_v0  ;;  %v6485_v20 = vmul.f32 %v6453_v23, %v20094_v25  ;;  %v6454_v36 = vadd.f32 %v6422_v60, %v17670_v55  ;;  %v6423_v10 = vmul.f32 %v6306_v45, %v20096_v22  ;;  %v6311_v28 = vpop.permute.xlu1 %6310 }
 0x712   : > { %13027 = vmatprep.mubr.msk.f32.mxu1 %vm1514_vm4, %v17808_v50  ;;  %v6424_v14 = vmul.f32 %v6311_v28, %v20097_v9  ;;  %v6770_v33 = vrot.slane %v17798_v6, 1  ;;  %v17825_v59 = vsel %vm3153_vm7, %v6619_v5, 0.0  ;;  %v17828_v25 = vadd.f32 %v17686_v62, %v6521_v21 }
 0x713   : > { %13028 = vmatmul.mubr.msk.f32.gmra.mrb[78].mxu1 %vm1514_vm4, %v17811_v53  ;;  %v6522_v55 = vmul.f32 %v17657_v39, %v6485_v20  ;;  %v6486_v8 = vmul.f32 %v6454_v36, %v20095_v48  ;;  %v6455_v0 = vadd.f32 %v6423_v10, %v17677_v26  ;;  %v17834_v40 = vsel %vm3153_vm7, 0.0, %v6621_v2 }
 0x714   : > { %v6624_v23 = vrot.slane %v6557_v54, 7  ;;  %v6456_v60 = vadd.f32 %v6424_v14, %v17681_v17  ;;  %v6771_v45 = vrot.slane %v17804_v41, 1  ;;  %v6316_v28 = vpop.permute.xlu0 %6315  ;;  %v6773_v20 = vrot.slane %v17825_v59, 1 }
 0x715   : > { %v6559_v5 = vadd.f32 %v17686_v62, %v6522_v55  ;;  %v6523_v21 = vmul.f32 %v17657_v39, %v6486_v8  ;;  %v6487_v53 = vmul.f32 %v6455_v0, %v20096_v22  ;;  %v6321_v48 = vpop.permute.xlu1 %6320  ;;  %v17843_v26 = vsel %vm3153_vm7, %v6621_v2, %v6622_v29 }
 0x716   : > { %v6488_v36 = vmul.f32 %v6456_v60, %v20097_v9  ;;  %v17847_v54 = vsel %vm3305_vm8, %v6770_v33, %v6771_v45  ;;  %v6425_v17 = vmul.f32 %v6316_v28, %v20098_v12  ;;  %v6625_v10 = vrot.slane %v17828_v25, 7 }
 0x717   : > { %v6627_v14 = vrot.slane %v6559_v5, 7  ;;  %v6524_v55 = vmul.f32 %v17657_v39, %v6487_v53  ;;  %13030 = vmatprep.mubr.msk.f32.mxu1 %vm1514_vm4, %v17847_v54  ;;  %v17855_v22 = vsel %vm3305_vm8, %v6771_v45, %v6773_v20  ;;  %v17858_v2 = vadd.f32 %v17686_v62, %v6523_v21 }
 0x718   : > { %20119 = vst [vmem:[#allocation88_spill] sm:$0xff] %v17855_v22  ;;  %v6525_v9 = vmul.f32 %v17657_v39, %v6488_v36  ;;  %v6457_v33 = vadd.f32 %v6425_v17, %v17690_v56  ;;  %13031 = vmatmul.mubr.msk.f32.gmra.mrb[80].mxu1 %vm1514_vm4, %v17855_v22  ;;  %v6426_v25 = vmul.f32 %v6321_v48, %v20099_v1  ;;  %v6326_v8 = vpop.permute.xlu0 %6325  ;;  %v17866_v53 = vsel %vm3153_vm7, 0.0, %v6624_v23 }
 0x719   : > { %v6561_v0 = vadd.f32 %v17686_v62, %v6524_v55  ;;  %v6775_v60 = vrot.slane %v17834_v40, 1  ;;  %v6776_v45 = vrot.slane %v17843_v26, 1  ;;  %v6331_v28 = vpop.permute.xlu1 %6330  ;;  %v6427_v20 = vmul.f32 %v6326_v8, %v20100_v15 }
 0x71a   : > { %v17872_v5 = vadd.f32 %v17686_v62, %v6525_v9  ;;  %v6489_v56 = vmul.f32 %v6457_v33, %v20098_v12  ;;  %v6458_v21 = vadd.f32 %v6426_v25, %v17694_v43  ;;  %v17878_v48 = vsel %vm3153_vm7, %v6624_v23, %v6625_v10 }
 0x71b   : > { %v17881_v36 = vsel %vm3153_vm7, 0.0, %v6627_v14  ;;  %v17884_v17 = vsel %vm3305_vm8, %v6775_v60, %v6776_v45  ;;  %v17887_v55 = vsel %vm3153_vm7, %v6622_v29, 0.0  ;;  %v6628_v9 = vrot.slane %v17858_v2, 7 }
 0x71c   : > { %20120 = vst [vmem:[#allocation89_spill] sm:$0xff] %v17884_v17  ;;  %v6526_v12 = vmul.f32 %v17657_v39, %v6489_v56  ;;  %v6490_v43 = vmul.f32 %v6458_v21, %v20099_v1  ;;  %13033 = vmatprep.mubr.msk.f32.mxu1 %vm1514_vm4, %v17884_v17  ;;  %v6459_v23 = vadd.f32 %v6427_v20, %v17698_v13  ;;  %v6336_v33 = vpop.permute.xlu0 %6335  ;;  %v6630_v25 = vrot.slane %v6561_v0, 7 }
 0x71d   : > { %v19802_v8 = vrot.slane %v17872_v5, 7  ;;  %v6778_v60 = vrot.slane %v17887_v55, 1  ;;  %v6428_v29 = vmul.f32 %v6331_v28, %v20101_v49  ;;  %v6341_v22 = vpop.permute.xlu1 %6340  ;;  %v6780_v21 = vrot.slane %v17866_v53, 1 }
 0x71e   : > { %v6563_v2 = vadd.f32 %v17686_v62, %v6526_v12  ;;  %v6527_v56 = vmul.f32 %v17657_v39, %v6490_v43  ;;  %v6491_v1 = vmul.f32 %v6459_v23, %v20100_v15  ;;  %v6781_v0 = vrot.slane %v17878_v48, 1 }
 0x71f   : > { %v17903_v17 = vsel %vm3305_vm8, %v6776_v45, %v6778_v60  ;;  %v6460_v13 = vadd.f32 %v6428_v29, %v17703_v4  ;;  %v6429_v20 = vmul.f32 %v6336_v33, %v20102_v11  ;;  %v17909_v28 = vsel %vm3153_vm7, %v6627_v14, %v6628_v9 }
 0x720   : > { %20121 = vst [vmem:[#allocation90_spill] sm:$0xff] %v17903_v17  ;;  %v17912_v12 = vadd.f32 %v17686_v62, %v6527_v56  ;;  %v6528_v43 = vmul.f32 %v17657_v39, %v6491_v1  ;;  %13034 = vmatmul.mubr.msk.f32.gmra.mrb[82].mxu1 %vm1514_vm4, %v17903_v17  ;;  %v17918_v15 = vsel %vm3153_vm7, %v6625_v10, 0.0  ;;  %v17922_v45 = vsel %vm3305_vm8, %v6780_v21, %v6781_v0 }
 0x721   : > { %v6492_v4 = vmul.f32 %v6460_v13, %v20101_v49  ;;  %20122 = vst [vmem:[#allocation91_spill] sm:$0xff] %v17922_v45  ;;  %v6461_v23 = vadd.f32 %v6429_v20, %v17707_v52  ;;  %v6783_v14 = vrot.slane %v17918_v15, 1  ;;  %v6346_v33 = vpop.permute.xlu0 %6345  ;;  %v6351_v60 = vpop.permute.xlu1 %6350  ;;  %v17927_v29 = vsel %vm3153_vm7, 0.0, %v6630_v25  ;;  %13036 = vmatprep.mubr.msk.f32.mxu1 %vm1514_vm4, %v17922_v45 }
 0x722   : > { %v17932_v56 = vsel %vm3153_vm7, %v6630_v25, %v19802_v8  ;;  %v6565_v10 = vadd.f32 %v17686_v62, %v6528_v43  ;;  %v6430_v49 = vmul.f32 %v6341_v22, %v20103_v51  ;;  %v6633_v52 = vrot.slane %v6563_v2, 7 }
 0x723   : > { %v6529_v1 = vmul.f32 %v17657_v39, %v6492_v4  ;;  %v6493_v21 = vmul.f32 %v6461_v23, %v20102_v11  ;;  %v17941_v13 = vsel %vm3305_vm8, %v6781_v0, %v6783_v14  ;;  %v6634_v20 = vrot.slane %v17912_v12, 7 }
 0x724   : > { %20123 = vst [vmem:[#allocation96_spill] sm:$0xff] %v17941_v13  ;;  %13037 = vmatmul.mubr.msk.f32.gmra.mrb[84].mxu1 %vm1514_vm4, %v17941_v13  ;;  %v6462_v25 = vadd.f32 %v6430_v49, %v17713_v16  ;;  %v6785_v43 = vrot.slane %v17881_v36, 1  ;;  %v6786_v8 = vrot.slane %v17909_v28, 1  ;;  %v6636_v22 = vrot.slane %v6565_v10, 7 }
 0x725   : > { %v6530_v2 = vmul.f32 %v17657_v39, %v6493_v21  ;;  %v6431_v4 = vmul.f32 %v6346_v33, %v20104_v35  ;;  %v17952_v11 = vsel %vm3153_vm7, %v6628_v9, 0.0  ;;  %v6356_v0 = vpop.permute.xlu0 %6355  ;;  %v6361_v23 = vpop.permute.xlu1 %6360  ;;  %v17955_v12 = vadd.f32 %v17686_v62, %v6529_v1 }
 0x726   : > { %v6494_v14 = vmul.f32 %v6462_v25, %v20103_v51  ;;  %v17959_v16 = vsel %vm3305_vm8, %v6785_v43, %v6786_v8  ;;  %v6788_v49 = vrot.slane %v17952_v11, 1  ;;  %v17963_v10 = vsel %vm3153_vm7, 0.0, %v6633_v52 }
 0x727   : > { %20124 = vst [vmem:[#allocation56_spill] sm:$0xff] %v17959_v16  ;;  %v17966_v33 = vadd.f32 %v17686_v62, %v6530_v2  ;;  %13039 = vmatprep.mubr.msk.f32.mxu1 %vm1514_vm4, %v17959_v16  ;;  %v6463_v9 = vadd.f32 %v6431_v4, %v17717_v24  ;;  %v6432_v1 = vmul.f32 %v6351_v60, %v20105_v34  ;;  %v6790_v25 = vrot.slane %v17927_v29, 1 }
 0x728   : > { %v6531_v51 = vmul.f32 %v17657_v39, %v6494_v14  ;;  %v17974_v21 = vsel %vm3305_vm8, %v6786_v8, %v6788_v49  ;;  %v6791_v43 = vrot.slane %v17932_v56, 1  ;;  %v17979_v13 = vsel %vm3153_vm7, %v6633_v52, %v6634_v20 }
 0x729   : > { %20125 = vst [vmem:[#allocation61_spill] sm:$0xff] %v17974_v21  ;;  %v17982_v2 = vsel %vm3153_vm7, 0.0, %v6636_v22  ;;  %v6495_v16 = vmul.f32 %v6463_v9, %v20104_v35  ;;  %13040 = vmatmul.mubr.msk.f32.gmra.mrb[86].mxu1 %vm1514_vm4, %v17974_v21  ;;  %v6464_v24 = vadd.f32 %v6432_v1, %v17724_v38  ;;  %v6366_v60 = vpop.permute.xlu0 %6365  ;;  %v6637_v8 = vrot.slane %v17955_v12, 7  ;;  %v6371_v1 = vpop.permute.xlu1 %6370 }
 0x72a   : > { %v17990_v4 = vsel %vm3305_vm8, %v6790_v25, %v6791_v43  ;;  %v6433_v14 = vmul.f32 %v6356_v0, %v20106_v18  ;;  %v20127_v52 = vrot.slane %v17872_v5, 7  ;;  %v17999_v35 = vadd.f32 %v17686_v62, %v6531_v51 }
 0x72b   : > { %20126 = vst [vmem:[#allocation62_spill] sm:$0xff] %v17990_v4  ;;  %v6532_v9 = vmul.f32 %v17657_v39, %v6495_v16  ;;  %v6496_v38 = vmul.f32 %v6464_v24, %v20105_v34  ;;  %13042 = vmatprep.mubr.msk.f32.mxu1 %vm1514_vm4, %v17990_v4  ;;  %v6639_v0 = vrot.slane %v17966_v33, 7  ;;  %v6434_v25 = vmul.f32 %v6361_v23, %v20107_v58 }
 0x72c   : > { %v17996_v49 = vsel %vm3153_vm7, %v20127_v52, 0.0  ;;  %v6465_v5 = vadd.f32 %v6433_v14, %v17728_v27  ;;  %v6795_v52 = vrot.slane %v17963_v10, 1  ;;  %v6796_v24 = vrot.slane %v17979_v13, 1 }
 0x72d   : > { %v6793_v12 = vrot.slane %v17996_v49, 1  ;;  %v6569_v51 = vadd.f32 %v17686_v62, %v6532_v9  ;;  %v6533_v16 = vmul.f32 %v17657_v39, %v6496_v38  ;;  %v18017_v4 = vsel %vm3153_vm7, %v6636_v22, %v6637_v8  ;;  %v6376_v38 = vpop.permute.xlu0 %6375 }
 0x72e   : > { %v6497_v33 = vmul.f32 %v6465_v5, %v20106_v18  ;;  %v6466_v27 = vadd.f32 %v6434_v25, %v17732_v42  ;;  %v6435_v23 = vmul.f32 %v6366_v60, %v20108_v63  ;;  %v6640_v14 = vrot.slane %v17999_v35, 7 }
 0x72f   : > { %v18013_v34 = vsel %vm3305_vm8, %v6791_v43, %v6793_v12  ;;  %v18026_v9 = vadd.f32 %v17686_v62, %v6533_v16  ;;  %v18029_v43 = vsel %vm3305_vm8, %v6795_v52, %v6796_v24  ;;  %v18032_v22 = vsel %vm3153_vm7, %v6634_v20, 0.0  ;;  %v6381_v52 = vpop.permute.xlu1 %6380 }
 0x730   : > { %20128 = vst [vmem:[#allocation63_spill] sm:$0xff] %v18013_v34  ;;  %13043 = vmatmul.mubr.msk.f32.gmra.mrb[88].mxu1 %vm1514_vm4, %v18013_v34  ;;  %20129 = vst [vmem:[#allocation64_spill] sm:$0xff] %v18029_v43  ;;  %v6534_v18 = vmul.f32 %v17657_v39, %v6497_v33  ;;  %v6498_v12 = vmul.f32 %v6466_v27, %v20107_v58  ;;  %v6467_v42 = vadd.f32 %v6435_v23, %v17736_v32 }
 0x731   : > { %13045 = vmatprep.mubr.msk.f32.mxu1 %vm1514_vm4, %v18029_v43  ;;  %v6798_v60 = vrot.slane %v18032_v22, 1  ;;  %v18041_v35 = vsel %vm3153_vm7, 0.0, %v6639_v0  ;;  %v6642_v5 = vrot.slane %v6569_v51, 7  ;;  %v19813_v25 = vrot.slane %v18026_v9, 7 }
 0x732   : > { %v6436_v20 = vmul.f32 %v6371_v1, %v20109_v46  ;;  %v6571_v16 = vadd.f32 %v17686_v62, %v6534_v18  ;;  %v6535_v58 = vmul.f32 %v17657_v39, %v6498_v12  ;;  %v6499_v33 = vmul.f32 %v6467_v42, %v20108_v63 }
 0x733   : > { %v18049_v27 = vsel %vm3305_vm8, %v6796_v24, %v6798_v60  ;;  %v6800_v51 = vrot.slane %v17982_v2, 1  ;;  %v6801_v23 = vrot.slane %v18017_v4, 1  ;;  %v6437_v1 = vmul.f32 %v6376_v38, %v20110_v57 }
 0x734   : > { %20130 = vst [vmem:[#allocation65_spill] sm:$0xff] %v18049_v27  ;;  %13046 = vmatmul.mubr.msk.f32.gmra.mrb[90].mxu1 %vm1514_vm4, %v18049_v27  ;;  %v6468_v32 = vadd.f32 %v6436_v20, %v17742_v3  ;;  %v18058_v18 = vsel %vm3153_vm7, %v6639_v0, %v6640_v14  ;;  %v18061_v12 = vadd.f32 %v17686_v62, %v6535_v58  ;;  %v18065_v24 = vsel %vm3153_vm7, %v6637_v8, 0.0  ;;  %v6386_v20 = vpop.permute.xlu0 %6385 }
 0x735   : > { %20131 = vst [vmem:[#allocation66_spill] sm:$0xff] %v18058_v18  ;;  %v6536_v63 = vmul.f32 %v17657_v39, %v6499_v33  ;;  %v18069_v3 = vsel %vm3305_vm8, %v6800_v51, %v6801_v23  ;;  %v6469_v60 = vadd.f32 %v6437_v1, %v17748_v37  ;;  %v6803_v38 = vrot.slane %v18065_v24, 1  ;;  %v20133_v33 = vld [vmem:[#allocation51_spill] sm:$0xff] }
 0x736   : > { %v6500_v42 = vmul.f32 %v6468_v32, %v20109_v46  ;;  %20132 = vst [vmem:[#allocation67_spill] sm:$0xff] %v18069_v3  ;;  %v18074_v0 = vsel %vm3153_vm7, 0.0, %v6642_v5  ;;  %v6645_v58 = vrot.slane %v6571_v16, 7  ;;  %13048 = vmatprep.mubr.msk.f32.mxu1 %vm1514_vm4, %v18069_v3  ;;  %v6438_v8 = vmul.f32 %v6381_v52, %v20111_v7  ;;  %v6391_v16 = vpop.permute.xlu1 %6390 }
 0x737   : > { %v6250_v46 = vmul.f32 %v20085_v31, %v20133_v33  ;;  %v18084_v32 = vsel %vm3153_vm7, %v6642_v5, %v19813_v25  ;;  %v6501_v51 = vmul.f32 %v6469_v60, %v20110_v57  ;;  %v18089_v1 = vsel %vm3305_vm8, %v6801_v23, %v6803_v38 }
 0x738   : > { %v6537_v37 = vmul.f32 %v17657_v39, %v6500_v42  ;;  %20134 = vst [vmem:[#allocation68_spill] sm:$0xff] %v18089_v1  ;;  %v6646_v3 = vrot.slane %v18061_v12, 7  ;;  %13049 = vmatmul.mubr.msk.f32.gmra.mrb[92].mxu1 %vm1514_vm4, %v18089_v1  ;;  %v6470_v52 = vadd.f32 %v6438_v8, %v17754_v47  ;;  %v6805_v27 = vrot.slane %v18041_v35, 1  ;;  %v6396_v43 = vpop.permute.xlu0 %6395 }
 0x739   : > { %v6806_v5 = vrot.slane %v18058_v18, 1  ;;  %v6573_v25 = vadd.f32 %v17686_v62, %v6536_v63  ;;  %v6538_v42 = vmul.f32 %v17657_v39, %v6501_v51  ;;  %v6439_v57 = vmul.f32 %v6386_v20, %v20112_v30  ;;  %v20136_v20 = vld [vmem:[#allocation81_spill] sm:$0xff] }
 0x73a   : > { %v18101_v23 = vsel %vm3153_vm7, %v6640_v14, 0.0  ;;  %v18104_v12 = vsel %vm3153_vm7, 0.0, %v6645_v58  ;;  %v6502_v60 = vmul.f32 %v6470_v52, %v20111_v7  ;;  %v6574_v8 = vadd.f32 %v17686_v62, %v6537_v37  ;;  %v20137_v51 = vld [vmem:[#allocation49_spill] sm:$0xff] }
 0x73b   : > { %v18108_v47 = vsel %vm3305_vm8, %v6805_v27, %v6806_v5  ;;  %v6808_v38 = vrot.slane %v18101_v23, 1  ;;  %v6575_v63 = vadd.f32 %v17686_v62, %v6538_v42  ;;  %v6471_v14 = vadd.f32 %v6439_v57, %v20136_v20  ;;  %v6401_v20 = vpop.permute.xlu1 %6400 }
 0x73c   : > { %20135 = vst [vmem:[#allocation69_spill] sm:$0xff] %v18108_v47  ;;  %13051 = vmatprep.mubr.msk.f32.mxu1 %vm1514_vm4, %v18108_v47  ;;  %v6440_v1 = vmul.f32 %v6391_v16, %v20137_v51  ;;  %v6539_v34 = vmul.f32 %v17657_v39, %v6502_v60  ;;  %v6810_v27 = vrot.slane %v18074_v0, 1  ;;  %v6811_v52 = vrot.slane %v18084_v32, 1  ;;  %v20139_v16 = vld [vmem:[#allocation85_spill] sm:$0xff] }
 0x73d   : > { %v18119_v7 = vsel %vm3305_vm8, %v6806_v5, %v6808_v38  ;;  %v18124_v37 = vsel %vm3153_vm7, %v6645_v58, %v6646_v3  ;;  %v6648_v42 = vrot.slane %v6573_v25, 7  ;;  %v6503_v47 = vmul.f32 %v6471_v14, %v20112_v30  ;;  %v20141_v38 = vld [vmem:[#allocation52_spill] sm:$0xff] }
 0x73e   : > { %20138 = vst [vmem:[#allocation70_spill] sm:$0xff] %v18119_v7  ;;  %13052 = vmatmul.mubr.msk.f32.gmra.mrb[94].mxu1 %vm1514_vm4, %v18119_v7  ;;  %v6472_v57 = vadd.f32 %v6440_v1, %v20139_v16  ;;  %v6576_v60 = vadd.f32 %v17686_v62, %v6539_v34  ;;  %v18132_v5 = vsel %vm3305_vm8, %v6810_v27, %v6811_v52  ;;  %v20142_v45 = vrot.slane %v18026_v9, 7  ;;  %v20143_v27 = vld [vmem:[#allocation86_spill] sm:$0xff] }
 0x73f   : > { %20140 = vst [vmem:[#allocation71_spill] sm:$0xff] %v18132_v5  ;;  %v6441_v21 = vmul.f32 %v6396_v43, %v20141_v38  ;;  %v6649_v25 = vrot.slane %v6574_v8, 7  ;;  %v6540_v30 = vmul.f32 %v17657_v39, %v6503_v47  ;;  %13054 = vmatprep.mubr.msk.f32.mxu1 %vm1514_vm4, %v18132_v5  ;;  %v6651_v1 = vrot.slane %v6575_v63, 7 }
 0x740   : > { %v18138_v58 = vsel %vm3153_vm7, %v20142_v45, 0.0  ;;  %v6504_v14 = vmul.f32 %v6472_v57, %v20137_v51  ;;  %v6442_v43 = vmul.f32 %v6401_v20, %v20133_v33  ;;  %v6815_v9 = vrot.slane %v18104_v12, 1 }
 0x741   : > { %v6813_v34 = vrot.slane %v18138_v58, 1  ;;  %v6473_v16 = vadd.f32 %v6441_v21, %v20143_v27  ;;  %v6577_v45 = vadd.f32 %v17686_v62, %v6540_v30  ;;  %v6816_v51 = vrot.slane %v18124_v37, 1 }
 0x742   : > { %v6541_v8 = vmul.f32 %v17657_v39, %v6504_v14  ;;  %v18155_v57 = vsel %vm3153_vm7, 0.0, %v6648_v42  ;;  %v6652_v5 = vrot.slane %v6576_v60, 7  ;;  %v6474_v21 = vadd.f32 %v6442_v43, %v6250_v46 }
 0x743   : > { %v18151_v47 = vsel %vm3305_vm8, %v6811_v52, %v6813_v34  ;;  %v6505_v63 = vmul.f32 %v6473_v16, %v20141_v38  ;;  %v18161_v20 = vsel %vm3153_vm7, %v6648_v42, %v6649_v25  ;;  %v18165_v52 = vsel %vm3305_vm8, %v6815_v9, %v6816_v51 }
 0x744   : > { %20144 = vst [vmem:[#allocation72_spill] sm:$0xff] %v18151_v47  ;;  %13055 = vmatmul.mubr.msk.f32.gmra.mrb[96].mxu1 %vm1514_vm4, %v18151_v47  ;;  %v6578_v30 = vadd.f32 %v17686_v62, %v6541_v8  ;;  %20145 = vst [vmem:[#allocation73_spill] sm:$0xff] %v18165_v52  ;;  %v18168_v14 = vsel %vm3153_vm7, %v6646_v3, 0.0  ;;  %v6654_v34 = vrot.slane %v6577_v45, 7  ;;  %v6506_v38 = vmul.f32 %v6474_v21, %v20133_v33 }
 0x745   : > { %v6542_v60 = vmul.f32 %v17657_v39, %v6505_v63  ;;  %13057 = vmatprep.mubr.msk.f32.mxu1 %vm1514_vm4, %v18165_v52  ;;  %v6818_v46 = vrot.slane %v18168_v14, 1  ;;  %v18176_v42 = vsel %vm3153_vm7, 0.0, %v6651_v1  ;;  %v18179_v16 = vsel %vm3153_vm7, %v6651_v1, %v6652_v5 }
 0x746   : > { %v6655_v27 = vrot.slane %v6578_v30, 7  ;;  %v6543_v43 = vmul.f32 %v17657_v39, %v6506_v38  ;;  %v6820_v33 = vrot.slane %v18155_v57, 1  ;;  %v6821_v45 = vrot.slane %v18161_v20, 1 }
 0x747   : > { %v6579_v3 = vadd.f32 %v17686_v62, %v6542_v60  ;;  %v18184_v9 = vsel %vm3305_vm8, %v6816_v51, %v6818_v46  ;;  %v18191_v8 = vsel %vm3153_vm7, %v6649_v25, 0.0  ;;  %v18194_v1 = vsel %vm3153_vm7, 0.0, %v6654_v34 }
 0x748   : > { %20146 = vst [vmem:[#allocation74_spill] sm:$0xff] %v18184_v9  ;;  %13058 = vmatmul.mubr.msk.f32.gmra.mrb[98].mxu1 %vm1514_vm4, %v18184_v9  ;;  %v6580_v21 = vadd.f32 %v17686_v62, %v6543_v43  ;;  %v6823_v39 = vrot.slane %v18191_v8, 1  ;;  %v18199_v51 = vsel %vm3153_vm7, %v6654_v34, %v6655_v27  ;;  %v18202_v30 = vsel %vm3305_vm8, %v6820_v33, %v6821_v45 }
 0x749   : > { %v6657_v63 = vrot.slane %v6579_v3, 7  ;;  %20147 = vst [vmem:[#allocation75_spill] sm:$0xff] %v18202_v30  ;;  %v6825_v60 = vrot.slane %v18176_v42, 1  ;;  %v6826_v38 = vrot.slane %v18179_v16, 1  ;;  %13060 = vmatprep.mubr.msk.f32.mxu1 %vm1514_vm4, %v18202_v30  ;;  %v18212_v62 = vsel %vm3153_vm7, %v6652_v5, 0.0 }
 0x74a   : > { %v6658_v25 = vrot.slane %v6580_v21, 7  ;;  %v18209_v46 = vsel %vm3305_vm8, %v6821_v45, %v6823_v39  ;;  %v6828_v43 = vrot.slane %v18212_v62, 1  ;;  %v6830_v5 = vrot.slane %v18194_v1, 1 }
 0x74b   : > { %20148 = vst [vmem:[#allocation76_spill] sm:$0xff] %v18209_v46  ;;  %v18215_v34 = vsel %vm3153_vm7, 0.0, %v6657_v63  ;;  %v18220_v3 = vsel %vm3305_vm8, %v6825_v60, %v6826_v38  ;;  %v6831_v45 = vrot.slane %v18199_v51, 1  ;;  %v18231_v21 = vsel %vm3153_vm7, %v6655_v27, 0.0 }
 0x74c   : > { %13061 = vmatmul.mubr.msk.f32.gmra.mrb[100].mxu1 %vm1514_vm4, %v18209_v46  ;;  %20149 = vst [vmem:[#allocation77_spill] sm:$0xff] %v18220_v3  ;;  %v18224_v33 = vsel %vm3153_vm7, %v6657_v63, %v6658_v25  ;;  %v18235_v60 = vsel %vm3305_vm8, %v6826_v38, %v6828_v43  ;;  %v6833_v63 = vrot.slane %v18231_v21, 1  ;;  %v18245_v30 = vsel %vm3153_vm7, %v6658_v25, 0.0 }
 0x74d   : > { %13063 = vmatprep.mubr.msk.f32.mxu1 %vm1514_vm4, %v18220_v3  ;;  %v6836_v39 = vrot.slane %v18224_v33, 1  ;;  %20150 = vst [vmem:[#allocation78_spill] sm:$0xff] %v18235_v60  ;;  %v18238_v46 = vsel %vm3305_vm8, %v6830_v5, %v6831_v45  ;;  %v6835_v3 = vrot.slane %v18215_v34, 1  ;;  %v6838_v43 = vrot.slane %v18245_v30, 1  ;;  %v10821_v5 = vld [vmem:[%s19607_s18 + $0x90] sm:$0xff] }
 0x74e   : > { %20151 = vst [vmem:[#allocation79_spill] sm:$0xff] %v18238_v46  ;;  %v18253_v38 = vsel %vm3305_vm8, %v6831_v45, %v6833_v63  ;;  %v20155_v45 = vmov 0.0   ;;  %v7424_v9 = vrot.slane %v17798_v6, 2 }
 0x74f   : > { %v18250_v27 = vsel %vm3305_vm8, %v6835_v3, %v6836_v39  ;;  %20153 = vst [vmem:[#allocation82_spill] sm:$0xff] %v18253_v38  ;;  %v18261_v25 = vsel %vm3305_vm8, %v6836_v39, %v6838_v43  ;;  %v10822_v3 = vld [vmem:[%s19607_s18 + $0x98] sm:$0xff]  ;;  %v10824_v39 = vld [vmem:[%s19607_s18 + $0xa8] sm:$0xff] }
 0x750   : > { %13064 = vmatmul.mubr.msk.f32.gmra.mrb[102].mxu1 %vm1514_vm4, %v18235_v60  ;;  %20152 = vst [vmem:[#allocation80_spill] sm:$0xff] %v18250_v27  ;;  %20154 = vst [vmem:[#allocation83_spill] sm:$0xff] %v18261_v25  ;;  %v13820_v63 = vpack.c.bf16 %v10822_v3, %v10821_v5  ;;  %v20156_v43 = vld [vmem:[#allocation60_spill] sm:$0xff]  ;;  %v10825_v5 = vld [vmem:[%s19607_s18 + $0xb0] sm:$0xff] }
 0x751   : > { %13066 = vmatprep.mubr.msk.f32.mxu1 %vm1514_vm4, %v18238_v46  ;;  %v10826_v3 = vld [vmem:[%s19607_s18 + $0xb8] sm:$0xff]  ;;  %v10864_v46 = vld [vmem:[%s19607_s18 + $0xe8] sm:$0xff] }
 0x754   : > { %13067 = vmatmul.mubr.msk.f32.gmra.mrb[104].mxu1 %vm1514_vm4, %v18253_v38  ;;  %v10863_v38 = vld [vmem:[%s19607_s18 + $0xe0] sm:$0xff] }
 0x755   : > { %13069 = vmatprep.mubr.msk.f32.mxu1 %vm1514_vm4, %v18250_v27  ;;  %v10823_v27 = vld [vmem:[%s19607_s18 + $0xa0] sm:$0xff] }
 0x758   : > { %13070 = vmatmul.mubr.msk.f32.gmra.mrb[106].mxu1 %vm1514_vm4, %v18261_v25  ;;  %v13824_v25 = vpack.c.bf16 %v10824_v39, %v10823_v27  ;;  %v10859_v27 = vld [vmem:[%s19607_s18 + $0xc0] sm:$0xff]  ;;  %v10860_v39 = vld [vmem:[%s19607_s18 + $0xc8] sm:$0xff] }
 0x759   : > { %13088 = vmatprep.mubr.f32.mxu1 %v20155_v45 }
 0x75c   : > { %13089 = vmatmul.mubr.f32.vlgmr.msra.gmra.mrb[76].mxu1 %v20155_v45  ;;  %v13828_v45 = vpack.c.bf16 %v10826_v3, %v10825_v5  ;;  %v20157_v5 = vld [vmem:[#allocation84_spill] sm:$0xff]  ;;  %v7419_v3 = vrot.slane %v17773_v61, 2 }
 0x75d   : > { %13091 = vmatprep.mubr.msk.f32.mxu1 %vm1514_vm4, %v17773_v61  ;;  %13819 = vmatpush3.bf16.msra.mxu1 %v20156_v43  ;;  %v13832_v43 = vpack.c.bf16 %v10860_v39, %v10859_v27  ;;  %v7422_v39 = vrot.slane %v17784_v19, 2  ;;  %v13840_v19 = vpack.c.bf16 %v10864_v46, %v10863_v38  ;;  %v7427_v46 = vrot.slane %v17825_v59, 2 }
 0x75e   : > { %13821 = vmatprep.subr.bf16.mxu1 %v13820_v63  ;;  %v7429_v38 = vrot.slane %v17834_v40, 2 }
 0x760   : > { %13092 = vmatmul.mubr.msk.f32.gmra.mrb[78].mxu1 %vm1514_vm4, %v17781_v44 }
 0x761   : > { %13094 = vmatprep.mubr.msk.f32.mxu1 %vm1514_vm4, %v17798_v6  ;;  %13823 = vmatpush3.bf16.msra.mxu1 %v13820_v63  ;;  %v7420_v63 = vrot.slane %v17781_v44, 2 }
 0x762   : > { %13825 = vmatprep.subr.bf16.mxu1 %v13824_v25 }
 0x763   : > { %v18372_v60 = vsel %vm3966_vm9, %v7419_v3, %v7420_v63  ;;  %v10866_v3 = vld [vmem:[%s19607_s18 + $0xf8] sm:$0xff] }
 0x764   : > { %13095 = vmatmul.mubr.msk.f32.gmra.mrb[80].mxu1 %vm1514_vm4, %v17804_v41 }
 0x765   : > { %13097 = vmatprep.mubr.msk.f32.mxu1 %vm1514_vm4, %v17834_v40  ;;  %13827 = vmatpush3.bf16.msra.mxu1 %v13824_v25  ;;  %v10861_v25 = vld [vmem:[%s19607_s18 + $0xd0] sm:$0xff] }
 0x766   : > { %13829 = vmatprep.subr.bf16.mxu1 %v13828_v45 }
 0x768   : > { %13098 = vmatmul.mubr.msk.f32.gmra.mrb[82].mxu1 %vm1514_vm4, %v17843_v26 }
 0x769   : > { %13100 = vmatprep.mubr.msk.f32.mxu1 %vm1514_vm4, %v17866_v53  ;;  %13831 = vmatpush3.bf16.msra.mxu1 %v13828_v45  ;;  %v10862_v45 = vld [vmem:[%s19607_s18 + $0xd8] sm:$0xff] }
 0x76a   : > { %13833 = vmatprep.subr.bf16.mxu1 %v13832_v43  ;;  %v13836_v27 = vpack.c.bf16 %v10862_v45, %v10861_v25  ;;  %v7425_v25 = vrot.slane %v17804_v41, 2  ;;  %v18379_v45 = vsel %vm3966_vm9, %v7420_v63, %v7422_v39 }
 0x76b   : > { %20158 = vst [vmem:[#allocation57_spill] sm:$0xff] %v18379_v45 }
 0x76c   : > { %13101 = vmatmul.mubr.msk.f32.gmra.mrb[84].mxu1 %vm1514_vm4, %v17878_v48  ;;  %v18390_v52 = vsel %vm3966_vm9, %v7424_v9, %v7425_v25  ;;  %v18398_v39 = vsel %vm3966_vm9, %v7425_v25, %v7427_v46  ;;  %v10899_v9 = vld [vmem:[%s19607_s18 + $0x100] sm:$0xff] }
 0x76d   : > { %13103 = vmatprep.mubr.msk.f32.mxu1 %vm1514_vm4, %v17881_v36  ;;  %20159 = vst [vmem:[#allocation58_spill] sm:$0xff] %v18390_v52 }
 0x770   : > { %13104 = vmatmul.mubr.msk.f32.gmra.mrb[86].mxu1 %vm1514_vm4, %v17909_v28 }
 0x771   : > { %13106 = vmatprep.mubr.msk.f32.mxu1 %vm1514_vm4, %v17927_v29 }
 0x774   : > { %13107 = vmatmul.mubr.msk.f32.gmra.mrb[88].mxu1 %vm1514_vm4, %v17932_v56 }
 0x775   : > { %13109 = vmatprep.mubr.msk.f32.mxu1 %vm1514_vm4, %v17963_v10 }
 0x778   : > { %13110 = vmatmul.mubr.msk.f32.gmra.mrb[90].mxu1 %vm1514_vm4, %v17979_v13 }
 0x779   : > { %13112 = vmatprep.mubr.msk.f32.mxu1 %vm1514_vm4, %v17982_v2 }
 0x77c   : > { %13113 = vmatmul.mubr.msk.f32.gmra.mrb[92].mxu1 %vm1514_vm4, %v18017_v4 }
 0x77d   : > { %13115 = vmatprep.mubr.msk.f32.mxu1 %vm1514_vm4, %v18041_v35 }
 0x780   : > { %13116 = vmatmul.mubr.msk.f32.gmra.mrb[94].mxu1 %vm1514_vm4, %v18058_v18 }
 0x781   : > { %13118 = vmatprep.mubr.msk.f32.mxu1 %vm1514_vm4, %v18074_v0 }
 0x784   : > { %13119 = vmatmul.mubr.msk.f32.gmra.mrb[96].mxu1 %vm1514_vm4, %v18084_v32 }
 0x785   : > { %13121 = vmatprep.mubr.msk.f32.mxu1 %vm1514_vm4, %v18104_v12 }
 0x788   : > { %13122 = vmatmul.mubr.msk.f32.gmra.mrb[98].mxu1 %vm1514_vm4, %v18124_v37 }
 0x789   : > { %13124 = vmatprep.mubr.msk.f32.mxu1 %vm1514_vm4, %v18155_v57 }
 0x78c   : > { %13125 = vmatmul.mubr.msk.f32.gmra.mrb[100].mxu1 %vm1514_vm4, %v18161_v20 }
 0x78d   : > { %13127 = vmatprep.mubr.msk.f32.mxu1 %vm1514_vm4, %v18176_v42 }
 0x790   : > { %13128 = vmatmul.mubr.msk.f32.gmra.mrb[102].mxu1 %vm1514_vm4, %v18179_v16 }
 0x791   : > { %13130 = vmatprep.mubr.msk.f32.mxu1 %vm1514_vm4, %v18194_v1 }
 0x794   : > { %13131 = vmatmul.mubr.msk.f32.gmra.mrb[104].mxu1 %vm1514_vm4, %v18199_v51 }
 0x795   : > { %13133 = vmatprep.mubr.msk.f32.mxu1 %vm1514_vm4, %v18215_v34 }
 0x798   : > { %13134 = vmatmul.mubr.msk.f32.gmra.mrb[106].mxu1 %vm1514_vm4, %v18224_v33 }
 0x799   : > { %13152 = vmatprep.mubr.msk.f32.mxu1 %vm1514_vm4, %v20157_v5 }
 0x79c   : > { %13153 = vmatmul.mubr.msk.f32.vlgmr.msra.gmra.mrb[76].mxu1 %vm1514_vm4, %v20157_v5  ;;  %v10865_v5 = vld [vmem:[%s19607_s18 + $0xf0] sm:$0xff] }
 0x79d   : > { %13155 = vmatprep.mubr.msk.f32.mxu1 %vm1514_vm4, %v18372_v60  ;;  %13835 = vmatpush3.bf16.msra.mxu1 %v13832_v43  ;;  %v7430_v43 = vrot.slane %v17843_v26, 2  ;;  %v13844_v63 = vpack.c.bf16 %v10866_v3, %v10865_v5  ;;  %v7435_v5 = vrot.slane %v17878_v48, 2  ;;  %v7437_v3 = vrot.slane %v17918_v15, 2 }
 0x79e   : > { %13837 = vmatprep.subr.bf16.mxu1 %v13836_v27  ;;  %v7442_v15 = vrot.slane %v17952_v11, 2 }
 0x79f   : > { %v18410_v59 = vsel %vm3966_vm9, %v7429_v38, %v7430_v43  ;;  %v7440_v38 = vrot.slane %v17909_v28, 2 }
 0x7a0   : > { %13156 = vmatmul.mubr.msk.f32.gmra.mrb[78].mxu1 %vm1514_vm4, %v18379_v45  ;;  %v7432_v45 = vrot.slane %v17887_v55, 2  ;;  %v7434_v55 = vrot.slane %v17866_v53, 2 }
 0x7a1   : > { %13158 = vmatprep.mubr.msk.f32.mxu1 %vm1514_vm4, %v18390_v52  ;;  %13839 = vmatpush3.bf16.msra.mxu1 %v13836_v27  ;;  %v10900_v52 = vld [vmem:[%s19607_s18 + $0x108] sm:$0xff] }
 0x7a2   : > { %13841 = vmatprep.subr.bf16.mxu1 %v13840_v19  ;;  %v18416_v27 = vpack.c.bf16 %v10900_v52, %v10899_v9  ;;  %v18419_v25 = vsel %vm3966_vm9, %v7430_v43, %v7432_v45  ;;  %v18425_v46 = vsel %vm3966_vm9, %v7434_v55, %v7435_v5  ;;  %v7439_v52 = vrot.slane %v17881_v36, 2 }
 0x7a3   : > { %v7445_v43 = vrot.slane %v17932_v56, 2  ;;  %v18446_v9 = vsel %vm3966_vm9, %v7440_v38, %v7442_v15  ;;  %v7450_v55 = vrot.slane %v17979_v13, 2  ;;  %v7455_v15 = vrot.slane %v18017_v4, 2 }
 0x7a4   : > { %13159 = vmatmul.mubr.msk.f32.gmra.mrb[80].mxu1 %vm1514_vm4, %v18398_v39  ;;  %v18439_v45 = vsel %vm3966_vm9, %v7439_v52, %v7440_v38  ;;  %v7452_v38 = vrot.slane %v18032_v22, 2 }
 0x7a5   : > { %13161 = vmatprep.mubr.msk.f32.mxu1 %vm1514_vm4, %v18410_v59  ;;  %13843 = vmatpush3.bf16.msra.mxu1 %v13840_v19  ;;  %v18433_v19 = vsel %vm3966_vm9, %v7435_v5, %v7437_v3  ;;  %v7447_v5 = vrot.slane %v17996_v49, 2  ;;  %v7449_v3 = vrot.slane %v17963_v10, 2 }
 0x7a6   : > { %13845 = vmatprep.subr.bf16.mxu1 %v13844_v63 }
 0x7a7   : > { %v18459_v52 = vsel %vm3966_vm9, %v7445_v43, %v7447_v5  ;;  %v18465_v49 = vsel %vm3966_vm9, %v7449_v3, %v7450_v55  ;;  %v7460_v5 = vrot.slane %v18058_v18, 2  ;;  %v7459_v3 = vrot.slane %v18041_v35, 2 }
 0x7a8   : > { %13162 = vmatmul.mubr.msk.f32.gmra.mrb[82].mxu1 %vm1514_vm4, %v18419_v25  ;;  %20161 = vst [vmem:[#allocation93_spill] sm:$0xff] %v18465_v49 }
 0x7a9   : > { %13164 = vmatprep.mubr.msk.f32.mxu1 %vm1514_vm4, %v18425_v46  ;;  %13847 = vmatpush3.bf16.msra.mxu1 %v13844_v63  ;;  %v7444_v63 = vrot.slane %v17927_v29, 2 }
 0x7aa   : > { %13849 = vmatprep.subr.bf16.mxu1 %v18416_v27 }
 0x7ab   : > { %v18452_v11 = vsel %vm3966_vm9, %v7444_v63, %v7445_v43  ;;  %v7454_v63 = vrot.slane %v17982_v2, 2  ;;  %v7457_v43 = vrot.slane %v18065_v24, 2  ;;  %v18491_v24 = vsel %vm3966_vm9, %v7459_v3, %v7460_v5 }
 0x7ac   : > { %13165 = vmatmul.mubr.msk.f32.gmra.mrb[84].mxu1 %vm1514_vm4, %v18433_v19  ;;  %20160 = vst [vmem:[#allocation92_spill] sm:$0xff] %v18452_v11  ;;  %20163 = vst [vmem:[#allocation95_spill] sm:$0xff] %v18491_v24  ;;  %v7469_v3 = vrot.slane %v18104_v12, 2 }
 0x7ad   : > { %13167 = vmatprep.mubr.msk.f32.mxu1 %vm1514_vm4, %v18439_v45  ;;  %v18478_v22 = vsel %vm3966_vm9, %v7454_v63, %v7455_v15  ;;  %v7464_v63 = vrot.slane %v18074_v0, 2 }
 0x7ae   : > { %20162 = vst [vmem:[#allocation94_spill] sm:$0xff] %v18478_v22 }
 0x7b0   : > { %13168 = vmatmul.mubr.msk.f32.gmra.mrb[86].mxu1 %vm1514_vm4, %v18446_v9 }
 0x7b1   : > { %13170 = vmatprep.mubr.msk.f32.mxu1 %vm1514_vm4, %v18452_v11  ;;  %v18472_v11 = vsel %vm3966_vm9, %v7450_v55, %v7452_v38  ;;  %v7462_v55 = vrot.slane %v18101_v23, 2  ;;  %v7465_v38 = vrot.slane %v18084_v32, 2 }
 0x7b3   : > { %v18504_v23 = vsel %vm3966_vm9, %v7464_v63, %v7465_v38  ;;  %v7474_v63 = vrot.slane %v18155_v57, 2 }
 0x7b4   : > { %13171 = vmatmul.mubr.msk.f32.gmra.mrb[88].mxu1 %vm1514_vm4, %v18459_v52  ;;  %20164 = vst [vmem:[#allocation97_spill] sm:$0xff] %v18504_v23 }
 0x7b5   : > { %13173 = vmatprep.mubr.msk.f32.mxu1 %vm1514_vm4, %v18465_v49  ;;  %v18485_v49 = vsel %vm3966_vm9, %v7455_v15, %v7457_v43  ;;  %v7467_v15 = vrot.slane %v18138_v58, 2  ;;  %v7470_v43 = vrot.slane %v18124_v37, 2 }
 0x7b7   : > { %v18517_v58 = vsel %vm3966_vm9, %v7469_v3, %v7470_v43  ;;  %v7479_v3 = vrot.slane %v18176_v42, 2 }
 0x7b8   : > { %13174 = vmatmul.mubr.msk.f32.gmra.mrb[90].mxu1 %vm1514_vm4, %v18472_v11  ;;  %20165 = vst [vmem:[#allocation98_spill] sm:$0xff] %v18517_v58 }
 0x7b9   : > { %13176 = vmatprep.mubr.msk.f32.mxu1 %vm1514_vm4, %v18478_v22  ;;  %v18498_v22 = vsel %vm3966_vm9, %v7460_v5, %v7462_v55  ;;  %v7472_v5 = vrot.slane %v18168_v14, 2  ;;  %v7475_v55 = vrot.slane %v18161_v20, 2 }
 0x7bb   : > { %v18530_v14 = vsel %vm3966_vm9, %v7474_v63, %v7475_v55  ;;  %v7484_v63 = vrot.slane %v18194_v1, 2 }
 0x7bc   : > { %13177 = vmatmul.mubr.msk.f32.gmra.mrb[92].mxu1 %vm1514_vm4, %v18485_v49  ;;  %20166 = vst [vmem:[#allocation99_spill] sm:$0xff] %v18530_v14 }
 0x7bd   : > { %13179 = vmatprep.mubr.msk.f32.mxu1 %vm1514_vm4, %v18491_v24  ;;  %v18511_v24 = vsel %vm3966_vm9, %v7465_v38, %v7467_v15  ;;  %v7477_v38 = vrot.slane %v18191_v8, 2  ;;  %v7480_v15 = vrot.slane %v18179_v16, 2 }
 0x7bf   : > { %v18543_v8 = vsel %vm3966_vm9, %v7479_v3, %v7480_v15  ;;  %v7489_v3 = vrot.slane %v18215_v34, 2 }
 0x7c0   : > { %13180 = vmatmul.mubr.msk.f32.gmra.mrb[94].mxu1 %vm1514_vm4, %v18498_v22  ;;  %20168 = vst [vmem:[#allocation59_spill] sm:$0xff] %v18543_v8 }
 0x7c1   : > { %13182 = vmatprep.mubr.msk.f32.mxu1 %vm1514_vm4, %v18504_v23  ;;  %v18524_v23 = vsel %vm3966_vm9, %v7470_v43, %v7472_v5  ;;  %v7482_v43 = vrot.slane %v18212_v62, 2  ;;  %v7485_v5 = vrot.slane %v18199_v51, 2 }
 0x7c3   : > { %v18556_v62 = vsel %vm3966_vm9, %v7484_v63, %v7485_v5  ;;  %v10901_v63 = vld [vmem:[%s19607_s18 + $0x110] sm:$0xff] }
 0x7c4   : > { %13183 = vmatmul.mubr.msk.f32.gmra.mrb[96].mxu1 %vm1514_vm4, %v18511_v24  ;;  %20170 = vst [vmem:[#allocation101_spill] sm:$0xff] %v18556_v62 }
 0x7c5   : > { %13185 = vmatprep.mubr.msk.f32.mxu1 %vm1514_vm4, %v18517_v58  ;;  %v18537_v58 = vsel %vm3966_vm9, %v7475_v55, %v7477_v38  ;;  %v7487_v55 = vrot.slane %v18231_v21, 2  ;;  %v7490_v38 = vrot.slane %v18224_v33, 2 }
 0x7c6   : > { %20167 = vst [vmem:[#allocation100_spill] sm:$0xff] %v18537_v58 }
 0x7c7   : > { %v18569_v21 = vsel %vm3966_vm9, %v7489_v3, %v7490_v38 }
 0x7c8   : > { %13186 = vmatmul.mubr.msk.f32.gmra.mrb[98].mxu1 %vm1514_vm4, %v18524_v23  ;;  %20171 = vst [vmem:[#allocation25_spill] sm:$0xff] %v18569_v21 }
 0x7c9   : > { %13188 = vmatprep.mubr.msk.f32.mxu1 %vm1514_vm4, %v18530_v14  ;;  %v18550_v14 = vsel %vm3966_vm9, %v7480_v15, %v7482_v43  ;;  %v7492_v15 = vrot.slane %v18245_v30, 2  ;;  %v10902_v30 = vld [vmem:[%s19607_s18 + $0x118] sm:$0xff] }
 0x7ca   : > { %20169 = vst [vmem:[#allocation24_spill] sm:$0xff] %v18550_v14 }
 0x7cb   : > { %v18574_v43 = vsel %vm3966_vm9, %v7490_v38, %v7492_v15  ;;  %v10904_v38 = vld [vmem:[%s19607_s18 + $0x128] sm:$0xff]  ;;  %v10906_v15 = vld [vmem:[%s19607_s18 + $0x138] sm:$0xff] }
 0x7cc   : > { %13189 = vmatmul.mubr.msk.f32.gmra.mrb[100].mxu1 %vm1514_vm4, %v18537_v58 }
 0x7cd   : > { %13191 = vmatprep.mubr.msk.f32.mxu1 %vm1514_vm4, %v18543_v8  ;;  %v18563_v8 = vsel %vm3966_vm9, %v7485_v5, %v7487_v55  ;;  %v13852_v5 = vpack.c.bf16 %v10902_v30, %v10901_v63  ;;  %v10903_v55 = vld [vmem:[%s19607_s18 + $0x120] sm:$0xff]  ;;  %v10940_v63 = vld [vmem:[%s19607_s18 + $0x148] sm:$0xff] }
 0x7ce   : > { %v13856_v3 = vpack.c.bf16 %v10904_v38, %v10903_v55  ;;  %v20172_v55 = vld [vmem:[#allocation54_spill] sm:$0xff] }
 0x7d0   : > { %13192 = vmatmul.mubr.msk.f32.gmra.mrb[102].mxu1 %vm1514_vm4, %v18550_v14 }
 0x7d1   : > { %13194 = vmatprep.mubr.msk.f32.mxu1 %vm1514_vm4, %v18556_v62 }
 0x7d4   : > { %13195 = vmatmul.mubr.msk.f32.gmra.mrb[104].mxu1 %vm1514_vm4, %v18563_v8 }
 0x7d5   : > { %13197 = vmatprep.mubr.msk.f32.mxu1 %vm1514_vm4, %v18569_v21 }
 0x7d8   : > { %13198 = vmatmul.mubr.msk.f32.gmra.mrb[106].mxu1 %vm1514_vm4, %v18574_v43 }
 0x7d9   : > { %13216 = vmatprep.mubr.msk.f32.mxu1 %vm1514_vm4, %v17773_v61  ;;  %v10905_v61 = vld [vmem:[%s19607_s18 + $0x130] sm:$0xff] }
 0x7dc   : > { %13217 = vmatmul.mubr.msk.f32.vlgmr.msra.gmra.mrb[76].mxu1 %vm1514_vm4, %v17781_v44  ;;  %v13860_v44 = vpack.c.bf16 %v10906_v15, %v10905_v61  ;;  %v6251_v61 = vmul.f32 %v20085_v31, %v20172_v55  ;;  %v20173_v15 = vld [vmem:[#allocation53_spill] sm:$0xff] }
 0x7dd   : > { %13219 = vmatprep.mubr.msk.f32.mxu1 %vm1514_vm4, %v17798_v6  ;;  %13851 = vmatpush3.bf16.msra.mxu1 %v18416_v27  ;;  %v10939_v27 = vld [vmem:[%s19607_s18 + $0x140] sm:$0xff] }
 0x7de   : > { %13853 = vmatprep.subr.bf16.mxu1 %v13852_v5  ;;  %v13864_v30 = vpack.c.bf16 %v10940_v63, %v10939_v27  ;;  %v6252_v63 = vmul.f32 %v20085_v31, %v20173_v15 }
 0x7e0   : > { %13220 = vmatmul.mubr.msk.f32.gmra.mrb[78].mxu1 %vm1514_vm4, %v17804_v41 }
 0x7e1   : > { %13222 = vmatprep.mubr.msk.f32.mxu1 %vm1514_vm4, %v17834_v40  ;;  %13855 = vmatpush3.bf16.msra.mxu1 %v13852_v5  ;;  %v6406_v5 = vpop.permute.xlu0 %6405 }
 0x7e2   : > { %13857 = vmatprep.subr.bf16.mxu1 %v13856_v3  ;;  %v6443_v38 = vmul.f32 %v6406_v5, %v20172_v55 }
 0x7e4   : > { %13223 = vmatmul.mubr.msk.f32.gmra.mrb[80].mxu1 %vm1514_vm4, %v17843_v26  ;;  %v6475_v27 = vadd.f32 %v6443_v38, %v6251_v61 }
 0x7e5   : > { %13225 = vmatprep.mubr.msk.f32.mxu1 %vm1514_vm4, %v17866_v53  ;;  %13859 = vmatpush3.bf16.msra.mxu1 %v13856_v3  ;;  %v6411_v3 = vpop.permute.xlu1 %6410 }
 0x7e6   : > { %13861 = vmatprep.subr.bf16.mxu1 %v13860_v44 }
 0x7e8   : > { %13226 = vmatmul.mubr.msk.f32.gmra.mrb[82].mxu1 %vm1514_vm4, %v17878_v48 }
 0x7e9   : > { %13228 = vmatprep.mubr.msk.f32.mxu1 %vm1514_vm4, %v17881_v36  ;;  %13863 = vmatpush3.bf16.msra.mxu1 %v13860_v44  ;;  %v6444_v44 = vmul.f32 %v6411_v3, %v20173_v15  ;;  %v14755_v3 = vld [vmem:[%s19606_s17 + $0x1] ss:$0 sm:$0xff] }
 0x7ea   : > { %13865 = vmatprep.subr.bf16.mxu1 %v13864_v30 }
 0x7eb   : > { %v6476_v5 = vadd.f32 %v6444_v44, %v6252_v63 }
 0x7ec   : > { %13229 = vmatmul.mubr.msk.f32.gmra.mrb[84].mxu1 %vm1514_vm4, %v17909_v28 }
 0x7ed   : > { %13231 = vmatprep.mubr.msk.f32.mxu1 %vm1514_vm4, %v17927_v29  ;;  %v6508_v38 = vmul.f32 %v6476_v5, %v20173_v15 }
 0x7ef   : > { %v6545_v31 = vmul.f32 %v14755_v3, %v6508_v38  ;;  %v10941_v38 = vld [vmem:[%s19607_s18 + $0x150] sm:$0xff] }
 0x7f0   : > { %13232 = vmatmul.mubr.msk.f32.gmra.mrb[86].mxu1 %vm1514_vm4, %v17932_v56 }
 0x7f1   : > { %13234 = vmatprep.mubr.msk.f32.mxu1 %vm1514_vm4, %v17963_v10 }
 0x7f4   : > { %13235 = vmatmul.mubr.msk.f32.gmra.mrb[88].mxu1 %vm1514_vm4, %v17979_v13 }
 0x7f5   : > { %13237 = vmatprep.mubr.msk.f32.mxu1 %vm1514_vm4, %v17982_v2 }
 0x7f8   : > { %13238 = vmatmul.mubr.msk.f32.gmra.mrb[90].mxu1 %vm1514_vm4, %v18017_v4 }
 0x7f9   : > { %13240 = vmatprep.mubr.msk.f32.mxu1 %vm1514_vm4, %v18041_v35 }
 0x7fc   : > { %13241 = vmatmul.mubr.msk.f32.gmra.mrb[92].mxu1 %vm1514_vm4, %v18058_v18  ;;  %v6507_v18 = vmul.f32 %v6475_v27, %v20172_v55  ;;  %v14756_v55 = vld [vmem:[%s19606_s17 + $0x2] ss:$0 sm:$0xff] }
 0x7fd   : > { %13243 = vmatprep.mubr.msk.f32.mxu1 %vm1514_vm4, %v18074_v0  ;;  %v6582_v44 = vadd.f32 %v14756_v55, %v6545_v31  ;;  %v10943_v31 = vld [vmem:[%s19607_s18 + $0x160] sm:$0xff] }
 0x7fe   : > { %v6544_v61 = vmul.f32 %v14755_v3, %v6507_v18  ;;  %v10942_v3 = vld [vmem:[%s19607_s18 + $0x158] sm:$0xff] }
 0x7ff   : > { %v6661_v27 = vrot.slane %v6582_v44, 7 }
 0x800   : > { %13244 = vmatmul.mubr.msk.f32.gmra.mrb[94].mxu1 %vm1514_vm4, %v18084_v32  ;;  %v6581_v15 = vadd.f32 %v14756_v55, %v6544_v61  ;;  %v13868_v61 = vpack.c.bf16 %v10942_v3, %v10941_v38  ;;  %v10944_v55 = vld [vmem:[%s19607_s18 + $0x168] sm:$0xff]  ;;  %v20175_v38 = vld [vmem:[#allocation88_spill] sm:$0xff]  ;;  %v20176_v3 = vld [vmem:[#allocation89_spill] sm:$0xff] }
 0x801   : > { %13246 = vmatprep.mubr.msk.f32.mxu1 %vm1514_vm4, %v18104_v12  ;;  %v13872_v44 = vpack.c.bf16 %v10944_v55, %v10943_v31  ;;  %v10980_v31 = vld [vmem:[%s19607_s18 + $0x188] sm:$0xff]  ;;  %v20177_v55 = vld [vmem:[#allocation91_spill] sm:$0xff] }
 0x802   : > { %v6660_v18 = vrot.slane %v6581_v15, 7  ;;  %v20174_v15 = vld [vmem:[#allocation87_spill] sm:$0xff] }
 0x804   : > { %13247 = vmatmul.mubr.msk.f32.gmra.mrb[96].mxu1 %vm1514_vm4, %v18124_v37  ;;  %v18678_v63 = vsel %vm3153_vm7, 0.0, %v6660_v18  ;;  %v18683_v5 = vsel %vm3153_vm7, %v6660_v18, %v6661_v27  ;;  %v10946_v18 = vld [vmem:[%s19607_s18 + $0x178] sm:$0xff] }
 0x805   : > { %13249 = vmatprep.mubr.msk.f32.mxu1 %vm1514_vm4, %v18155_v57 }
 0x808   : > { %13250 = vmatmul.mubr.msk.f32.gmra.mrb[98].mxu1 %vm1514_vm4, %v18161_v20 }
 0x809   : > { %13252 = vmatprep.mubr.msk.f32.mxu1 %vm1514_vm4, %v18176_v42 }
 0x80c   : > { %13253 = vmatmul.mubr.msk.f32.gmra.mrb[100].mxu1 %vm1514_vm4, %v18179_v16 }
 0x80d   : > { %13255 = vmatprep.mubr.msk.f32.mxu1 %vm1514_vm4, %v18194_v1 }
 0x810   : > { %13256 = vmatmul.mubr.msk.f32.gmra.mrb[102].mxu1 %vm1514_vm4, %v18199_v51 }
 0x811   : > { %13258 = vmatprep.mubr.msk.f32.mxu1 %vm1514_vm4, %v18215_v34 }
 0x814   : > { %13259 = vmatmul.mubr.msk.f32.gmra.mrb[104].mxu1 %vm1514_vm4, %v18224_v33 }
 0x815   : > { %13261 = vmatprep.mubr.msk.f32.mxu1 %vm1514_vm4, %v18678_v63 }
 0x818   : > { %13262 = vmatmul.mubr.msk.f32.gmra.mrb[106].mxu1 %vm1514_vm4, %v18683_v5 }
 0x819   : > { %13280 = vmatprep.mubr.msk.f32.mxu1 %vm1514_vm4, %v17808_v50  ;;  %v10945_v50 = vld [vmem:[%s19607_s18 + $0x170] sm:$0xff] }
 0x81c   : > { %13281 = vmatmul.mubr.msk.f32.vlgmr.msra.gmra.mrb[76].mxu1 %vm1514_vm4, %v20174_v15  ;;  %v13876_v15 = vpack.c.bf16 %v10946_v18, %v10945_v50  ;;  %v20179_v50 = vld [vmem:[#allocation56_spill] sm:$0xff]  ;;  %v20180_v18 = vld [vmem:[#allocation61_spill] sm:$0xff] }
 0x81d   : > { %13283 = vmatprep.mubr.msk.f32.mxu1 %vm1514_vm4, %v17847_v54  ;;  %13867 = vmatpush3.bf16.msra.mxu1 %v13864_v30  ;;  %v10979_v30 = vld [vmem:[%s19607_s18 + $0x180] sm:$0xff] }
 0x81e   : > { %13869 = vmatprep.subr.bf16.mxu1 %v13868_v61 }
 0x820   : > { %13284 = vmatmul.mubr.msk.f32.gmra.mrb[78].mxu1 %vm1514_vm4, %v20175_v38  ;;  %v20181_v38 = vld [vmem:[#allocation62_spill] sm:$0xff] }
 0x821   : > { %13286 = vmatprep.mubr.msk.f32.mxu1 %vm1514_vm4, %v20176_v3  ;;  %13871 = vmatpush3.bf16.msra.mxu1 %v13868_v61  ;;  %v13880_v3 = vpack.c.bf16 %v10980_v31, %v10979_v30  ;;  %v20178_v61 = vld [vmem:[#allocation96_spill] sm:$0xff]  ;;  %v20184_v30 = vld [vmem:[#allocation65_spill] sm:$0xff]  ;;  %v20185_v31 = vld [vmem:[#allocation67_spill] sm:$0xff] }
 0x822   : > { %13873 = vmatprep.subr.bf16.mxu1 %v13872_v44 }
 0x824   : > { %13287 = vmatmul.mubr.msk.f32.gmra.mrb[80].mxu1 %vm1514_vm4, %v17903_v17  ;;  %v20182_v17 = vld [vmem:[#allocation63_spill] sm:$0xff] }
 0x825   : > { %13289 = vmatprep.mubr.msk.f32.mxu1 %vm1514_vm4, %v20177_v55  ;;  %13875 = vmatpush3.bf16.msra.mxu1 %v13872_v44  ;;  %v20183_v44 = vld [vmem:[#allocation64_spill] sm:$0xff] }
 0x826   : > { %13877 = vmatprep.subr.bf16.mxu1 %v13876_v15 }
 0x828   : > { %13290 = vmatmul.mubr.msk.f32.gmra.mrb[82].mxu1 %vm1514_vm4, %v20178_v61 }
 0x829   : > { %13292 = vmatprep.mubr.msk.f32.mxu1 %vm1514_vm4, %v20179_v50  ;;  %13879 = vmatpush3.bf16.msra.mxu1 %v13876_v15  ;;  %v20186_v15 = vld [vmem:[#allocation68_spill] sm:$0xff]  ;;  %v20187_v50 = vld [vmem:[#allocation69_spill] sm:$0xff] }
 0x82a   : > { %13881 = vmatprep.subr.bf16.mxu1 %v13880_v3 }
 0x82c   : > { %13293 = vmatmul.mubr.msk.f32.gmra.mrb[84].mxu1 %vm1514_vm4, %v20180_v18 }
 0x82d   : > { %13295 = vmatprep.mubr.msk.f32.mxu1 %vm1514_vm4, %v20181_v38  ;;  %v20188_v38 = vld [vmem:[#allocation71_spill] sm:$0xff] }
 0x830   : > { %13296 = vmatmul.mubr.msk.f32.gmra.mrb[86].mxu1 %vm1514_vm4, %v20182_v17  ;;  %v20198_v17 = vld [vmem:[#allocation83_spill] sm:$0xff] }
 0x831   : > { %13298 = vmatprep.mubr.msk.f32.mxu1 %vm1514_vm4, %v20183_v44  ;;  %v20189_v44 = vld [vmem:[#allocation73_spill] sm:$0xff] }
 0x834   : > { %13299 = vmatmul.mubr.msk.f32.gmra.mrb[88].mxu1 %vm1514_vm4, %v20184_v30  ;;  %v20190_v30 = vld [vmem:[#allocation74_spill] sm:$0xff] }
 0x835   : > { %13301 = vmatprep.mubr.msk.f32.mxu1 %vm1514_vm4, %v20185_v31  ;;  %v20191_v31 = vld [vmem:[#allocation75_spill] sm:$0xff] }
 0x838   : > { %13302 = vmatmul.mubr.msk.f32.gmra.mrb[90].mxu1 %vm1514_vm4, %v20186_v15  ;;  %v20192_v15 = vld [vmem:[#allocation76_spill] sm:$0xff] }
 0x839   : > { %13304 = vmatprep.mubr.msk.f32.mxu1 %vm1514_vm4, %v20187_v50  ;;  %v20193_v50 = vld [vmem:[#allocation77_spill] sm:$0xff] }
 0x83c   : > { %13305 = vmatmul.mubr.msk.f32.gmra.mrb[92].mxu1 %vm1514_vm4, %v18119_v7  ;;  %v20194_v7 = vld [vmem:[#allocation78_spill] sm:$0xff] }
 0x83d   : > { %13307 = vmatprep.mubr.msk.f32.mxu1 %vm1514_vm4, %v20188_v38  ;;  %v20195_v38 = vld [vmem:[#allocation79_spill] sm:$0xff] }
 0x840   : > { %13308 = vmatmul.mubr.msk.f32.gmra.mrb[94].mxu1 %vm1514_vm4, %v18151_v47  ;;  %v20196_v47 = vld [vmem:[#allocation82_spill] sm:$0xff] }
 0x841   : > { %13310 = vmatprep.mubr.msk.f32.mxu1 %vm1514_vm4, %v20189_v44  ;;  %v8093_v44 = vrot.slane %v18683_v5, 1 }
 0x844   : > { %13311 = vmatmul.mubr.msk.f32.gmra.mrb[96].mxu1 %vm1514_vm4, %v20190_v30  ;;  %v18769_v30 = vsel %vm3153_vm7, %v6661_v27, 0.0  ;;  %v10981_v27 = vld [vmem:[%s19607_s18 + $0x190] sm:$0xff] }
 0x845   : > { %13313 = vmatprep.mubr.msk.f32.mxu1 %vm1514_vm4, %v20191_v31  ;;  %v20197_v31 = vld [vmem:[#allocation80_spill] sm:$0xff] }
 0x848   : > { %13314 = vmatmul.mubr.msk.f32.gmra.mrb[98].mxu1 %vm1514_vm4, %v20192_v15  ;;  %v8092_v15 = vrot.slane %v18678_v63, 1 }
 0x849   : > { %13316 = vmatprep.mubr.msk.f32.mxu1 %vm1514_vm4, %v20193_v50  ;;  %v8095_v50 = vrot.slane %v18769_v30, 1 }
 0x84c   : > { %13317 = vmatmul.mubr.msk.f32.gmra.mrb[100].mxu1 %vm1514_vm4, %v20194_v7 }
 0x84d   : > { %13319 = vmatprep.mubr.msk.f32.mxu1 %vm1514_vm4, %v20195_v38  ;;  %v18778_v38 = vsel %vm3305_vm8, %v8092_v15, %v8093_v44 }
 0x84e   : > { %20199 = vst [vmem:[#allocation23_spill] sm:$0xff] %v18778_v38 }
 0x850   : > { %13320 = vmatmul.mubr.msk.f32.gmra.mrb[102].mxu1 %vm1514_vm4, %v20196_v47  ;;  %v18783_v47 = vsel %vm3305_vm8, %v8093_v44, %v8095_v50  ;;  %v10983_v50 = vld [vmem:[%s19607_s18 + $0x1a0] sm:$0xff]  ;;  %v10984_v44 = vld [vmem:[%s19607_s18 + $0x1a8] sm:$0xff] }
 0x851   : > { %13322 = vmatprep.mubr.msk.f32.mxu1 %vm1514_vm4, %v20197_v31  ;;  %20200 = vst [vmem:[#allocation26_spill] sm:$0xff] %v18783_v47  ;;  %v10982_v31 = vld [vmem:[%s19607_s18 + $0x198] sm:$0xff] }
 0x852   : > { %v13884_v15 = vpack.c.bf16 %v10982_v31, %v10981_v27  ;;  %v10986_v31 = vld [vmem:[%s19607_s18 + $0x1b8] sm:$0xff]  ;;  %v11018_v27 = vld [vmem:[%s19607_s18 + $0x1c8] sm:$0xff] }
 0x854   : > { %13323 = vmatmul.mubr.msk.f32.gmra.mrb[104].mxu1 %vm1514_vm4, %v20198_v17  ;;  %v20202_v17 = vld [vmem:[#allocation58_spill] sm:$0xff] }
 0x855   : > { %13325 = vmatprep.mubr.msk.f32.mxu1 %vm1514_vm4, %v18778_v38  ;;  %v20201_v38 = vld [vmem:[#allocation57_spill] sm:$0xff] }
 0x858   : > { %13326 = vmatmul.mubr.msk.f32.gmra.mrb[106].mxu1 %vm1514_vm4, %v18783_v47  ;;  %v13888_v47 = vpack.c.bf16 %v10984_v44, %v10983_v50  ;;  %v20205_v44 = vld [vmem:[#allocation94_spill] sm:$0xff] }
 0x859   : > { %13344 = vmatprep.mubr.msk.f32.mxu1 %vm1514_vm4, %v18372_v60  ;;  %v10985_v60 = vld [vmem:[%s19607_s18 + $0x1b0] sm:$0xff] }
 0x85c   : > { %13345 = vmatmul.mubr.msk.f32.vlgmr.msra.gmra.mrb[76].mxu1 %vm1514_vm4, %v20201_v38  ;;  %v13892_v38 = vpack.c.bf16 %v10986_v31, %v10985_v60  ;;  %v20206_v60 = vld [vmem:[#allocation95_spill] sm:$0xff]  ;;  %v20207_v31 = vld [vmem:[#allocation97_spill] sm:$0xff] }
 0x85d   : > { %13347 = vmatprep.mubr.msk.f32.mxu1 %vm1514_vm4, %v20202_v17  ;;  %13883 = vmatpush3.bf16.msra.mxu1 %v13880_v3  ;;  %v11017_v3 = vld [vmem:[%s19607_s18 + $0x1c0] sm:$0xff] }
 0x85e   : > { %13885 = vmatprep.subr.bf16.mxu1 %v13884_v15  ;;  %v13896_v50 = vpack.c.bf16 %v11018_v27, %v11017_v3  ;;  %v20209_v3 = vld [vmem:[#allocation99_spill] sm:$0xff] }
 0x85f   : > { %v20210_v27 = vld [vmem:[#allocation59_spill] sm:$0xff] }
 0x860   : > { %13348 = vmatmul.mubr.msk.f32.gmra.mrb[78].mxu1 %vm1514_vm4, %v18398_v39 }
 0x861   : > { %13350 = vmatprep.mubr.msk.f32.mxu1 %vm1514_vm4, %v18410_v59  ;;  %13887 = vmatpush3.bf16.msra.mxu1 %v13884_v15  ;;  %v20203_v15 = vld [vmem:[#allocation92_spill] sm:$0xff] }
 0x862   : > { %13889 = vmatprep.subr.bf16.mxu1 %v13888_v47 }
 0x864   : > { %13351 = vmatmul.mubr.msk.f32.gmra.mrb[80].mxu1 %vm1514_vm4, %v18419_v25 }
 0x865   : > { %13353 = vmatprep.mubr.msk.f32.mxu1 %vm1514_vm4, %v18425_v46  ;;  %13891 = vmatpush3.bf16.msra.mxu1 %v13888_v47  ;;  %v20204_v47 = vld [vmem:[#allocation93_spill] sm:$0xff] }
 0x866   : > { %13893 = vmatprep.subr.bf16.mxu1 %v13892_v38 }
 0x868   : > { %13354 = vmatmul.mubr.msk.f32.gmra.mrb[82].mxu1 %vm1514_vm4, %v18433_v19 }
 0x869   : > { %13356 = vmatprep.mubr.msk.f32.mxu1 %vm1514_vm4, %v18439_v45  ;;  %13895 = vmatpush3.bf16.msra.mxu1 %v13892_v38  ;;  %v20208_v38 = vld [vmem:[#allocation98_spill] sm:$0xff] }
 0x86a   : > { %13897 = vmatprep.subr.bf16.mxu1 %v13896_v50 }
 0x86c   : > { %13357 = vmatmul.mubr.msk.f32.gmra.mrb[84].mxu1 %vm1514_vm4, %v18446_v9 }
 0x86d   : > { %13359 = vmatprep.mubr.msk.f32.mxu1 %vm1514_vm4, %v20203_v15 }
 0x870   : > { %13360 = vmatmul.mubr.msk.f32.gmra.mrb[86].mxu1 %vm1514_vm4, %v18459_v52 }
 0x871   : > { %13362 = vmatprep.mubr.msk.f32.mxu1 %vm1514_vm4, %v20204_v47 }
 0x874   : > { %13363 = vmatmul.mubr.msk.f32.gmra.mrb[88].mxu1 %vm1514_vm4, %v18472_v11 }
 0x875   : > { %13365 = vmatprep.mubr.msk.f32.mxu1 %vm1514_vm4, %v20205_v44 }
 0x878   : > { %13366 = vmatmul.mubr.msk.f32.gmra.mrb[90].mxu1 %vm1514_vm4, %v18485_v49 }
 0x879   : > { %13368 = vmatprep.mubr.msk.f32.mxu1 %vm1514_vm4, %v20206_v60 }
 0x87c   : > { %13369 = vmatmul.mubr.msk.f32.gmra.mrb[92].mxu1 %vm1514_vm4, %v18498_v22 }
 0x87d   : > { %13371 = vmatprep.mubr.msk.f32.mxu1 %vm1514_vm4, %v20207_v31 }
 0x880   : > { %13372 = vmatmul.mubr.msk.f32.gmra.mrb[94].mxu1 %vm1514_vm4, %v18511_v24 }
 0x881   : > { %13374 = vmatprep.mubr.msk.f32.mxu1 %vm1514_vm4, %v20208_v38  ;;  %v8368_v38 = vrot.slane %v18683_v5, 2 }
 0x884   : > { %13375 = vmatmul.mubr.msk.f32.gmra.mrb[96].mxu1 %vm1514_vm4, %v18524_v23 }
 0x885   : > { %13377 = vmatprep.mubr.msk.f32.mxu1 %vm1514_vm4, %v20209_v3  ;;  %v8367_v3 = vrot.slane %v18678_v63, 2 }
 0x888   : > { %13378 = vmatmul.mubr.msk.f32.gmra.mrb[98].mxu1 %vm1514_vm4, %v18537_v58  ;;  %v8370_v58 = vrot.slane %v18769_v30, 2  ;;  %v11020_v30 = vld [vmem:[%s19607_s18 + $0x1d8] sm:$0xff] }
 0x889   : > { %13380 = vmatprep.mubr.msk.f32.mxu1 %vm1514_vm4, %v20210_v27 }
 0x88c   : > { %13381 = vmatmul.mubr.msk.f32.gmra.mrb[100].mxu1 %vm1514_vm4, %v18550_v14  ;;  %v18875_v14 = vsel %vm3966_vm9, %v8367_v3, %v8368_v38 }
 0x88d   : > { %13383 = vmatprep.mubr.msk.f32.mxu1 %vm1514_vm4, %v18556_v62  ;;  %v18880_v62 = vsel %vm3966_vm9, %v8368_v38, %v8370_v58  ;;  %v11021_v58 = vld [vmem:[%s19607_s18 + $0x1e0] sm:$0xff]  ;;  %v11022_v38 = vld [vmem:[%s19607_s18 + $0x1e8] sm:$0xff] }
 0x88e   : > { %20211 = vst [vmem:[#allocation28_spill] sm:$0xff] %v18880_v62 }
 0x890   : > { %13384 = vmatmul.mubr.msk.f32.gmra.mrb[102].mxu1 %vm1514_vm4, %v18563_v8 }
 0x891   : > { %13386 = vmatprep.mubr.msk.f32.mxu1 %vm1514_vm4, %v18569_v21  ;;  %v11019_v21 = vld [vmem:[%s19607_s18 + $0x1d0] sm:$0xff] }
 0x892   : > { %v13900_v3 = vpack.c.bf16 %v11020_v30, %v11019_v21  ;;  %v11024_v21 = vld [vmem:[%s19607_s18 + $0x1f8] sm:$0xff]  ;;  %v20233_v30 = vld [vmem:[#allocation79_spill] sm:$0xff] }
 0x894   : > { %13387 = vmatmul.mubr.msk.f32.gmra.mrb[104].mxu1 %vm1514_vm4, %v18574_v43 }
 0x895   : > { %13389 = vmatprep.mubr.msk.f32.mxu1 %vm1514_vm4, %v18875_v14 }
 0x898   : > { %13390 = vmatmul.mubr.msk.f32.gmra.mrb[106].mxu1 %vm1514_vm4, %v18880_v62  ;;  %v13904_v62 = vpack.c.bf16 %v11022_v38, %v11021_v58  ;;  %v20235_v58 = vld [vmem:[#allocation80_spill] sm:$0xff]  ;;  %v20236_v38 = vld [vmem:[#allocation83_spill] sm:$0xff] }
 0x899   : > { %13408 = vmatprep.mubr.msk.f32.mxu1 %vm1514_vm4, %v17798_v6  ;;  %v11023_v6 = vld [vmem:[%s19607_s18 + $0x1f0] sm:$0xff] }
 0x89c   : > { %13409 = vmatmul.mubr.msk.f32.vlgmr.msra.gmra.mrb[76].mxu1 %vm1514_vm4, %v17804_v41  ;;  %v13908_v41 = vpack.c.bf16 %v11024_v21, %v11023_v6  ;;  %v20237_v6 = vld [vmem:[#allocation23_spill] sm:$0xff]  ;;  %v20238_v21 = vld [vmem:[#allocation26_spill] sm:$0xff] }
 0x89d   : > { %13411 = vmatprep.mubr.msk.f32.mxu1 %vm1514_vm4, %v17834_v40  ;;  %13899 = vmatpush3.bf16.msra.mxu1 %v13896_v50  ;;  %v11057_v40 = vld [vmem:[%s19607_s18 + $0x200] sm:$0xff]  ;;  %v11058_v50 = vld [vmem:[%s19607_s18 + $0x208] sm:$0xff] }
 0x89e   : > { %13901 = vmatprep.subr.bf16.mxu1 %v13900_v3 }
 0x8a0   : > { %13412 = vmatmul.mubr.msk.f32.gmra.mrb[78].mxu1 %vm1514_vm4, %v17843_v26  ;;  %v13912_v26 = vpack.c.bf16 %v11058_v50, %v11057_v40 }
 0x8a1   : > { %13414 = vmatprep.mubr.msk.f32.mxu1 %vm1514_vm4, %v17866_v53  ;;  %13903 = vmatpush3.bf16.msra.mxu1 %v13900_v3  ;;  %v20212_v53 = vld [vmem:[#allocation66_spill] sm:$0xff] }
 0x8a2   : > { %13905 = vmatprep.subr.bf16.mxu1 %v13904_v62  ;;  %v20234_v3 = vld [vmem:[#allocation82_spill] sm:$0xff] }
 0x8a4   : > { %13415 = vmatmul.mubr.msk.f32.gmra.mrb[80].mxu1 %vm1514_vm4, %v17878_v48  ;;  %v20213_v48 = vmov 0.0  }
 0x8a5   : > { %13417 = vmatprep.mubr.msk.f32.mxu1 %vm1514_vm4, %v17881_v36  ;;  %13907 = vmatpush3.bf16.msra.mxu1 %v13904_v62  ;;  %v11059_v36 = vld [vmem:[%s19607_s18 + $0x210] sm:$0xff]  ;;  %v20227_v62 = vld [vmem:[#allocation72_spill] sm:$0xff] }
 0x8a6   : > { %13909 = vmatprep.subr.bf16.mxu1 %v13908_v41 }
 0x8a8   : > { %13418 = vmatmul.mubr.msk.f32.gmra.mrb[82].mxu1 %vm1514_vm4, %v17909_v28  ;;  %v11060_v28 = vld [vmem:[%s19607_s18 + $0x218] sm:$0xff] }
 0x8a9   : > { %13420 = vmatprep.mubr.msk.f32.mxu1 %vm1514_vm4, %v17927_v29  ;;  %13911 = vmatpush3.bf16.msra.mxu1 %v13908_v41  ;;  %v13916_v29 = vpack.c.bf16 %v11060_v28, %v11059_v36  ;;  %v20239_v41 = vld [vmem:[#allocation55_spill] sm:$0xff] }
 0x8aa   : > { %13913 = vmatprep.subr.bf16.mxu1 %v13912_v26 }
 0x8ac   : > { %13421 = vmatmul.mubr.msk.f32.gmra.mrb[84].mxu1 %vm1514_vm4, %v17932_v56  ;;  %v11061_v56 = vld [vmem:[%s19607_s18 + $0x220] sm:$0xff] }
 0x8ad   : > { %13423 = vmatprep.mubr.msk.f32.mxu1 %vm1514_vm4, %v17963_v10  ;;  %v20214_v10 = vld [vmem:[#allocation88_spill] sm:$0xff] }
 0x8b0   : > { %13424 = vmatmul.mubr.msk.f32.gmra.mrb[86].mxu1 %vm1514_vm4, %v17979_v13  ;;  %v11062_v13 = vld [vmem:[%s19607_s18 + $0x228] sm:$0xff] }
 0x8b1   : > { %13426 = vmatprep.mubr.msk.f32.mxu1 %vm1514_vm4, %v17982_v2  ;;  %v20215_v2 = vld [vmem:[#allocation89_spill] sm:$0xff] }
 0x8b4   : > { %13427 = vmatmul.mubr.msk.f32.gmra.mrb[88].mxu1 %vm1514_vm4, %v18017_v4  ;;  %v13920_v4 = vpack.c.bf16 %v11062_v13, %v11061_v56 }
 0x8b5   : > { %13429 = vmatprep.mubr.msk.f32.mxu1 %vm1514_vm4, %v18041_v35  ;;  %v11064_v35 = vld [vmem:[%s19607_s18 + $0x238] sm:$0xff] }
 0x8b8   : > { %13430 = vmatmul.mubr.msk.f32.gmra.mrb[90].mxu1 %vm1514_vm4, %v20212_v53 }
 0x8b9   : > { %13432 = vmatprep.mubr.msk.f32.mxu1 %vm1514_vm4, %v18074_v0  ;;  %v20216_v0 = vld [vmem:[#allocation90_spill] sm:$0xff] }
 0x8bc   : > { %13433 = vmatmul.mubr.msk.f32.gmra.mrb[92].mxu1 %vm1514_vm4, %v18084_v32 }
 0x8bd   : > { %13435 = vmatprep.mubr.msk.f32.mxu1 %vm1514_vm4, %v18104_v12  ;;  %v20217_v12 = vld [vmem:[#allocation56_spill] sm:$0xff] }
 0x8c0   : > { %13436 = vmatmul.mubr.msk.f32.gmra.mrb[94].mxu1 %vm1514_vm4, %v18124_v37  ;;  %v20218_v37 = vld [vmem:[#allocation62_spill] sm:$0xff] }
 0x8c1   : > { %13438 = vmatprep.mubr.msk.f32.mxu1 %vm1514_vm4, %v18155_v57  ;;  %v20219_v57 = vld [vmem:[#allocation63_spill] sm:$0xff] }
 0x8c4   : > { %13439 = vmatmul.mubr.msk.f32.gmra.mrb[96].mxu1 %vm1514_vm4, %v18161_v20  ;;  %v20220_v20 = vld [vmem:[#allocation64_spill] sm:$0xff] }
 0x8c5   : > { %13441 = vmatprep.mubr.msk.f32.mxu1 %vm1514_vm4, %v18176_v42  ;;  %v20221_v42 = vld [vmem:[#allocation65_spill] sm:$0xff] }
 0x8c8   : > { %13442 = vmatmul.mubr.msk.f32.gmra.mrb[98].mxu1 %vm1514_vm4, %v18179_v16  ;;  %v20222_v16 = vld [vmem:[#allocation67_spill] sm:$0xff] }
 0x8c9   : > { %13444 = vmatprep.mubr.msk.f32.mxu1 %vm1514_vm4, %v18194_v1  ;;  %v20223_v1 = vld [vmem:[#allocation68_spill] sm:$0xff] }
 0x8cc   : > { %13445 = vmatmul.mubr.msk.f32.gmra.mrb[100].mxu1 %vm1514_vm4, %v18199_v51  ;;  %v20224_v51 = vld [vmem:[#allocation69_spill] sm:$0xff] }
 0x8cd   : > { %13447 = vmatprep.mubr.msk.f32.mxu1 %vm1514_vm4, %v18215_v34  ;;  %v20225_v34 = vld [vmem:[#allocation70_spill] sm:$0xff] }
 0x8d0   : > { %13448 = vmatmul.mubr.msk.f32.gmra.mrb[102].mxu1 %vm1514_vm4, %v18224_v33  ;;  %v20226_v33 = vld [vmem:[#allocation71_spill] sm:$0xff] }
 0x8d1   : > { %13450 = vmatprep.mubr.msk.f32.mxu1 %vm1514_vm4, %v18678_v63  ;;  %v20228_v63 = vld [vmem:[#allocation73_spill] sm:$0xff] }
 0x8d4   : > { %13451 = vmatmul.mubr.msk.f32.gmra.mrb[104].mxu1 %vm1514_vm4, %v18683_v5  ;;  %v20229_v5 = vld [vmem:[#allocation74_spill] sm:$0xff] }
 0x8d5   : > { %13453 = vmatprep.mubr.f32.mxu1 %v20213_v48 }
 0x8d8   : > { %13454 = vmatmul.mubr.f32.gmra.mrb[106].mxu1 %v20213_v48 }
 0x8d9   : > { %13472 = vmatprep.mubr.msk.f32.mxu1 %vm1514_vm4, %v17847_v54  ;;  %v11063_v54 = vld [vmem:[%s19607_s18 + $0x230] sm:$0xff] }
 0x8da   : > { %v13924_v32 = vpack.c.bf16 %v11064_v35, %v11063_v54 }
 0x8dc   : > { %13473 = vmatmul.mubr.msk.f32.vlgmr.msra.gmra.mrb[76].mxu1 %vm1514_vm4, %v20214_v10 }
 0x8dd   : > { %13475 = vmatprep.mubr.msk.f32.mxu1 %vm1514_vm4, %v20215_v2  ;;  %13915 = vmatpush3.bf16.msra.mxu1 %v13912_v26 }
 0x8de   : > { %13917 = vmatprep.subr.bf16.mxu1 %v13916_v29 }
 0x8e0   : > { %13476 = vmatmul.mubr.msk.f32.gmra.mrb[78].mxu1 %vm1514_vm4, %v20216_v0 }
 0x8e1   : > { %13478 = vmatprep.mubr.msk.f32.mxu1 %vm1514_vm4, %v20177_v55  ;;  %13919 = vmatpush3.bf16.msra.mxu1 %v13916_v29  ;;  %v20230_v55 = vld [vmem:[#allocation75_spill] sm:$0xff] }
 0x8e2   : > { %13921 = vmatprep.subr.bf16.mxu1 %v13920_v4 }
 0x8e4   : > { %13479 = vmatmul.mubr.msk.f32.gmra.mrb[80].mxu1 %vm1514_vm4, %v20178_v61  ;;  %v20231_v61 = vld [vmem:[#allocation76_spill] sm:$0xff] }
 0x8e5   : > { %13481 = vmatprep.mubr.msk.f32.mxu1 %vm1514_vm4, %v20217_v12  ;;  %13923 = vmatpush3.bf16.msra.mxu1 %v13920_v4 }
 0x8e6   : > { %13925 = vmatprep.subr.bf16.mxu1 %v13924_v32 }
 0x8e8   : > { %13482 = vmatmul.mubr.msk.f32.gmra.mrb[82].mxu1 %vm1514_vm4, %v20180_v18  ;;  %v20232_v18 = vld [vmem:[#allocation77_spill] sm:$0xff] }
 0x8e9   : > { %13484 = vmatprep.mubr.msk.f32.mxu1 %vm1514_vm4, %v20218_v37  ;;  %13927 = vmatpush3.bf16.msra.mxu1 %v13924_v32 }
 0x8ec   : > { %13485 = vmatmul.mubr.msk.f32.gmra.mrb[84].mxu1 %vm1514_vm4, %v20219_v57 }
 0x8ed   : > { %13487 = vmatprep.mubr.msk.f32.mxu1 %vm1514_vm4, %v20220_v20 }
 0x8f0   : > { %13488 = vmatmul.mubr.msk.f32.gmra.mrb[86].mxu1 %vm1514_vm4, %v20221_v42 }
 0x8f1   : > { %13490 = vmatprep.mubr.msk.f32.mxu1 %vm1514_vm4, %v20222_v16 }
 0x8f4   : > { %13491 = vmatmul.mubr.msk.f32.gmra.mrb[88].mxu1 %vm1514_vm4, %v20223_v1 }
 0x8f5   : > { %13493 = vmatprep.mubr.msk.f32.mxu1 %vm1514_vm4, %v20224_v51 }
 0x8f8   : > { %13494 = vmatmul.mubr.msk.f32.gmra.mrb[90].mxu1 %vm1514_vm4, %v20225_v34 }
 0x8f9   : > { %13496 = vmatprep.mubr.msk.f32.mxu1 %vm1514_vm4, %v20226_v33 }
 0x8fc   : > { %13497 = vmatmul.mubr.msk.f32.gmra.mrb[92].mxu1 %vm1514_vm4, %v20227_v62 }
 0x8fd   : > { %13499 = vmatprep.mubr.msk.f32.mxu1 %vm1514_vm4, %v20228_v63 }
 0x900   : > { %13500 = vmatmul.mubr.msk.f32.gmra.mrb[94].mxu1 %vm1514_vm4, %v20229_v5 }
 0x901   : > { %13502 = vmatprep.mubr.msk.f32.mxu1 %vm1514_vm4, %v20230_v55 }
 0x904   : > { %13503 = vmatmul.mubr.msk.f32.gmra.mrb[96].mxu1 %vm1514_vm4, %v20231_v61 }
 0x905   : > { %13505 = vmatprep.mubr.msk.f32.mxu1 %vm1514_vm4, %v20232_v18 }
 0x908   : > { %13506 = vmatmul.mubr.msk.f32.gmra.mrb[98].mxu1 %vm1514_vm4, %v20194_v7  ;;  %v20241_v7 = vld [vmem:[#allocation99_spill] sm:$0xff] }
 0x909   : > { %13508 = vmatprep.mubr.msk.f32.mxu1 %vm1514_vm4, %v20233_v30 }
 0x90c   : > { %13509 = vmatmul.mubr.msk.f32.gmra.mrb[100].mxu1 %vm1514_vm4, %v20234_v3 }
 0x90d   : > { %13511 = vmatprep.mubr.msk.f32.mxu1 %vm1514_vm4, %v20235_v58 }
 0x910   : > { %13512 = vmatmul.mubr.msk.f32.gmra.mrb[102].mxu1 %vm1514_vm4, %v20236_v38 }
 0x911   : > { %13514 = vmatprep.mubr.msk.f32.mxu1 %vm1514_vm4, %v20237_v6 }
 0x914   : > { %13515 = vmatmul.mubr.msk.f32.gmra.mrb[104].mxu1 %vm1514_vm4, %v20238_v21 }
 0x915   : > { %13517 = vmatprep.mubr.msk.f32.mxu1 %vm1514_vm4, %v20239_v41 }
 0x918   : > { %13518 = vmatmul.mubr.msk.f32.gmra.mrb[106].mxu1 %vm1514_vm4, %v20239_v41 }
 0x919   : > { %13536 = vmatprep.mubr.msk.f32.mxu1 %vm1514_vm4, %v20202_v17  ;;  %v20240_v17 = vld [vmem:[#allocation98_spill] sm:$0xff] }
 0x91c   : > { %13537 = vmatmul.mubr.msk.f32.vlgmr.msra.gmra.mrb[76].mxu1 %vm1514_vm4, %v18398_v39  ;;  %v20242_v39 = vld [vmem:[#allocation100_spill] sm:$0xff] }
 0x91d   : > { %13539 = vmatprep.mubr.msk.f32.mxu1 %vm1514_vm4, %v18410_v59  ;;  %v20243_v59 = vld [vmem:[#allocation24_spill] sm:$0xff] }
 0x920   : > { %13540 = vmatmul.mubr.msk.f32.gmra.mrb[78].mxu1 %vm1514_vm4, %v18419_v25  ;;  %v20244_v25 = vld [vmem:[#allocation101_spill] sm:$0xff] }
 0x921   : > { %13542 = vmatprep.mubr.msk.f32.mxu1 %vm1514_vm4, %v18425_v46  ;;  %v20245_v46 = vld [vmem:[#allocation25_spill] sm:$0xff] }
 0x924   : > { %13543 = vmatmul.mubr.msk.f32.gmra.mrb[80].mxu1 %vm1514_vm4, %v18433_v19  ;;  %v20246_v19 = vld [vmem:[#allocation28_spill] sm:$0xff] }
 0x925   : > { %13545 = vmatprep.mubr.msk.f32.mxu1 %vm1514_vm4, %v18439_v45  ;;  %v20247_v45 = vld [vmem:[#allocation84_spill] sm:$0xff] }
 0x928   : > { %13546 = vmatmul.mubr.msk.f32.gmra.mrb[82].mxu1 %vm1514_vm4, %v18446_v9  ;;  %v9611_v9 = vld [vmem:[%s19608_s19 + $0x8] sm:$0xff] }
 0x929   : > { %13548 = vmatprep.mubr.msk.f32.mxu1 %vm1514_vm4, %v20203_v15  ;;  %9690 = vmatprep.mubr.f32.mxu0 %v9611_v9 }
 0x92c   : > { %13549 = vmatmul.mubr.msk.f32.gmra.mrb[84].mxu1 %vm1514_vm4, %v18459_v52  ;;  %v19125_v52 = vld [vmem:[%s19606_s17 + $0x3] ss:$0 sm:$0xff] }
 0x92d   : > { %13551 = vmatprep.mubr.msk.f32.mxu1 %vm1514_vm4, %v20204_v47 }
 0x930   : > { %13552 = vmatmul.mubr.msk.f32.gmra.mrb[86].mxu1 %vm1514_vm4, %v18472_v11  ;;  %v9740_v11 = vld [vmem:[%s19609_s20 + $0x8] sm:$0xff] }
 0x931   : > { %13554 = vmatprep.mubr.msk.f32.mxu1 %vm1514_vm4, %v20205_v44 }
 0x934   : > { %13555 = vmatmul.mubr.msk.f32.gmra.mrb[88].mxu1 %vm1514_vm4, %v18485_v49 }
 0x935   : > { %13557 = vmatprep.mubr.msk.f32.mxu1 %vm1514_vm4, %v20206_v60 }
 0x938   : > { %13558 = vmatmul.mubr.msk.f32.gmra.mrb[90].mxu1 %vm1514_vm4, %v18498_v22  ;;  %v19133_v22 = vld [vmem:[%s19606_s17 + $0x4] ss:$0 sm:$0xff] }
 0x939   : > { %13560 = vmatprep.mubr.msk.f32.mxu1 %vm1514_vm4, %v20207_v31 }
 0x93c   : > { %13561 = vmatmul.mubr.msk.f32.gmra.mrb[92].mxu1 %vm1514_vm4, %v18511_v24 }
 0x93d   : > { %13563 = vmatprep.mubr.msk.f32.mxu1 %vm1514_vm4, %v20240_v17 }
 0x940   : > { %13564 = vmatmul.mubr.msk.f32.gmra.mrb[94].mxu1 %vm1514_vm4, %v18524_v23 }
 0x941   : > { %13566 = vmatprep.mubr.msk.f32.mxu1 %vm1514_vm4, %v20241_v7 }
 0x944   : > { %13567 = vmatmul.mubr.msk.f32.gmra.mrb[96].mxu1 %vm1514_vm4, %v20242_v39 }
 0x945   : > { %13569 = vmatprep.mubr.msk.f32.mxu1 %vm1514_vm4, %v20210_v27 }
 0x948   : > { %13570 = vmatmul.mubr.msk.f32.gmra.mrb[98].mxu1 %vm1514_vm4, %v20243_v59 }
 0x949   : > { %13572 = vmatprep.mubr.msk.f32.mxu1 %vm1514_vm4, %v20244_v25 }
 0x94c   : > { %13573 = vmatmul.mubr.msk.f32.gmra.mrb[100].mxu1 %vm1514_vm4, %v18563_v8 }
 0x94d   : > { %13575 = vmatprep.mubr.msk.f32.mxu1 %vm1514_vm4, %v20245_v46 }
 0x950   : > { %13576 = vmatmul.mubr.msk.f32.gmra.mrb[102].mxu1 %vm1514_vm4, %v18574_v43 }
 0x951   : > { %13578 = vmatprep.mubr.msk.f32.mxu1 %vm1514_vm4, %v18875_v14 }
 0x954   : > { %13579 = vmatmul.mubr.msk.f32.gmra.mrb[104].mxu1 %vm1514_vm4, %v20246_v19 }
 0x955   : > { %13581 = vmatprep.mubr.msk.f32.mxu1 %vm1514_vm4, %v20247_v45 }
 0x958   : > { %13582 = vmatmul.mubr.msk.f32.gmra.mrb[106].mxu1 %vm1514_vm4, %v20247_v45 }
 0x959   : > { %9807 = vmatprep.mubr.f32.mxu1 %v9740_v11 }
 0x9ef   : > { %v13538_v49 = vpop.f32.mrb[76].mxu1 }
 0x9f0   : > { %v9446_v24 = vmul.f32 %v13538_v49, %v19125_v52  ;;  %v9249_v23 = vpop.f32.mrb[77].mxu1 }
 0x9f1   : > { %v9445_v14 = vmul.f32 %v19125_v52, %v9249_v23 }
 0x9f2   : > { %v9483_v8 = vadd.f32 %v19133_v22, %v9446_v24 }
 0x9f3   : > { %v9482_v43 = vadd.f32 %v19133_v22, %v9445_v14  ;;  %v13541_v15 = vpop.f32.mrb[78].mxu1 }
 0x9f4   : > { %v9515_v47 = vmax.f32 %v9483_v8, 0.0  ;;  %v9448_v44 = vmul.f32 %v13541_v15, %v19125_v52  ;;  %v9259_v60 = vpop.f32.mrb[79].mxu1 }
 0x9f5   : > { %v9514_v31 = vmax.f32 %v9482_v43, 0.0  ;;  %v9447_v27 = vmul.f32 %v19125_v52, %v9259_v60 }
 0x9f6   : > { %v9547_v40 = vmin.f32 %v9515_v47, 6.0  ;;  %v9485_v50 = vadd.f32 %v19133_v22, %v9448_v44 }
 0x9f7   : > { %v9546_v26 = vmin.f32 %v9514_v31, 6.0  ;;  %v9484_v53 = vadd.f32 %v19133_v22, %v9447_v27  ;;  %v13544_v48 = vpop.f32.mrb[80].mxu1 }
 0x9f8   : > { %9579 = vst.msk [vmem:[%s19144_s3 + $0x8] sm:$0xff] %vm1514_vm4, %v9547_v40  ;;  %v9517_v36 = vmax.f32 %v9485_v50, 0.0  ;;  %v9450_v28 = vmul.f32 %v13544_v48, %v19125_v52  ;;  %v9269_v29 = vpop.f32.mrb[81].mxu1 }
 0x9f9   : > { %9578 = vst.msk [vmem:[%s19144_s3] sm:$0xff] %vm1514_vm4, %v9546_v26  ;;  %v19151_v56 = vpack.c.bf16 %v9547_v40, %v9546_v26  ;;  %v9516_v13 = vmax.f32 %v9484_v53, 0.0  ;;  %v9449_v10 = vmul.f32 %v19125_v52, %v9269_v29 }
 0x9fa   : > { %v9549_v2 = vmin.f32 %v9517_v36, 6.0  ;;  %v9487_v4 = vadd.f32 %v19133_v22, %v9450_v28 }
 0x9fb   : > { %v9548_v54 = vmin.f32 %v9516_v13, 6.0  ;;  %v9486_v35 = vadd.f32 %v19133_v22, %v9449_v10  ;;  %v13547_v0 = vpop.f32.mrb[82].mxu1 }
 0x9fc   : > { %9581 = vst.msk [vmem:[%s19144_s3 + $0x18] sm:$0xff] %vm1514_vm4, %v9549_v2  ;;  %v9519_v32 = vmax.f32 %v9487_v4, 0.0  ;;  %v9452_v12 = vmul.f32 %v13547_v0, %v19125_v52  ;;  %v9279_v37 = vpop.f32.mrb[83].mxu1 }
 0x9fd   : > { %9580 = vst.msk [vmem:[%s19144_s3 + $0x10] sm:$0xff] %vm1514_vm4, %v9548_v54  ;;  %v19161_v57 = vpack.c.bf16 %v9549_v2, %v9548_v54  ;;  %v9518_v20 = vmax.f32 %v9486_v35, 0.0  ;;  %v9451_v42 = vmul.f32 %v19125_v52, %v9279_v37 }
 0x9fe   : > { %v9551_v16 = vmin.f32 %v9519_v32, 6.0  ;;  %v9489_v1 = vadd.f32 %v19133_v22, %v9452_v12 }
 0x9ff   : > { %v9550_v51 = vmin.f32 %v9518_v20, 6.0  ;;  %v9488_v34 = vadd.f32 %v19133_v22, %v9451_v42  ;;  %v13550_v33 = vpop.f32.mrb[84].mxu1 }
 0xa00   : > { %9583 = vst.msk [vmem:[%s19144_s3 + $0x28] sm:$0xff] %vm1514_vm4, %v9551_v16  ;;  %v9521_v62 = vmax.f32 %v9489_v1, 0.0  ;;  %v9454_v63 = vmul.f32 %v13550_v33, %v19125_v52  ;;  %v9289_v5 = vpop.f32.mrb[85].mxu1 }
 0xa01   : > { %9582 = vst.msk [vmem:[%s19144_s3 + $0x20] sm:$0xff] %vm1514_vm4, %v9550_v51  ;;  %v19171_v55 = vpack.c.bf16 %v9551_v16, %v9550_v51  ;;  %v9520_v61 = vmax.f32 %v9488_v34, 0.0  ;;  %v9453_v18 = vmul.f32 %v19125_v52, %v9289_v5 }
 0xa02   : > { %v9553_v30 = vmin.f32 %v9521_v62, 6.0  ;;  %v9491_v3 = vadd.f32 %v19133_v22, %v9454_v63 }
 0xa03   : > { %v9552_v58 = vmin.f32 %v9520_v61, 6.0  ;;  %v9490_v38 = vadd.f32 %v19133_v22, %v9453_v18  ;;  %v13553_v6 = vpop.f32.mrb[86].mxu1 }
 0xa04   : > { %9585 = vst.msk [vmem:[%s19144_s3 + $0x38] sm:$0xff] %vm1514_vm4, %v9553_v30  ;;  %v9523_v21 = vmax.f32 %v9491_v3, 0.0  ;;  %v9456_v41 = vmul.f32 %v13553_v6, %v19125_v52  ;;  %v9299_v17 = vpop.f32.mrb[87].mxu1 }
 0xa05   : > { %9584 = vst.msk [vmem:[%s19144_s3 + $0x30] sm:$0xff] %vm1514_vm4, %v9552_v58  ;;  %v19181_v7 = vpack.c.bf16 %v9553_v30, %v9552_v58  ;;  %v9522_v39 = vmax.f32 %v9490_v38, 0.0  ;;  %v9455_v59 = vmul.f32 %v19125_v52, %v9299_v17 }
 0xa06   : > { %v9555_v25 = vmin.f32 %v9523_v21, 6.0  ;;  %v9493_v46 = vadd.f32 %v19133_v22, %v9456_v41 }
 0xa07   : > { %v9554_v19 = vmin.f32 %v9522_v39, 6.0  ;;  %v9492_v45 = vadd.f32 %v19133_v22, %v9455_v59  ;;  %v13556_v9 = vpop.f32.mrb[88].mxu1 }
 0xa08   : > { %9587 = vst.msk [vmem:[%s19144_s3 + $0x48] sm:$0xff] %vm1514_vm4, %v9555_v25  ;;  %v9525_v11 = vmax.f32 %v9493_v46, 0.0  ;;  %v9458_v49 = vmul.f32 %v13556_v9, %v19125_v52  ;;  %v9309_v24 = vpop.f32.mrb[89].mxu1 }
 0xa09   : > { %9586 = vst.msk [vmem:[%s19144_s3 + $0x40] sm:$0xff] %vm1514_vm4, %v9554_v19  ;;  %v19191_v23 = vpack.c.bf16 %v9555_v25, %v9554_v19  ;;  %v9524_v14 = vmax.f32 %v9492_v45, 0.0  ;;  %v9457_v8 = vmul.f32 %v19125_v52, %v9309_v24 }
 0xa0a   : > { %v9557_v43 = vmin.f32 %v9525_v11, 6.0  ;;  %v9495_v15 = vadd.f32 %v19133_v22, %v9458_v49 }
 0xa0b   : > { %v9556_v47 = vmin.f32 %v9524_v14, 6.0  ;;  %v9494_v44 = vadd.f32 %v19133_v22, %v9457_v8  ;;  %v13559_v60 = vpop.f32.mrb[90].mxu1 }
 0xa0c   : > { %9589 = vst.msk [vmem:[%s19144_s3 + $0x58] sm:$0xff] %vm1514_vm4, %v9557_v43  ;;  %v9527_v31 = vmax.f32 %v9495_v15, 0.0  ;;  %v9460_v27 = vmul.f32 %v13559_v60, %v19125_v52  ;;  %v9319_v40 = vpop.f32.mrb[91].mxu1 }
 0xa0d   : > { %9588 = vst.msk [vmem:[%s19144_s3 + $0x50] sm:$0xff] %vm1514_vm4, %v9556_v47  ;;  %v19201_v50 = vpack.c.bf16 %v9557_v43, %v9556_v47  ;;  %v9526_v26 = vmax.f32 %v9494_v44, 0.0  ;;  %v9459_v53 = vmul.f32 %v19125_v52, %v9319_v40 }
 0xa0e   : > { %v9559_v48 = vmin.f32 %v9527_v31, 6.0  ;;  %v9497_v36 = vadd.f32 %v19133_v22, %v9460_v27 }
 0xa0f   : > { %v9558_v28 = vmin.f32 %v9526_v26, 6.0  ;;  %v9496_v29 = vadd.f32 %v19133_v22, %v9459_v53  ;;  %v13562_v13 = vpop.f32.mrb[92].mxu1 }
 0xa10   : > { %9591 = vst.msk [vmem:[%s19144_s3 + $0x68] sm:$0xff] %vm1514_vm4, %v9559_v48  ;;  %v9529_v10 = vmax.f32 %v9497_v36, 0.0  ;;  %v9462_v2 = vmul.f32 %v13562_v13, %v19125_v52  ;;  %v9329_v4 = vpop.f32.mrb[93].mxu1 }
 0xa11   : > { %9590 = vst.msk [vmem:[%s19144_s3 + $0x60] sm:$0xff] %vm1514_vm4, %v9558_v28  ;;  %v19211_v54 = vpack.c.bf16 %v9559_v48, %v9558_v28  ;;  %v9528_v35 = vmax.f32 %v9496_v29, 0.0  ;;  %v9461_v0 = vmul.f32 %v19125_v52, %v9329_v4 }
 0xa12   : > { %v9561_v32 = vmin.f32 %v9529_v10, 6.0  ;;  %v9499_v12 = vadd.f32 %v19133_v22, %v9462_v2 }
 0xa13   : > { %v9560_v37 = vmin.f32 %v9528_v35, 6.0  ;;  %v9498_v20 = vadd.f32 %v19133_v22, %v9461_v0  ;;  %v13565_v42 = vpop.f32.mrb[94].mxu1 }
 0xa14   : > { %9593 = vst.msk [vmem:[%s19144_s3 + $0x78] sm:$0xff] %vm1514_vm4, %v9561_v32  ;;  %v9531_v16 = vmax.f32 %v9499_v12, 0.0  ;;  %v9464_v1 = vmul.f32 %v13565_v42, %v19125_v52  ;;  %v9339_v51 = vpop.f32.mrb[95].mxu1 }
 0xa15   : > { %9592 = vst.msk [vmem:[%s19144_s3 + $0x70] sm:$0xff] %vm1514_vm4, %v9560_v37  ;;  %v19221_v34 = vpack.c.bf16 %v9561_v32, %v9560_v37  ;;  %v9530_v33 = vmax.f32 %v9498_v20, 0.0  ;;  %v9463_v62 = vmul.f32 %v19125_v52, %v9339_v51 }
 0xa16   : > { %v9563_v63 = vmin.f32 %v9531_v16, 6.0  ;;  %v9501_v5 = vadd.f32 %v19133_v22, %v9464_v1 }
 0xa17   : > { %v9562_v61 = vmin.f32 %v9530_v33, 6.0  ;;  %v9500_v18 = vadd.f32 %v19133_v22, %v9463_v62  ;;  %v13568_v30 = vpop.f32.mrb[96].mxu1 }
 0xa18   : > { %9595 = vst.msk [vmem:[%s19144_s3 + $0x88] sm:$0xff] %vm1514_vm4, %v9563_v63  ;;  %v9533_v3 = vmax.f32 %v9501_v5, 0.0  ;;  %v9466_v58 = vmul.f32 %v13568_v30, %v19125_v52  ;;  %v9349_v38 = vpop.f32.mrb[97].mxu1 }
 0xa19   : > { %9594 = vst.msk [vmem:[%s19144_s3 + $0x80] sm:$0xff] %vm1514_vm4, %v9562_v61  ;;  %v9532_v6 = vmax.f32 %v9500_v18, 0.0  ;;  %v9465_v21 = vmul.f32 %v19125_v52, %v9349_v38  ;;  %v19232_v41 = vpack.c.bf16 %v9563_v63, %v9562_v61 }
 0xa1a   : > { %v9565_v17 = vmin.f32 %v9533_v3, 6.0  ;;  %v9503_v39 = vadd.f32 %v19133_v22, %v9466_v58 }
 0xa1b   : > { %v9564_v59 = vmin.f32 %v9532_v6, 6.0  ;;  %v9502_v25 = vadd.f32 %v19133_v22, %v9465_v21  ;;  %v13571_v46 = vpop.f32.mrb[98].mxu1  ;;  %13929 = vmatprep.subr.bf16.mxu0 %v19232_v41  ;;  %13961 = vmatprep.subr.bf16.mxu1 %v19232_v41 }
 0xa1c   : > { %9597 = vst.msk [vmem:[%s19144_s3 + $0x98] sm:$0xff] %vm1514_vm4, %v9565_v17  ;;  %v9535_v19 = vmax.f32 %v9503_v39, 0.0  ;;  %v9468_v45 = vmul.f32 %v13571_v46, %v19125_v52  ;;  %v9359_v9 = vpop.f32.mrb[99].mxu1  ;;  %13931 = vmatpush3.bf16.msra.mxu0 %v19151_v56  ;;  %13963 = vmatpush3.bf16.msra.mxu1 %v19151_v56 }
 0xa1d   : > { %9596 = vst.msk [vmem:[%s19144_s3 + $0x90] sm:$0xff] %vm1514_vm4, %v9564_v59  ;;  %v9534_v11 = vmax.f32 %v9502_v25, 0.0  ;;  %v9467_v49 = vmul.f32 %v19125_v52, %v9359_v9  ;;  %v19246_v24 = vpack.c.bf16 %v9565_v17, %v9564_v59 }
 0xa1e   : > { %v9567_v14 = vmin.f32 %v9535_v19, 6.0  ;;  %v9505_v8 = vadd.f32 %v19133_v22, %v9468_v45 }
 0xa1f   : > { %v9566_v43 = vmin.f32 %v9534_v11, 6.0  ;;  %v9504_v15 = vadd.f32 %v19133_v22, %v9467_v49  ;;  %v13574_v47 = vpop.f32.mrb[100].mxu1  ;;  %13933 = vmatprep.subr.bf16.mxu0 %v19246_v24  ;;  %13965 = vmatprep.subr.bf16.mxu1 %v19246_v24 }
 0xa20   : > { %9599 = vst.msk [vmem:[%s19144_s3 + $0xa8] sm:$0xff] %vm1514_vm4, %v9567_v14  ;;  %v9537_v44 = vmax.f32 %v9505_v8, 0.0  ;;  %v9470_v60 = vmul.f32 %v13574_v47, %v19125_v52  ;;  %v9369_v31 = vpop.f32.mrb[101].mxu1  ;;  %13935 = vmatpush3.bf16.msra.mxu0 %v19161_v57  ;;  %13967 = vmatpush3.bf16.msra.mxu1 %v19161_v57  ;;  %v9739_v8 = vld [vmem:[%s19609_s20] sm:$0xff]  ;;  %v9612_v47 = vld [vmem:[%s19608_s19 + $0x10] sm:$0xff] }
 0xa21   : > { %9598 = vst.msk [vmem:[%s19144_s3 + $0xa0] sm:$0xff] %vm1514_vm4, %v9566_v43  ;;  %v9536_v27 = vmax.f32 %v9504_v15, 0.0  ;;  %v9469_v40 = vmul.f32 %v19125_v52, %v9369_v31  ;;  %v19260_v26 = vpack.c.bf16 %v9567_v14, %v9566_v43  ;;  %v9610_v14 = vld [vmem:[%s19608_s19] sm:$0xff]  ;;  %v9613_v43 = vld [vmem:[%s19608_s19 + $0x18] sm:$0xff] }
 0xa22   : > { %v9569_v53 = vmin.f32 %v9537_v44, 6.0  ;;  %v9507_v48 = vadd.f32 %v19133_v22, %v9470_v60  ;;  %v9742_v15 = vld [vmem:[%s19609_s20 + $0x18] sm:$0xff]  ;;  %v9615_v44 = vld [vmem:[%s19608_s19 + $0x28] sm:$0xff]  ;;  %v9616_v60 = vld [vmem:[%s19608_s19 + $0x30] sm:$0xff] }
 0xa23   : > { %v9568_v36 = vmin.f32 %v9536_v27, 6.0  ;;  %v9506_v28 = vadd.f32 %v19133_v22, %v9469_v40  ;;  %v13577_v29 = vpop.f32.mrb[102].mxu1  ;;  %13937 = vmatprep.subr.bf16.mxu0 %v19260_v26  ;;  %13969 = vmatprep.subr.bf16.mxu1 %v19260_v26  ;;  %v9618_v31 = vld [vmem:[%s19608_s19 + $0x40] sm:$0xff]  ;;  %v9620_v27 = vld [vmem:[%s19608_s19 + $0x50] sm:$0xff]  ;;  %v9625_v40 = vld [vmem:[%s19608_s19 + $0x78] sm:$0xff] }
 0xa24   : > { %9601 = vst.msk [vmem:[%s19144_s3 + $0xb8] sm:$0xff] %vm1514_vm4, %v9569_v53  ;;  %v9539_v13 = vmax.f32 %v9507_v48, 0.0  ;;  %v9472_v10 = vmul.f32 %v13577_v29, %v19125_v52  ;;  %v9379_v2 = vpop.f32.mrb[103].mxu1  ;;  %13939 = vmatpush3.bf16.msra.mxu0 %v19171_v55  ;;  %13971 = vmatpush3.bf16.msra.mxu1 %v19171_v55 }
 0xa25   : > { %9600 = vst.msk [vmem:[%s19144_s3 + $0xb0] sm:$0xff] %vm1514_vm4, %v9568_v36  ;;  %v9538_v4 = vmax.f32 %v9506_v28, 0.0  ;;  %v9471_v35 = vmul.f32 %v19125_v52, %v9379_v2  ;;  %v19274_v0 = vpack.c.bf16 %v9569_v53, %v9568_v36 }
 0xa26   : > { %v9571_v32 = vmin.f32 %v9539_v13, 6.0  ;;  %v9509_v12 = vadd.f32 %v19133_v22, %v9472_v10 }
 0xa27   : > { %v9570_v37 = vmin.f32 %v9538_v4, 6.0  ;;  %v9508_v20 = vadd.f32 %v19133_v22, %v9471_v35  ;;  %v13580_v42 = vpop.f32.mrb[104].mxu1  ;;  %13941 = vmatprep.subr.bf16.mxu0 %v19274_v0  ;;  %13973 = vmatprep.subr.bf16.mxu1 %v19274_v0 }
 0xa28   : > { %9603 = vst.msk [vmem:[%s19144_s3 + $0xc8] sm:$0xff] %vm1514_vm4, %v9571_v32  ;;  %v9541_v16 = vmax.f32 %v9509_v12, 0.0  ;;  %v9474_v1 = vmul.f32 %v13580_v42, %v19125_v52  ;;  %v9389_v51 = vpop.f32.mrb[105].mxu1  ;;  %13943 = vmatpush3.bf16.msra.mxu0 %v19181_v7  ;;  %13975 = vmatpush3.bf16.msra.mxu1 %v19181_v7 }
 0xa29   : > { %9602 = vst.msk [vmem:[%s19144_s3 + $0xc0] sm:$0xff] %vm1514_vm4, %v9570_v37  ;;  %v9540_v33 = vmax.f32 %v9508_v20, 0.0  ;;  %v9473_v62 = vmul.f32 %v19125_v52, %v9389_v51  ;;  %v19288_v63 = vpack.c.bf16 %v9571_v32, %v9570_v37 }
 0xa2a   : > { %v9573_v5 = vmin.f32 %v9541_v16, 6.0  ;;  %v9511_v61 = vadd.f32 %v19133_v22, %v9474_v1 }
 0xa2b   : > { %v9572_v18 = vmin.f32 %v9540_v33, 6.0  ;;  %v9510_v30 = vadd.f32 %v19133_v22, %v9473_v62  ;;  %v13583_v3 = vpop.f32.mrb[106].mxu1  ;;  %13945 = vmatprep.subr.bf16.mxu0 %v19288_v63  ;;  %13977 = vmatprep.subr.bf16.mxu1 %v19288_v63 }
 0xa2c   : > { %9605 = vst.msk [vmem:[%s19144_s3 + $0xd8] sm:$0xff] %vm1514_vm4, %v9573_v5  ;;  %v9543_v58 = vmax.f32 %v9511_v61, 0.0  ;;  %v9476_v38 = vmul.f32 %v13583_v3, %v19125_v52  ;;  %v9399_v6 = vpop.f32.mrb[107].mxu1  ;;  %13947 = vmatpush3.bf16.msra.mxu0 %v19191_v23  ;;  %13979 = vmatpush3.bf16.msra.mxu1 %v19191_v23 }
 0xa2d   : > { %9604 = vst.msk [vmem:[%s19144_s3 + $0xd0] sm:$0xff] %vm1514_vm4, %v9572_v18  ;;  %v9542_v21 = vmax.f32 %v9510_v30, 0.0  ;;  %v9475_v17 = vmul.f32 %v19125_v52, %v9399_v6  ;;  %v19302_v39 = vpack.c.bf16 %v9573_v5, %v9572_v18 }
 0xa2e   : > { %v9575_v59 = vmin.f32 %v9543_v58, 6.0  ;;  %v9513_v25 = vadd.f32 %v19133_v22, %v9476_v38 }
 0xa2f   : > { %v9574_v46 = vmin.f32 %v9542_v21, 6.0  ;;  %v9512_v19 = vadd.f32 %v19133_v22, %v9475_v17  ;;  %13949 = vmatprep.subr.bf16.mxu0 %v19302_v39  ;;  %13981 = vmatprep.subr.bf16.mxu1 %v19302_v39 }
 0xa30   : > { %9607 = vst.msk [vmem:[%s19144_s3 + $0xe8] sm:$0xff] %vm1514_vm4, %v9575_v59  ;;  %v9545_v45 = vmax.f32 %v9513_v25, 0.0  ;;  %13951 = vmatpush3.bf16.msra.mxu0 %v19201_v50  ;;  %13983 = vmatpush3.bf16.msra.mxu1 %v19201_v50 }
 0xa31   : > { %9606 = vst.msk [vmem:[%s19144_s3 + $0xe0] sm:$0xff] %vm1514_vm4, %v9574_v46  ;;  %v9544_v52 = vmax.f32 %v9512_v19, 0.0  ;;  %v13952_v9 = vpack.c.bf16 %v9575_v59, %v9574_v46 }
 0xa32   : > { %v9577_v11 = vmin.f32 %v9545_v45, 6.0 }
 0xa33   : > { %v9576_v49 = vmin.f32 %v9544_v52, 6.0  ;;  %13953 = vmatprep.subr.bf16.mxu0 %v13952_v9  ;;  %13985 = vmatprep.subr.bf16.mxu1 %v13952_v9 }
 0xa34   : > { %9609 = vst.msk [vmem:[%s19144_s3 + $0xf8] sm:$0xff] %vm1514_vm4, %v9577_v11  ;;  %13955 = vmatpush3.bf16.msra.mxu0 %v19211_v54  ;;  %13987 = vmatpush3.bf16.msra.mxu1 %v19211_v54 }
 0xa35   : > { %9608 = vst.msk [vmem:[%s19144_s3 + $0xf0] sm:$0xff] %vm1514_vm4, %v9576_v49  ;;  %v13956_v22 = vpack.c.bf16 %v9577_v11, %v9576_v49 }
 0xa37   : > { %13957 = vmatprep.subr.bf16.mxu0 %v13956_v22  ;;  %13989 = vmatprep.subr.bf16.mxu1 %v13956_v22 }
 0xa38   : > { %13959 = vmatpush3.bf16.msra.mxu0 %v19221_v34  ;;  %13991 = vmatpush3.bf16.msra.mxu1 %v19221_v34 }
 0xa39   : > { %13993 = vmatprep.subr.bf16.mxu0 %v19232_v41  ;;  %v9741_v41 = vld [vmem:[%s19609_s20 + $0x10] sm:$0xff] }
 0xa3b   : > { %9691 = vmatmul.mubr.f32.vlgmr.msra.gmra.mrb[100].mxu0 %v9610_v14  ;;  %9808 = vmatmul.mubr.f32.vlgmr.msra.gmra.mrb[108].mxu1 %v9739_v8 }
 0xa3c   : > { %13995 = vmatpush3.bf16.msra.mxu0 %v19151_v56  ;;  %9695 = vmatprep.mubr.f32.mxu0 %v9613_v43  ;;  %v9614_v56 = vld [vmem:[%s19608_s19 + $0x20] sm:$0xff] }
 0xa3d   : > { %13997 = vmatprep.subr.bf16.mxu0 %v19246_v24  ;;  %9812 = vmatprep.mubr.f32.mxu1 %v9742_v15  ;;  %v9617_v24 = vld [vmem:[%s19608_s19 + $0x38] sm:$0xff] }
 0xa3f   : > { %9696 = vmatmul.mubr.f32.gmra.mrb[102].mxu0 %v9612_v47  ;;  %9813 = vmatmul.mubr.f32.gmra.mrb[110].mxu1 %v9741_v41 }
 0xa40   : > { %13999 = vmatpush3.bf16.msra.mxu0 %v19161_v57  ;;  %9700 = vmatprep.mubr.f32.mxu0 %v9615_v44  ;;  %v9619_v57 = vld [vmem:[%s19608_s19 + $0x48] sm:$0xff] }
 0xa41   : > { %14001 = vmatprep.subr.bf16.mxu0 %v19260_v26  ;;  %v9829_v26 = vld [vmem:[%s19610_s21] sm:$0xff] }
 0xa42   : > { %v9831_v53 = vcombine.high %v9829_v26, %v9829_v26 }
 0xa43   : > { %9701 = vmatmul.mubr.f32.gmra.mrb[104].mxu0 %v9614_v56 }
 0xa44   : > { %14003 = vmatpush3.bf16.msra.mxu0 %v19171_v55  ;;  %9705 = vmatprep.mubr.f32.mxu0 %v9617_v24  ;;  %v9621_v55 = vld [vmem:[%s19608_s19 + $0x58] sm:$0xff] }
 0xa45   : > { %14005 = vmatprep.subr.bf16.mxu0 %v19274_v0 }
 0xa47   : > { %9706 = vmatmul.mubr.f32.gmra.mrb[106].mxu0 %v9616_v60 }
 0xa48   : > { %14007 = vmatpush3.bf16.msra.mxu0 %v19181_v7  ;;  %9710 = vmatprep.mubr.f32.mxu0 %v9619_v57  ;;  %v9623_v7 = vld [vmem:[%s19608_s19 + $0x68] sm:$0xff] }
 0xa49   : > { %14009 = vmatprep.subr.bf16.mxu0 %v19288_v63 }
 0xa4b   : > { %9711 = vmatmul.mubr.f32.gmra.mrb[108].mxu0 %v9618_v31 }
 0xa4c   : > { %14011 = vmatpush3.bf16.msra.mxu0 %v19191_v23  ;;  %9715 = vmatprep.mubr.f32.mxu0 %v9621_v55  ;;  %v9622_v23 = vld [vmem:[%s19608_s19 + $0x60] sm:$0xff] }
 0xa4d   : > { %14013 = vmatprep.subr.bf16.mxu0 %v19302_v39 }
 0xa4f   : > { %9716 = vmatmul.mubr.f32.gmra.mrb[110].mxu0 %v9620_v27 }
 0xa50   : > { %14015 = vmatpush3.bf16.msra.mxu0 %v19201_v50  ;;  %9720 = vmatprep.mubr.f32.mxu0 %v9623_v7  ;;  %v9624_v50 = vld [vmem:[%s19608_s19 + $0x70] sm:$0xff] }
 0xa51   : > { %14017 = vmatprep.subr.bf16.mxu0 %v13952_v9 }
 0xa53   : > { %9721 = vmatmul.mubr.f32.gmra.mrb[112].mxu0 %v9622_v23 }
 0xa54   : > { %14019 = vmatpush3.bf16.msra.mxu0 %v19211_v54  ;;  %9725 = vmatprep.mubr.f32.mxu0 %v9625_v40 }
 0xa55   : > { %14021 = vmatprep.subr.bf16.mxu0 %v13956_v22 }
 0xa57   : > { %9726 = vmatmul.mubr.f32.gmra.mrb[114].mxu0 %v9624_v50 }
 0xa58   : > { %14023 = vmatpush3.bf16.msra.mxu0 %v19221_v34  ;;  %9897 = vmatprep.mubr.f32.mxu0 %v9831_v53 }
 0xa5b   : > { %9898 = vmatmul.mubr.f32.vlgmr.msra.gmra.mrb[116].mxu0 %v9829_v26 }
 0xa5c   : > { %14785 = shalt.err (!%p14782_p2)
}
 0xa5d   : > { %s14786_s3 = scalar_lea.hbm %s19397_s8, 4096  ;;  %s14790_s4 = scalar_lea.hbm %s20249_s27, 8192 }
 0xa5e   : > { %p14787_p3 = scmp.ne.s32.totalorder %s19397_s8, %s14786_s3  ;;  %p14791_p8 = scmp.lt.u32.totalorder %s19397_s8, %s20249_s27 }
 0xa5f   : > { %p14792_p11 = scmp.lt.u32.totalorder %s14790_s4, %s14786_s3  ;;  %p14794_p10 = scmp.lt.u32.totalorder %s14786_s3, %s19397_s8 }
 0xa60   : > { %p14788_p4 = pnand %p14787_p3, %p15120_p5 }
 0xa61   : > { %p14793_p9 = por %p14792_p11, %p14791_p8 }
 0xa62   : > { %p14789_p7 = pneg %p14788_p4 }
 0xa63   : > { %p14795_p12 = por %p14794_p10, %p14793_p9 }
 0xa65   : > { %p14796_p13 = pnand %p14795_p12, %p14789_p7 }
 0xa67   : > { %14799 = shalt.err (!%p14796_p13)
}
 0xa68   : > { %s19880_s28 = smov 128   ;;  %s19881_s1 = smov 8   ;;  %vm9824_vm10 = vcmask 519168  }
 0xa69   : > { %14542 = dma.vmem_to_hbm [thread:$0]  (%p15120_p5), %s19400_s26, 4096, %s19397_s8, %s9918_s9, %s19880_s28, %s19880_s28, %s19881_s1  }
 0xa6a   : > { %s10204_s30 = sshll.u32 %s19128_s22, 6  ;;  %s10205_s5 = sshll.u32 %s19128_s22, 4 }
 0xa6b   : > { %s19431_s3 = scalar_lea.vmem [#allocation6], %s10204_s30  ;;  %s19435_s0 = scalar_lea.vmem [#allocation8], %s10205_s5 }
 0xa6c   : > { %s9978_s8 = sshll.u32 %s19435_s0, 4  ;;  %s10206_s26 = sshll.u32 %s19128_s22, 2  ;;  %s19463_s8 = int_to_ptr.vmem [resolvable:$true] %s9978_s8 }
 0xa6d   : > { %s9922_s9 = sand.u32 1, %s15101_s7   ;;  %s11118_s24 = sshll.u32 %s15101_s7, 10 }
 0xa6e   : > { %s9962_s4 = sshll.u32 %s19431_s3, 4  ;;  %s11119_s25 = sshll.u32 %s15101_s7, 8  ;;  %s19470_s4 = int_to_ptr.vmem [resolvable:$true] %s9962_s4 }
 0xa6f   : > { %s20250_s5 = sld [smem:[#allocation117_spill]]  ;;  %s20251_s10 = sld [smem:[#allocation118_spill]] }
 0xa70   : > { %s19479_s12 = scalar_lea.vmem [#allocation9], %s10206_s26  ;;  %s19483_s30 = scalar_lea.sflag [#allocation7], %s9922_s9 }
 0xa71   : > { %s14800_s13 = scalar_lea.vmem %s19470_s4, 1024  ;;  %s14943_s1 = smov [#allocation6]  }
 0xa72   : > { %p14801_p0 = scmp.ne.s32.totalorder %s19470_s4, %s14800_s13 }
 0xa74   : > { %p14802_p1 = pnand %p14801_p0, %p15120_p5 }
 0xa75   : > { %s19468_s28 = scalar_lea.hbm %s20250_s5, %s11118_s24  ;;  %s19475_s11 = scalar_lea.hbm %s20251_s10, %s11119_s25 }
 0xa76   : > { %s11120_s24 = sshll.u32 %s15101_s7, 6  ;;  %p14803_p2 = pneg %p14802_p1 }
 0xa77   : > { %s14804_s25 = sshll.u32 %s14943_s1, 4  ;;  %s14805_s25 = int_to_ptr.vmem [resolvable:$false] %s14804_s25 }
 0xa78   : > { %p14807_p3 = scmp.lt.s32.totalorder %s19470_s4, %s14805_s25 }
 0xb0e   : > { %v12049_v54 = vpop.f32.mrb[100].mxu0  ;;  %v12105_v34 = vpop.f32.mrb[108].mxu1 }
 0xb0f   : > { %v12050_v48 = vpop.f32.mrb[101].mxu0  ;;  %v12106_v36 = vpop.f32.mrb[109].mxu1 }
 0xb10   : > { %v12051_v28 = vadd.f32 %v12050_v48, %v12049_v54  ;;  %v12107_v29 = vadd.f32 %v12106_v36, %v12105_v34 }
 0xb12   : > { %9731 = vst.msk [vmem:[%s19431_s3] sm:$0xff] %vm1514_vm4, %v12051_v28  ;;  %v12052_v13 = vpop.f32.mrb[102].mxu0  ;;  %v9820_v10 = vcombine.high %v12107_v29, %v12107_v29  ;;  %v12108_v2 = vpop.f32.mrb[110].mxu1 }
 0xb13   : > { %9825 = vst.msk [vmem:[%s19435_s0] sm:$0xf] %vm9824_vm10, %v12107_v29  ;;  %v12053_v4 = vpop.f32.mrb[103].mxu0  ;;  %v12109_v35 = vpop.f32.mrb[111].mxu1 }
 0xb14   : > { %v12054_v0 = vadd.f32 %v12053_v4, %v12052_v13  ;;  %9826 = vst.msk [vmem:[%s19435_s0 + $0x4] sm:$0xf] %vm9824_vm10, %v9820_v10  ;;  %v12110_v32 = vadd.f32 %v12109_v35, %v12108_v2 }
 0xb16   : > { %9732 = vst.msk [vmem:[%s19431_s3 + $0x8] sm:$0xff] %vm1514_vm4, %v12054_v0  ;;  %v12055_v12 = vpop.f32.mrb[104].mxu0  ;;  %v9821_v37 = vcombine.high %v12110_v32, %v12110_v32 }
 0xb17   : > { %9827 = vst.msk [vmem:[%s19435_s0 + $0x8] sm:$0xf] %vm9824_vm10, %v12110_v32  ;;  %v12056_v20 = vpop.f32.mrb[105].mxu0 }
 0xb18   : > { %v12057_v42 = vadd.f32 %v12056_v20, %v12055_v12  ;;  %9828 = vst.msk [vmem:[%s19435_s0 + $0xc] sm:$0xf] %vm9824_vm10, %v9821_v37  ;;  %s14806_s0 = scalar_lea.vmem %s14805_s25, 2048 }
 0xb19   : > { %p14808_p4 = scmp.lt.s32.totalorder %s14806_s0, %s14800_s13 }
 0xb1a   : > { %9733 = vst.msk [vmem:[%s19431_s3 + $0x10] sm:$0xff] %vm1514_vm4, %v12057_v42  ;;  %v12058_v16 = vpop.f32.mrb[106].mxu0 }
 0xb1b   : > { %v12059_v1 = vpop.f32.mrb[107].mxu0  ;;  %p14809_p7 = por %p14808_p4, %p14807_p3 }
 0xb1c   : > { %v12060_v51 = vadd.f32 %v12059_v1, %v12058_v16 }
 0xb1d   : > { %p14810_p8 = pnand %p14809_p7, %p14803_p2 }
 0xb1e   : > { %9734 = vst.msk [vmem:[%s19431_s3 + $0x18] sm:$0xff] %vm1514_vm4, %v12060_v51  ;;  %v12061_v33 = vpop.f32.mrb[108].mxu0 }
 0xb1f   : > { %v12062_v62 = vpop.f32.mrb[109].mxu0 }
 0xb20   : > { %v12063_v63 = vadd.f32 %v12062_v62, %v12061_v33 }
 0xb22   : > { %9735 = vst.msk [vmem:[%s19431_s3 + $0x20] sm:$0xff] %vm1514_vm4, %v12063_v63  ;;  %v12064_v5 = vpop.f32.mrb[110].mxu0 }
 0xb23   : > { %v12065_v61 = vpop.f32.mrb[111].mxu0 }
 0xb24   : > { %v12066_v18 = vadd.f32 %v12065_v61, %v12064_v5 }
 0xb26   : > { %9736 = vst.msk [vmem:[%s19431_s3 + $0x28] sm:$0xff] %vm1514_vm4, %v12066_v18  ;;  %v12067_v30 = vpop.f32.mrb[112].mxu0 }
 0xb27   : > { %v12068_v3 = vpop.f32.mrb[113].mxu0 }
 0xb28   : > { %v12069_v58 = vadd.f32 %v12068_v3, %v12067_v30 }
 0xb2a   : > { %9737 = vst.msk [vmem:[%s19431_s3 + $0x30] sm:$0xff] %vm1514_vm4, %v12069_v58  ;;  %v12070_v38 = vpop.f32.mrb[114].mxu0 }
 0xb2b   : > { %v12071_v6 = vpop.f32.mrb[115].mxu0 }
 0xb2c   : > { %v12072_v21 = vadd.f32 %v12071_v6, %v12070_v38 }
 0xb2e   : > { %9738 = vst.msk [vmem:[%s19431_s3 + $0x38] sm:$0xff] %vm1514_vm4, %v12072_v21  ;;  %v12143_v17 = vpop.f32.mrb[116].mxu0 }
 0xb2f   : > { %v12144_v39 = vpop.f32.mrb[117].mxu0 }
 0xb30   : > { %14813 = shalt.err (!%p14810_p8)
}
 0xb31   : > { %s14814_s3 = scalar_lea.hbm %s19468_s28, 1024  ;;  %s14818_s1 = scalar_lea.hbm %s20250_s5, 2048 }
 0xb32   : > { %p14815_p11 = scmp.ne.s32.totalorder %s19468_s28, %s14814_s3  ;;  %p14819_p12 = scmp.lt.u32.totalorder %s19468_s28, %s20250_s5 }
 0xb33   : > { %p14820_p13 = scmp.lt.u32.totalorder %s14818_s1, %s14814_s3  ;;  %p14822_p1 = scmp.lt.u32.totalorder %s14814_s3, %s19468_s28 }
 0xb34   : > { %p14816_p9 = pnand %p14815_p11, %p15120_p5 }
 0xb35   : > { %p14821_p0 = por %p14820_p13, %p14819_p12 }
 0xb36   : > { %p14817_p10 = pneg %p14816_p9 }
 0xb37   : > { %p14823_p2 = por %p14822_p1, %p14821_p0 }
 0xb39   : > { %p14824_p3 = pnand %p14823_p2, %p14817_p10 }
 0xb3b   : > { %14827 = shalt.err (!%p14824_p3)
}
 0xb3c   : > { %s20252_s13 = smov 8   ;;  %s20253_s0 = smov 128   ;;  %v12145_v59 = vadd.f32 %v12144_v39, %v12143_v17 }
 0xb3d   : > { %14543 = dma.vmem_to_hbm [thread:$0]  (%p15120_p5), %s19470_s4, 1024, %s19468_s28, %s19483_s30, %s20253_s0, %s20253_s0, %s20252_s13  }
 0xb3e   : > { %s14828_s29 = scalar_lea.vmem %s19463_s8, 256  ;;  %s14944_s3 = smov [#allocation8]  }
 0xb3f   : > { %p14829_p4 = scmp.ne.s32.totalorder %s19463_s8, %s14828_s29  ;;  %s14832_s26 = sshll.u32 %s14944_s3, 4  ;;  %s14833_s26 = int_to_ptr.vmem [resolvable:$false] %s14832_s26 }
 0xb40   : > { %s14834_s9 = scalar_lea.vmem %s14833_s26, 512  ;;  %p14835_p11 = scmp.lt.s32.totalorder %s19463_s8, %s14833_s26 }
 0xb41   : > { %p14830_p7 = pnand %p14829_p4, %p15120_p5  ;;  %p14836_p9 = scmp.lt.s32.totalorder %s14834_s9, %s14828_s29 }
 0xb43   : > { %p14831_p8 = pneg %p14830_p7  ;;  %p14837_p10 = por %p14836_p9, %p14835_p11 }
 0xb45   : > { %p14838_p12 = pnand %p14837_p10, %p14831_p8 }
 0xb47   : > { %14841 = shalt.err (!%p14838_p12)
}
 0xb48   : > { %s14842_s28 = scalar_lea.hbm %s19475_s11, 256  ;;  %s14846_s25 = scalar_lea.hbm %s20251_s10, 512 }
 0xb49   : > { %p14843_p13 = scmp.ne.s32.totalorder %s19475_s11, %s14842_s28  ;;  %p14847_p2 = scmp.lt.u32.totalorder %s19475_s11, %s20251_s10 }
 0xb4a   : > { %p14848_p3 = scmp.lt.u32.totalorder %s14846_s25, %s14842_s28  ;;  %p14850_p7 = scmp.lt.u32.totalorder %s14842_s28, %s19475_s11 }
 0xb4b   : > { %p14844_p0 = pnand %p14843_p13, %p15120_p5 }
 0xb4c   : > { %p14849_p4 = por %p14848_p3, %p14847_p2 }
 0xb4d   : > { %p14845_p1 = pneg %p14844_p0 }
 0xb4e   : > { %p14851_p8 = por %p14850_p7, %p14849_p4 }
 0xb50   : > { %p14852_p11 = pnand %p14851_p8, %p14845_p1 }
 0xb52   : > { %14855 = shalt.err (!%p14852_p11)
}
 0xb53   : > { %s14945_s29 = smov 64   ;;  %s14946_s3 = smov 4   ;;  %vm9914_vm11 = vcmask 517120   ;;  %v20254_v25 = vld [vmem:[#allocation22_spill] sm:$0xff] }
 0xb54   : > { %14544 = dma.vmem_to_hbm [thread:$0]  (%p15120_p5), %s19463_s8, 256, %s19475_s11, %s19483_s30, %s14945_s29, %s14945_s29, %s14946_s3   ;;  %v9910_v46 = vrot.slane %v12145_v59, %v20254_v25 }
 0xb55   : > { %s20255_s28 = sld [smem:[#allocation119_spill]]  ;;  %s20256_s1 = sshll.u32 %s19479_s12, 4  ;;  %s19542_s1 = int_to_ptr.vmem [resolvable:$true] %s20256_s1 }
 0xb56   : > { %v9911_v19 = vcombine.high %v9910_v46, %v9910_v46  ;;  %9915 = vst.msk [vmem:[%s19479_s12] sm:$0x3] %vm9914_vm11, %v9910_v46  ;;  %s9933_s25 = scalar_lea.sflag [#allocation10], %s19128_s22  ;;  %s14856_s11 = scalar_lea.vmem %s19542_s1, 64 }
 0xb57   : > { %p14857_p9 = scmp.ne.s32.totalorder %s19542_s1, %s14856_s11  ;;  %s14947_s7 = smov [#allocation9]  }
 0xb58   : > { %9916 = vst.msk [vmem:[%s19479_s12 + $0x2] sm:$0x3] %vm9914_vm11, %v9911_v19  ;;  %s14860_s8 = sshll.u32 %s14947_s7, 4  ;;  %s14861_s8 = int_to_ptr.vmem [resolvable:$false] %s14860_s8 }
 0xb59   : > { %p14858_p10 = pnand %p14857_p9, %p15120_p5  ;;  %p14863_p13 = scmp.lt.s32.totalorder %s19542_s1, %s14861_s8 }
 0xb5b   : > { %s19538_s4 = scalar_lea.hbm %s20255_s28, %s11120_s24  ;;  %p14859_p12 = pneg %p14858_p10 }
 0xb5c   : > { %s14862_s24 = scalar_lea.vmem %s14861_s8, 128 }
 0xb5d   : > { %p14864_p0 = scmp.lt.s32.totalorder %s14862_s24, %s14856_s11 }
 0xb5f   : > { %p14865_p1 = por %p14864_p0, %p14863_p13 }
 0xb61   : > { %p14866_p2 = pnand %p14865_p1, %p14859_p12 }
 0xb63   : > { %14869 = shalt.err (!%p14866_p2)
}
 0xb64   : > { %s14870_s12 = scalar_lea.hbm %s19538_s4, 64  ;;  %s14874_s0 = scalar_lea.hbm %s20255_s28, 128 }
 0xb65   : > { %p14871_p3 = scmp.ne.s32.totalorder %s19538_s4, %s14870_s12  ;;  %p14875_p8 = scmp.lt.u32.totalorder %s19538_s4, %s20255_s28 }
 0xb66   : > { %p14876_p11 = scmp.lt.u32.totalorder %s14874_s0, %s14870_s12  ;;  %p14878_p10 = scmp.lt.u32.totalorder %s14870_s12, %s19538_s4 }
 0xb67   : > { %p14872_p4 = pnand %p14871_p3, %p15120_p5 }
 0xb68   : > { %p14877_p9 = por %p14876_p11, %p14875_p8 }
 0xb69   : > { %p14873_p7 = pneg %p14872_p4 }
 0xb6a   : > { %p14879_p12 = por %p14878_p10, %p14877_p9 }
 0xb6c   : > { %p14880_p13 = pnand %p14879_p12, %p14873_p7 }
 0xb6e   : > { %14883 = shalt.err (!%p14880_p13)
}
 0xb6f   : > { %s14948_s26 = smov 32   ;;  %s14949_s9 = smov 2  }
 0xb70   : > { %14545 = dma.vmem_to_hbm [thread:$0]  (%p15120_p5), %s19542_s1, 64, %s19538_s4, %s9933_s25, %s14948_s26, %s14948_s26, %s14949_s9  }
 0xb71 PF: > { %s20257_s11 = sld [smem:[#allocation17_spill]]  ;;  %s20258_s7 = sld [smem:[#allocation15_spill]] }
 0xb77   : > { %p14569_p0 = scmp.ge.s32.totalorder %s20257_s11, 2  ;;  %s10009_s24 = sand.u32 1, %s20258_s7  }
 0xb78   : > { %s10010_s12 = scalar_lea.sflag [#allocation3], %s10009_s24 }
 0xb79   : > { %p14555_p1 = pnand %p14569_p0, %p15124_p6 }
 0xb7b   : > { %14905 = dma.done.wait (!%p14555_p1), %s10010_s12, 4096  }
 0xb7c   : > { %14907 = vsyncadd (!%p14555_p1), %s10010_s12, 4294963200  ;;  %s20260_s30 = sadd.s32 4294967294, %s20257_s11  }
 0xb7d   : > { %s10018_s13 = sand.u32 1, %s20260_s30  }
 0xb7e   : > { %s10019_s0 = scalar_lea.sflag [#allocation7], %s10018_s13 }
 0xb7f   : > { %14909 = dma.done.wait (!%p14555_p1), %s10019_s0, 1280  }
 0xb80   : > { %14911 = vsyncadd (!%p14555_p1), %s10019_s0, 4294966016  ;;  %s10037_s6 = scalar_lea.sflag [#allocation10], %s10009_s24 }
 0xb81   : > { %14913 = dma.done.wait (!%p14555_p1), %s10037_s6, 64  }
 0xb82   : > { %14915 = vsyncadd (!%p14555_p1), %s10037_s6, 4294967232  ;;  %s20261_s30 = sld [smem:[#allocation18_spill]]  ;;  %s20262_s22 = sld [smem:[#allocation16_spill]] }
 0xb83   : > { %s20263_s6 = sld [smem:[#allocation19_spill]]  ;;  %s20264_s29 = smov %s14922_s2 }
 0xb88   : > { %p43_p5 = scmp.ge.s32.totalorder %s20261_s30, 4   ;;  %s20265_s2 = smov %s20262_s22 }
 0xb8a   :  { %45 = sbr.rel (!%p43_p5) target bundleno = 27 (0x1b), region = 222 }
 0xb91   :  { %10042 = vsyncpa [#allocation3], 1 }
 0xb92   :  { %10044 = vsyncpa [#allocation3 + $0x1], 1 }
 0xb93   :  { %10045 = vsyncpa [#allocation7], 1 }
 0xb94   :  { %10047 = vsyncpa [#allocation7 + $0x1], 1 }
 0xb95   :  { %10048 = vsyncpa [#allocation10], 1 }
 0xb96   :  { %10050 = vsyncpa [#allocation10 + $0x1], 1 }
 0xb97   :  { %10051 = vsyncpa [#allocation4], 1 }
 0xb98   :  { %10053 = vsyncpa [#allocation4 + $0x1], 1 }

</bundles_post_ra>
